<compile_context>
chip_gen: v6e
topology: v6e:2x2x1
jax: 0.10.0
libtpu: 0.0.40
codegen_flags: <defaults>
</compile_context>

<pallas_src>
import jax
import jax.numpy as jnp
from jax import lax
from jax.experimental import pallas as pl
from jax.experimental.pallas import tpu as pltpu


def _round_up(a, b):
    return (a + b - 1) // b * b


# ----------------------------- Pallas kernels --------------------------------

def _conv_pool_kernel(w_ref, b_ref, p_ref, o_ref):
    """Fused conv-as-GEMM + bias + ReLU + 2x2 max-pool.

    w_ref: (Cout, K)       bf16   K = Cin*kh*kw
    b_ref: (Cout, 1)       f32
    p_ref: (4, K, tile_m)  bf16   axis 0 = pool phase (sh*2 + sw)
    o_ref: (Cout, tile_m)  f32    columns = flattened (n, ph, pw)
    """
    w = w_ref[...]
    acc = jnp.dot(w, p_ref[0], preferred_element_type=jnp.float32)
    for phase in range(1, 4):
        acc = jnp.maximum(
            acc, jnp.dot(w, p_ref[phase], preferred_element_type=jnp.float32))
    # relu(max(conv) + b) == maxpool(relu(conv + b)) since b is per-channel.
    o_ref[...] = jnp.maximum(acc + b_ref[...], 0.0).astype(o_ref.dtype)


def _mlp_kernel(x_ref, w1_ref, b1_ref, w2_ref, b2_ref, w3_ref, b3_ref, o_ref):
    """fc1+ReLU -> fc2+ReLU -> fc3, all weights VMEM-resident (grid-less)."""
    h = x_ref[...].astype(jnp.bfloat16)
    h = jnp.dot(h, w1_ref[...], preferred_element_type=jnp.float32) + b1_ref[...]
    h = jnp.maximum(h, 0.0).astype(jnp.bfloat16)
    h = jnp.dot(h, w2_ref[...], preferred_element_type=jnp.float32) + b2_ref[...]
    h = jnp.maximum(h, 0.0).astype(jnp.bfloat16)
    o_ref[...] = (jnp.dot(h, w3_ref[...], preferred_element_type=jnp.float32)
                  + b3_ref[...]).astype(o_ref.dtype)


# ----------------------------- wrappers ---------------------------------------

def _im2col_pooled(x, k):
    """x: (N, C, H, W) -> patches (4, C*k*k, N*PH*PW).

    patches[sh*2+sw, ci*k*k + kh*k + kw, (n*PH + ph)*PW + pw]
        == x[n, ci, 2*ph + sh + kh, 2*pw + sw + kw]
    i.e. one (K, M) patch matrix per 2x2 pool phase, so the conv GEMM result
    can be max-reduced over the leading phase axis to give the pooled output.
    """
    N, C, H, W = x.shape
    OH, OW = H - k + 1, W - k + 1
    PH, PW = OH // 2, OW // 2
    cols = []
    for kh in range(k):
        for kw in range(k):
            s = x[:, :, kh:kh + OH, kw:kw + OW]          # (N, C, OH, OW)
            s = s.reshape(N, C, PH, 2, PW, 2)
            s = s.transpose(3, 5, 1, 0, 2, 4)            # (sh, sw, C, N, PH, PW)
            cols.append(s.reshape(4, C, N * PH * PW))
    p = jnp.stack(cols, axis=2)                          # (4, C, k*k, M)
    return p.reshape(4, C * k * k, N * PH * PW)


def conv_relu_pool_pallas(x, w, b, *, tile_m=2048):
    """Conv2d(stride 1, VALID) + ReLU + 2x2/2 max-pool, fused in one kernel.

    x: (N, Cin, H, W) f32, w: (Cout, Cin, k, k) torch OIHW, b: (Cout,).
    Returns (N, Cout, (H-k+1)//2, (W-k+1)//2) f32.
    """
    N, Cin, H, W = x.shape
    Cout, Cin2, k, k2 = w.shape
    assert Cin == Cin2 and k == k2
    OH, OW = H - k + 1, W - k + 1
    assert OH % 2 == 0 and OW % 2 == 0, "2x2/2 pool needs even conv output"
    PH, PW = OH // 2, OW // 2
    M = N * PH * PW
    K = Cin * k * k

    patches = _im2col_pooled(x.astype(jnp.bfloat16), k)   # (4, K, M) bf16
    wm = w.reshape(Cout, K).astype(jnp.bfloat16)           # (Cout, K)
    bm = b.reshape(Cout, 1).astype(jnp.float32)

    # Large lane-dense tiles; keep >=2 grid steps so v7x can megacore-shard.
    tm = min(tile_m, _round_up(pl.cdiv(M, 2), 128))
    grid = (pl.cdiv(M, tm),)

    out = pl.pallas_call(
        _conv_pool_kernel,
        out_shape=jax.ShapeDtypeStruct((Cout, M), jnp.float32),
        grid=grid,
        in_specs=[
            pl.BlockSpec((Cout, K), lambda j: (0, 0)),
            pl.BlockSpec((Cout, 1), lambda j: (0, 0)),
            pl.BlockSpec((4, K, tm), lambda j: (0, 0, j)),
        ],
        out_specs=pl.BlockSpec((Cout, tm), lambda j: (0, j)),
        compiler_params=pltpu.CompilerParams(
            dimension_semantics=("parallel",)),
    )(wm, bm, patches)

    # (Cout, N*PH*PW) -> (N, Cout, PH, PW); tiny (<1 MB) host transpose.
    return out.reshape(Cout, N, PH, PW).transpose(1, 0, 2, 3)


def mlp_pallas(x, w1, b1, w2, b2, w3, b3):
    """x: (B, 13456) f32; w_i pre-transposed (K, N) bf16; b_i (N,) f32."""
    B = x.shape[0]
    return pl.pallas_call(
        _mlp_kernel,
        out_shape=jax.ShapeDtypeStruct((B, w3.shape[1]), jnp.float32),
    )(x, w1, b1.reshape(1, -1), w2, b2.reshape(1, -1), w3, b3.reshape(1, -1))


def prepare_params(params):
    """One-time (outside jit) prep: pre-transpose + bf16-cast the FC weights."""
    (w1, b1, w2, b2, f1w, f1b, f2w, f2b, f3w, f3b) = params
    return (w1, b1, w2, b2,
            jnp.asarray(f1w.T, jnp.bfloat16), f1b,
            jnp.asarray(f2w.T, jnp.bfloat16), f2b,
            jnp.asarray(f3w.T, jnp.bfloat16), f3b)


def lenet_forward(x, kparams):
    (w1, b1, w2, b2, f1wt, f1b, f2wt, f2b, f3wt, f3b) = kparams
    y = conv_relu_pool_pallas(x, w1, b1)        # conv1+ReLU+pool -> (N, 6, 62, 62)
    y = conv_relu_pool_pallas(y, w2, b2)        # conv2+ReLU+pool -> (N, 16, 29, 29)
    y = y.reshape(y.shape[0], -1)               # (N, 13456), torch .view order
    return mlp_pallas(y, f1wt, f1b, f2wt, f2b, f3wt, f3b)


# --------------------------- reference (pure JAX) -----------------------------

def reference_forward(x, params):
    (w1, b1, w2, b2, f1w, f1b, f2w, f2b, f3w, f3b) = params
    dn = ('NCHW', 'OIHW', 'NCHW')
    hp = lax.Precision.HIGHEST
    y = lax.conv_general_dilated(x, w1, (1, 1), 'VALID',
                                 dimension_numbers=dn, precision=hp)
    y = jnp.maximum(y + b1[None, :, None, None], 0.0)
    y = lax.reduce_window(y, -jnp.inf, lax.max, (1, 1, 2, 2), (1, 1, 2, 2), 'VALID')
    y = lax.conv_general_dilated(y, w2, (1, 1), 'VALID',
                                 dimension_numbers=dn, precision=hp)
    y = jnp.maximum(y + b2[None, :, None, None], 0.0)
    y = lax.reduce_window(y, -jnp.inf, lax.max, (1, 1, 2, 2), (1, 1, 2, 2), 'VALID')
    y = y.reshape(y.shape[0], -1)
    y = jnp.maximum(jnp.dot(y, f1w.T, precision=hp) + f1b, 0.0)
    y = jnp.maximum(jnp.dot(y, f2w.T, precision=hp) + f2b, 0.0)
    return jnp.dot(y, f3w.T, precision=hp) + f3b


# --------------------------- main ---------------------------------------------

if __name__ == "__main__":
    num_classes = 10
    config = {'batch': 2, 'norm': 0, 'dropout': False, 'activation': 'relu',
              'norm_type': 'BN', 'dropout_rate': 0.0}

    key = jax.random.PRNGKey(0)
    ks = jax.random.split(key, 11)

    def winit(k, shape, fan_in):
        return (jax.random.normal(k, shape, jnp.float32)
                / jnp.sqrt(jnp.float32(fan_in)))

    w1 = winit(ks[0], (6, 3, 5, 5), 3 * 25)
    b1 = winit(ks[1], (6,), 3 * 25)
    w2 = winit(ks[2], (16, 6, 5, 5), 6 * 25)
    b2 = winit(ks[3], (16,), 6 * 25)
    f1w = winit(ks[4], (120, 13456), 13456)
    f1b = winit(ks[5], (120,), 13456)
    f2w = winit(ks[6], (84, 120), 120)
    f2b = winit(ks[7], (84,), 120)
    f3w = winit(ks[8], (num_classes, 84), 84)
    f3b = winit(ks[9], (num_classes,), 84)
    params = (w1, b1, w2, b2, f1w, f1b, f2w, f2b, f3w, f3b)
    kparams = prepare_params(params)

    # fc1 in_features = 13456 = 16*29*29 forces a 128x128 spatial input.
    x = jax.random.normal(ks[10], (config['batch'], 3, 128, 128), jnp.float32)

    out = jax.block_until_ready(jax.jit(lenet_forward)(x, kparams))
    assert out.shape == (config['batch'], num_classes)

    ref = reference_forward(x, params)
    err = float(jnp.max(jnp.abs(out - ref)))
    # 2e-2 tolerance: intentional single-pass bf16 (f32 accumulate) matmuls
    # vs. the f32 HIGHEST-precision reference (per performance review).
    if not bool(jnp.allclose(out, ref, rtol=2e-2, atol=2e-2)):
        raise SystemExit("mismatch vs reference: max abs err = %g" % err)
    print("KERNEL_OK")
</pallas_src>

<mosaic_0001>
module attributes {stable_mosaic.version = 11 : i64} {
  func.func @_conv_pool_kernel(%arg0: i32, %arg1: memref<6x75xbf16, #tpu.memory_space<vmem>>, %arg2: memref<6x1xf32, #tpu.memory_space<vmem>>, %arg3: memref<4x75x2048xbf16, #tpu.memory_space<vmem>>, %arg4: memref<6x2048xf32, #tpu.memory_space<vmem>>) attributes {dimension_semantics = [#tpu.dimension_semantics<parallel>], iteration_bounds = array<i64: 4>, scalar_prefetch = 0 : i64, scratch_operands = 0 : i64, tpu.core_type = #tpu.core_type<tc>, window_params = [{pipeline_mode = #tpu.pipeline_mode<synchronous>, transform_indices = @transform_0, window_bounds = array<i64: 6, 75>}, {pipeline_mode = #tpu.pipeline_mode<synchronous>, transform_indices = @transform_1, window_bounds = array<i64: 6, 1>}, {transform_indices = @transform_2, window_bounds = array<i64: 4, 75, 2048>}, {transform_indices = @transform_3, window_bounds = array<i64: 6, 2048>}]} {
    %c0 = arith.constant 0 : index
    %c0_0 = arith.constant 0 : index
    %0 = vector.load %arg1[%c0, %c0_0] : memref<6x75xbf16, #tpu.memory_space<vmem>>, vector<6x75xbf16>
    %c0_1 = arith.constant 0 : index
    %c0_2 = arith.constant 0 : index
    %c0_3 = arith.constant 0 : index
    %1 = vector.load %arg3[%c0_1, %c0_2, %c0_3] : memref<4x75x2048xbf16, #tpu.memory_space<vmem>>, vector<1x75x2048xbf16>
    %2 = vector.shape_cast %1 : vector<1x75x2048xbf16> to vector<75x2048xbf16>
    %cst = arith.constant dense<0.000000e+00> : vector<6x2048xf32>
    %3 = tpu.matmul %0, %2, %cst {dimension_numbers = #tpu.dot_dimension_numbers<[1], [0], [0], [1], [0, 0, 1, 1], [], []>} : vector<6x75xbf16>, vector<75x2048xbf16>, vector<6x2048xf32> -> vector<6x2048xf32>
    %c1 = arith.constant 1 : index
    %c0_4 = arith.constant 0 : index
    %c0_5 = arith.constant 0 : index
    %4 = vector.load %arg3[%c1, %c0_4, %c0_5] : memref<4x75x2048xbf16, #tpu.memory_space<vmem>>, vector<1x75x2048xbf16>
    %5 = vector.shape_cast %4 : vector<1x75x2048xbf16> to vector<75x2048xbf16>
    %cst_6 = arith.constant dense<0.000000e+00> : vector<6x2048xf32>
    %6 = tpu.matmul %0, %5, %cst_6 {dimension_numbers = #tpu.dot_dimension_numbers<[1], [0], [0], [1], [0, 0, 1, 1], [], []>} : vector<6x75xbf16>, vector<75x2048xbf16>, vector<6x2048xf32> -> vector<6x2048xf32>
    %7 = arith.maximumf %3, %6 : vector<6x2048xf32>
    %c2 = arith.constant 2 : index
    %c0_7 = arith.constant 0 : index
    %c0_8 = arith.constant 0 : index
    %8 = vector.load %arg3[%c2, %c0_7, %c0_8] : memref<4x75x2048xbf16, #tpu.memory_space<vmem>>, vector<1x75x2048xbf16>
    %9 = vector.shape_cast %8 : vector<1x75x2048xbf16> to vector<75x2048xbf16>
    %cst_9 = arith.constant dense<0.000000e+00> : vector<6x2048xf32>
    %10 = tpu.matmul %0, %9, %cst_9 {dimension_numbers = #tpu.dot_dimension_numbers<[1], [0], [0], [1], [0, 0, 1, 1], [], []>} : vector<6x75xbf16>, vector<75x2048xbf16>, vector<6x2048xf32> -> vector<6x2048xf32>
    %11 = arith.maximumf %7, %10 : vector<6x2048xf32>
    %c3 = arith.constant 3 : index
    %c0_10 = arith.constant 0 : index
    %c0_11 = arith.constant 0 : index
    %12 = vector.load %arg3[%c3, %c0_10, %c0_11] : memref<4x75x2048xbf16, #tpu.memory_space<vmem>>, vector<1x75x2048xbf16>
    %13 = vector.shape_cast %12 : vector<1x75x2048xbf16> to vector<75x2048xbf16>
    %cst_12 = arith.constant dense<0.000000e+00> : vector<6x2048xf32>
    %14 = tpu.matmul %0, %13, %cst_12 {dimension_numbers = #tpu.dot_dimension_numbers<[1], [0], [0], [1], [0, 0, 1, 1], [], []>} : vector<6x75xbf16>, vector<75x2048xbf16>, vector<6x2048xf32> -> vector<6x2048xf32>
    %15 = arith.maximumf %11, %14 : vector<6x2048xf32>
    %c0_13 = arith.constant 0 : index
    %c0_14 = arith.constant 0 : index
    %16 = vector.load %arg2[%c0_13, %c0_14] : memref<6x1xf32, #tpu.memory_space<vmem>>, vector<6x1xf32>
    %17 = vector.broadcast %16 : vector<6x1xf32> to vector<6x2048xf32>
    %18 = arith.addf %15, %17 : vector<6x2048xf32>
    %cst_15 = arith.constant 0.000000e+00 : f32
    %19 = vector.broadcast %cst_15 : f32 to vector<6x2048xf32>
    %20 = arith.maximumf %18, %19 : vector<6x2048xf32>
    %c0_16 = arith.constant 0 : index
    %c0_17 = arith.constant 0 : index
    %21 = vector.load %arg4[%c0_16, %c0_17] : memref<6x2048xf32, #tpu.memory_space<vmem>>, vector<6x2048xf32>
    tpu.vector_store %arg4[%c0_16, %c0_17], %20 {strides = array<i32>} : memref<6x2048xf32, #tpu.memory_space<vmem>>, vector<6x2048xf32>,
    return
  }
  func.func @transform_0(%arg0: i32) -> (i32, i32) {
    %c0_i32 = arith.constant 0 : i32
    %c0_i32_0 = arith.constant 0 : i32
    %c0_i32_1 = arith.constant 0 : i32
    return %c0_i32, %c0_i32_0 : i32, i32
  }
  func.func @transform_1(%arg0: i32) -> (i32, i32) {
    %c0_i32 = arith.constant 0 : i32
    %c0_i32_0 = arith.constant 0 : i32
    %c0_i32_1 = arith.constant 0 : i32
    return %c0_i32, %c0_i32_0 : i32, i32
  }
  func.func @transform_2(%arg0: i32) -> (i32, i32, i32) {
    %c0_i32 = arith.constant 0 : i32
    %c0_i32_0 = arith.constant 0 : i32
    %c0_i32_1 = arith.constant 0 : i32
    return %c0_i32, %c0_i32_0, %arg0 : i32, i32, i32
  }
  func.func @transform_3(%arg0: i32) -> (i32, i32) {
    %c0_i32 = arith.constant 0 : i32
    %c0_i32_0 = arith.constant 0 : i32
    return %c0_i32, %arg0 : i32, i32
  }
}

module attributes {stable_mosaic.version = 11 : i64} {
  func.func @_conv_pool_kernel(%arg0: i32, %arg1: memref<16x150xbf16, #tpu.memory_space<vmem>>, %arg2: memref<16x1xf32, #tpu.memory_space<vmem>>, %arg3: memref<4x150x896xbf16, #tpu.memory_space<vmem>>, %arg4: memref<16x896xf32, #tpu.memory_space<vmem>>) attributes {dimension_semantics = [#tpu.dimension_semantics<parallel>], iteration_bounds = array<i64: 2>, scalar_prefetch = 0 : i64, scratch_operands = 0 : i64, tpu.core_type = #tpu.core_type<tc>, window_params = [{pipeline_mode = #tpu.pipeline_mode<synchronous>, transform_indices = @transform_0, window_bounds = array<i64: 16, 150>}, {pipeline_mode = #tpu.pipeline_mode<synchronous>, transform_indices = @transform_1, window_bounds = array<i64: 16, 1>}, {transform_indices = @transform_2, window_bounds = array<i64: 4, 150, 896>}, {transform_indices = @transform_3, window_bounds = array<i64: 16, 896>}]} {
    %c0 = arith.constant 0 : index
    %c0_0 = arith.constant 0 : index
    %0 = vector.load %arg1[%c0, %c0_0] : memref<16x150xbf16, #tpu.memory_space<vmem>>, vector<16x150xbf16>
    %c0_1 = arith.constant 0 : index
    %c0_2 = arith.constant 0 : index
    %c0_3 = arith.constant 0 : index
    %1 = vector.load %arg3[%c0_1, %c0_2, %c0_3] : memref<4x150x896xbf16, #tpu.memory_space<vmem>>, vector<1x150x896xbf16>
    %2 = vector.shape_cast %1 : vector<1x150x896xbf16> to vector<150x896xbf16>
    %cst = arith.constant dense<0.000000e+00> : vector<16x896xf32>
    %3 = tpu.matmul %0, %2, %cst {dimension_numbers = #tpu.dot_dimension_numbers<[1], [0], [0], [1], [0, 0, 1, 1], [], []>} : vector<16x150xbf16>, vector<150x896xbf16>, vector<16x896xf32> -> vector<16x896xf32>
    %c1 = arith.constant 1 : index
    %c0_4 = arith.constant 0 : index
    %c0_5 = arith.constant 0 : index
    %4 = vector.load %arg3[%c1, %c0_4, %c0_5] : memref<4x150x896xbf16, #tpu.memory_space<vmem>>, vector<1x150x896xbf16>
    %5 = vector.shape_cast %4 : vector<1x150x896xbf16> to vector<150x896xbf16>
    %cst_6 = arith.constant dense<0.000000e+00> : vector<16x896xf32>
    %6 = tpu.matmul %0, %5, %cst_6 {dimension_numbers = #tpu.dot_dimension_numbers<[1], [0], [0], [1], [0, 0, 1, 1], [], []>} : vector<16x150xbf16>, vector<150x896xbf16>, vector<16x896xf32> -> vector<16x896xf32>
    %7 = arith.maximumf %3, %6 : vector<16x896xf32>
    %c2 = arith.constant 2 : index
    %c0_7 = arith.constant 0 : index
    %c0_8 = arith.constant 0 : index
    %8 = vector.load %arg3[%c2, %c0_7, %c0_8] : memref<4x150x896xbf16, #tpu.memory_space<vmem>>, vector<1x150x896xbf16>
    %9 = vector.shape_cast %8 : vector<1x150x896xbf16> to vector<150x896xbf16>
    %cst_9 = arith.constant dense<0.000000e+00> : vector<16x896xf32>
    %10 = tpu.matmul %0, %9, %cst_9 {dimension_numbers = #tpu.dot_dimension_numbers<[1], [0], [0], [1], [0, 0, 1, 1], [], []>} : vector<16x150xbf16>, vector<150x896xbf16>, vector<16x896xf32> -> vector<16x896xf32>
    %11 = arith.maximumf %7, %10 : vector<16x896xf32>
    %c3 = arith.constant 3 : index
    %c0_10 = arith.constant 0 : index
    %c0_11 = arith.constant 0 : index
    %12 = vector.load %arg3[%c3, %c0_10, %c0_11] : memref<4x150x896xbf16, #tpu.memory_space<vmem>>, vector<1x150x896xbf16>
    %13 = vector.shape_cast %12 : vector<1x150x896xbf16> to vector<150x896xbf16>
    %cst_12 = arith.constant dense<0.000000e+00> : vector<16x896xf32>
    %14 = tpu.matmul %0, %13, %cst_12 {dimension_numbers = #tpu.dot_dimension_numbers<[1], [0], [0], [1], [0, 0, 1, 1], [], []>} : vector<16x150xbf16>, vector<150x896xbf16>, vector<16x896xf32> -> vector<16x896xf32>
    %15 = arith.maximumf %11, %14 : vector<16x896xf32>
    %c0_13 = arith.constant 0 : index
    %c0_14 = arith.constant 0 : index
    %16 = vector.load %arg2[%c0_13, %c0_14] : memref<16x1xf32, #tpu.memory_space<vmem>>, vector<16x1xf32>
    %17 = vector.broadcast %16 : vector<16x1xf32> to vector<16x896xf32>
    %18 = arith.addf %15, %17 : vector<16x896xf32>
    %cst_15 = arith.constant 0.000000e+00 : f32
    %19 = vector.broadcast %cst_15 : f32 to vector<16x896xf32>
    %20 = arith.maximumf %18, %19 : vector<16x896xf32>
    %c0_16 = arith.constant 0 : index
    %c0_17 = arith.constant 0 : index
    %21 = vector.load %arg4[%c0_16, %c0_17] : memref<16x896xf32, #tpu.memory_space<vmem>>, vector<16x896xf32>
    tpu.vector_store %arg4[%c0_16, %c0_17], %20 {strides = array<i32>} : memref<16x896xf32, #tpu.memory_space<vmem>>, vector<16x896xf32>,
    return
  }
  func.func @transform_0(%arg0: i32) -> (i32, i32) {
    %c0_i32 = arith.constant 0 : i32
    %c0_i32_0 = arith.constant 0 : i32
    %c0_i32_1 = arith.constant 0 : i32
    return %c0_i32, %c0_i32_0 : i32, i32
  }
  func.func @transform_1(%arg0: i32) -> (i32, i32) {
    %c0_i32 = arith.constant 0 : i32
    %c0_i32_0 = arith.constant 0 : i32
    %c0_i32_1 = arith.constant 0 : i32
    return %c0_i32, %c0_i32_0 : i32, i32
  }
  func.func @transform_2(%arg0: i32) -> (i32, i32, i32) {
    %c0_i32 = arith.constant 0 : i32
    %c0_i32_0 = arith.constant 0 : i32
    %c0_i32_1 = arith.constant 0 : i32
    return %c0_i32, %c0_i32_0, %arg0 : i32, i32, i32
  }
  func.func @transform_3(%arg0: i32) -> (i32, i32) {
    %c0_i32 = arith.constant 0 : i32
    %c0_i32_0 = arith.constant 0 : i32
    return %c0_i32, %arg0 : i32, i32
  }
}

module attributes {stable_mosaic.version = 11 : i64} {
  func.func @_mlp_kernel(%arg0: memref<2x13456xf32, #tpu.memory_space<vmem>>, %arg1: memref<13456x120xbf16, #tpu.memory_space<vmem>>, %arg2: memref<1x120xf32, #tpu.memory_space<vmem>>, %arg3: memref<120x84xbf16, #tpu.memory_space<vmem>>, %arg4: memref<1x84xf32, #tpu.memory_space<vmem>>, %arg5: memref<84x10xbf16, #tpu.memory_space<vmem>>, %arg6: memref<1x10xf32, #tpu.memory_space<vmem>>, %arg7: memref<2x10xf32, #tpu.memory_space<vmem>>) attributes {dimension_semantics = [], scalar_prefetch = 0 : i64, scratch_operands = 0 : i64, tpu.core_type = #tpu.core_type<tc>} {
    %c0 = arith.constant 0 : index
    %c0_0 = arith.constant 0 : index
    %0 = vector.load %arg0[%c0, %c0_0] : memref<2x13456xf32, #tpu.memory_space<vmem>>, vector<2x13456xf32>
    %1 = arith.truncf %0 : vector<2x13456xf32> to vector<2x13456xbf16>
    %c0_1 = arith.constant 0 : index
    %c0_2 = arith.constant 0 : index
    %2 = vector.load %arg1[%c0_1, %c0_2] : memref<13456x120xbf16, #tpu.memory_space<vmem>>, vector<13456x120xbf16>
    %cst = arith.constant dense<0.000000e+00> : vector<2x120xf32>
    %3 = tpu.matmul %1, %2, %cst {dimension_numbers = #tpu.dot_dimension_numbers<[1], [0], [0], [1], [0, 0, 1, 1], [], []>} : vector<2x13456xbf16>, vector<13456x120xbf16>, vector<2x120xf32> -> vector<2x120xf32>
    %c0_3 = arith.constant 0 : index
    %c0_4 = arith.constant 0 : index
    %4 = vector.load %arg2[%c0_3, %c0_4] : memref<1x120xf32, #tpu.memory_space<vmem>>, vector<1x120xf32>
    %5 = vector.broadcast %4 : vector<1x120xf32> to vector<2x120xf32>
    %6 = arith.addf %3, %5 : vector<2x120xf32>
    %cst_5 = arith.constant 0.000000e+00 : f32
    %7 = vector.broadcast %cst_5 : f32 to vector<2x120xf32>
    %8 = arith.maximumf %6, %7 : vector<2x120xf32>
    %9 = arith.truncf %8 : vector<2x120xf32> to vector<2x120xbf16>
    %c0_6 = arith.constant 0 : index
    %c0_7 = arith.constant 0 : index
    %10 = vector.load %arg3[%c0_6, %c0_7] : memref<120x84xbf16, #tpu.memory_space<vmem>>, vector<120x84xbf16>
    %cst_8 = arith.constant dense<0.000000e+00> : vector<2x84xf32>
    %11 = tpu.matmul %9, %10, %cst_8 {dimension_numbers = #tpu.dot_dimension_numbers<[1], [0], [0], [1], [0, 0, 1, 1], [], []>} : vector<2x120xbf16>, vector<120x84xbf16>, vector<2x84xf32> -> vector<2x84xf32>
    %c0_9 = arith.constant 0 : index
    %c0_10 = arith.constant 0 : index
    %12 = vector.load %arg4[%c0_9, %c0_10] : memref<1x84xf32, #tpu.memory_space<vmem>>, vector<1x84xf32>
    %13 = vector.broadcast %12 : vector<1x84xf32> to vector<2x84xf32>
    %14 = arith.addf %11, %13 : vector<2x84xf32>
    %cst_11 = arith.constant 0.000000e+00 : f32
    %15 = vector.broadcast %cst_11 : f32 to vector<2x84xf32>
    %16 = arith.maximumf %14, %15 : vector<2x84xf32>
    %17 = arith.truncf %16 : vector<2x84xf32> to vector<2x84xbf16>
    %c0_12 = arith.constant 0 : index
    %c0_13 = arith.constant 0 : index
    %18 = vector.load %arg5[%c0_12, %c0_13] : memref<84x10xbf16, #tpu.memory_space<vmem>>, vector<84x10xbf16>
    %cst_14 = arith.constant dense<0.000000e+00> : vector<2x10xf32>
    %19 = tpu.matmul %17, %18, %cst_14 {dimension_numbers = #tpu.dot_dimension_numbers<[1], [0], [0], [1], [0, 0, 1, 1], [], []>} : vector<2x84xbf16>, vector<84x10xbf16>, vector<2x10xf32> -> vector<2x10xf32>
    %c0_15 = arith.constant 0 : index
    %c0_16 = arith.constant 0 : index
    %20 = vector.load %arg6[%c0_15, %c0_16] : memref<1x10xf32, #tpu.memory_space<vmem>>, vector<1x10xf32>
    %21 = vector.broadcast %20 : vector<1x10xf32> to vector<2x10xf32>
    %22 = arith.addf %19, %21 : vector<2x10xf32>
    %c0_17 = arith.constant 0 : index
    %c0_18 = arith.constant 0 : index
    %23 = vector.load %arg7[%c0_17, %c0_18] : memref<2x10xf32, #tpu.memory_space<vmem>>, vector<2x10xf32>
    tpu.vector_store %arg7[%c0_17, %c0_18], %22 {strides = array<i32>} : memref<2x10xf32, #tpu.memory_space<vmem>>, vector<2x10xf32>,
    return
  }
}

</mosaic_0001>

<bundles_post_ra>
// kernel: lenet_forward.3
= control target key start
LH: loop header
LB: loop body
LE: loop exit
PB: predicated region body
PF: predicated region fallthrough
CT: control target
= control target key end

     0   :  { %s6337_s12 = smov 0   ;;  %s6339_s13 = smov 0   ;;  %s8496_s0 = inlined_call_operand.vmem [shape: bf16[6,75], index: 0, kind: input, shape index: {}]   ;;  %s8497_s1 = inlined_call_operand.vmem [shape: f32[6,1], index: 1, kind: input, shape index: {}]   ;;  %s8498_s2 = inlined_call_operand.vmem [shape: bf16[4,75,7688], index: 2, kind: input, shape index: {}]   ;;  %s8499_s3 = inlined_call_operand.vmem [shape: f32[6,7688], index: 3, kind: output, shape index: {}]  }
   0x1   :  { %s6341_s14 = smov 0  }
   0x2 LB: > { %s6353_s15 = sadd.s32 4294967295, %s6181_s14   ;;  %s6356_s16 = sadd.s32 1, %s6181_s14   ;;  %s6181_s14 = sphi %s6341_s14, %s8533_s14   ;;  %s6177_s13 = sphi %s6339_s13, %s8532_s13   ;;  %s6173_s12 = sphi %s6337_s12, %s8531_s12  }
   0x3   : > { %s59_s17 = ssub.s32 %s6181_s14, %s6356_s16  ;;  %s62_s18 = sadd.s32 1, %s6177_s13 }
   0x4   : > { %p60_p0 = scmp.eq.s32.totalorder %s59_s17, 0  ;;  %p69_p1 = scmp.ne.s32.totalorder %s6177_s13, %s6173_s12 }
   0x5   : > { %p70_p2 = scmp.eq.s32.totalorder %s6181_s14, 0  ;;  %p99_p3 = scmp.eq.s32.totalorder %s6353_s15, 3 }
   0x6   : > { %s6366_s19 = scalar_select %p60_p0, %s6177_s13, %s62_s18  }
   0x7   : > { %p71_p4 = por %p70_p2, %p69_p1  ;;  %p6368_p5 = por %p99_p3, %p69_p1 }
   0x8   : > { %p5078_p6 = scmp.ge.s32.totalorder %s6181_s14, 4 }
   0xa   : > { %127 = sbr.rel (%p5078_p6) target bundleno = 285 (0x11d), region = 24 }
   0xf   : > { %130 = sbr.rel (!%p71_p4) target bundleno = 285 (0x11d), region = 28  ;;  %s132_s21 = sand.u32 (%p71_p4), 1, %s6177_s13  }
  0x10   : > { %s5079_s22 = sshll.u32 (%p71_p4), %s6181_s14, 4  ;;  %s5741_s23 = smul.u32 (%p71_p4), 2560, %s132_s21 }
  0x11   : > { %s136_s24 = ssub.s32 (%p71_p4), 61, %s5079_s22  ;;  %s5731_s25 = sshll.u32 (%p71_p4), %s6181_s14, 6 }
  0x12   : > { %p137_p7 = scmp.lt.s32.totalorder (%p71_p4), %s136_s24, 16  ;;  %s6379_s28 = scalar_lea.vmem (%p71_p4), %s8498_s2, %s5731_s25  }
  0x13   : > { %s6383_s4 = scalar_lea.vmem (%p71_p4), [#allocation2], %s5741_s23  }
  0x14   : > { %s8535_s24 = smov (!%p137_p7, %s136_s24), 16 }
  0x15   : > { %s139_s29 = smul.u32 2560, %s8535_s24  ;;  %s6381_s30 = sshll.u32 %s8535_s24, 2 }
  0x17   : > { %p5083_p8 = scmp.eq.s32.totalorder %s139_s29, 0 }
  0x18   : > { %p147_p9 = scmp.lt.u32.totalorder (!%p5083_p8), %s6381_s30, 8 }
  0x19   : > { %146 = sbr.rel (%p5083_p8) target bundleno = 285 (0x11d), region = 32 }
  0x1e   : > { %150 = sbr.rel (%p147_p9) target bundleno = 238 (0xee), region = 36  ;;  %s6387_s5 = sand.u32 (!%p147_p9), 7, %s6381_s30  }
  0x1f   : > { %p245_p10 = scmp.eq.s32.totalorder (!%p147_p9), %s6387_s5, 0  ;;  %p5084_p11 = scmp.ne.s32.totalorder (!%p147_p9), %s6387_s5, 0 }
  0x23   : > { %248 = sbr.rel (%p5084_p11) target bundleno = 115 (0x73), region = 51  ;;  %s249_s6 = sshrl.u32 (!%p5084_p11), %s6381_s30, 3 }
  0x24   : > { %s6394_s7 = sshrl.u32 (!%p5084_p11), %s249_s6, 1 }
  0x25   : > { %p5085_p12 = scmp.le.s32.totalorder (!%p5084_p11), %s6394_s7, 0 }
  0x28   : > { %4948 = sbr.rel (%p5085_p12) target bundleno = 86 (0x56), region = 232  ;;  %s8501_s8 = smov (!%p5085_p12), %s6383_s4 }
  0x29   : > { %s8502_s9 = smov (!%p5085_p12), %s6379_s28  ;;  %s6403_s10 = smov (!%p5085_p12), 0  }
  0x2a   : > { %s6405_s11 = smov (!%p5085_p12), 0  }
  0x2d LB: >> { %v262_v0 = vld [vmem:[%s6189_s9] sm:$0xff]  ;;  %v264_v1 = vld [vmem:[%s6189_s9 + $0x8] sm:$0xff]  ;;  %v266_v2 = vld [vmem:[%s6189_s9 + $0xf4] sm:$0xff]  ;;  %s422_s17 = sadd.s32 1, %s6193_s10  ;;  %s256_s11 = sadd.s32 1, %s6197_s11   ;;  %s6197_s11 = sphi %s6405_s11, %s256_s11   ;;  %s6193_s10 = sphi %s6403_s10, %s8505_s10   ;;  %s6189_s9 = sphi %s8502_s9, %s8504_s9   ;;  %s6185_s8 = sphi %s8501_s8, %s8503_s8  }
  0x2e   : >> { %263 = vst [vmem:[%s6185_s8] sm:$0xff] %v262_v0  ;;  %265 = vst [vmem:[%s6185_s8 + $0x8] sm:$0xff] %v264_v1  ;;  %v268_v3 = vld [vmem:[%s6189_s9 + $0xfc] sm:$0xff]  ;;  %v270_v4 = vld [vmem:[%s6189_s9 + $0x1e8] sm:$0xff]  ;;  %p423_p13 = scmp.ge.s32.totalorder %s422_s17, %s6394_s7  ;;  %p255_p0 = scmp.ge.s32.totalorder %s256_s11, %s6394_s7 }
  0x2f   : >> { %267 = vst [vmem:[%s6185_s8 + $0x40] sm:$0xff] %v266_v2  ;;  %v272_v5 = vld [vmem:[%s6189_s9 + $0x1f0] sm:$0xff]  ;;  %269 = vst [vmem:[%s6185_s8 + $0x48] sm:$0xff] %v268_v3  ;;  %v274_v6 = vld [vmem:[%s6189_s9 + $0x2dc] sm:$0xff] }
  0x30   : >> { %271 = vst [vmem:[%s6185_s8 + $0x80] sm:$0xff] %v270_v4  ;;  %273 = vst [vmem:[%s6185_s8 + $0x88] sm:$0xff] %v272_v5  ;;  %v276_v7 = vld [vmem:[%s6189_s9 + $0x2e4] sm:$0xff]  ;;  %v278_v8 = vld [vmem:[%s6189_s9 + $0x3d0] sm:$0xff]  ;;  %s8537_s17 = smov (%p423_p13, %s422_s17), 0 }
  0x31   : >> { %275 = vst [vmem:[%s6185_s8 + $0xc0] sm:$0xff] %v274_v6  ;;  %277 = vst [vmem:[%s6185_s8 + $0xc8] sm:$0xff] %v276_v7  ;;  %v280_v9 = vld [vmem:[%s6189_s9 + $0x3d8] sm:$0xff]  ;;  %v282_v10 = vld [vmem:[%s6189_s9 + $0x4c4] sm:$0xff]  ;;  %s5086_s18 = sshll.u32 %s8537_s17, 4  ;;  %s8505_s10 = smov %s8537_s17 }
  0x32   : >> { %279 = vst [vmem:[%s6185_s8 + $0x100] sm:$0xff] %v278_v8  ;;  %v284_v11 = vld [vmem:[%s6189_s9 + $0x4cc] sm:$0xff]  ;;  %281 = vst [vmem:[%s6185_s8 + $0x108] sm:$0xff] %v280_v9  ;;  %v286_v12 = vld [vmem:[%s6189_s9 + $0x5b8] sm:$0xff]  ;;  %s6461_s21 = scalar_lea.vmem %s6379_s28, %s5086_s18   ;;  %s6464_s22 = scalar_lea.vmem %s6383_s4, %s5086_s18 [#allocation2]  }
  0x33   : >> { %283 = vst [vmem:[%s6185_s8 + $0x140] sm:$0xff] %v282_v10  ;;  %285 = vst [vmem:[%s6185_s8 + $0x148] sm:$0xff] %v284_v11  ;;  %v288_v13 = vld [vmem:[%s6189_s9 + $0x5c0] sm:$0xff]  ;;  %v290_v14 = vld [vmem:[%s6189_s9 + $0x6ac] sm:$0xff] }
  0x34   : >> { %287 = vst [vmem:[%s6185_s8 + $0x180] sm:$0xff] %v286_v12  ;;  %289 = vst [vmem:[%s6185_s8 + $0x188] sm:$0xff] %v288_v13  ;;  %v292_v15 = vld [vmem:[%s6189_s9 + $0x6b4] sm:$0xff]  ;;  %v294_v16 = vld [vmem:[%s6189_s9 + $0x7a0] sm:$0xff] }
  0x35   : >> { %291 = vst [vmem:[%s6185_s8 + $0x1c0] sm:$0xff] %v290_v14  ;;  %v296_v17 = vld [vmem:[%s6189_s9 + $0x7a8] sm:$0xff]  ;;  %293 = vst [vmem:[%s6185_s8 + $0x1c8] sm:$0xff] %v292_v15  ;;  %v298_v18 = vld [vmem:[%s6189_s9 + $0x894] sm:$0xff] }
  0x36   : >> { %295 = vst [vmem:[%s6185_s8 + $0x200] sm:$0xff] %v294_v16  ;;  %297 = vst [vmem:[%s6185_s8 + $0x208] sm:$0xff] %v296_v17  ;;  %v300_v19 = vld [vmem:[%s6189_s9 + $0x89c] sm:$0xff]  ;;  %v302_v20 = vld [vmem:[%s6189_s9 + $0x988] sm:$0xff] }
  0x37   : >> { %299 = vst [vmem:[%s6185_s8 + $0x240] sm:$0xff] %v298_v18  ;;  %301 = vst [vmem:[%s6185_s8 + $0x248] sm:$0xff] %v300_v19  ;;  %v304_v21 = vld [vmem:[%s6189_s9 + $0x990] sm:$0xff]  ;;  %v306_v22 = vld [vmem:[%s6189_s9 + $0xa7c] sm:$0xff] }
  0x38   : >> { %303 = vst [vmem:[%s6185_s8 + $0x280] sm:$0xff] %v302_v20  ;;  %v308_v23 = vld [vmem:[%s6189_s9 + $0xa84] sm:$0xff]  ;;  %305 = vst [vmem:[%s6185_s8 + $0x288] sm:$0xff] %v304_v21  ;;  %v310_v24 = vld [vmem:[%s6189_s9 + $0xb70] sm:$0xff] }
  0x39   : >> { %307 = vst [vmem:[%s6185_s8 + $0x2c0] sm:$0xff] %v306_v22  ;;  %309 = vst [vmem:[%s6185_s8 + $0x2c8] sm:$0xff] %v308_v23  ;;  %v312_v25 = vld [vmem:[%s6189_s9 + $0xb78] sm:$0xff]  ;;  %v314_v26 = vld [vmem:[%s6189_s9 + $0xc64] sm:$0xff] }
  0x3a   : >> { %311 = vst [vmem:[%s6185_s8 + $0x300] sm:$0xff] %v310_v24  ;;  %313 = vst [vmem:[%s6185_s8 + $0x308] sm:$0xff] %v312_v25  ;;  %v316_v27 = vld [vmem:[%s6189_s9 + $0xc6c] sm:$0xff]  ;;  %v318_v28 = vld [vmem:[%s6189_s9 + $0xd58] sm:$0xff] }
  0x3b   : >> { %315 = vst [vmem:[%s6185_s8 + $0x340] sm:$0xff] %v314_v26  ;;  %v320_v29 = vld [vmem:[%s6189_s9 + $0xd60] sm:$0xff]  ;;  %317 = vst [vmem:[%s6185_s8 + $0x348] sm:$0xff] %v316_v27  ;;  %v322_v30 = vld [vmem:[%s6189_s9 + $0xe4c] sm:$0xff] }
  0x3c   : >> { %319 = vst [vmem:[%s6185_s8 + $0x380] sm:$0xff] %v318_v28  ;;  %321 = vst [vmem:[%s6185_s8 + $0x388] sm:$0xff] %v320_v29  ;;  %v324_v31 = vld [vmem:[%s6189_s9 + $0xe54] sm:$0xff]  ;;  %v326_v32 = vld [vmem:[%s6189_s9 + $0xf40] sm:$0xff] }
  0x3d   : >> { %323 = vst [vmem:[%s6185_s8 + $0x3c0] sm:$0xff] %v322_v30  ;;  %325 = vst [vmem:[%s6185_s8 + $0x3c8] sm:$0xff] %v324_v31  ;;  %v328_v33 = vld [vmem:[%s6189_s9 + $0xf48] sm:$0xff]  ;;  %v330_v34 = vld [vmem:[%s6189_s9 + $0x1034] sm:$0xff] }
  0x3e   : >> { %327 = vst [vmem:[%s6185_s8 + $0x400] sm:$0xff] %v326_v32  ;;  %v332_v35 = vld [vmem:[%s6189_s9 + $0x103c] sm:$0xff]  ;;  %329 = vst [vmem:[%s6185_s8 + $0x408] sm:$0xff] %v328_v33  ;;  %v334_v36 = vld [vmem:[%s6189_s9 + $0x1128] sm:$0xff] }
  0x3f   : >> { %331 = vst [vmem:[%s6185_s8 + $0x440] sm:$0xff] %v330_v34  ;;  %333 = vst [vmem:[%s6185_s8 + $0x448] sm:$0xff] %v332_v35  ;;  %v336_v37 = vld [vmem:[%s6189_s9 + $0x1130] sm:$0xff]  ;;  %v338_v38 = vld [vmem:[%s6189_s9 + $0x121c] sm:$0xff] }
  0x40   : >> { %335 = vst [vmem:[%s6185_s8 + $0x480] sm:$0xff] %v334_v36  ;;  %337 = vst [vmem:[%s6185_s8 + $0x488] sm:$0xff] %v336_v37  ;;  %v340_v39 = vld [vmem:[%s6189_s9 + $0x1224] sm:$0xff]  ;;  %v342_v40 = vld [vmem:[%s6189_s9 + $0x1310] sm:$0xff] }
  0x41   : >> { %339 = vst [vmem:[%s6185_s8 + $0x4c0] sm:$0xff] %v338_v38  ;;  %v344_v41 = vld [vmem:[%s6189_s9 + $0x1318] sm:$0xff]  ;;  %341 = vst [vmem:[%s6185_s8 + $0x4c8] sm:$0xff] %v340_v39  ;;  %v346_v42 = vld [vmem:[%s6189_s9 + $0x1404] sm:$0xff] }
  0x42   : >> { %343 = vst [vmem:[%s6185_s8 + $0x500] sm:$0xff] %v342_v40  ;;  %345 = vst [vmem:[%s6185_s8 + $0x508] sm:$0xff] %v344_v41  ;;  %v348_v43 = vld [vmem:[%s6189_s9 + $0x140c] sm:$0xff]  ;;  %v350_v44 = vld [vmem:[%s6189_s9 + $0x14f8] sm:$0xff] }
  0x43   : >> { %347 = vst [vmem:[%s6185_s8 + $0x540] sm:$0xff] %v346_v42  ;;  %349 = vst [vmem:[%s6185_s8 + $0x548] sm:$0xff] %v348_v43  ;;  %v352_v45 = vld [vmem:[%s6189_s9 + $0x1500] sm:$0xff]  ;;  %v354_v46 = vld [vmem:[%s6189_s9 + $0x15ec] sm:$0xff] }
  0x44   : >> { %351 = vst [vmem:[%s6185_s8 + $0x580] sm:$0xff] %v350_v44  ;;  %v356_v47 = vld [vmem:[%s6189_s9 + $0x15f4] sm:$0xff]  ;;  %353 = vst [vmem:[%s6185_s8 + $0x588] sm:$0xff] %v352_v45  ;;  %v358_v48 = vld [vmem:[%s6189_s9 + $0x16e0] sm:$0xff] }
  0x45   : >> { %355 = vst [vmem:[%s6185_s8 + $0x5c0] sm:$0xff] %v354_v46  ;;  %357 = vst [vmem:[%s6185_s8 + $0x5c8] sm:$0xff] %v356_v47  ;;  %v360_v49 = vld [vmem:[%s6189_s9 + $0x16e8] sm:$0xff]  ;;  %v362_v50 = vld [vmem:[%s6189_s9 + $0x17d4] sm:$0xff] }
  0x46   : >> { %359 = vst [vmem:[%s6185_s8 + $0x600] sm:$0xff] %v358_v48  ;;  %361 = vst [vmem:[%s6185_s8 + $0x608] sm:$0xff] %v360_v49  ;;  %v364_v51 = vld [vmem:[%s6189_s9 + $0x17dc] sm:$0xff]  ;;  %v366_v52 = vld [vmem:[%s6189_s9 + $0x18c8] sm:$0xff] }
  0x47   : >> { %363 = vst [vmem:[%s6185_s8 + $0x640] sm:$0xff] %v362_v50  ;;  %v368_v53 = vld [vmem:[%s6189_s9 + $0x18d0] sm:$0xff]  ;;  %365 = vst [vmem:[%s6185_s8 + $0x648] sm:$0xff] %v364_v51  ;;  %v370_v54 = vld [vmem:[%s6189_s9 + $0x19bc] sm:$0xff] }
  0x48   : >> { %367 = vst [vmem:[%s6185_s8 + $0x680] sm:$0xff] %v366_v52  ;;  %369 = vst [vmem:[%s6185_s8 + $0x688] sm:$0xff] %v368_v53  ;;  %v372_v55 = vld [vmem:[%s6189_s9 + $0x19c4] sm:$0xff]  ;;  %v374_v56 = vld [vmem:[%s6189_s9 + $0x1ab0] sm:$0xff] }
  0x49   : >> { %371 = vst [vmem:[%s6185_s8 + $0x6c0] sm:$0xff] %v370_v54  ;;  %373 = vst [vmem:[%s6185_s8 + $0x6c8] sm:$0xff] %v372_v55  ;;  %v376_v57 = vld [vmem:[%s6189_s9 + $0x1ab8] sm:$0xff]  ;;  %v378_v58 = vld [vmem:[%s6189_s9 + $0x1ba4] sm:$0xff] }
  0x4a   : >> { %375 = vst [vmem:[%s6185_s8 + $0x700] sm:$0xff] %v374_v56  ;;  %v380_v59 = vld [vmem:[%s6189_s9 + $0x1bac] sm:$0xff]  ;;  %377 = vst [vmem:[%s6185_s8 + $0x708] sm:$0xff] %v376_v57  ;;  %v382_v60 = vld [vmem:[%s6189_s9 + $0x1c98] sm:$0xff] }
  0x4b   : >> { %379 = vst [vmem:[%s6185_s8 + $0x740] sm:$0xff] %v378_v58  ;;  %381 = vst [vmem:[%s6185_s8 + $0x748] sm:$0xff] %v380_v59  ;;  %v384_v61 = vld [vmem:[%s6189_s9 + $0x1ca0] sm:$0xff]  ;;  %v386_v62 = vld [vmem:[%s6189_s9 + $0x1d8c] sm:$0xff] }
  0x4c   : >> { %383 = vst [vmem:[%s6185_s8 + $0x780] sm:$0xff] %v382_v60  ;;  %385 = vst [vmem:[%s6185_s8 + $0x788] sm:$0xff] %v384_v61  ;;  %v388_v63 = vld [vmem:[%s6189_s9 + $0x1d94] sm:$0xff]  ;;  %v390_v0 = vld [vmem:[%s6189_s9 + $0x1e80] sm:$0xff] }
  0x4d   : >> { %387 = vst [vmem:[%s6185_s8 + $0x7c0] sm:$0xff] %v386_v62  ;;  %v392_v1 = vld [vmem:[%s6189_s9 + $0x1e88] sm:$0xff]  ;;  %389 = vst [vmem:[%s6185_s8 + $0x7c8] sm:$0xff] %v388_v63  ;;  %v394_v2 = vld [vmem:[%s6189_s9 + $0x1f74] sm:$0xff] }
  0x4e   : >> { %391 = vst [vmem:[%s6185_s8 + $0x800] sm:$0xff] %v390_v0  ;;  %393 = vst [vmem:[%s6185_s8 + $0x808] sm:$0xff] %v392_v1  ;;  %v396_v3 = vld [vmem:[%s6189_s9 + $0x1f7c] sm:$0xff]  ;;  %v398_v4 = vld [vmem:[%s6189_s9 + $0x2068] sm:$0xff] }
  0x4f   : >> { %395 = vst [vmem:[%s6185_s8 + $0x840] sm:$0xff] %v394_v2  ;;  %397 = vst [vmem:[%s6185_s8 + $0x848] sm:$0xff] %v396_v3  ;;  %v400_v5 = vld [vmem:[%s6189_s9 + $0x2070] sm:$0xff]  ;;  %v402_v6 = vld [vmem:[%s6189_s9 + $0x215c] sm:$0xff] }
  0x50   : >> { %399 = vst [vmem:[%s6185_s8 + $0x880] sm:$0xff] %v398_v4  ;;  %v404_v7 = vld [vmem:[%s6189_s9 + $0x2164] sm:$0xff]  ;;  %401 = vst [vmem:[%s6185_s8 + $0x888] sm:$0xff] %v400_v5  ;;  %v406_v8 = vld [vmem:[%s6189_s9 + $0x2250] sm:$0xff] }
  0x51   : >> { %403 = vst [vmem:[%s6185_s8 + $0x8c0] sm:$0xff] %v402_v6  ;;  %405 = vst [vmem:[%s6185_s8 + $0x8c8] sm:$0xff] %v404_v7  ;;  %v408_v9 = vld [vmem:[%s6189_s9 + $0x2258] sm:$0xff]  ;;  %v410_v10 = vld [vmem:[%s6189_s9 + $0x2344] sm:$0xff]  ;;  %258 = sbr.rel (!%p255_p0) target bundleno = 45 (0x2d), region = 238 }
  0x52   : >> { %407 = vst [vmem:[%s6185_s8 + $0x900] sm:$0xff] %v406_v8  ;;  %409 = vst [vmem:[%s6185_s8 + $0x908] sm:$0xff] %v408_v9  ;;  %v412_v11 = vld [vmem:[%s6189_s9 + $0x234c] sm:$0xff]  ;;  %v414_v12 = vld [vmem:[%s6189_s9 + $0x2438] sm:$0xff] }
  0x53   : >> { %411 = vst [vmem:[%s6185_s8 + $0x940] sm:$0xff] %v410_v10  ;;  %v416_v13 = vld [vmem:[%s6189_s9 + $0x2440] sm:$0xff]  ;;  %413 = vst [vmem:[%s6185_s8 + $0x948] sm:$0xff] %v412_v11  ;;  %v418_v14 = vld [vmem:[%s6189_s9 + $0x252c] sm:$0xff] }
  0x54   : >> { %415 = vst [vmem:[%s6185_s8 + $0x980] sm:$0xff] %v414_v12  ;;  %417 = vst [vmem:[%s6185_s8 + $0x988] sm:$0xff] %v416_v13  ;;  %v420_v15 = vld [vmem:[%s6189_s9 + $0x2534] sm:$0xff]  ;;  %s8504_s9 = smov %s6461_s21 }
  0x55   : >> { %419 = vst [vmem:[%s6185_s8 + $0x9c0] sm:$0xff] %v418_v14  ;;  %421 = vst [vmem:[%s6185_s8 + $0x9c8] sm:$0xff] %v420_v15  ;;  %s8503_s8 = smov %s6464_s22 }
  0x56 PF: > { %s6602_s23 = sand.u32 1, %s249_s6   ;;  %s5732_s24 = sshll.u32 %s6394_s7, 8 }
  0x57   : > { %s433_s25 = sshra.s32 %s5732_s24, 4  ;;  %p5091_p1 = scmp.le.s32.totalorder %s6602_s23, 0 }
  0x58   : > { %s6606_s26 = scalar_lea.vmem %s6379_s28, %s433_s25   ;;  %s6609_s27 = scalar_lea.vmem %s6383_s4, %s433_s25 [#allocation2]  }
  0x59   : > { %4962 = sbr.rel (%p5091_p1) target bundleno = 115 (0x73), region = 243  ;;  %s8506_s29 = smov (!%p5091_p1), %s6609_s27 }
  0x5a   : > { %s8507_s8 = smov (!%p5091_p1), %s6606_s26  ;;  %s6618_s9 = smov (!%p5091_p1), 0  }
  0x5b   : > { %s6620_s10 = smov (!%p5091_p1), 0  }
  0x5e LB: >> { %v449_v16 = vld [vmem:[%s6205_s8] sm:$0xff]  ;;  %v451_v17 = vld [vmem:[%s6205_s8 + $0xf4] sm:$0xff]  ;;  %v453_v18 = vld [vmem:[%s6205_s8 + $0x1e8] sm:$0xff]  ;;  %s529_s6 = sadd.s32 1, %s6209_s9  ;;  %s443_s10 = sadd.s32 1, %s6213_s10   ;;  %s6213_s10 = sphi %s6620_s10, %s443_s10   ;;  %s6209_s9 = sphi %s6618_s9, %s8510_s9   ;;  %s6205_s8 = sphi %s8507_s8, %s8509_s8   ;;  %s6201_s29 = sphi %s8506_s29, %s8508_s29  }
  0x5f   : >> { %450 = vst [vmem:[%s6201_s29] sm:$0xff] %v449_v16  ;;  %452 = vst [vmem:[%s6201_s29 + $0x40] sm:$0xff] %v451_v17  ;;  %v455_v19 = vld [vmem:[%s6205_s8 + $0x2dc] sm:$0xff]  ;;  %v457_v20 = vld [vmem:[%s6205_s8 + $0x3d0] sm:$0xff]  ;;  %p530_p2 = scmp.ge.s32.totalorder %s529_s6, %s6602_s23  ;;  %p442_p3 = scmp.ge.s32.totalorder %s443_s10, %s6602_s23 }
  0x60   : >> { %454 = vst [vmem:[%s6201_s29 + $0x80] sm:$0xff] %v453_v18  ;;  %v459_v21 = vld [vmem:[%s6205_s8 + $0x4c4] sm:$0xff]  ;;  %456 = vst [vmem:[%s6201_s29 + $0xc0] sm:$0xff] %v455_v19  ;;  %v461_v22 = vld [vmem:[%s6205_s8 + $0x5b8] sm:$0xff] }
  0x61   : >> { %458 = vst [vmem:[%s6201_s29 + $0x100] sm:$0xff] %v457_v20  ;;  %460 = vst [vmem:[%s6201_s29 + $0x140] sm:$0xff] %v459_v21  ;;  %v463_v23 = vld [vmem:[%s6205_s8 + $0x6ac] sm:$0xff]  ;;  %v465_v24 = vld [vmem:[%s6205_s8 + $0x7a0] sm:$0xff]  ;;  %s8539_s6 = smov (%p530_p2, %s529_s6), 0 }
  0x62   : >> { %462 = vst [vmem:[%s6201_s29 + $0x180] sm:$0xff] %v461_v22  ;;  %464 = vst [vmem:[%s6201_s29 + $0x1c0] sm:$0xff] %v463_v23  ;;  %v467_v25 = vld [vmem:[%s6205_s8 + $0x894] sm:$0xff]  ;;  %v469_v26 = vld [vmem:[%s6205_s8 + $0x988] sm:$0xff]  ;;  %s5092_s7 = sshll.u32 %s8539_s6, 3  ;;  %s8510_s9 = smov %s8539_s6 }
  0x63   : >> { %466 = vst [vmem:[%s6201_s29 + $0x200] sm:$0xff] %v465_v24  ;;  %v471_v27 = vld [vmem:[%s6205_s8 + $0xa7c] sm:$0xff]  ;;  %468 = vst [vmem:[%s6201_s29 + $0x240] sm:$0xff] %v467_v25  ;;  %v473_v28 = vld [vmem:[%s6205_s8 + $0xb70] sm:$0xff]  ;;  %s6676_s11 = scalar_lea.vmem %s6606_s26, %s5092_s7   ;;  %s6679_s17 = scalar_lea.vmem %s6609_s27, %s5092_s7 [#allocation2]  }
  0x64   : >> { %470 = vst [vmem:[%s6201_s29 + $0x280] sm:$0xff] %v469_v26  ;;  %472 = vst [vmem:[%s6201_s29 + $0x2c0] sm:$0xff] %v471_v27  ;;  %v475_v29 = vld [vmem:[%s6205_s8 + $0xc64] sm:$0xff]  ;;  %v477_v30 = vld [vmem:[%s6205_s8 + $0xd58] sm:$0xff] }
  0x65   : >> { %474 = vst [vmem:[%s6201_s29 + $0x300] sm:$0xff] %v473_v28  ;;  %476 = vst [vmem:[%s6201_s29 + $0x340] sm:$0xff] %v475_v29  ;;  %v479_v31 = vld [vmem:[%s6205_s8 + $0xe4c] sm:$0xff]  ;;  %v481_v32 = vld [vmem:[%s6205_s8 + $0xf40] sm:$0xff] }
  0x66   : >> { %478 = vst [vmem:[%s6201_s29 + $0x380] sm:$0xff] %v477_v30  ;;  %v483_v33 = vld [vmem:[%s6205_s8 + $0x1034] sm:$0xff]  ;;  %480 = vst [vmem:[%s6201_s29 + $0x3c0] sm:$0xff] %v479_v31  ;;  %v485_v34 = vld [vmem:[%s6205_s8 + $0x1128] sm:$0xff] }
  0x67   : >> { %482 = vst [vmem:[%s6201_s29 + $0x400] sm:$0xff] %v481_v32  ;;  %484 = vst [vmem:[%s6201_s29 + $0x440] sm:$0xff] %v483_v33  ;;  %v487_v35 = vld [vmem:[%s6205_s8 + $0x121c] sm:$0xff]  ;;  %v489_v36 = vld [vmem:[%s6205_s8 + $0x1310] sm:$0xff] }
  0x68   : >> { %486 = vst [vmem:[%s6201_s29 + $0x480] sm:$0xff] %v485_v34  ;;  %488 = vst [vmem:[%s6201_s29 + $0x4c0] sm:$0xff] %v487_v35  ;;  %v491_v37 = vld [vmem:[%s6205_s8 + $0x1404] sm:$0xff]  ;;  %v493_v38 = vld [vmem:[%s6205_s8 + $0x14f8] sm:$0xff] }
  0x69   : >> { %490 = vst [vmem:[%s6201_s29 + $0x500] sm:$0xff] %v489_v36  ;;  %v495_v39 = vld [vmem:[%s6205_s8 + $0x15ec] sm:$0xff]  ;;  %492 = vst [vmem:[%s6201_s29 + $0x540] sm:$0xff] %v491_v37  ;;  %v497_v40 = vld [vmem:[%s6205_s8 + $0x16e0] sm:$0xff] }
  0x6a   : >> { %494 = vst [vmem:[%s6201_s29 + $0x580] sm:$0xff] %v493_v38  ;;  %496 = vst [vmem:[%s6201_s29 + $0x5c0] sm:$0xff] %v495_v39  ;;  %v499_v41 = vld [vmem:[%s6205_s8 + $0x17d4] sm:$0xff]  ;;  %v501_v42 = vld [vmem:[%s6205_s8 + $0x18c8] sm:$0xff] }
  0x6b   : >> { %498 = vst [vmem:[%s6201_s29 + $0x600] sm:$0xff] %v497_v40  ;;  %500 = vst [vmem:[%s6201_s29 + $0x640] sm:$0xff] %v499_v41  ;;  %v503_v43 = vld [vmem:[%s6205_s8 + $0x19bc] sm:$0xff]  ;;  %v505_v44 = vld [vmem:[%s6205_s8 + $0x1ab0] sm:$0xff] }
  0x6c   : >> { %502 = vst [vmem:[%s6201_s29 + $0x680] sm:$0xff] %v501_v42  ;;  %v507_v45 = vld [vmem:[%s6205_s8 + $0x1ba4] sm:$0xff]  ;;  %504 = vst [vmem:[%s6201_s29 + $0x6c0] sm:$0xff] %v503_v43  ;;  %v509_v46 = vld [vmem:[%s6205_s8 + $0x1c98] sm:$0xff] }
  0x6d   : >> { %506 = vst [vmem:[%s6201_s29 + $0x700] sm:$0xff] %v505_v44  ;;  %508 = vst [vmem:[%s6201_s29 + $0x740] sm:$0xff] %v507_v45  ;;  %v511_v47 = vld [vmem:[%s6205_s8 + $0x1d8c] sm:$0xff]  ;;  %v513_v48 = vld [vmem:[%s6205_s8 + $0x1e80] sm:$0xff] }
  0x6e   : >> { %510 = vst [vmem:[%s6201_s29 + $0x780] sm:$0xff] %v509_v46  ;;  %512 = vst [vmem:[%s6201_s29 + $0x7c0] sm:$0xff] %v511_v47  ;;  %v515_v49 = vld [vmem:[%s6205_s8 + $0x1f74] sm:$0xff]  ;;  %v517_v50 = vld [vmem:[%s6205_s8 + $0x2068] sm:$0xff]  ;;  %445 = sbr.rel (!%p442_p3) target bundleno = 94 (0x5e), region = 249 }
  0x6f   : >> { %514 = vst [vmem:[%s6201_s29 + $0x800] sm:$0xff] %v513_v48  ;;  %v519_v51 = vld [vmem:[%s6205_s8 + $0x215c] sm:$0xff]  ;;  %516 = vst [vmem:[%s6201_s29 + $0x840] sm:$0xff] %v515_v49  ;;  %v521_v52 = vld [vmem:[%s6205_s8 + $0x2250] sm:$0xff] }
  0x70   : >> { %518 = vst [vmem:[%s6201_s29 + $0x880] sm:$0xff] %v517_v50  ;;  %520 = vst [vmem:[%s6201_s29 + $0x8c0] sm:$0xff] %v519_v51  ;;  %v523_v53 = vld [vmem:[%s6205_s8 + $0x2344] sm:$0xff]  ;;  %v525_v54 = vld [vmem:[%s6205_s8 + $0x2438] sm:$0xff] }
  0x71   : >> { %522 = vst [vmem:[%s6201_s29 + $0x900] sm:$0xff] %v521_v52  ;;  %524 = vst [vmem:[%s6201_s29 + $0x940] sm:$0xff] %v523_v53  ;;  %v527_v55 = vld [vmem:[%s6205_s8 + $0x252c] sm:$0xff]  ;;  %s8509_s8 = smov %s6676_s11 }
  0x72   : >> { %526 = vst [vmem:[%s6201_s29 + $0x980] sm:$0xff] %v525_v54  ;;  %528 = vst [vmem:[%s6201_s29 + $0x9c0] sm:$0xff] %v527_v55  ;;  %s8508_s29 = smov %s6679_s17 }
  0x73 PF: > { %538 = sbr.rel (%p245_p10) target bundleno = 238 (0xee), region = 69  ;;  %s540_s18 = ssub.s32 (!%p245_p10), %s6381_s30, %s6387_s5 }
  0x74   : > { %s544_s21 = sshrl.u32 (!%p245_p10), %s6381_s30, 3  ;;  %s6741_s22 = scalar_lea.vmem (!%p245_p10), %s6379_s28, %s540_s18 }
  0x75   : > { %s6744_s24 = scalar_lea.vmem (!%p245_p10), %s6383_s4, %s540_s18 [#allocation2]  ;;  %s6748_s25 = sshrl.u32 (!%p245_p10), %s544_s21, 1 }
  0x76   : > { %p5094_p4 = scmp.le.s32.totalorder (!%p245_p10), %s6748_s25, 0 }
  0x78   : > { %4976 = sbr.rel (%p5094_p4) target bundleno = 166 (0xa6), region = 254  ;;  %s8511_s23 = smov (!%p5094_p4), %s6383_s4 }
  0x79   : > { %s8512_s26 = smov (!%p5094_p4), %s6379_s28  ;;  %s6757_s27 = smov (!%p5094_p4), 0  }
  0x7a   : > { %s6759_s29 = smov (!%p5094_p4), 0  }
  0x7d LB: >> { %v557_v56 = vld [vmem:[%s6221_s26] sm:$0xff]  ;;  %v559_v57 = vld [vmem:[%s6221_s26 + $0x8] sm:$0xff]  ;;  %v561_v58 = vld [vmem:[%s6221_s26 + $0xf4] sm:$0xff]  ;;  %s717_s8 = sadd.s32 1, %s6225_s27  ;;  %s551_s29 = sadd.s32 1, %s6229_s29   ;;  %s6229_s29 = sphi %s6759_s29, %s551_s29   ;;  %s6225_s27 = sphi %s6757_s27, %s8515_s27   ;;  %s6221_s26 = sphi %s8512_s26, %s8514_s26   ;;  %s6217_s23 = sphi %s8511_s23, %s8513_s23  }
  0x7e   : >> { %558 = vst [vmem:[%s6217_s23] sm:$0xff] %v557_v56  ;;  %560 = vst [vmem:[%s6217_s23 + $0x8] sm:$0xff] %v559_v57  ;;  %v563_v59 = vld [vmem:[%s6221_s26 + $0xfc] sm:$0xff]  ;;  %v565_v60 = vld [vmem:[%s6221_s26 + $0x1e8] sm:$0xff]  ;;  %p718_p6 = scmp.ge.s32.totalorder %s717_s8, %s6748_s25  ;;  %p550_p7 = scmp.ge.s32.totalorder %s551_s29, %s6748_s25 }
  0x7f   : >> { %562 = vst [vmem:[%s6217_s23 + $0x40] sm:$0xff] %v561_v58  ;;  %v567_v61 = vld [vmem:[%s6221_s26 + $0x1f0] sm:$0xff]  ;;  %564 = vst [vmem:[%s6217_s23 + $0x48] sm:$0xff] %v563_v59  ;;  %v569_v62 = vld [vmem:[%s6221_s26 + $0x2dc] sm:$0xff] }
  0x80   : >> { %566 = vst [vmem:[%s6217_s23 + $0x80] sm:$0xff] %v565_v60  ;;  %568 = vst [vmem:[%s6217_s23 + $0x88] sm:$0xff] %v567_v61  ;;  %v571_v63 = vld [vmem:[%s6221_s26 + $0x2e4] sm:$0xff]  ;;  %v573_v0 = vld [vmem:[%s6221_s26 + $0x3d0] sm:$0xff]  ;;  %s8541_s8 = smov (%p718_p6, %s717_s8), 0 }
  0x81   : >> { %570 = vst [vmem:[%s6217_s23 + $0xc0] sm:$0xff] %v569_v62  ;;  %572 = vst [vmem:[%s6217_s23 + $0xc8] sm:$0xff] %v571_v63  ;;  %v575_v1 = vld [vmem:[%s6221_s26 + $0x3d8] sm:$0xff]  ;;  %v577_v2 = vld [vmem:[%s6221_s26 + $0x4c4] sm:$0xff]  ;;  %s5095_s9 = sshll.u32 %s8541_s8, 4  ;;  %s8515_s27 = smov %s8541_s8 }
  0x82   : >> { %574 = vst [vmem:[%s6217_s23 + $0x100] sm:$0xff] %v573_v0  ;;  %v579_v3 = vld [vmem:[%s6221_s26 + $0x4cc] sm:$0xff]  ;;  %576 = vst [vmem:[%s6217_s23 + $0x108] sm:$0xff] %v575_v1  ;;  %v581_v4 = vld [vmem:[%s6221_s26 + $0x5b8] sm:$0xff]  ;;  %s6815_s10 = scalar_lea.vmem %s6379_s28, %s5095_s9   ;;  %s6818_s6 = scalar_lea.vmem %s6383_s4, %s5095_s9 [#allocation2]  }
  0x83   : >> { %578 = vst [vmem:[%s6217_s23 + $0x140] sm:$0xff] %v577_v2  ;;  %580 = vst [vmem:[%s6217_s23 + $0x148] sm:$0xff] %v579_v3  ;;  %v583_v5 = vld [vmem:[%s6221_s26 + $0x5c0] sm:$0xff]  ;;  %v585_v6 = vld [vmem:[%s6221_s26 + $0x6ac] sm:$0xff] }
  0x84   : >> { %582 = vst [vmem:[%s6217_s23 + $0x180] sm:$0xff] %v581_v4  ;;  %584 = vst [vmem:[%s6217_s23 + $0x188] sm:$0xff] %v583_v5  ;;  %v587_v7 = vld [vmem:[%s6221_s26 + $0x6b4] sm:$0xff]  ;;  %v589_v8 = vld [vmem:[%s6221_s26 + $0x7a0] sm:$0xff] }
  0x85   : >> { %586 = vst [vmem:[%s6217_s23 + $0x1c0] sm:$0xff] %v585_v6  ;;  %v591_v9 = vld [vmem:[%s6221_s26 + $0x7a8] sm:$0xff]  ;;  %588 = vst [vmem:[%s6217_s23 + $0x1c8] sm:$0xff] %v587_v7  ;;  %v593_v10 = vld [vmem:[%s6221_s26 + $0x894] sm:$0xff] }
  0x86   : >> { %590 = vst [vmem:[%s6217_s23 + $0x200] sm:$0xff] %v589_v8  ;;  %592 = vst [vmem:[%s6217_s23 + $0x208] sm:$0xff] %v591_v9  ;;  %v595_v11 = vld [vmem:[%s6221_s26 + $0x89c] sm:$0xff]  ;;  %v597_v12 = vld [vmem:[%s6221_s26 + $0x988] sm:$0xff] }
  0x87   : >> { %594 = vst [vmem:[%s6217_s23 + $0x240] sm:$0xff] %v593_v10  ;;  %596 = vst [vmem:[%s6217_s23 + $0x248] sm:$0xff] %v595_v11  ;;  %v599_v13 = vld [vmem:[%s6221_s26 + $0x990] sm:$0xff]  ;;  %v601_v14 = vld [vmem:[%s6221_s26 + $0xa7c] sm:$0xff] }
  0x88   : >> { %598 = vst [vmem:[%s6217_s23 + $0x280] sm:$0xff] %v597_v12  ;;  %v603_v15 = vld [vmem:[%s6221_s26 + $0xa84] sm:$0xff]  ;;  %600 = vst [vmem:[%s6217_s23 + $0x288] sm:$0xff] %v599_v13  ;;  %v605_v16 = vld [vmem:[%s6221_s26 + $0xb70] sm:$0xff] }
  0x89   : >> { %602 = vst [vmem:[%s6217_s23 + $0x2c0] sm:$0xff] %v601_v14  ;;  %604 = vst [vmem:[%s6217_s23 + $0x2c8] sm:$0xff] %v603_v15  ;;  %v607_v17 = vld [vmem:[%s6221_s26 + $0xb78] sm:$0xff]  ;;  %v609_v18 = vld [vmem:[%s6221_s26 + $0xc64] sm:$0xff] }
  0x8a   : >> { %606 = vst [vmem:[%s6217_s23 + $0x300] sm:$0xff] %v605_v16  ;;  %608 = vst [vmem:[%s6217_s23 + $0x308] sm:$0xff] %v607_v17  ;;  %v611_v19 = vld [vmem:[%s6221_s26 + $0xc6c] sm:$0xff]  ;;  %v613_v20 = vld [vmem:[%s6221_s26 + $0xd58] sm:$0xff] }
  0x8b   : >> { %610 = vst [vmem:[%s6217_s23 + $0x340] sm:$0xff] %v609_v18  ;;  %v615_v21 = vld [vmem:[%s6221_s26 + $0xd60] sm:$0xff]  ;;  %612 = vst [vmem:[%s6217_s23 + $0x348] sm:$0xff] %v611_v19  ;;  %v617_v22 = vld [vmem:[%s6221_s26 + $0xe4c] sm:$0xff] }
  0x8c   : >> { %614 = vst [vmem:[%s6217_s23 + $0x380] sm:$0xff] %v613_v20  ;;  %616 = vst [vmem:[%s6217_s23 + $0x388] sm:$0xff] %v615_v21  ;;  %v619_v23 = vld [vmem:[%s6221_s26 + $0xe54] sm:$0xff]  ;;  %v621_v24 = vld [vmem:[%s6221_s26 + $0xf40] sm:$0xff] }
  0x8d   : >> { %618 = vst [vmem:[%s6217_s23 + $0x3c0] sm:$0xff] %v617_v22  ;;  %620 = vst [vmem:[%s6217_s23 + $0x3c8] sm:$0xff] %v619_v23  ;;  %v623_v25 = vld [vmem:[%s6221_s26 + $0xf48] sm:$0xff]  ;;  %v625_v26 = vld [vmem:[%s6221_s26 + $0x1034] sm:$0xff] }
  0x8e   : >> { %622 = vst [vmem:[%s6217_s23 + $0x400] sm:$0xff] %v621_v24  ;;  %v627_v27 = vld [vmem:[%s6221_s26 + $0x103c] sm:$0xff]  ;;  %624 = vst [vmem:[%s6217_s23 + $0x408] sm:$0xff] %v623_v25  ;;  %v629_v28 = vld [vmem:[%s6221_s26 + $0x1128] sm:$0xff] }
  0x8f   : >> { %626 = vst [vmem:[%s6217_s23 + $0x440] sm:$0xff] %v625_v26  ;;  %628 = vst [vmem:[%s6217_s23 + $0x448] sm:$0xff] %v627_v27  ;;  %v631_v29 = vld [vmem:[%s6221_s26 + $0x1130] sm:$0xff]  ;;  %v633_v30 = vld [vmem:[%s6221_s26 + $0x121c] sm:$0xff] }
  0x90   : >> { %630 = vst [vmem:[%s6217_s23 + $0x480] sm:$0xff] %v629_v28  ;;  %632 = vst [vmem:[%s6217_s23 + $0x488] sm:$0xff] %v631_v29  ;;  %v635_v31 = vld [vmem:[%s6221_s26 + $0x1224] sm:$0xff]  ;;  %v637_v32 = vld [vmem:[%s6221_s26 + $0x1310] sm:$0xff] }
  0x91   : >> { %634 = vst [vmem:[%s6217_s23 + $0x4c0] sm:$0xff] %v633_v30  ;;  %v639_v33 = vld [vmem:[%s6221_s26 + $0x1318] sm:$0xff]  ;;  %636 = vst [vmem:[%s6217_s23 + $0x4c8] sm:$0xff] %v635_v31  ;;  %v641_v34 = vld [vmem:[%s6221_s26 + $0x1404] sm:$0xff] }
  0x92   : >> { %638 = vst [vmem:[%s6217_s23 + $0x500] sm:$0xff] %v637_v32  ;;  %640 = vst [vmem:[%s6217_s23 + $0x508] sm:$0xff] %v639_v33  ;;  %v643_v35 = vld [vmem:[%s6221_s26 + $0x140c] sm:$0xff]  ;;  %v645_v36 = vld [vmem:[%s6221_s26 + $0x14f8] sm:$0xff] }
  0x93   : >> { %642 = vst [vmem:[%s6217_s23 + $0x540] sm:$0xff] %v641_v34  ;;  %644 = vst [vmem:[%s6217_s23 + $0x548] sm:$0xff] %v643_v35  ;;  %v647_v37 = vld [vmem:[%s6221_s26 + $0x1500] sm:$0xff]  ;;  %v649_v38 = vld [vmem:[%s6221_s26 + $0x15ec] sm:$0xff] }
  0x94   : >> { %646 = vst [vmem:[%s6217_s23 + $0x580] sm:$0xff] %v645_v36  ;;  %v651_v39 = vld [vmem:[%s6221_s26 + $0x15f4] sm:$0xff]  ;;  %648 = vst [vmem:[%s6217_s23 + $0x588] sm:$0xff] %v647_v37  ;;  %v653_v40 = vld [vmem:[%s6221_s26 + $0x16e0] sm:$0xff] }
  0x95   : >> { %650 = vst [vmem:[%s6217_s23 + $0x5c0] sm:$0xff] %v649_v38  ;;  %652 = vst [vmem:[%s6217_s23 + $0x5c8] sm:$0xff] %v651_v39  ;;  %v655_v41 = vld [vmem:[%s6221_s26 + $0x16e8] sm:$0xff]  ;;  %v657_v42 = vld [vmem:[%s6221_s26 + $0x17d4] sm:$0xff] }
  0x96   : >> { %654 = vst [vmem:[%s6217_s23 + $0x600] sm:$0xff] %v653_v40  ;;  %656 = vst [vmem:[%s6217_s23 + $0x608] sm:$0xff] %v655_v41  ;;  %v659_v43 = vld [vmem:[%s6221_s26 + $0x17dc] sm:$0xff]  ;;  %v661_v44 = vld [vmem:[%s6221_s26 + $0x18c8] sm:$0xff] }
  0x97   : >> { %658 = vst [vmem:[%s6217_s23 + $0x640] sm:$0xff] %v657_v42  ;;  %v663_v45 = vld [vmem:[%s6221_s26 + $0x18d0] sm:$0xff]  ;;  %660 = vst [vmem:[%s6217_s23 + $0x648] sm:$0xff] %v659_v43  ;;  %v665_v46 = vld [vmem:[%s6221_s26 + $0x19bc] sm:$0xff] }
  0x98   : >> { %662 = vst [vmem:[%s6217_s23 + $0x680] sm:$0xff] %v661_v44  ;;  %664 = vst [vmem:[%s6217_s23 + $0x688] sm:$0xff] %v663_v45  ;;  %v667_v47 = vld [vmem:[%s6221_s26 + $0x19c4] sm:$0xff]  ;;  %v669_v48 = vld [vmem:[%s6221_s26 + $0x1ab0] sm:$0xff] }
  0x99   : >> { %666 = vst [vmem:[%s6217_s23 + $0x6c0] sm:$0xff] %v665_v46  ;;  %668 = vst [vmem:[%s6217_s23 + $0x6c8] sm:$0xff] %v667_v47  ;;  %v671_v49 = vld [vmem:[%s6221_s26 + $0x1ab8] sm:$0xff]  ;;  %v673_v50 = vld [vmem:[%s6221_s26 + $0x1ba4] sm:$0xff] }
  0x9a   : >> { %670 = vst [vmem:[%s6217_s23 + $0x700] sm:$0xff] %v669_v48  ;;  %v675_v51 = vld [vmem:[%s6221_s26 + $0x1bac] sm:$0xff]  ;;  %672 = vst [vmem:[%s6217_s23 + $0x708] sm:$0xff] %v671_v49  ;;  %v677_v52 = vld [vmem:[%s6221_s26 + $0x1c98] sm:$0xff] }
  0x9b   : >> { %674 = vst [vmem:[%s6217_s23 + $0x740] sm:$0xff] %v673_v50  ;;  %676 = vst [vmem:[%s6217_s23 + $0x748] sm:$0xff] %v675_v51  ;;  %v679_v53 = vld [vmem:[%s6221_s26 + $0x1ca0] sm:$0xff]  ;;  %v681_v54 = vld [vmem:[%s6221_s26 + $0x1d8c] sm:$0xff] }
  0x9c   : >> { %678 = vst [vmem:[%s6217_s23 + $0x780] sm:$0xff] %v677_v52  ;;  %680 = vst [vmem:[%s6217_s23 + $0x788] sm:$0xff] %v679_v53  ;;  %v683_v55 = vld [vmem:[%s6221_s26 + $0x1d94] sm:$0xff]  ;;  %v685_v56 = vld [vmem:[%s6221_s26 + $0x1e80] sm:$0xff] }
  0x9d   : >> { %682 = vst [vmem:[%s6217_s23 + $0x7c0] sm:$0xff] %v681_v54  ;;  %v687_v57 = vld [vmem:[%s6221_s26 + $0x1e88] sm:$0xff]  ;;  %684 = vst [vmem:[%s6217_s23 + $0x7c8] sm:$0xff] %v683_v55  ;;  %v689_v58 = vld [vmem:[%s6221_s26 + $0x1f74] sm:$0xff] }
  0x9e   : >> { %686 = vst [vmem:[%s6217_s23 + $0x800] sm:$0xff] %v685_v56  ;;  %688 = vst [vmem:[%s6217_s23 + $0x808] sm:$0xff] %v687_v57  ;;  %v691_v59 = vld [vmem:[%s6221_s26 + $0x1f7c] sm:$0xff]  ;;  %v693_v60 = vld [vmem:[%s6221_s26 + $0x2068] sm:$0xff] }
  0x9f   : >> { %690 = vst [vmem:[%s6217_s23 + $0x840] sm:$0xff] %v689_v58  ;;  %692 = vst [vmem:[%s6217_s23 + $0x848] sm:$0xff] %v691_v59  ;;  %v695_v61 = vld [vmem:[%s6221_s26 + $0x2070] sm:$0xff]  ;;  %v697_v62 = vld [vmem:[%s6221_s26 + $0x215c] sm:$0xff] }
  0xa0   : >> { %694 = vst [vmem:[%s6217_s23 + $0x880] sm:$0xff] %v693_v60  ;;  %v699_v63 = vld [vmem:[%s6221_s26 + $0x2164] sm:$0xff]  ;;  %696 = vst [vmem:[%s6217_s23 + $0x888] sm:$0xff] %v695_v61  ;;  %v701_v0 = vld [vmem:[%s6221_s26 + $0x2250] sm:$0xff] }
  0xa1   : >> { %698 = vst [vmem:[%s6217_s23 + $0x8c0] sm:$0xff] %v697_v62  ;;  %700 = vst [vmem:[%s6217_s23 + $0x8c8] sm:$0xff] %v699_v63  ;;  %v703_v1 = vld [vmem:[%s6221_s26 + $0x2258] sm:$0xff]  ;;  %v705_v2 = vld [vmem:[%s6221_s26 + $0x2344] sm:$0xff]  ;;  %553 = sbr.rel (!%p550_p7) target bundleno = 125 (0x7d), region = 260 }
  0xa2   : >> { %702 = vst [vmem:[%s6217_s23 + $0x900] sm:$0xff] %v701_v0  ;;  %704 = vst [vmem:[%s6217_s23 + $0x908] sm:$0xff] %v703_v1  ;;  %v707_v3 = vld [vmem:[%s6221_s26 + $0x234c] sm:$0xff]  ;;  %v709_v4 = vld [vmem:[%s6221_s26 + $0x2438] sm:$0xff] }
  0xa3   : >> { %706 = vst [vmem:[%s6217_s23 + $0x940] sm:$0xff] %v705_v2  ;;  %v711_v5 = vld [vmem:[%s6221_s26 + $0x2440] sm:$0xff]  ;;  %708 = vst [vmem:[%s6217_s23 + $0x948] sm:$0xff] %v707_v3  ;;  %v713_v6 = vld [vmem:[%s6221_s26 + $0x252c] sm:$0xff] }
  0xa4   : >> { %710 = vst [vmem:[%s6217_s23 + $0x980] sm:$0xff] %v709_v4  ;;  %712 = vst [vmem:[%s6217_s23 + $0x988] sm:$0xff] %v711_v5  ;;  %v715_v7 = vld [vmem:[%s6221_s26 + $0x2534] sm:$0xff]  ;;  %s8514_s26 = smov %s6815_s10 }
  0xa5   : >> { %714 = vst [vmem:[%s6217_s23 + $0x9c0] sm:$0xff] %v713_v6  ;;  %716 = vst [vmem:[%s6217_s23 + $0x9c8] sm:$0xff] %v715_v7  ;;  %s8513_s23 = smov %s6818_s6 }
  0xa6 PF: > { %s6956_s7 = sand.u32 1, %s544_s21   ;;  %s5734_s11 = sshll.u32 %s6748_s25, 8 }
  0xa7   : > { %s728_s17 = sshra.s32 %s5734_s11, 4  ;;  %p5100_p8 = scmp.le.s32.totalorder %s6956_s7, 0 }
  0xa8   : > { %s6960_s18 = scalar_lea.vmem %s6379_s28, %s728_s17   ;;  %s6963_s9 = scalar_lea.vmem %s6383_s4, %s728_s17 [#allocation2]  }
  0xa9   : > { %4990 = sbr.rel (%p5100_p8) target bundleno = 195 (0xc3), region = 265  ;;  %s8516_s23 = smov (!%p5100_p8), %s6963_s9 }
  0xaa   : > { %s8517_s26 = smov (!%p5100_p8), %s6960_s18  ;;  %s6972_s27 = smov (!%p5100_p8), 0  }
  0xab   : > { %s6974_s29 = smov (!%p5100_p8), 0  }
  0xae LB: >> { %v744_v8 = vld [vmem:[%s6237_s26] sm:$0xff]  ;;  %v746_v9 = vld [vmem:[%s6237_s26 + $0xf4] sm:$0xff]  ;;  %v748_v10 = vld [vmem:[%s6237_s26 + $0x1e8] sm:$0xff]  ;;  %s824_s21 = sadd.s32 1, %s6241_s27  ;;  %s738_s29 = sadd.s32 1, %s6245_s29   ;;  %s6245_s29 = sphi %s6974_s29, %s738_s29   ;;  %s6241_s27 = sphi %s6972_s27, %s8520_s27   ;;  %s6237_s26 = sphi %s8517_s26, %s8519_s26   ;;  %s6233_s23 = sphi %s8516_s23, %s8518_s23  }
  0xaf   : >> { %745 = vst [vmem:[%s6233_s23] sm:$0xff] %v744_v8  ;;  %747 = vst [vmem:[%s6233_s23 + $0x40] sm:$0xff] %v746_v9  ;;  %v750_v11 = vld [vmem:[%s6237_s26 + $0x2dc] sm:$0xff]  ;;  %v752_v12 = vld [vmem:[%s6237_s26 + $0x3d0] sm:$0xff]  ;;  %p825_p9 = scmp.ge.s32.totalorder %s824_s21, %s6956_s7  ;;  %p737_p10 = scmp.ge.s32.totalorder %s738_s29, %s6956_s7 }
  0xb0   : >> { %749 = vst [vmem:[%s6233_s23 + $0x80] sm:$0xff] %v748_v10  ;;  %v754_v13 = vld [vmem:[%s6237_s26 + $0x4c4] sm:$0xff]  ;;  %751 = vst [vmem:[%s6233_s23 + $0xc0] sm:$0xff] %v750_v11  ;;  %v756_v14 = vld [vmem:[%s6237_s26 + $0x5b8] sm:$0xff] }
  0xb1   : >> { %753 = vst [vmem:[%s6233_s23 + $0x100] sm:$0xff] %v752_v12  ;;  %755 = vst [vmem:[%s6233_s23 + $0x140] sm:$0xff] %v754_v13  ;;  %v758_v15 = vld [vmem:[%s6237_s26 + $0x6ac] sm:$0xff]  ;;  %v760_v16 = vld [vmem:[%s6237_s26 + $0x7a0] sm:$0xff]  ;;  %s8543_s21 = smov (%p825_p9, %s824_s21), 0 }
  0xb2   : >> { %757 = vst [vmem:[%s6233_s23 + $0x180] sm:$0xff] %v756_v14  ;;  %759 = vst [vmem:[%s6233_s23 + $0x1c0] sm:$0xff] %v758_v15  ;;  %v762_v17 = vld [vmem:[%s6237_s26 + $0x894] sm:$0xff]  ;;  %v764_v18 = vld [vmem:[%s6237_s26 + $0x988] sm:$0xff]  ;;  %s5101_s25 = sshll.u32 %s8543_s21, 3  ;;  %s8520_s27 = smov %s8543_s21 }
  0xb3   : >> { %761 = vst [vmem:[%s6233_s23 + $0x200] sm:$0xff] %v760_v16  ;;  %v766_v19 = vld [vmem:[%s6237_s26 + $0xa7c] sm:$0xff]  ;;  %763 = vst [vmem:[%s6233_s23 + $0x240] sm:$0xff] %v762_v17  ;;  %v768_v20 = vld [vmem:[%s6237_s26 + $0xb70] sm:$0xff]  ;;  %s7030_s8 = scalar_lea.vmem %s6960_s18, %s5101_s25   ;;  %s7033_s10 = scalar_lea.vmem %s6963_s9, %s5101_s25 [#allocation2]  }
  0xb4   : >> { %765 = vst [vmem:[%s6233_s23 + $0x280] sm:$0xff] %v764_v18  ;;  %767 = vst [vmem:[%s6233_s23 + $0x2c0] sm:$0xff] %v766_v19  ;;  %v770_v21 = vld [vmem:[%s6237_s26 + $0xc64] sm:$0xff]  ;;  %v772_v22 = vld [vmem:[%s6237_s26 + $0xd58] sm:$0xff] }
  0xb5   : >> { %769 = vst [vmem:[%s6233_s23 + $0x300] sm:$0xff] %v768_v20  ;;  %771 = vst [vmem:[%s6233_s23 + $0x340] sm:$0xff] %v770_v21  ;;  %v774_v23 = vld [vmem:[%s6237_s26 + $0xe4c] sm:$0xff]  ;;  %v776_v24 = vld [vmem:[%s6237_s26 + $0xf40] sm:$0xff] }
  0xb6   : >> { %773 = vst [vmem:[%s6233_s23 + $0x380] sm:$0xff] %v772_v22  ;;  %v778_v25 = vld [vmem:[%s6237_s26 + $0x1034] sm:$0xff]  ;;  %775 = vst [vmem:[%s6233_s23 + $0x3c0] sm:$0xff] %v774_v23  ;;  %v780_v26 = vld [vmem:[%s6237_s26 + $0x1128] sm:$0xff] }
  0xb7   : >> { %777 = vst [vmem:[%s6233_s23 + $0x400] sm:$0xff] %v776_v24  ;;  %779 = vst [vmem:[%s6233_s23 + $0x440] sm:$0xff] %v778_v25  ;;  %v782_v27 = vld [vmem:[%s6237_s26 + $0x121c] sm:$0xff]  ;;  %v784_v28 = vld [vmem:[%s6237_s26 + $0x1310] sm:$0xff] }
  0xb8   : >> { %781 = vst [vmem:[%s6233_s23 + $0x480] sm:$0xff] %v780_v26  ;;  %783 = vst [vmem:[%s6233_s23 + $0x4c0] sm:$0xff] %v782_v27  ;;  %v786_v29 = vld [vmem:[%s6237_s26 + $0x1404] sm:$0xff]  ;;  %v788_v30 = vld [vmem:[%s6237_s26 + $0x14f8] sm:$0xff] }
  0xb9   : >> { %785 = vst [vmem:[%s6233_s23 + $0x500] sm:$0xff] %v784_v28  ;;  %v790_v31 = vld [vmem:[%s6237_s26 + $0x15ec] sm:$0xff]  ;;  %787 = vst [vmem:[%s6233_s23 + $0x540] sm:$0xff] %v786_v29  ;;  %v792_v32 = vld [vmem:[%s6237_s26 + $0x16e0] sm:$0xff] }
  0xba   : >> { %789 = vst [vmem:[%s6233_s23 + $0x580] sm:$0xff] %v788_v30  ;;  %791 = vst [vmem:[%s6233_s23 + $0x5c0] sm:$0xff] %v790_v31  ;;  %v794_v33 = vld [vmem:[%s6237_s26 + $0x17d4] sm:$0xff]  ;;  %v796_v34 = vld [vmem:[%s6237_s26 + $0x18c8] sm:$0xff] }
  0xbb   : >> { %793 = vst [vmem:[%s6233_s23 + $0x600] sm:$0xff] %v792_v32  ;;  %795 = vst [vmem:[%s6233_s23 + $0x640] sm:$0xff] %v794_v33  ;;  %v798_v35 = vld [vmem:[%s6237_s26 + $0x19bc] sm:$0xff]  ;;  %v800_v36 = vld [vmem:[%s6237_s26 + $0x1ab0] sm:$0xff] }
  0xbc   : >> { %797 = vst [vmem:[%s6233_s23 + $0x680] sm:$0xff] %v796_v34  ;;  %v802_v37 = vld [vmem:[%s6237_s26 + $0x1ba4] sm:$0xff]  ;;  %799 = vst [vmem:[%s6233_s23 + $0x6c0] sm:$0xff] %v798_v35  ;;  %v804_v38 = vld [vmem:[%s6237_s26 + $0x1c98] sm:$0xff] }
  0xbd   : >> { %801 = vst [vmem:[%s6233_s23 + $0x700] sm:$0xff] %v800_v36  ;;  %803 = vst [vmem:[%s6233_s23 + $0x740] sm:$0xff] %v802_v37  ;;  %v806_v39 = vld [vmem:[%s6237_s26 + $0x1d8c] sm:$0xff]  ;;  %v808_v40 = vld [vmem:[%s6237_s26 + $0x1e80] sm:$0xff] }
  0xbe   : >> { %805 = vst [vmem:[%s6233_s23 + $0x780] sm:$0xff] %v804_v38  ;;  %807 = vst [vmem:[%s6233_s23 + $0x7c0] sm:$0xff] %v806_v39  ;;  %v810_v41 = vld [vmem:[%s6237_s26 + $0x1f74] sm:$0xff]  ;;  %v812_v42 = vld [vmem:[%s6237_s26 + $0x2068] sm:$0xff]  ;;  %740 = sbr.rel (!%p737_p10) target bundleno = 174 (0xae), region = 271 }
  0xbf   : >> { %809 = vst [vmem:[%s6233_s23 + $0x800] sm:$0xff] %v808_v40  ;;  %v814_v43 = vld [vmem:[%s6237_s26 + $0x215c] sm:$0xff]  ;;  %811 = vst [vmem:[%s6233_s23 + $0x840] sm:$0xff] %v810_v41  ;;  %v816_v44 = vld [vmem:[%s6237_s26 + $0x2250] sm:$0xff] }
  0xc0   : >> { %813 = vst [vmem:[%s6233_s23 + $0x880] sm:$0xff] %v812_v42  ;;  %815 = vst [vmem:[%s6233_s23 + $0x8c0] sm:$0xff] %v814_v43  ;;  %v818_v45 = vld [vmem:[%s6237_s26 + $0x2344] sm:$0xff]  ;;  %v820_v46 = vld [vmem:[%s6237_s26 + $0x2438] sm:$0xff] }
  0xc1   : >> { %817 = vst [vmem:[%s6233_s23 + $0x900] sm:$0xff] %v816_v44  ;;  %819 = vst [vmem:[%s6233_s23 + $0x940] sm:$0xff] %v818_v45  ;;  %v822_v47 = vld [vmem:[%s6237_s26 + $0x252c] sm:$0xff]  ;;  %s8519_s26 = smov %s7030_s8 }
  0xc2   : >> { %821 = vst [vmem:[%s6233_s23 + $0x980] sm:$0xff] %v820_v46  ;;  %823 = vst [vmem:[%s6233_s23 + $0x9c0] sm:$0xff] %v822_v47  ;;  %s8518_s23 = smov %s7033_s10 }
  0xc3 PF: > { %s6311_s6 = smov 1  }
  0xc4   : > { %s831_s11 = sshll.u32 %s6311_s6, %s6387_s5 }
  0xc5   : > { %s7090_s17 = sadd.s32 4294967295, %s831_s11 }
  0xc6   : > { %v841_v48 = vld [vmem:[%s6741_s22] sm:%s7090_s17]  ;;  %v843_v49 = vld [vmem:[%s6741_s22 + $0xf4] sm:%s7090_s17] }
  0xc7   : > { %842 = vst [vmem:[%s6744_s24] sm:%s7090_s17] %v841_v48  ;;  %844 = vst [vmem:[%s6744_s24 + $0x40] sm:%s7090_s17] %v843_v49 }
  0xc8   : > { %v845_v50 = vld [vmem:[%s6741_s22 + $0x1e8] sm:%s7090_s17]  ;;  %v847_v51 = vld [vmem:[%s6741_s22 + $0x2dc] sm:%s7090_s17] }
  0xc9   : > { %846 = vst [vmem:[%s6744_s24 + $0x80] sm:%s7090_s17] %v845_v50  ;;  %848 = vst [vmem:[%s6744_s24 + $0xc0] sm:%s7090_s17] %v847_v51 }
  0xca   : > { %v849_v52 = vld [vmem:[%s6741_s22 + $0x3d0] sm:%s7090_s17]  ;;  %v851_v53 = vld [vmem:[%s6741_s22 + $0x4c4] sm:%s7090_s17] }
  0xcb   : > { %850 = vst [vmem:[%s6744_s24 + $0x100] sm:%s7090_s17] %v849_v52  ;;  %852 = vst [vmem:[%s6744_s24 + $0x140] sm:%s7090_s17] %v851_v53 }
  0xcc   : > { %v853_v54 = vld [vmem:[%s6741_s22 + $0x5b8] sm:%s7090_s17]  ;;  %v855_v55 = vld [vmem:[%s6741_s22 + $0x6ac] sm:%s7090_s17] }
  0xcd   : > { %854 = vst [vmem:[%s6744_s24 + $0x180] sm:%s7090_s17] %v853_v54  ;;  %856 = vst [vmem:[%s6744_s24 + $0x1c0] sm:%s7090_s17] %v855_v55 }
  0xce   : > { %v857_v56 = vld [vmem:[%s6741_s22 + $0x7a0] sm:%s7090_s17]  ;;  %v859_v57 = vld [vmem:[%s6741_s22 + $0x894] sm:%s7090_s17] }
  0xcf   : > { %858 = vst [vmem:[%s6744_s24 + $0x200] sm:%s7090_s17] %v857_v56  ;;  %860 = vst [vmem:[%s6744_s24 + $0x240] sm:%s7090_s17] %v859_v57 }
  0xd0   : > { %v861_v58 = vld [vmem:[%s6741_s22 + $0x988] sm:%s7090_s17]  ;;  %v863_v59 = vld [vmem:[%s6741_s22 + $0xa7c] sm:%s7090_s17] }
  0xd1   : > { %862 = vst [vmem:[%s6744_s24 + $0x280] sm:%s7090_s17] %v861_v58  ;;  %864 = vst [vmem:[%s6744_s24 + $0x2c0] sm:%s7090_s17] %v863_v59 }
  0xd2   : > { %v865_v60 = vld [vmem:[%s6741_s22 + $0xb70] sm:%s7090_s17]  ;;  %v867_v61 = vld [vmem:[%s6741_s22 + $0xc64] sm:%s7090_s17] }
  0xd3   : > { %866 = vst [vmem:[%s6744_s24 + $0x300] sm:%s7090_s17] %v865_v60  ;;  %868 = vst [vmem:[%s6744_s24 + $0x340] sm:%s7090_s17] %v867_v61 }
  0xd4   : > { %v869_v62 = vld [vmem:[%s6741_s22 + $0xd58] sm:%s7090_s17]  ;;  %v871_v63 = vld [vmem:[%s6741_s22 + $0xe4c] sm:%s7090_s17] }
  0xd5   : > { %870 = vst [vmem:[%s6744_s24 + $0x380] sm:%s7090_s17] %v869_v62  ;;  %872 = vst [vmem:[%s6744_s24 + $0x3c0] sm:%s7090_s17] %v871_v63 }
  0xd6   : > { %v873_v0 = vld [vmem:[%s6741_s22 + $0xf40] sm:%s7090_s17]  ;;  %v875_v1 = vld [vmem:[%s6741_s22 + $0x1034] sm:%s7090_s17] }
  0xd7   : > { %874 = vst [vmem:[%s6744_s24 + $0x400] sm:%s7090_s17] %v873_v0  ;;  %876 = vst [vmem:[%s6744_s24 + $0x440] sm:%s7090_s17] %v875_v1 }
  0xd8   : > { %v877_v2 = vld [vmem:[%s6741_s22 + $0x1128] sm:%s7090_s17]  ;;  %v879_v3 = vld [vmem:[%s6741_s22 + $0x121c] sm:%s7090_s17] }
  0xd9   : > { %878 = vst [vmem:[%s6744_s24 + $0x480] sm:%s7090_s17] %v877_v2  ;;  %880 = vst [vmem:[%s6744_s24 + $0x4c0] sm:%s7090_s17] %v879_v3 }
  0xda   : > { %v881_v4 = vld [vmem:[%s6741_s22 + $0x1310] sm:%s7090_s17]  ;;  %v883_v5 = vld [vmem:[%s6741_s22 + $0x1404] sm:%s7090_s17] }
  0xdb   : > { %882 = vst [vmem:[%s6744_s24 + $0x500] sm:%s7090_s17] %v881_v4  ;;  %884 = vst [vmem:[%s6744_s24 + $0x540] sm:%s7090_s17] %v883_v5 }
  0xdc   : > { %v885_v6 = vld [vmem:[%s6741_s22 + $0x14f8] sm:%s7090_s17]  ;;  %v887_v7 = vld [vmem:[%s6741_s22 + $0x15ec] sm:%s7090_s17] }
  0xdd   : > { %886 = vst [vmem:[%s6744_s24 + $0x580] sm:%s7090_s17] %v885_v6  ;;  %888 = vst [vmem:[%s6744_s24 + $0x5c0] sm:%s7090_s17] %v887_v7 }
  0xde   : > { %v889_v8 = vld [vmem:[%s6741_s22 + $0x16e0] sm:%s7090_s17]  ;;  %v891_v9 = vld [vmem:[%s6741_s22 + $0x17d4] sm:%s7090_s17] }
  0xdf   : > { %890 = vst [vmem:[%s6744_s24 + $0x600] sm:%s7090_s17] %v889_v8  ;;  %892 = vst [vmem:[%s6744_s24 + $0x640] sm:%s7090_s17] %v891_v9 }
  0xe0   : > { %v893_v10 = vld [vmem:[%s6741_s22 + $0x18c8] sm:%s7090_s17]  ;;  %v895_v11 = vld [vmem:[%s6741_s22 + $0x19bc] sm:%s7090_s17] }
  0xe1   : > { %894 = vst [vmem:[%s6744_s24 + $0x680] sm:%s7090_s17] %v893_v10  ;;  %896 = vst [vmem:[%s6744_s24 + $0x6c0] sm:%s7090_s17] %v895_v11 }
  0xe2   : > { %v897_v12 = vld [vmem:[%s6741_s22 + $0x1ab0] sm:%s7090_s17]  ;;  %v899_v13 = vld [vmem:[%s6741_s22 + $0x1ba4] sm:%s7090_s17] }
  0xe3   : > { %898 = vst [vmem:[%s6744_s24 + $0x700] sm:%s7090_s17] %v897_v12  ;;  %900 = vst [vmem:[%s6744_s24 + $0x740] sm:%s7090_s17] %v899_v13 }
  0xe4   : > { %v901_v14 = vld [vmem:[%s6741_s22 + $0x1c98] sm:%s7090_s17]  ;;  %v903_v15 = vld [vmem:[%s6741_s22 + $0x1d8c] sm:%s7090_s17] }
  0xe5   : > { %902 = vst [vmem:[%s6744_s24 + $0x780] sm:%s7090_s17] %v901_v14  ;;  %904 = vst [vmem:[%s6744_s24 + $0x7c0] sm:%s7090_s17] %v903_v15 }
  0xe6   : > { %v905_v16 = vld [vmem:[%s6741_s22 + $0x1e80] sm:%s7090_s17]  ;;  %v907_v17 = vld [vmem:[%s6741_s22 + $0x1f74] sm:%s7090_s17] }
  0xe7   : > { %906 = vst [vmem:[%s6744_s24 + $0x800] sm:%s7090_s17] %v905_v16  ;;  %908 = vst [vmem:[%s6744_s24 + $0x840] sm:%s7090_s17] %v907_v17 }
  0xe8   : > { %v909_v18 = vld [vmem:[%s6741_s22 + $0x2068] sm:%s7090_s17]  ;;  %v911_v19 = vld [vmem:[%s6741_s22 + $0x215c] sm:%s7090_s17] }
  0xe9   : > { %910 = vst [vmem:[%s6744_s24 + $0x880] sm:%s7090_s17] %v909_v18  ;;  %912 = vst [vmem:[%s6744_s24 + $0x8c0] sm:%s7090_s17] %v911_v19 }
  0xea   : > { %v913_v20 = vld [vmem:[%s6741_s22 + $0x2250] sm:%s7090_s17]  ;;  %v915_v21 = vld [vmem:[%s6741_s22 + $0x2344] sm:%s7090_s17] }
  0xeb   : > { %914 = vst [vmem:[%s6744_s24 + $0x900] sm:%s7090_s17] %v913_v20  ;;  %916 = vst [vmem:[%s6744_s24 + $0x940] sm:%s7090_s17] %v915_v21 }
  0xec   : > { %v917_v22 = vld [vmem:[%s6741_s22 + $0x2438] sm:%s7090_s17]  ;;  %v919_v23 = vld [vmem:[%s6741_s22 + $0x252c] sm:%s7090_s17] }
  0xed   : > { %918 = vst [vmem:[%s6744_s24 + $0x980] sm:%s7090_s17] %v917_v22  ;;  %920 = vst [vmem:[%s6744_s24 + $0x9c0] sm:%s7090_s17] %v919_v23 }
  0xee PF: > { %p5104_p11 = scmp.ge.u32.totalorder %s6381_s30, 8 }
  0xef   : > { %s6312_s5 = smov (!%p5104_p11), 1  }
  0xf0   : > { %153 = sbr.rel (%p5104_p11) target bundleno = 285 (0x11d), region = 40  ;;  %s154_s22 = sshll.u32 (!%p5104_p11), %s6312_s5, %s6381_s30 }
  0xf1   : > { %s7254_s24 = sadd.s32 (!%p5104_p11), 4294967295, %s154_s22 }
  0xf5   : > { %v164_v24 = vld [vmem:[%s6379_s28] sm:%s7254_s24]  ;;  %v166_v25 = vld [vmem:[%s6379_s28 + $0xf4] sm:%s7254_s24] }
  0xf6   : > { %165 = vst [vmem:[%s6383_s4] sm:%s7254_s24] %v164_v24  ;;  %167 = vst [vmem:[%s6383_s4 + $0x40] sm:%s7254_s24] %v166_v25 }
  0xf7   : > { %v168_v26 = vld [vmem:[%s6379_s28 + $0x1e8] sm:%s7254_s24]  ;;  %v170_v27 = vld [vmem:[%s6379_s28 + $0x2dc] sm:%s7254_s24] }
  0xf8   : > { %169 = vst [vmem:[%s6383_s4 + $0x80] sm:%s7254_s24] %v168_v26  ;;  %171 = vst [vmem:[%s6383_s4 + $0xc0] sm:%s7254_s24] %v170_v27 }
  0xf9   : > { %v172_v28 = vld [vmem:[%s6379_s28 + $0x3d0] sm:%s7254_s24]  ;;  %v174_v29 = vld [vmem:[%s6379_s28 + $0x4c4] sm:%s7254_s24] }
  0xfa   : > { %173 = vst [vmem:[%s6383_s4 + $0x100] sm:%s7254_s24] %v172_v28  ;;  %175 = vst [vmem:[%s6383_s4 + $0x140] sm:%s7254_s24] %v174_v29 }
  0xfb   : > { %v176_v30 = vld [vmem:[%s6379_s28 + $0x5b8] sm:%s7254_s24]  ;;  %v178_v31 = vld [vmem:[%s6379_s28 + $0x6ac] sm:%s7254_s24] }
  0xfc   : > { %177 = vst [vmem:[%s6383_s4 + $0x180] sm:%s7254_s24] %v176_v30  ;;  %179 = vst [vmem:[%s6383_s4 + $0x1c0] sm:%s7254_s24] %v178_v31 }
  0xfd   : > { %v180_v32 = vld [vmem:[%s6379_s28 + $0x7a0] sm:%s7254_s24]  ;;  %v182_v33 = vld [vmem:[%s6379_s28 + $0x894] sm:%s7254_s24] }
  0xfe   : > { %181 = vst [vmem:[%s6383_s4 + $0x200] sm:%s7254_s24] %v180_v32  ;;  %183 = vst [vmem:[%s6383_s4 + $0x240] sm:%s7254_s24] %v182_v33 }
  0xff   : > { %v184_v34 = vld [vmem:[%s6379_s28 + $0x988] sm:%s7254_s24]  ;;  %v186_v35 = vld [vmem:[%s6379_s28 + $0xa7c] sm:%s7254_s24] }
 0x100   : > { %185 = vst [vmem:[%s6383_s4 + $0x280] sm:%s7254_s24] %v184_v34  ;;  %187 = vst [vmem:[%s6383_s4 + $0x2c0] sm:%s7254_s24] %v186_v35 }
 0x101   : > { %v188_v36 = vld [vmem:[%s6379_s28 + $0xb70] sm:%s7254_s24]  ;;  %v190_v37 = vld [vmem:[%s6379_s28 + $0xc64] sm:%s7254_s24] }
 0x102   : > { %189 = vst [vmem:[%s6383_s4 + $0x300] sm:%s7254_s24] %v188_v36  ;;  %191 = vst [vmem:[%s6383_s4 + $0x340] sm:%s7254_s24] %v190_v37 }
 0x103   : > { %v192_v38 = vld [vmem:[%s6379_s28 + $0xd58] sm:%s7254_s24]  ;;  %v194_v39 = vld [vmem:[%s6379_s28 + $0xe4c] sm:%s7254_s24] }
 0x104   : > { %193 = vst [vmem:[%s6383_s4 + $0x380] sm:%s7254_s24] %v192_v38  ;;  %195 = vst [vmem:[%s6383_s4 + $0x3c0] sm:%s7254_s24] %v194_v39 }
 0x105   : > { %v196_v40 = vld [vmem:[%s6379_s28 + $0xf40] sm:%s7254_s24]  ;;  %v198_v41 = vld [vmem:[%s6379_s28 + $0x1034] sm:%s7254_s24] }
 0x106   : > { %197 = vst [vmem:[%s6383_s4 + $0x400] sm:%s7254_s24] %v196_v40  ;;  %199 = vst [vmem:[%s6383_s4 + $0x440] sm:%s7254_s24] %v198_v41 }
 0x107   : > { %v200_v42 = vld [vmem:[%s6379_s28 + $0x1128] sm:%s7254_s24]  ;;  %v202_v43 = vld [vmem:[%s6379_s28 + $0x121c] sm:%s7254_s24] }
 0x108   : > { %201 = vst [vmem:[%s6383_s4 + $0x480] sm:%s7254_s24] %v200_v42  ;;  %203 = vst [vmem:[%s6383_s4 + $0x4c0] sm:%s7254_s24] %v202_v43 }
 0x109   : > { %v204_v44 = vld [vmem:[%s6379_s28 + $0x1310] sm:%s7254_s24]  ;;  %v206_v45 = vld [vmem:[%s6379_s28 + $0x1404] sm:%s7254_s24] }
 0x10a   : > { %205 = vst [vmem:[%s6383_s4 + $0x500] sm:%s7254_s24] %v204_v44  ;;  %207 = vst [vmem:[%s6383_s4 + $0x540] sm:%s7254_s24] %v206_v45 }
 0x10b   : > { %v208_v46 = vld [vmem:[%s6379_s28 + $0x14f8] sm:%s7254_s24]  ;;  %v210_v47 = vld [vmem:[%s6379_s28 + $0x15ec] sm:%s7254_s24] }
 0x10c   : > { %209 = vst [vmem:[%s6383_s4 + $0x580] sm:%s7254_s24] %v208_v46  ;;  %211 = vst [vmem:[%s6383_s4 + $0x5c0] sm:%s7254_s24] %v210_v47 }
 0x10d   : > { %v212_v48 = vld [vmem:[%s6379_s28 + $0x16e0] sm:%s7254_s24]  ;;  %v214_v49 = vld [vmem:[%s6379_s28 + $0x17d4] sm:%s7254_s24] }
 0x10e   : > { %213 = vst [vmem:[%s6383_s4 + $0x600] sm:%s7254_s24] %v212_v48  ;;  %215 = vst [vmem:[%s6383_s4 + $0x640] sm:%s7254_s24] %v214_v49 }
 0x10f   : > { %v216_v50 = vld [vmem:[%s6379_s28 + $0x18c8] sm:%s7254_s24]  ;;  %v218_v51 = vld [vmem:[%s6379_s28 + $0x19bc] sm:%s7254_s24] }
 0x110   : > { %217 = vst [vmem:[%s6383_s4 + $0x680] sm:%s7254_s24] %v216_v50  ;;  %219 = vst [vmem:[%s6383_s4 + $0x6c0] sm:%s7254_s24] %v218_v51 }
 0x111   : > { %v220_v52 = vld [vmem:[%s6379_s28 + $0x1ab0] sm:%s7254_s24]  ;;  %v222_v53 = vld [vmem:[%s6379_s28 + $0x1ba4] sm:%s7254_s24] }
 0x112   : > { %221 = vst [vmem:[%s6383_s4 + $0x700] sm:%s7254_s24] %v220_v52  ;;  %223 = vst [vmem:[%s6383_s4 + $0x740] sm:%s7254_s24] %v222_v53 }
 0x113   : > { %v224_v54 = vld [vmem:[%s6379_s28 + $0x1c98] sm:%s7254_s24]  ;;  %v226_v55 = vld [vmem:[%s6379_s28 + $0x1d8c] sm:%s7254_s24] }
 0x114   : > { %225 = vst [vmem:[%s6383_s4 + $0x780] sm:%s7254_s24] %v224_v54  ;;  %227 = vst [vmem:[%s6383_s4 + $0x7c0] sm:%s7254_s24] %v226_v55 }
 0x115   : > { %v228_v56 = vld [vmem:[%s6379_s28 + $0x1e80] sm:%s7254_s24]  ;;  %v230_v57 = vld [vmem:[%s6379_s28 + $0x1f74] sm:%s7254_s24] }
 0x116   : > { %229 = vst [vmem:[%s6383_s4 + $0x800] sm:%s7254_s24] %v228_v56  ;;  %231 = vst [vmem:[%s6383_s4 + $0x840] sm:%s7254_s24] %v230_v57 }
 0x117   : > { %v232_v58 = vld [vmem:[%s6379_s28 + $0x2068] sm:%s7254_s24]  ;;  %v234_v59 = vld [vmem:[%s6379_s28 + $0x215c] sm:%s7254_s24] }
 0x118   : > { %233 = vst [vmem:[%s6383_s4 + $0x880] sm:%s7254_s24] %v232_v58  ;;  %235 = vst [vmem:[%s6383_s4 + $0x8c0] sm:%s7254_s24] %v234_v59 }
 0x119   : > { %v236_v60 = vld [vmem:[%s6379_s28 + $0x2250] sm:%s7254_s24]  ;;  %v238_v61 = vld [vmem:[%s6379_s28 + $0x2344] sm:%s7254_s24] }
 0x11a   : > { %237 = vst [vmem:[%s6383_s4 + $0x900] sm:%s7254_s24] %v236_v60  ;;  %239 = vst [vmem:[%s6383_s4 + $0x940] sm:%s7254_s24] %v238_v61 }
 0x11b   : > { %v240_v62 = vld [vmem:[%s6379_s28 + $0x2438] sm:%s7254_s24]  ;;  %v242_v63 = vld [vmem:[%s6379_s28 + $0x252c] sm:%s7254_s24] }
 0x11c   : > { %241 = vst [vmem:[%s6383_s4 + $0x980] sm:%s7254_s24] %v240_v62  ;;  %243 = vst [vmem:[%s6383_s4 + $0x9c0] sm:%s7254_s24] %v242_v63 }
 0x11d PF: > { %p5106_p12 = scmp.ge.s32.totalorder %s6181_s14, 1  ;;  %p923_p13 = scmp.lt.s32.totalorder %s6181_s14, 5 }
 0x11f   : > { %p924_p0 = pnand %p5106_p12, %p923_p13 }
 0x120   : > { %s930_s30 = sand.u32 (!%p924_p0), 1, %s6173_s12  }
 0x121   : > { %927 = sbr.rel (%p924_p0) target bundleno = 968 (0x3c8), region = 94  ;;  %s5107_s27 = sshll.u32 (!%p924_p0), %s930_s30, 7 }
 0x122   : > { %s5742_s7 = smul.u32 (!%p924_p0), 2560, %s930_s30  ;;  %s8032_s12 = scalar_lea.vmem (!%p924_p0), [#allocation3], %s5107_s27  }
 0x124   : > { %s7424_s28 = scalar_lea.vmem (!%p924_p0), [#allocation2], %s5742_s7 }
 0x126   : > { %vm1432_vm0 = vcmask 1044480   ;;  %vm1433_vm1 = vcmask 1045504   ;;  %v6313_v0 = vmov 65535   ;;  %v6314_v2 = vmov 0   ;;  %v1028_v3 = vld [vmem:[%s7424_s28 + $0x200] sm:$0xff]  ;;  %v1029_v6 = vld [vmem:[%s7424_s28 + $0x208] sm:$0xff] }
 0x127   : > { %v1434_v1 = vsel %vm1432_vm0, 4294967295, %v6313_v0  ;;  %1516 = vmatprep.mubr.bf16.mxu0 %v6314_v2  ;;  %1557 = vmatprep.mubr.bf16.mxu1 %v6314_v2  ;;  %v1036_v4 = vld [vmem:[%s7424_s28 + $0x240] sm:$0x33]  ;;  %v1037_v8 = vld [vmem:[%s7424_s28 + $0x248] sm:$0x33]  ;;  %v1030_v41 = vld [vmem:[%s7424_s28 + $0x210] sm:$0xff] }
 0x128   : > { %6029 = vset.pattern.permute.xlu0 %v6314_v2  ;;  %v7428_v5 = vsel %vm1433_vm1, %v1434_v1, 0  ;;  %v5173_v7 = vcombine.high %v1028_v3, %v1036_v4  ;;  %v5172_v9 = vcombine.low %v1028_v3, %v1036_v4  ;;  %v1012_v10 = vld [vmem:[%s7424_s28 + $0x180] sm:$0xff]  ;;  %v5175_v12 = vcombine.high %v1029_v6, %v1037_v8  ;;  %v1013_v14 = vld [vmem:[%s7424_s28 + $0x188] sm:$0xff]  ;;  %v1038_v42 = vld [vmem:[%s7424_s28 + $0x250] sm:$0x33]  ;;  %s5701_s29 = sshll.u32 (%p6368_p5), %s6353_s15, 4 }
 0x129   : > { %v1020_v11 = vld [vmem:[%s7424_s28 + $0x1c0] sm:$0xff]  ;;  %v5174_v13 = vcombine.low %v1029_v6, %v1037_v8  ;;  %v1021_v15 = vld [vmem:[%s7424_s28 + $0x1c8] sm:$0xff]  ;;  %v1031_v44 = vld [vmem:[%s7424_s28 + $0x218] sm:$0xff]  ;;  %v5177_v49 = vcombine.high %v1030_v41, %v1038_v42  ;;  %v5176_v53 = vcombine.low %v1030_v41, %v1038_v42  ;;  %vm1428_vm2 = vcmask 613376   ;;  %s5736_s21 = sshll.u32 (%p6368_p5), %s6353_s15, 7  ;;  %s4445_s25 = ssub.s32 (%p6368_p5), 61, %s5701_s29 }
 0x12a   : > { %v1440_v16 = vand.u32 %v5173_v7, %v7428_v5  ;;  %v1437_v17 = vand.u32 %v5172_v9, %v7428_v5  ;;  %v5157_v18 = vcombine.high %v1012_v10, %v1020_v11  ;;  %v1446_v19 = vand.u32 %v5175_v12, %v7428_v5  ;;  %v996_v22 = vld [vmem:[%s7424_s28 + $0x100] sm:$0xff]  ;;  %v997_v24 = vld [vmem:[%s7424_s28 + $0x108] sm:$0xff]  ;;  %v1039_v45 = vld [vmem:[%s7424_s28 + $0x258] sm:$0x33]  ;;  %s8081_s6 = scalar_lea.vmem (%p6368_p5), %s8499_s3, %s5736_s21   ;;  %p4446_p1 = scmp.lt.s32.totalorder (%p6368_p5), %s4445_s25, 16 }
 0x12b   : > { %v1443_v20 = vand.u32 %v5174_v13, %v7428_v5  ;;  %v5159_v21 = vcombine.high %v1013_v14, %v1021_v15  ;;  %v1004_v23 = vld [vmem:[%s7424_s28 + $0x140] sm:$0xff]  ;;  %v1005_v25 = vld [vmem:[%s7424_s28 + $0x148] sm:$0xff]  ;;  %v5156_v26 = vcombine.low %v1012_v10, %v1020_v11  ;;  %v5158_v27 = vcombine.low %v1013_v14, %v1021_v15  ;;  %v1014_v58 = vld [vmem:[%s7424_s28 + $0x190] sm:$0xff] }
 0x12c   : > { %1490 = vmatprep.subr.bf16.mxu0 %v1440_v16  ;;  %1531 = vmatprep.subr.bf16.mxu1 %v1446_v19  ;;  %v5141_v28 = vcombine.high %v996_v22, %v1004_v23  ;;  %v5143_v29 = vcombine.high %v997_v24, %v1005_v25  ;;  %v980_v30 = vld [vmem:[%s7424_s28 + $0x80] sm:$0xff]  ;;  %v981_v32 = vld [vmem:[%s7424_s28 + $0x88] sm:$0xff]  ;;  %v5140_v34 = vcombine.low %v996_v22, %v1004_v23  ;;  %v1022_v59 = vld [vmem:[%s7424_s28 + $0x1d0] sm:$0xff] }
 0x12d   : > { %1491 = vmatpush1.bf16.msra.mxu0 %v1437_v17  ;;  %1532 = vmatpush1.bf16.msra.mxu1 %v1443_v20  ;;  %v988_v31 = vld [vmem:[%s7424_s28 + $0xc0] sm:$0xff]  ;;  %v989_v33 = vld [vmem:[%s7424_s28 + $0xc8] sm:$0xff]  ;;  %v5142_v35 = vcombine.low %v997_v24, %v1005_v25  ;;  %v5179_v51 = vcombine.high %v1031_v44, %v1039_v45  ;;  %v1452_v55 = vand.u32 %v5177_v49, %v7428_v5  ;;  %v1015_v60 = vld [vmem:[%s7424_s28 + $0x198] sm:$0xff] }
 0x12e   : > { %1492 = vmatprep.subr.bf16.mxu0 %v5157_v18  ;;  %1533 = vmatprep.subr.bf16.mxu1 %v5159_v21  ;;  %v5125_v36 = vcombine.high %v980_v30, %v988_v31  ;;  %v964_v37 = vld [vmem:[%s7424_s28] sm:$0xff]  ;;  %v5127_v39 = vcombine.high %v981_v32, %v989_v33  ;;  %v965_v40 = vld [vmem:[%s7424_s28 + $0x8] sm:$0xff]  ;;  %v5124_v46 = vcombine.low %v980_v30, %v988_v31  ;;  %v1023_v61 = vld [vmem:[%s7424_s28 + $0x1d8] sm:$0xff] }
 0x12f   : > { %v972_v38 = vld [vmem:[%s7424_s28 + $0x40] sm:$0xff]  ;;  %v973_v43 = vld [vmem:[%s7424_s28 + $0x48] sm:$0xff]  ;;  %v5126_v47 = vcombine.low %v981_v32, %v989_v33  ;;  %v5178_v56 = vcombine.low %v1031_v44, %v1039_v45  ;;  %v1458_v57 = vand.u32 %v5179_v51, %v7428_v5  ;;  %v1449_v63 = vand.u32 %v5176_v53, %v7428_v5  ;;  %v998_v4 = vld [vmem:[%s7424_s28 + $0x110] sm:$0xff] }
 0x130   : > { %v5109_v48 = vcombine.high %v964_v37, %v972_v38  ;;  %v5111_v50 = vcombine.high %v965_v40, %v973_v43  ;;  %v5108_v52 = vcombine.low %v964_v37, %v972_v38  ;;  %v5110_v54 = vcombine.low %v965_v40, %v973_v43  ;;  %v7465_v62 = vld [vmem:[%s8496_s0] sm:$0x7]  ;;  %v1006_v6 = vld [vmem:[%s7424_s28 + $0x150] sm:$0xff]  ;;  %v999_v7 = vld [vmem:[%s7424_s28 + $0x118] sm:$0xff] }
 0x131   : > { %1493 = vmatpush1.bf16.msra.mxu0 %v5156_v26  ;;  %1534 = vmatpush1.bf16.msra.mxu1 %v5158_v27  ;;  %v1455_v0 = vand.u32 %v5178_v56, %v7428_v5  ;;  %v5161_v1 = vcombine.high %v1014_v58, %v1022_v59  ;;  %v5163_v3 = vcombine.high %v1015_v60, %v1023_v61  ;;  %v1007_v8 = vld [vmem:[%s7424_s28 + $0x158] sm:$0xff]  ;;  %v982_v13 = vld [vmem:[%s7424_s28 + $0x90] sm:$0xff]  ;;  %v1032_v24 = vld [vmem:[%s7424_s28 + $0x220] sm:$0xff] }
 0x132   : > { %1494 = vmatprep.subr.bf16.mxu0 %v5141_v28  ;;  %1535 = vmatprep.subr.bf16.mxu1 %v5143_v29  ;;  %v5160_v9 = vcombine.low %v1014_v58, %v1022_v59  ;;  %v5162_v10 = vcombine.low %v1015_v60, %v1023_v61  ;;  %v5145_v11 = vcombine.high %v998_v4, %v1006_v6  ;;  %v990_v14 = vld [vmem:[%s7424_s28 + $0xd0] sm:$0xff]  ;;  %v983_v15 = vld [vmem:[%s7424_s28 + $0x98] sm:$0xff]  ;;  %v1040_v25 = vld [vmem:[%s7424_s28 + $0x260] sm:$0x33] }
 0x133   : > { %v5147_v12 = vcombine.high %v999_v7, %v1007_v8  ;;  %v991_v16 = vld [vmem:[%s7424_s28 + $0xd8] sm:$0xff]  ;;  %v5144_v17 = vcombine.low %v998_v4, %v1006_v6  ;;  %v5146_v18 = vcombine.low %v999_v7, %v1007_v8  ;;  %v5129_v19 = vcombine.high %v982_v13, %v990_v14  ;;  %v966_v20 = vld [vmem:[%s7424_s28 + $0x10] sm:$0xff]  ;;  %v1033_v27 = vld [vmem:[%s7424_s28 + $0x228] sm:$0xff] }
 0x134   : > { %v974_v21 = vld [vmem:[%s7424_s28 + $0x50] sm:$0xff]  ;;  %v5131_v22 = vcombine.high %v983_v15, %v991_v16  ;;  %v967_v23 = vld [vmem:[%s7424_s28 + $0x18] sm:$0xff]  ;;  %v1041_v28 = vld [vmem:[%s7424_s28 + $0x268] sm:$0x33]  ;;  %v5128_v29 = vcombine.low %v982_v13, %v990_v14  ;;  %v5130_v30 = vcombine.low %v983_v15, %v991_v16  ;;  %v5181_v32 = vcombine.high %v1032_v24, %v1040_v25 }
 0x135   : > { %1495 = vmatpush1.bf16.msra.mxu0 %v5140_v34  ;;  %1536 = vmatpush1.bf16.msra.mxu1 %v5142_v35  ;;  %v975_v26 = vld [vmem:[%s7424_s28 + $0x58] sm:$0xff]  ;;  %v5113_v31 = vcombine.high %v966_v20, %v974_v21  ;;  %v5183_v34 = vcombine.high %v1033_v27, %v1041_v28  ;;  %v5112_v35 = vcombine.low %v966_v20, %v974_v21  ;;  %v1016_v41 = vld [vmem:[%s7424_s28 + $0x1a0] sm:$0xff]  ;;  %v1017_v43 = vld [vmem:[%s7424_s28 + $0x1a8] sm:$0xff] }
 0x136   : > { %1496 = vmatprep.subr.bf16.mxu0 %v5125_v36  ;;  %1537 = vmatprep.subr.bf16.mxu1 %v5127_v39  ;;  %v5115_v33 = vcombine.high %v967_v23, %v975_v26  ;;  %v5180_v36 = vcombine.low %v1032_v24, %v1040_v25  ;;  %v5114_v37 = vcombine.low %v967_v23, %v975_v26  ;;  %v1024_v42 = vld [vmem:[%s7424_s28 + $0x1e0] sm:$0xff]  ;;  %v1025_v44 = vld [vmem:[%s7424_s28 + $0x1e8] sm:$0xff]  ;;  %v1034_v7 = vld [vmem:[%s7424_s28 + $0x230] sm:$0xff] }
 0x137   : > { %v1464_v38 = vand.u32 %v5181_v32, %v7428_v5  ;;  %v5182_v39 = vcombine.low %v1033_v27, %v1041_v28  ;;  %v1470_v40 = vand.u32 %v5183_v34, %v7428_v5  ;;  %v1000_v49 = vld [vmem:[%s7424_s28 + $0x120] sm:$0xff]  ;;  %v1001_v51 = vld [vmem:[%s7424_s28 + $0x128] sm:$0xff]  ;;  %v5164_v53 = vcombine.low %v1016_v41, %v1024_v42  ;;  %v1042_v8 = vld [vmem:[%s7424_s28 + $0x270] sm:$0x33] }
 0x138   : > { %v1461_v45 = vand.u32 %v5180_v36, %v7428_v5  ;;  %v992_v58 = vld [vmem:[%s7424_s28 + $0xe0] sm:$0xff]  ;;  %v985_v59 = vld [vmem:[%s7424_s28 + $0xa8] sm:$0xff]  ;;  %v5185_v15 = vcombine.high %v1034_v7, %v1042_v8  ;;  %v1018_v24 = vld [vmem:[%s7424_s28 + $0x1b0] sm:$0xff] }
 0x139   : > { %1497 = vmatpush1.bf16.msra.mxu0 %v5124_v46  ;;  %1538 = vmatpush1.bf16.msra.mxu1 %v5126_v47  ;;  %v1467_v46 = vand.u32 %v5182_v39, %v7428_v5  ;;  %v5165_v47 = vcombine.high %v1016_v41, %v1024_v42  ;;  %v993_v60 = vld [vmem:[%s7424_s28 + $0xe8] sm:$0xff]  ;;  %v1026_v25 = vld [vmem:[%s7424_s28 + $0x1f0] sm:$0xff]  ;;  %v1019_v26 = vld [vmem:[%s7424_s28 + $0x1b8] sm:$0xff] }
 0x13a   : > { %1498 = vmatprep.subr.bf16.mxu0 %v5109_v48  ;;  %1539 = vmatprep.subr.bf16.mxu1 %v5111_v50  ;;  %v5167_v48 = vcombine.high %v1017_v43, %v1025_v44  ;;  %v1008_v50 = vld [vmem:[%s7424_s28 + $0x160] sm:$0xff]  ;;  %v5135_v4 = vcombine.high %v985_v59, %v993_v60  ;;  %v969_v6 = vld [vmem:[%s7424_s28 + $0x28] sm:$0xff]  ;;  %v5134_v13 = vcombine.low %v985_v59, %v993_v60  ;;  %v1027_v27 = vld [vmem:[%s7424_s28 + $0x1f8] sm:$0xff] }
 0x13b   : > { %v5148_v61 = vcombine.low %v1000_v49, %v1008_v50  ;;  %v1476_v21 = vand.u32 %v5185_v15, %v7428_v5  ;;  %v1002_v32 = vld [vmem:[%s7424_s28 + $0x130] sm:$0xff]  ;;  %v1003_v34 = vld [vmem:[%s7424_s28 + $0x138] sm:$0xff]  ;;  %v5168_v36 = vcombine.low %v1018_v24, %v1026_v25  ;;  %v5228_v15 = vld [vmem:[%s7424_s28 + $0x380] sm:$0xff] }
 0x13c   : > { %v994_v41 = vld [vmem:[%s7424_s28 + $0xf0] sm:$0xff]  ;;  %v987_v42 = vld [vmem:[%s7424_s28 + $0xb8] sm:$0xff] }
 0x13d   : > { %1499 = vmatpush1.bf16.msra.mxu0 %v5108_v52  ;;  %1540 = vmatpush1.bf16.msra.mxu1 %v5110_v54  ;;  %v1009_v52 = vld [vmem:[%s7424_s28 + $0x168] sm:$0xff]  ;;  %v5166_v54 = vcombine.low %v1017_v43, %v1025_v44  ;;  %v995_v43 = vld [vmem:[%s7424_s28 + $0xf8] sm:$0xff] }
 0x13e   : > { %1572 = vmatprep.subr.bf16.mxu0 %v1452_v55  ;;  %1613 = vmatprep.subr.bf16.mxu1 %v1458_v57  ;;  %v5149_v55 = vcombine.high %v1000_v49, %v1008_v50  ;;  %v5151_v56 = vcombine.high %v1001_v51, %v1009_v52  ;;  %v984_v57 = vld [vmem:[%s7424_s28 + $0xa0] sm:$0xff]  ;;  %v5139_v49 = vcombine.high %v987_v42, %v995_v43  ;;  %v971_v50 = vld [vmem:[%s7424_s28 + $0x38] sm:$0xff] }
 0x140   : > { %5188 = vmatmul.mubr.msk.bf16.vlgmr.msra.gmra.mxu0 %vm1428_vm2, %v7465_v62  ;;  %5189 = vmatmul.mubr.msk.bf16.vlgmr.msra.gmra.mxu1 %vm1428_vm2, %v7465_v62 }
 0x141   : > { %1573 = vmatpush1.bf16.msra.mxu0 %v1449_v63  ;;  %1614 = vmatpush1.bf16.msra.mxu1 %v1455_v0  ;;  %v5150_v63 = vcombine.low %v1001_v51, %v1009_v52  ;;  %v5133_v0 = vcombine.high %v984_v57, %v992_v58  ;;  %v5260_v51 = vld [vmem:[%s7424_s28 + $0x480] sm:$0xff] }
 0x142   : > { %1574 = vmatprep.subr.bf16.mxu0 %v5161_v1  ;;  %1615 = vmatprep.subr.bf16.mxu1 %v5163_v3  ;;  %v968_v1 = vld [vmem:[%s7424_s28 + $0x20] sm:$0xff] }
 0x143   : > { %1598 = vmatprep.mubr.bf16.mxu0 %v6314_v2  ;;  %1639 = vmatprep.mubr.bf16.mxu1 %v6314_v2  ;;  %v976_v3 = vld [vmem:[%s7424_s28 + $0x60] sm:$0xff] }
 0x144   : > { %v5117_v14 = vcombine.high %v968_v1, %v976_v3  ;;  %v5268_v52 = vld [vmem:[%s7424_s28 + $0x4c0] sm:$0x33] }
 0x145   : > { %1575 = vmatpush1.bf16.msra.mxu0 %v5160_v9  ;;  %1616 = vmatpush1.bf16.msra.mxu1 %v5162_v10  ;;  %v977_v9 = vld [vmem:[%s7424_s28 + $0x68] sm:$0xff]  ;;  %v1035_v10 = vld [vmem:[%s7424_s28 + $0x238] sm:$0xff]  ;;  %v5341_v59 = vcombine.high %v5260_v51, %v5268_v52 }
 0x146   : > { %1576 = vmatprep.subr.bf16.mxu0 %v5145_v11  ;;  %1617 = vmatprep.subr.bf16.mxu1 %v5147_v12  ;;  %v1043_v11 = vld [vmem:[%s7424_s28 + $0x278] sm:$0x33]  ;;  %v5132_v12 = vcombine.low %v984_v57, %v992_v58  ;;  %v5119_v16 = vcombine.high %v969_v6, %v977_v9  ;;  %v5118_v20 = vcombine.low %v969_v6, %v977_v9  ;;  %v5245_v9 = vld [vmem:[%s7424_s28 + $0x408] sm:$0xff] }
 0x147   : > { %v5138_v57 = vcombine.low %v987_v42, %v995_v43 }
 0x149   : > { %1577 = vmatpush1.bf16.msra.mxu0 %v5144_v17  ;;  %1618 = vmatpush1.bf16.msra.mxu1 %v5146_v18  ;;  %v5187_v17 = vcombine.high %v1035_v10, %v1043_v11  ;;  %v5116_v18 = vcombine.low %v968_v1, %v976_v3  ;;  %v2281_v3 = vand.u32 %v5341_v59, %v7428_v5  ;;  %v5230_v59 = vld [vmem:[%s7424_s28 + $0x390] sm:$0xff] }
 0x14a   : > { %1578 = vmatprep.subr.bf16.mxu0 %v5129_v19  ;;  %1619 = vmatprep.subr.bf16.mxu1 %v5131_v22  ;;  %v5184_v19 = vcombine.low %v1034_v7, %v1042_v8  ;;  %v5186_v22 = vcombine.low %v1035_v10, %v1043_v11  ;;  %v5244_v7 = vld [vmem:[%s7424_s28 + $0x400] sm:$0xff]  ;;  %v5253_v10 = vld [vmem:[%s7424_s28 + $0x448] sm:$0xff] }
 0x14b   : > { %v1482_v23 = vand.u32 %v5187_v17, %v7428_v5  ;;  %v5252_v8 = vld [vmem:[%s7424_s28 + $0x440] sm:$0xff]  ;;  %v5229_v17 = vld [vmem:[%s7424_s28 + $0x388] sm:$0xff] }
 0x14c   : > { %v1473_v28 = vand.u32 %v5184_v19, %v7428_v5  ;;  %v5324_v19 = vcombine.low %v5244_v7, %v5252_v8 }
 0x14d   : > { %1579 = vmatpush1.bf16.msra.mxu0 %v5128_v29  ;;  %1620 = vmatpush1.bf16.msra.mxu1 %v5130_v30  ;;  %v1479_v29 = vand.u32 %v5186_v22, %v7428_v5  ;;  %v5169_v30 = vcombine.high %v1018_v24, %v1026_v25  ;;  %v5220_v24 = vld [vmem:[%s7424_s28 + $0x340] sm:$0xff]  ;;  %v5213_v25 = vld [vmem:[%s7424_s28 + $0x308] sm:$0xff] }
 0x14e   : > { %1580 = vmatprep.subr.bf16.mxu0 %v5113_v31  ;;  %1621 = vmatprep.subr.bf16.mxu1 %v5115_v33  ;;  %v5171_v31 = vcombine.high %v1019_v26, %v1027_v27  ;;  %v1010_v33 = vld [vmem:[%s7424_s28 + $0x170] sm:$0xff] }
 0x14f   : > { %v5152_v44 = vcombine.low %v1002_v32, %v1010_v33 }
 0x151   : > { %1581 = vmatpush1.bf16.msra.mxu0 %v5112_v35  ;;  %1622 = vmatpush1.bf16.msra.mxu1 %v5114_v37  ;;  %v1011_v35 = vld [vmem:[%s7424_s28 + $0x178] sm:$0xff]  ;;  %v5170_v37 = vcombine.low %v1019_v26, %v1027_v27  ;;  %v5221_v26 = vld [vmem:[%s7424_s28 + $0x348] sm:$0xff] }
 0x152   : > { %1654 = vmatprep.subr.bf16.mxu0 %v1464_v38  ;;  %1695 = vmatprep.subr.bf16.mxu1 %v1470_v40  ;;  %v5153_v38 = vcombine.high %v1002_v32, %v1010_v33  ;;  %v5155_v39 = vcombine.high %v1003_v34, %v1011_v35  ;;  %v986_v40 = vld [vmem:[%s7424_s28 + $0xb0] sm:$0xff]  ;;  %v5295_v32 = vcombine.high %v5213_v25, %v5221_v26  ;;  %v5197_v33 = vld [vmem:[%s7424_s28 + $0x288] sm:$0xff] }
 0x154   : > { %5190 = vmatmul.mubr.msk.bf16.vlgmr.msra.gmra.mxu0 %vm1428_vm2, %v7465_v62  ;;  %5191 = vmatmul.mubr.msk.bf16.vlgmr.msra.gmra.mxu1 %vm1428_vm2, %v7465_v62 }
 0x155   : > { %1655 = vmatpush1.bf16.msra.mxu0 %v1461_v45  ;;  %1696 = vmatpush1.bf16.msra.mxu1 %v1467_v46  ;;  %v5154_v45 = vcombine.low %v1003_v34, %v1011_v35  ;;  %v5137_v46 = vcombine.high %v986_v40, %v994_v41  ;;  %v5262_v34 = vld [vmem:[%s7424_s28 + $0x490] sm:$0xff] }
 0x156   : > { %1656 = vmatprep.subr.bf16.mxu0 %v5165_v47  ;;  %1697 = vmatprep.subr.bf16.mxu1 %v5167_v48  ;;  %v970_v47 = vld [vmem:[%s7424_s28 + $0x30] sm:$0xff] }
 0x157   : > { %1680 = vmatprep.mubr.bf16.mxu0 %v6314_v2  ;;  %1721 = vmatprep.mubr.bf16.mxu1 %v6314_v2  ;;  %v978_v48 = vld [vmem:[%s7424_s28 + $0x70] sm:$0xff] }
 0x158   : > { %v5121_v58 = vcombine.high %v970_v47, %v978_v48  ;;  %v5270_v35 = vld [vmem:[%s7424_s28 + $0x4d0] sm:$0x33] }
 0x159   : > { %1657 = vmatpush1.bf16.msra.mxu0 %v5164_v53  ;;  %1698 = vmatpush1.bf16.msra.mxu1 %v5166_v54  ;;  %v979_v53 = vld [vmem:[%s7424_s28 + $0x78] sm:$0xff]  ;;  %v5261_v54 = vld [vmem:[%s7424_s28 + $0x488] sm:$0xff]  ;;  %v5345_v42 = vcombine.high %v5262_v34, %v5270_v35 }
 0x15a   : > { %1658 = vmatprep.subr.bf16.mxu0 %v5149_v55  ;;  %1699 = vmatprep.subr.bf16.mxu1 %v5151_v56  ;;  %v5269_v55 = vld [vmem:[%s7424_s28 + $0x4c8] sm:$0x33]  ;;  %v5136_v56 = vcombine.low %v986_v40, %v994_v41  ;;  %v5123_v60 = vcombine.high %v971_v50, %v979_v53  ;;  %v5122_v1 = vcombine.low %v971_v50, %v979_v53  ;;  %v5247_v53 = vld [vmem:[%s7424_s28 + $0x418] sm:$0xff] }
 0x15b   : > { %v5294_v40 = vcombine.low %v5213_v25, %v5221_v26 }
 0x15d   : > { %1659 = vmatpush1.bf16.msra.mxu0 %v5148_v61  ;;  %1700 = vmatpush1.bf16.msra.mxu1 %v5150_v63  ;;  %v5343_v61 = vcombine.high %v5261_v54, %v5269_v55  ;;  %v5120_v63 = vcombine.low %v970_v47, %v978_v48  ;;  %v2293_v48 = vand.u32 %v5345_v42, %v7428_v5  ;;  %v5232_v42 = vld [vmem:[%s7424_s28 + $0x3a0] sm:$0xff] }
 0x15e   : > { %1660 = vmatprep.subr.bf16.mxu0 %v5133_v0  ;;  %1701 = vmatprep.subr.bf16.mxu1 %v5135_v4  ;;  %v5340_v0 = vcombine.low %v5260_v51, %v5268_v52  ;;  %v5342_v4 = vcombine.low %v5261_v54, %v5269_v55  ;;  %v5246_v51 = vld [vmem:[%s7424_s28 + $0x410] sm:$0xff]  ;;  %v5255_v54 = vld [vmem:[%s7424_s28 + $0x458] sm:$0xff] }
 0x15f   : > { %v2287_v6 = vand.u32 %v5343_v61, %v7428_v5  ;;  %v5254_v52 = vld [vmem:[%s7424_s28 + $0x450] sm:$0xff]  ;;  %v5231_v61 = vld [vmem:[%s7424_s28 + $0x398] sm:$0xff] }
 0x160   : > { %v2278_v11 = vand.u32 %v5340_v0, %v7428_v5  ;;  %v5328_v0 = vcombine.low %v5246_v51, %v5254_v52 }
 0x161   : > { %1661 = vmatpush1.bf16.msra.mxu0 %v5132_v12  ;;  %1702 = vmatpush1.bf16.msra.mxu1 %v5134_v13  ;;  %v2284_v12 = vand.u32 %v5342_v4, %v7428_v5  ;;  %v5325_v13 = vcombine.high %v5244_v7, %v5252_v8  ;;  %v5222_v7 = vld [vmem:[%s7424_s28 + $0x350] sm:$0xff]  ;;  %v5215_v8 = vld [vmem:[%s7424_s28 + $0x318] sm:$0xff] }
 0x162   : > { %1662 = vmatprep.subr.bf16.mxu0 %v5117_v14  ;;  %1703 = vmatprep.subr.bf16.mxu1 %v5119_v16  ;;  %v5327_v14 = vcombine.high %v5245_v9, %v5253_v10  ;;  %v5236_v16 = vld [vmem:[%s7424_s28 + $0x3c0] sm:$0xff] }
 0x163   : > { %v5308_v27 = vcombine.low %v5228_v15, %v5236_v16 }
 0x165   : > { %1663 = vmatpush1.bf16.msra.mxu0 %v5116_v18  ;;  %1704 = vmatpush1.bf16.msra.mxu1 %v5118_v20  ;;  %v5237_v18 = vld [vmem:[%s7424_s28 + $0x3c8] sm:$0xff]  ;;  %v5326_v20 = vcombine.low %v5245_v9, %v5253_v10  ;;  %v5223_v9 = vld [vmem:[%s7424_s28 + $0x358] sm:$0xff] }
 0x166   : > { %1736 = vmatprep.subr.bf16.mxu0 %v1476_v21  ;;  %1777 = vmatprep.subr.bf16.mxu1 %v1482_v23  ;;  %v5309_v21 = vcombine.high %v5228_v15, %v5236_v16  ;;  %v5311_v22 = vcombine.high %v5229_v17, %v5237_v18  ;;  %v5212_v23 = vld [vmem:[%s7424_s28 + $0x300] sm:$0xff]  ;;  %v5299_v15 = vcombine.high %v5215_v8, %v5223_v9  ;;  %v5199_v16 = vld [vmem:[%s7424_s28 + $0x298] sm:$0xff] }
 0x168   : > { %5192 = vmatmul.mubr.msk.bf16.vlgmr.msra.gmra.mxu0 %vm1428_vm2, %v7465_v62  ;;  %5193 = vmatmul.mubr.msk.bf16.vlgmr.msra.gmra.mxu1 %vm1428_vm2, %v7465_v62 }
 0x169   : > { %1737 = vmatpush1.bf16.msra.mxu0 %v1473_v28  ;;  %1778 = vmatpush1.bf16.msra.mxu1 %v1479_v29  ;;  %v5310_v28 = vcombine.low %v5229_v17, %v5237_v18  ;;  %v5293_v29 = vcombine.high %v5212_v23, %v5220_v24  ;;  %v5264_v17 = vld [vmem:[%s7424_s28 + $0x4a0] sm:$0xff] }
 0x16a   : > { %1738 = vmatprep.subr.bf16.mxu0 %v5169_v30  ;;  %1779 = vmatprep.subr.bf16.mxu1 %v5171_v31  ;;  %v5196_v30 = vld [vmem:[%s7424_s28 + $0x280] sm:$0xff] }
 0x16b   : > { %1762 = vmatprep.mubr.bf16.mxu0 %v6314_v2  ;;  %1803 = vmatprep.mubr.bf16.mxu1 %v6314_v2  ;;  %v5204_v31 = vld [vmem:[%s7424_s28 + $0x2c0] sm:$0xff] }
 0x16c   : > { %v5277_v41 = vcombine.high %v5196_v30, %v5204_v31  ;;  %v5272_v18 = vld [vmem:[%s7424_s28 + $0x4e0] sm:$0x33] }
 0x16d   : > { %1739 = vmatpush1.bf16.msra.mxu0 %v5168_v36  ;;  %1780 = vmatpush1.bf16.msra.mxu1 %v5170_v37  ;;  %v5205_v36 = vld [vmem:[%s7424_s28 + $0x2c8] sm:$0xff]  ;;  %v5263_v37 = vld [vmem:[%s7424_s28 + $0x498] sm:$0xff]  ;;  %v5349_v25 = vcombine.high %v5264_v17, %v5272_v18 }
 0x16e   : > { %1740 = vmatprep.subr.bf16.mxu0 %v5153_v38  ;;  %1781 = vmatprep.subr.bf16.mxu1 %v5155_v39  ;;  %v5271_v38 = vld [vmem:[%s7424_s28 + $0x4d8] sm:$0x33]  ;;  %v5292_v39 = vcombine.low %v5212_v23, %v5220_v24  ;;  %v5279_v43 = vcombine.high %v5197_v33, %v5205_v36  ;;  %v5278_v47 = vcombine.low %v5197_v33, %v5205_v36  ;;  %v5249_v36 = vld [vmem:[%s7424_s28 + $0x428] sm:$0xff] }
 0x16f   : > { %v5298_v23 = vcombine.low %v5215_v8, %v5223_v9 }
 0x171   : > { %1741 = vmatpush1.bf16.msra.mxu0 %v5152_v44  ;;  %1782 = vmatpush1.bf16.msra.mxu1 %v5154_v45  ;;  %v5347_v44 = vcombine.high %v5263_v37, %v5271_v38  ;;  %v5276_v45 = vcombine.low %v5196_v30, %v5204_v31  ;;  %v2305_v31 = vand.u32 %v5349_v25, %v7428_v5  ;;  %v5234_v25 = vld [vmem:[%s7424_s28 + $0x3b0] sm:$0xff] }
 0x172   : > { %1742 = vmatprep.subr.bf16.mxu0 %v5137_v46  ;;  %1783 = vmatprep.subr.bf16.mxu1 %v5139_v49  ;;  %v5344_v46 = vcombine.low %v5262_v34, %v5270_v35  ;;  %v5346_v49 = vcombine.low %v5263_v37, %v5271_v38  ;;  %v5248_v34 = vld [vmem:[%s7424_s28 + $0x420] sm:$0xff]  ;;  %v5257_v37 = vld [vmem:[%s7424_s28 + $0x468] sm:$0xff] }
 0x173   : > { %v2299_v50 = vand.u32 %v5347_v44, %v7428_v5  ;;  %v5256_v35 = vld [vmem:[%s7424_s28 + $0x460] sm:$0xff]  ;;  %v5233_v44 = vld [vmem:[%s7424_s28 + $0x3a8] sm:$0xff] }
 0x174   : > { %v2290_v55 = vand.u32 %v5344_v46, %v7428_v5  ;;  %v5332_v46 = vcombine.low %v5248_v34, %v5256_v35 }
 0x175   : > { %1743 = vmatpush1.bf16.msra.mxu0 %v5136_v56  ;;  %1784 = vmatpush1.bf16.msra.mxu1 %v5138_v57  ;;  %v2296_v56 = vand.u32 %v5346_v49, %v7428_v5  ;;  %v5329_v57 = vcombine.high %v5246_v51, %v5254_v52  ;;  %v5224_v51 = vld [vmem:[%s7424_s28 + $0x360] sm:$0xff]  ;;  %v5217_v52 = vld [vmem:[%s7424_s28 + $0x328] sm:$0xff] }
 0x176   : > { %1744 = vmatprep.subr.bf16.mxu0 %v5121_v58  ;;  %1785 = vmatprep.subr.bf16.mxu1 %v5123_v60  ;;  %v5331_v58 = vcombine.high %v5247_v53, %v5255_v54  ;;  %v5238_v60 = vld [vmem:[%s7424_s28 + $0x3d0] sm:$0xff] }
 0x177   : > { %v5312_v10 = vcombine.low %v5230_v59, %v5238_v60 }
 0x179   : > { %1745 = vmatpush1.bf16.msra.mxu0 %v5120_v63  ;;  %1786 = vmatpush1.bf16.msra.mxu1 %v5122_v1  ;;  %v5239_v63 = vld [vmem:[%s7424_s28 + $0x3d8] sm:$0xff]  ;;  %v5330_v1 = vcombine.low %v5247_v53, %v5255_v54  ;;  %v5225_v53 = vld [vmem:[%s7424_s28 + $0x368] sm:$0xff] }
 0x17a   : > { %2331 = vmatprep.subr.bf16.mxu0 %v2281_v3  ;;  %2372 = vmatprep.subr.bf16.mxu1 %v2287_v6  ;;  %v5313_v3 = vcombine.high %v5230_v59, %v5238_v60  ;;  %v5315_v4 = vcombine.high %v5231_v61, %v5239_v63  ;;  %v5214_v6 = vld [vmem:[%s7424_s28 + $0x310] sm:$0xff]  ;;  %v5303_v59 = vcombine.high %v5217_v52, %v5225_v53  ;;  %v5201_v60 = vld [vmem:[%s7424_s28 + $0x2a8] sm:$0xff] }
 0x17c   : > { %5194 = vmatmul.mubr.msk.bf16.vlgmr.msra.gmra.mxu0 %vm1428_vm2, %v7465_v62  ;;  %5195 = vmatmul.mubr.msk.bf16.vlgmr.msra.gmra.mxu1 %vm1428_vm2, %v7465_v62 }
 0x17d   : > { %2332 = vmatpush1.bf16.msra.mxu0 %v2278_v11  ;;  %2373 = vmatpush1.bf16.msra.mxu1 %v2284_v12  ;;  %v5314_v11 = vcombine.low %v5231_v61, %v5239_v63  ;;  %v5297_v12 = vcombine.high %v5214_v6, %v5222_v7  ;;  %v5266_v61 = vld [vmem:[%s7424_s28 + $0x4b0] sm:$0xff] }
 0x17e   : > { %2333 = vmatprep.subr.bf16.mxu0 %v5325_v13  ;;  %2374 = vmatprep.subr.bf16.mxu1 %v5327_v14  ;;  %v5198_v13 = vld [vmem:[%s7424_s28 + $0x290] sm:$0xff] }
 0x17f   : > { %2357 = vmatprep.mubr.bf16.mxu0 %v6314_v2  ;;  %2398 = vmatprep.mubr.bf16.mxu1 %v6314_v2  ;;  %v5206_v14 = vld [vmem:[%s7424_s28 + $0x2d0] sm:$0xff] }
 0x180   : > { %v5281_v24 = vcombine.high %v5198_v13, %v5206_v14  ;;  %v5274_v63 = vld [vmem:[%s7424_s28 + $0x4f0] sm:$0x33] }
 0x181   : > { %2334 = vmatpush1.bf16.msra.mxu0 %v5324_v19  ;;  %2375 = vmatpush1.bf16.msra.mxu1 %v5326_v20  ;;  %v5207_v19 = vld [vmem:[%s7424_s28 + $0x2d8] sm:$0xff]  ;;  %v5265_v20 = vld [vmem:[%s7424_s28 + $0x4a8] sm:$0xff]  ;;  %v5353_v8 = vcombine.high %v5266_v61, %v5274_v63 }
 0x182   : > { %2335 = vmatprep.subr.bf16.mxu0 %v5309_v21  ;;  %2376 = vmatprep.subr.bf16.mxu1 %v5311_v22  ;;  %v5273_v21 = vld [vmem:[%s7424_s28 + $0x4e8] sm:$0x33]  ;;  %v5296_v22 = vcombine.low %v5214_v6, %v5222_v7  ;;  %v5283_v26 = vcombine.high %v5199_v16, %v5207_v19  ;;  %v5282_v30 = vcombine.low %v5199_v16, %v5207_v19  ;;  %v5251_v19 = vld [vmem:[%s7424_s28 + $0x438] sm:$0xff] }
 0x183   : > { %v5302_v6 = vcombine.low %v5217_v52, %v5225_v53 }
 0x185   : > { %2336 = vmatpush1.bf16.msra.mxu0 %v5308_v27  ;;  %2377 = vmatpush1.bf16.msra.mxu1 %v5310_v28  ;;  %v5351_v27 = vcombine.high %v5265_v20, %v5273_v21  ;;  %v5280_v28 = vcombine.low %v5198_v13, %v5206_v14  ;;  %v2317_v14 = vand.u32 %v5353_v8, %v7428_v5  ;;  %v5396_v8 = vld [vmem:[%s7424_s28 + $0x600] sm:$0xff] }
 0x186   : > { %2337 = vmatprep.subr.bf16.mxu0 %v5293_v29  ;;  %2378 = vmatprep.subr.bf16.mxu1 %v5295_v32  ;;  %v5348_v29 = vcombine.low %v5264_v17, %v5272_v18  ;;  %v5350_v32 = vcombine.low %v5265_v20, %v5273_v21  ;;  %v5250_v17 = vld [vmem:[%s7424_s28 + $0x430] sm:$0xff]  ;;  %v5259_v20 = vld [vmem:[%s7424_s28 + $0x478] sm:$0xff] }
 0x187   : > { %v2311_v33 = vand.u32 %v5351_v27, %v7428_v5  ;;  %v5258_v18 = vld [vmem:[%s7424_s28 + $0x470] sm:$0xff]  ;;  %v5235_v27 = vld [vmem:[%s7424_s28 + $0x3b8] sm:$0xff] }
 0x188   : > { %v2302_v38 = vand.u32 %v5348_v29, %v7428_v5  ;;  %v5336_v29 = vcombine.low %v5250_v17, %v5258_v18 }
 0x189   : > { %2338 = vmatpush1.bf16.msra.mxu0 %v5292_v39  ;;  %2379 = vmatpush1.bf16.msra.mxu1 %v5294_v40  ;;  %v2308_v39 = vand.u32 %v5350_v32, %v7428_v5  ;;  %v5333_v40 = vcombine.high %v5248_v34, %v5256_v35  ;;  %v5226_v34 = vld [vmem:[%s7424_s28 + $0x370] sm:$0xff]  ;;  %v5219_v35 = vld [vmem:[%s7424_s28 + $0x338] sm:$0xff] }
 0x18a   : > { %2339 = vmatprep.subr.bf16.mxu0 %v5277_v41  ;;  %2380 = vmatprep.subr.bf16.mxu1 %v5279_v43  ;;  %v5335_v41 = vcombine.high %v5249_v36, %v5257_v37  ;;  %v5240_v43 = vld [vmem:[%s7424_s28 + $0x3e0] sm:$0xff] }
 0x18b   : > { %v5316_v54 = vcombine.low %v5232_v42, %v5240_v43 }
 0x18d   : > { %2340 = vmatpush1.bf16.msra.mxu0 %v5276_v45  ;;  %2381 = vmatpush1.bf16.msra.mxu1 %v5278_v47  ;;  %v5241_v45 = vld [vmem:[%s7424_s28 + $0x3e8] sm:$0xff]  ;;  %v5334_v47 = vcombine.low %v5249_v36, %v5257_v37  ;;  %v5227_v36 = vld [vmem:[%s7424_s28 + $0x378] sm:$0xff] }
 0x18e   : > { %2413 = vmatprep.subr.bf16.mxu0 %v2293_v48  ;;  %2454 = vmatprep.subr.bf16.mxu1 %v2299_v50  ;;  %v5317_v48 = vcombine.high %v5232_v42, %v5240_v43  ;;  %v5319_v49 = vcombine.high %v5233_v44, %v5241_v45  ;;  %v5216_v50 = vld [vmem:[%s7424_s28 + $0x320] sm:$0xff]  ;;  %v5307_v42 = vcombine.high %v5219_v35, %v5227_v36  ;;  %v5203_v43 = vld [vmem:[%s7424_s28 + $0x2b8] sm:$0xff] }
 0x190   : > { %5356 = vmatmul.mubr.msk.bf16.vlgmr.msra.gmra.mxu0 %vm1428_vm2, %v7465_v62  ;;  %5357 = vmatmul.mubr.msk.bf16.vlgmr.msra.gmra.mxu1 %vm1428_vm2, %v7465_v62 }
 0x191   : > { %2414 = vmatpush1.bf16.msra.mxu0 %v2290_v55  ;;  %2455 = vmatpush1.bf16.msra.mxu1 %v2296_v56  ;;  %v5318_v55 = vcombine.low %v5233_v44, %v5241_v45  ;;  %v5301_v56 = vcombine.high %v5216_v50, %v5224_v51  ;;  %v5428_v44 = vld [vmem:[%s7424_s28 + $0x700] sm:$0xff] }
 0x192   : > { %2415 = vmatprep.subr.bf16.mxu0 %v5329_v57  ;;  %2456 = vmatprep.subr.bf16.mxu1 %v5331_v58  ;;  %v5200_v57 = vld [vmem:[%s7424_s28 + $0x2a0] sm:$0xff] }
 0x193   : > { %2439 = vmatprep.mubr.bf16.mxu0 %v6314_v2  ;;  %2480 = vmatprep.mubr.bf16.mxu1 %v6314_v2  ;;  %v5208_v58 = vld [vmem:[%s7424_s28 + $0x2e0] sm:$0xff] }
 0x194   : > { %v5285_v7 = vcombine.high %v5200_v57, %v5208_v58  ;;  %v5436_v45 = vld [vmem:[%s7424_s28 + $0x740] sm:$0x33] }
 0x195   : > { %2416 = vmatpush1.bf16.msra.mxu0 %v5328_v0  ;;  %2457 = vmatpush1.bf16.msra.mxu1 %v5330_v1  ;;  %v5209_v0 = vld [vmem:[%s7424_s28 + $0x2e8] sm:$0xff]  ;;  %v5267_v1 = vld [vmem:[%s7424_s28 + $0x4b8] sm:$0xff]  ;;  %v5509_v52 = vcombine.high %v5428_v44, %v5436_v45 }
 0x196   : > { %2417 = vmatprep.subr.bf16.mxu0 %v5313_v3  ;;  %2458 = vmatprep.subr.bf16.mxu1 %v5315_v4  ;;  %v5275_v3 = vld [vmem:[%s7424_s28 + $0x4f8] sm:$0x33]  ;;  %v5300_v4 = vcombine.low %v5216_v50, %v5224_v51  ;;  %v5287_v9 = vcombine.high %v5201_v60, %v5209_v0  ;;  %v5286_v13 = vcombine.low %v5201_v60, %v5209_v0  ;;  %v5413_v0 = vld [vmem:[%s7424_s28 + $0x688] sm:$0xff] }
 0x197   : > { %v5306_v50 = vcombine.low %v5219_v35, %v5227_v36 }
 0x199   : > { %2418 = vmatpush1.bf16.msra.mxu0 %v5312_v10  ;;  %2459 = vmatpush1.bf16.msra.mxu1 %v5314_v11  ;;  %v5355_v10 = vcombine.high %v5267_v1, %v5275_v3  ;;  %v5284_v11 = vcombine.low %v5200_v57, %v5208_v58  ;;  %v3138_v58 = vand.u32 %v5509_v52, %v7428_v5  ;;  %v5406_v52 = vld [vmem:[%s7424_s28 + $0x650] sm:$0xff] }
 0x19a   : > { %2419 = vmatprep.subr.bf16.mxu0 %v5297_v12  ;;  %2460 = vmatprep.subr.bf16.mxu1 %v5299_v15  ;;  %v5352_v12 = vcombine.low %v5266_v61, %v5274_v63  ;;  %v5354_v15 = vcombine.low %v5267_v1, %v5275_v3  ;;  %v5412_v61 = vld [vmem:[%s7424_s28 + $0x680] sm:$0xff]  ;;  %v5421_v1 = vld [vmem:[%s7424_s28 + $0x6c8] sm:$0xff] }
 0x19b   : > { %v2323_v16 = vand.u32 %v5355_v10, %v7428_v5  ;;  %v5420_v63 = vld [vmem:[%s7424_s28 + $0x6c0] sm:$0xff]  ;;  %v5397_v10 = vld [vmem:[%s7424_s28 + $0x608] sm:$0xff] }
 0x19c   : > { %v2314_v21 = vand.u32 %v5352_v12, %v7428_v5  ;;  %v5492_v12 = vcombine.low %v5412_v61, %v5420_v63 }
 0x19d   : > { %2420 = vmatpush1.bf16.msra.mxu0 %v5296_v22  ;;  %2461 = vmatpush1.bf16.msra.mxu1 %v5298_v23  ;;  %v2320_v22 = vand.u32 %v5354_v15, %v7428_v5  ;;  %v5337_v23 = vcombine.high %v5250_v17, %v5258_v18  ;;  %v5388_v17 = vld [vmem:[%s7424_s28 + $0x5c0] sm:$0xff]  ;;  %v5381_v18 = vld [vmem:[%s7424_s28 + $0x588] sm:$0xff] }
 0x19e   : > { %2421 = vmatprep.subr.bf16.mxu0 %v5281_v24  ;;  %2462 = vmatprep.subr.bf16.mxu1 %v5283_v26  ;;  %v5339_v24 = vcombine.high %v5251_v19, %v5259_v20  ;;  %v5242_v26 = vld [vmem:[%s7424_s28 + $0x3f0] sm:$0xff] }
 0x19f   : > { %v5320_v37 = vcombine.low %v5234_v25, %v5242_v26 }
 0x1a1   : > { %2422 = vmatpush1.bf16.msra.mxu0 %v5280_v28  ;;  %2463 = vmatpush1.bf16.msra.mxu1 %v5282_v30  ;;  %v5243_v28 = vld [vmem:[%s7424_s28 + $0x3f8] sm:$0xff]  ;;  %v5338_v30 = vcombine.low %v5251_v19, %v5259_v20 }
 0x1a2   : > { %2495 = vmatprep.subr.bf16.mxu0 %v2305_v31  ;;  %2536 = vmatprep.subr.bf16.mxu1 %v2311_v33  ;;  %v5321_v31 = vcombine.high %v5234_v25, %v5242_v26  ;;  %v5323_v32 = vcombine.high %v5235_v27, %v5243_v28  ;;  %v5218_v33 = vld [vmem:[%s7424_s28 + $0x330] sm:$0xff]  ;;  %v5365_v25 = vld [vmem:[%s7424_s28 + $0x508] sm:$0xff] }
 0x1a3   : > { %v5430_v26 = vld [vmem:[%s7424_s28 + $0x710] sm:$0xff] }
 0x1a4   : > { %5358 = vmatmul.mubr.msk.bf16.vlgmr.msra.gmra.mxu0 %vm1428_vm2, %v7465_v62  ;;  %5359 = vmatmul.mubr.msk.bf16.vlgmr.msra.gmra.mxu1 %vm1428_vm2, %v7465_v62 }
 0x1a5   : > { %2496 = vmatpush1.bf16.msra.mxu0 %v2302_v38  ;;  %2537 = vmatpush1.bf16.msra.mxu1 %v2308_v39  ;;  %v5322_v38 = vcombine.low %v5235_v27, %v5243_v28  ;;  %v5305_v39 = vcombine.high %v5218_v33, %v5226_v34  ;;  %v5438_v27 = vld [vmem:[%s7424_s28 + $0x750] sm:$0x33]  ;;  %v5373_v28 = vld [vmem:[%s7424_s28 + $0x548] sm:$0xff] }
 0x1a6   : > { %2497 = vmatprep.subr.bf16.mxu0 %v5333_v40  ;;  %2538 = vmatprep.subr.bf16.mxu1 %v5335_v41  ;;  %v5202_v40 = vld [vmem:[%s7424_s28 + $0x2b0] sm:$0xff]  ;;  %v5447_v35 = vcombine.high %v5365_v25, %v5373_v28 }
 0x1a7   : > { %2521 = vmatprep.mubr.bf16.mxu0 %v6314_v2  ;;  %2562 = vmatprep.mubr.bf16.mxu1 %v6314_v2  ;;  %v5210_v41 = vld [vmem:[%s7424_s28 + $0x2f0] sm:$0xff] }
 0x1a8   : > { %v5289_v51 = vcombine.high %v5202_v40, %v5210_v41 }
 0x1a9   : > { %2498 = vmatpush1.bf16.msra.mxu0 %v5332_v46  ;;  %2539 = vmatpush1.bf16.msra.mxu1 %v5334_v47  ;;  %v5211_v46 = vld [vmem:[%s7424_s28 + $0x2f8] sm:$0xff]  ;;  %v5429_v47 = vld [vmem:[%s7424_s28 + $0x708] sm:$0xff] }
 0x1aa   : > { %2499 = vmatprep.subr.bf16.mxu0 %v5317_v48  ;;  %2540 = vmatprep.subr.bf16.mxu1 %v5319_v49  ;;  %v5437_v48 = vld [vmem:[%s7424_s28 + $0x748] sm:$0x33]  ;;  %v5304_v49 = vcombine.low %v5218_v33, %v5226_v34  ;;  %v5291_v53 = vcombine.high %v5203_v43, %v5211_v46  ;;  %v5290_v57 = vcombine.low %v5203_v43, %v5211_v46  ;;  %v5414_v43 = vld [vmem:[%s7424_s28 + $0x690] sm:$0xff]  ;;  %v5423_v46 = vld [vmem:[%s7424_s28 + $0x6d8] sm:$0xff] }
 0x1ab   : > { %v5513_v34 = vcombine.high %v5430_v26, %v5438_v27 }
 0x1ad   : > { %2500 = vmatpush1.bf16.msra.mxu0 %v5316_v54  ;;  %2541 = vmatpush1.bf16.msra.mxu1 %v5318_v55  ;;  %v5511_v54 = vcombine.high %v5429_v47, %v5437_v48  ;;  %v5288_v55 = vcombine.low %v5202_v40, %v5210_v41  ;;  %v3150_v40 = vand.u32 %v5513_v34, %v7428_v5 }
 0x1ae   : > { %2501 = vmatprep.subr.bf16.mxu0 %v5301_v56  ;;  %2542 = vmatprep.subr.bf16.mxu1 %v5303_v59  ;;  %v5508_v56 = vcombine.low %v5428_v44, %v5436_v45  ;;  %v5510_v59 = vcombine.low %v5429_v47, %v5437_v48  ;;  %v5422_v44 = vld [vmem:[%s7424_s28 + $0x6d0] sm:$0xff]  ;;  %v5415_v45 = vld [vmem:[%s7424_s28 + $0x698] sm:$0xff] }
 0x1af   : > { %v3144_v60 = vand.u32 %v5511_v54, %v7428_v5  ;;  %v5399_v54 = vld [vmem:[%s7424_s28 + $0x618] sm:$0xff] }
 0x1b0   : > { %v3135_v3 = vand.u32 %v5508_v56, %v7428_v5  ;;  %v5496_v56 = vcombine.low %v5414_v43, %v5422_v44 }
 0x1b1   : > { %2502 = vmatpush1.bf16.msra.mxu0 %v5300_v4  ;;  %2543 = vmatpush1.bf16.msra.mxu1 %v5302_v6  ;;  %v3141_v4 = vand.u32 %v5510_v59, %v7428_v5  ;;  %v5493_v6 = vcombine.high %v5412_v61, %v5420_v63  ;;  %v5390_v61 = vld [vmem:[%s7424_s28 + $0x5d0] sm:$0xff]  ;;  %v5383_v63 = vld [vmem:[%s7424_s28 + $0x598] sm:$0xff] }
 0x1b2   : > { %2503 = vmatprep.subr.bf16.mxu0 %v5285_v7  ;;  %2544 = vmatprep.subr.bf16.mxu1 %v5287_v9  ;;  %v5495_v7 = vcombine.high %v5413_v0, %v5421_v1  ;;  %v5404_v9 = vld [vmem:[%s7424_s28 + $0x640] sm:$0xff] }
 0x1b3   : > { %v5476_v19 = vcombine.low %v5396_v8, %v5404_v9 }
 0x1b5   : > { %2504 = vmatpush1.bf16.msra.mxu0 %v5284_v11  ;;  %2545 = vmatpush1.bf16.msra.mxu1 %v5286_v13  ;;  %v5405_v11 = vld [vmem:[%s7424_s28 + $0x648] sm:$0xff]  ;;  %v5494_v13 = vcombine.low %v5413_v0, %v5421_v1  ;;  %v5391_v0 = vld [vmem:[%s7424_s28 + $0x5d8] sm:$0xff] }
 0x1b6   : > { %2577 = vmatprep.subr.bf16.mxu0 %v2317_v14  ;;  %2618 = vmatprep.subr.bf16.mxu1 %v2323_v16  ;;  %v5477_v14 = vcombine.high %v5396_v8, %v5404_v9  ;;  %v5479_v15 = vcombine.high %v5397_v10, %v5405_v11  ;;  %v5380_v16 = vld [vmem:[%s7424_s28 + $0x580] sm:$0xff]  ;;  %v5478_v20 = vcombine.low %v5397_v10, %v5405_v11  ;;  %v5367_v9 = vld [vmem:[%s7424_s28 + $0x518] sm:$0xff] }
 0x1b7   : > { %v5467_v8 = vcombine.high %v5383_v63, %v5391_v0  ;;  %v5432_v10 = vld [vmem:[%s7424_s28 + $0x720] sm:$0xff] }
 0x1b8   : > { %5360 = vmatmul.mubr.msk.bf16.vlgmr.msra.gmra.mxu0 %vm1428_vm2, %v7465_v62  ;;  %5361 = vmatmul.mubr.msk.bf16.vlgmr.msra.gmra.mxu1 %vm1428_vm2, %v7465_v62  ;;  %v5440_v11 = vld [vmem:[%s7424_s28 + $0x760] sm:$0x33] }
 0x1b9   : > { %2578 = vmatpush1.bf16.msra.mxu0 %v2314_v21  ;;  %2619 = vmatpush1.bf16.msra.mxu1 %v2320_v22  ;;  %v5461_v21 = vcombine.high %v5380_v16, %v5388_v17  ;;  %v5364_v22 = vld [vmem:[%s7424_s28 + $0x500] sm:$0xff] }
 0x1ba   : > { %2579 = vmatprep.subr.bf16.mxu0 %v5337_v23  ;;  %2620 = vmatprep.subr.bf16.mxu1 %v5339_v24  ;;  %v5372_v23 = vld [vmem:[%s7424_s28 + $0x540] sm:$0xff] }
 0x1bb   : > { %2603 = vmatprep.mubr.bf16.mxu0 %v6314_v2  ;;  %2644 = vmatprep.mubr.bf16.mxu1 %v6314_v2  ;;  %v5445_v33 = vcombine.high %v5364_v22, %v5372_v23 }
 0x1bd   : > { %2580 = vmatpush1.bf16.msra.mxu0 %v5336_v29  ;;  %2621 = vmatpush1.bf16.msra.mxu1 %v5338_v30  ;;  %v5431_v29 = vld [vmem:[%s7424_s28 + $0x718] sm:$0xff] }
 0x1be   : > { %2581 = vmatprep.subr.bf16.mxu0 %v5321_v31  ;;  %2622 = vmatprep.subr.bf16.mxu1 %v5323_v32  ;;  %v5439_v30 = vld [vmem:[%s7424_s28 + $0x758] sm:$0x33]  ;;  %v5460_v31 = vcombine.low %v5380_v16, %v5388_v17  ;;  %v5466_v16 = vcombine.low %v5383_v63, %v5391_v0 }
 0x1bf   : > { %v5515_v36 = vcombine.high %v5431_v29, %v5439_v30  ;;  %v5514_v41 = vcombine.low %v5431_v29, %v5439_v30  ;;  %v5417_v29 = vld [vmem:[%s7424_s28 + $0x6a8] sm:$0xff] }
 0x1c0   : > { %v5425_v30 = vld [vmem:[%s7424_s28 + $0x6e8] sm:$0xff] }
 0x1c1   : > { %2582 = vmatpush1.bf16.msra.mxu0 %v5320_v37  ;;  %2623 = vmatpush1.bf16.msra.mxu1 %v5322_v38  ;;  %v5444_v37 = vcombine.low %v5364_v22, %v5372_v23  ;;  %v5512_v38 = vcombine.low %v5430_v26, %v5438_v27  ;;  %v3153_v48 = vand.u32 %v5514_v41, %v7428_v5  ;;  %v4383_v22 = vld [vmem:[%s8497_s1] sm:$0x3f] }
 0x1c2   : > { %2583 = vmatprep.subr.bf16.mxu0 %v5305_v39  ;;  %2624 = vmatprep.subr.bf16.mxu1 %v5307_v42  ;;  %v5446_v39 = vcombine.low %v5365_v25, %v5373_v28  ;;  %v3156_v42 = vand.u32 %v5515_v36, %v7428_v5  ;;  %v5416_v27 = vld [vmem:[%s7424_s28 + $0x6a0] sm:$0xff]  ;;  %v5503_v34 = vcombine.high %v5417_v29, %v5425_v30 }
 0x1c3   : > { %v3147_v47 = vand.u32 %v5512_v38, %v7428_v5  ;;  %v5424_v28 = vld [vmem:[%s7424_s28 + $0x6e0] sm:$0xff]  ;;  %4386 = vperm.xlu0 %6029, %v4383_v22   ;;  %v5409_v38 = vld [vmem:[%s7424_s28 + $0x668] sm:$0xff] }
 0x1c4   : > { %v5408_v36 = vld [vmem:[%s7424_s28 + $0x660] sm:$0xff] }
 0x1c5   : > { %2584 = vmatpush1.bf16.msra.mxu0 %v5304_v49  ;;  %2625 = vmatpush1.bf16.msra.mxu1 %v5306_v50  ;;  %v5497_v49 = vcombine.high %v5414_v43, %v5422_v44  ;;  %v5499_v50 = vcombine.high %v5415_v45, %v5423_v46  ;;  %v5384_v43 = vld [vmem:[%s7424_s28 + $0x5a0] sm:$0xff] }
 0x1c6   : > { %2585 = vmatprep.subr.bf16.mxu0 %v5289_v51  ;;  %2626 = vmatprep.subr.bf16.mxu1 %v5291_v53  ;;  %v5398_v51 = vld [vmem:[%s7424_s28 + $0x610] sm:$0xff]  ;;  %v7714_v53 = vld [vmem:[%s8496_s0] sm:$0x7] }
 0x1c7   : > { %v5480_v1 = vcombine.low %v5398_v51, %v5406_v52  ;;  %v5392_v44 = vld [vmem:[%s7424_s28 + $0x5e0] sm:$0xff] }
 0x1c9   : > { %2586 = vmatpush1.bf16.msra.mxu0 %v5288_v55  ;;  %2627 = vmatpush1.bf16.msra.mxu1 %v5290_v57  ;;  %v5407_v55 = vld [vmem:[%s7424_s28 + $0x658] sm:$0xff]  ;;  %v5498_v57 = vcombine.low %v5415_v45, %v5423_v46  ;;  %v5385_v45 = vld [vmem:[%s7424_s28 + $0x5a8] sm:$0xff] }
 0x1ca   : > { %3188 = vmatprep.subr.bf16.mxu0 %v3138_v58  ;;  %3229 = vmatprep.subr.bf16.mxu1 %v3144_v60  ;;  %v5481_v58 = vcombine.high %v5398_v51, %v5406_v52  ;;  %v5483_v59 = vcombine.high %v5399_v54, %v5407_v55  ;;  %v5382_v60 = vld [vmem:[%s7424_s28 + $0x590] sm:$0xff]  ;;  %v5393_v46 = vld [vmem:[%s7424_s28 + $0x5e8] sm:$0xff]  ;;  %v5376_v51 = vld [vmem:[%s7424_s28 + $0x560] sm:$0xff] }
 0x1cb   : > { %v5471_v52 = vcombine.high %v5385_v45, %v5393_v46 }
 0x1cc   : > { %5362 = vmatmul.mubr.msk.bf16.vlgmr.msra.gmra.mxu0 %vm1428_vm2, %v7465_v62  ;;  %5363 = vmatmul.mubr.msk.bf16.vlgmr.msra.gmra.mxu1 %vm1428_vm2, %v7465_v62  ;;  %v5389_v62 = vld [vmem:[%s7424_s28 + $0x5c8] sm:$0xff] }
 0x1cd   : > { %3189 = vmatpush1.bf16.msra.mxu0 %v3135_v3  ;;  %3230 = vmatpush1.bf16.msra.mxu1 %v3141_v4  ;;  %v5463_v24 = vcombine.high %v5381_v18, %v5389_v62  ;;  %v5462_v32 = vcombine.low %v5381_v18, %v5389_v62  ;;  %v5482_v3 = vcombine.low %v5399_v54, %v5407_v55  ;;  %v5369_v54 = vld [vmem:[%s7424_s28 + $0x528] sm:$0xff]  ;;  %v5434_v55 = vld [vmem:[%s7424_s28 + $0x730] sm:$0xff] }
 0x1ce   : > { %3190 = vmatprep.subr.bf16.mxu0 %v5493_v6  ;;  %3231 = vmatprep.subr.bf16.mxu1 %v5495_v7  ;;  %v5465_v4 = vcombine.high %v5382_v60, %v5390_v61  ;;  %v5366_v6 = vld [vmem:[%s7424_s28 + $0x510] sm:$0xff]  ;;  %v5517_v18 = vcombine.high %v5432_v10, %v5440_v11 }
 0x1cf   : > { %3214 = vmatprep.mubr.bf16.mxu0 %v6314_v2  ;;  %3255 = vmatprep.mubr.bf16.mxu1 %v6314_v2  ;;  %v5374_v7 = vld [vmem:[%s7424_s28 + $0x550] sm:$0xff] }
 0x1d0   : > { %v5449_v17 = vcombine.high %v5366_v6, %v5374_v7 }
 0x1d1   : > { %3191 = vmatpush1.bf16.msra.mxu0 %v5492_v12  ;;  %3232 = vmatpush1.bf16.msra.mxu1 %v5494_v13  ;;  %v5375_v12 = vld [vmem:[%s7424_s28 + $0x558] sm:$0xff]  ;;  %v5433_v13 = vld [vmem:[%s7424_s28 + $0x728] sm:$0xff] }
 0x1d2   : > { %3192 = vmatprep.subr.bf16.mxu0 %v5477_v14  ;;  %3233 = vmatprep.subr.bf16.mxu1 %v5479_v15  ;;  %v5441_v14 = vld [vmem:[%s7424_s28 + $0x768] sm:$0x33]  ;;  %v5464_v15 = vcombine.low %v5382_v60, %v5390_v61  ;;  %v5451_v62 = vcombine.high %v5367_v9, %v5375_v12  ;;  %v5450_v23 = vcombine.low %v5367_v9, %v5375_v12 }
 0x1d3   : > { %v5518_v25 = vcombine.low %v5433_v13, %v5441_v14  ;;  %v5468_v60 = vcombine.low %v5384_v43, %v5392_v44  ;;  %v5470_v61 = vcombine.low %v5385_v45, %v5393_v46  ;;  %v5596_v45 = vld [vmem:[%s7424_s28 + $0x980] sm:$0xff] }
 0x1d4   : > { %v5604_v46 = vld [vmem:[%s7424_s28 + $0x9c0] sm:$0x33] }
 0x1d5   : > { %3193 = vmatpush1.bf16.msra.mxu0 %v5476_v19  ;;  %3234 = vmatpush1.bf16.msra.mxu1 %v5478_v20  ;;  %v5519_v19 = vcombine.high %v5433_v13, %v5441_v14  ;;  %v5448_v20 = vcombine.low %v5366_v6, %v5374_v7 }
 0x1d6   : > { %3194 = vmatprep.subr.bf16.mxu0 %v5461_v21  ;;  %3235 = vmatprep.subr.bf16.mxu1 %v5463_v24  ;;  %v5516_v21 = vcombine.low %v5432_v10, %v5440_v11  ;;  %v3162_v24 = vand.u32 %v5517_v18, %v7428_v5  ;;  %v5419_v18 = vld [vmem:[%s7424_s28 + $0x6b8] sm:$0xff] }
 0x1d7   : > { %v3168_v26 = vand.u32 %v5519_v19, %v7428_v5 }
 0x1d9   : > { %3195 = vmatpush1.bf16.msra.mxu0 %v5460_v31  ;;  %3236 = vmatpush1.bf16.msra.mxu1 %v5462_v32  ;;  %v3159_v31 = vand.u32 %v5516_v21, %v7428_v5  ;;  %v3165_v32 = vand.u32 %v5518_v25, %v7428_v5 }
 0x1da   : > { %3196 = vmatprep.subr.bf16.mxu0 %v5445_v33  ;;  %3237 = vmatprep.subr.bf16.mxu1 %v5447_v35  ;;  %v5501_v33 = vcombine.high %v5416_v27, %v5424_v28  ;;  %v5400_v35 = vld [vmem:[%s7424_s28 + $0x620] sm:$0xff] }
 0x1db   : > { %v5485_v41 = vcombine.high %v5400_v35, %v5408_v36 }
 0x1dd   : > { %3197 = vmatpush1.bf16.msra.mxu0 %v5444_v37  ;;  %3238 = vmatpush1.bf16.msra.mxu1 %v5446_v39  ;;  %v5401_v37 = vld [vmem:[%s7424_s28 + $0x628] sm:$0xff]  ;;  %v5500_v39 = vcombine.low %v5416_v27, %v5424_v28  ;;  %v5410_v27 = vld [vmem:[%s7424_s28 + $0x670] sm:$0xff]  ;;  %v5403_v28 = vld [vmem:[%s7424_s28 + $0x638] sm:$0xff] }
 0x1de   : > { %3270 = vmatprep.subr.bf16.mxu0 %v3150_v40  ;;  %3311 = vmatprep.subr.bf16.mxu1 %v3156_v42  ;;  %v5502_v40 = vcombine.low %v5417_v29, %v5425_v30  ;;  %v5487_v42 = vcombine.high %v5401_v37, %v5409_v38  ;;  %v5411_v29 = vld [vmem:[%s7424_s28 + $0x678] sm:$0xff] }
 0x1e0   : > { %5524 = vmatmul.mubr.msk.bf16.vlgmr.msra.gmra.mxu0 %vm1428_vm2, %v7714_v53  ;;  %5525 = vmatmul.mubr.msk.bf16.vlgmr.msra.gmra.mxu1 %vm1428_vm2, %v7714_v53 }
 0x1e1   : > { %3271 = vmatpush1.bf16.msra.mxu0 %v3147_v47  ;;  %3312 = vmatpush1.bf16.msra.mxu1 %v3153_v48  ;;  %v5484_v47 = vcombine.low %v5400_v35, %v5408_v36  ;;  %v5486_v48 = vcombine.low %v5401_v37, %v5409_v38  ;;  %v5394_v35 = vld [vmem:[%s7424_s28 + $0x5f0] sm:$0xff]  ;;  %v5387_v36 = vld [vmem:[%s7424_s28 + $0x5b8] sm:$0xff] }
 0x1e2   : > { %3272 = vmatprep.subr.bf16.mxu0 %v5497_v49  ;;  %3313 = vmatprep.subr.bf16.mxu1 %v5499_v50  ;;  %v5469_v49 = vcombine.high %v5384_v43, %v5392_v44  ;;  %v5368_v50 = vld [vmem:[%s7424_s28 + $0x520] sm:$0xff]  ;;  %v5395_v37 = vld [vmem:[%s7424_s28 + $0x5f8] sm:$0xff] }
 0x1e3   : > { %3296 = vmatprep.mubr.bf16.mxu0 %v6314_v2  ;;  %3337 = vmatprep.mubr.bf16.mxu1 %v6314_v2  ;;  %v5453_v63 = vcombine.high %v5368_v50, %v5376_v51  ;;  %v5452_v7 = vcombine.low %v5368_v50, %v5376_v51  ;;  %v5475_v43 = vcombine.high %v5387_v36, %v5395_v37  ;;  %v5371_v44 = vld [vmem:[%s7424_s28 + $0x538] sm:$0xff] }
 0x1e4   : > { %v5474_v51 = vcombine.low %v5387_v36, %v5395_v37  ;;  %v5532_v36 = vld [vmem:[%s7424_s28 + $0x780] sm:$0xff] }
 0x1e5   : > { %3273 = vmatpush1.bf16.msra.mxu0 %v5496_v56  ;;  %3314 = vmatpush1.bf16.msra.mxu1 %v5498_v57  ;;  %v5442_v56 = vld [vmem:[%s7424_s28 + $0x770] sm:$0x33]  ;;  %v5377_v57 = vld [vmem:[%s7424_s28 + $0x568] sm:$0xff]  ;;  %v5540_v37 = vld [vmem:[%s7424_s28 + $0x7c0] sm:$0xff] }
 0x1e6   : > { %3274 = vmatprep.subr.bf16.mxu0 %v5481_v58  ;;  %3315 = vmatprep.subr.bf16.mxu1 %v5483_v59  ;;  %v5435_v58 = vld [vmem:[%s7424_s28 + $0x738] sm:$0xff]  ;;  %v5521_v0 = vcombine.high %v5434_v55, %v5442_v56  ;;  %v5454_v10 = vcombine.low %v5369_v54, %v5377_v57 }
 0x1e7   : > { %v5443_v59 = vld [vmem:[%s7424_s28 + $0x778] sm:$0x33] }
 0x1e8   : > { %v3174_v11 = vand.u32 %v5521_v0, %v7428_v5  ;;  %v5522_v12 = vcombine.low %v5435_v58, %v5443_v59 }
 0x1e9   : > { %3275 = vmatpush1.bf16.msra.mxu0 %v5480_v1  ;;  %3316 = vmatpush1.bf16.msra.mxu1 %v5482_v3  ;;  %v5455_v1 = vcombine.high %v5369_v54, %v5377_v57  ;;  %v5523_v3 = vcombine.high %v5435_v58, %v5443_v59  ;;  %v5677_v54 = vcombine.high %v5596_v45, %v5604_v46 }
 0x1ea   : > { %3276 = vmatprep.subr.bf16.mxu0 %v5465_v4  ;;  %3317 = vmatprep.subr.bf16.mxu1 %v5467_v8  ;;  %v5520_v8 = vcombine.low %v5434_v55, %v5442_v56  ;;  %v3177_v22 = vand.u32 %v5522_v12, %v7428_v5  ;;  %v5581_v12 = vld [vmem:[%s7424_s28 + $0x908] sm:$0xff] }
 0x1eb   : > { %v3180_v14 = vand.u32 %v5523_v3, %v7428_v5  ;;  %v3995_v0 = vand.u32 %v5677_v54, %v7428_v5  ;;  %v5612_v54 = vcombine.low %v5532_v36, %v5540_v37 }
 0x1ed   : > { %3277 = vmatpush1.bf16.msra.mxu0 %v5464_v15  ;;  %3318 = vmatpush1.bf16.msra.mxu1 %v5466_v16  ;;  %v5418_v15 = vld [vmem:[%s7424_s28 + $0x6b0] sm:$0xff] }
 0x1ee   : > { %3278 = vmatprep.subr.bf16.mxu0 %v5449_v17  ;;  %3319 = vmatprep.subr.bf16.mxu1 %v5451_v62  ;;  %v5426_v16 = vld [vmem:[%s7424_s28 + $0x6f0] sm:$0xff]  ;;  %v5427_v62 = vld [vmem:[%s7424_s28 + $0x6f8] sm:$0xff] }
 0x1ef   : > { %v5507_v25 = vcombine.high %v5419_v18, %v5427_v62  ;;  %v5504_v30 = vcombine.low %v5418_v15, %v5426_v16 }
 0x1f1   : > { %3279 = vmatpush1.bf16.msra.mxu0 %v5448_v20  ;;  %3320 = vmatpush1.bf16.msra.mxu1 %v5450_v23  ;;  %v3171_v20 = vand.u32 %v5520_v8, %v7428_v5  ;;  %v5505_v23 = vcombine.high %v5418_v15, %v5426_v16  ;;  %v5580_v8 = vld [vmem:[%s7424_s28 + $0x900] sm:$0xff] }
 0x1f2   : > { %3352 = vmatprep.subr.bf16.mxu0 %v3162_v24  ;;  %3393 = vmatprep.subr.bf16.mxu1 %v3168_v26  ;;  %v5402_v26 = vld [vmem:[%s7424_s28 + $0x630] sm:$0xff] }
 0x1f3   : > { %v5488_v38 = vcombine.low %v5402_v26, %v5410_v27 }
 0x1f4   : > { %5526 = vmatmul.mubr.msk.bf16.vlgmr.msra.gmra.mxu0 %vm1428_vm2, %v7714_v53  ;;  %5527 = vmatmul.mubr.msk.bf16.vlgmr.msra.gmra.mxu1 %vm1428_vm2, %v7714_v53 }
 0x1f5   : > { %3353 = vmatpush1.bf16.msra.mxu0 %v3159_v31  ;;  %3394 = vmatpush1.bf16.msra.mxu1 %v3165_v32  ;;  %v5506_v31 = vcombine.low %v5419_v18, %v5427_v62  ;;  %v5489_v32 = vcombine.high %v5402_v26, %v5410_v27 }
 0x1f6   : > { %3354 = vmatprep.subr.bf16.mxu0 %v5501_v33  ;;  %3395 = vmatprep.subr.bf16.mxu1 %v5503_v34  ;;  %v5491_v33 = vcombine.high %v5403_v28, %v5411_v29  ;;  %v5386_v34 = vld [vmem:[%s7424_s28 + $0x5b0] sm:$0xff] }
 0x1f7   : > { %3378 = vmatprep.mubr.bf16.mxu0 %v6314_v2  ;;  %3419 = vmatprep.mubr.bf16.mxu1 %v6314_v2  ;;  %v5472_v50 = vcombine.low %v5386_v34, %v5394_v35 }
 0x1f9   : > { %3355 = vmatpush1.bf16.msra.mxu0 %v5500_v39  ;;  %3396 = vmatpush1.bf16.msra.mxu1 %v5502_v40  ;;  %v5490_v39 = vcombine.low %v5403_v28, %v5411_v29  ;;  %v5473_v40 = vcombine.high %v5386_v34, %v5394_v35  ;;  %v5548_v29 = vld [vmem:[%s7424_s28 + $0x800] sm:$0xff] }
 0x1fa   : > { %3356 = vmatprep.subr.bf16.mxu0 %v5485_v41  ;;  %3397 = vmatprep.subr.bf16.mxu1 %v5487_v42  ;;  %v5370_v41 = vld [vmem:[%s7424_s28 + $0x530] sm:$0xff] }
 0x1fb   : > { %v5378_v42 = vld [vmem:[%s7424_s28 + $0x570] sm:$0xff] }
 0x1fc   : > { %v5456_v59 = vcombine.low %v5370_v41, %v5378_v42 }
 0x1fd   : > { %3357 = vmatpush1.bf16.msra.mxu0 %v5484_v47  ;;  %3398 = vmatpush1.bf16.msra.mxu1 %v5486_v48  ;;  %v5379_v47 = vld [vmem:[%s7424_s28 + $0x578] sm:$0xff]  ;;  %v5597_v48 = vld [vmem:[%s7424_s28 + $0x988] sm:$0xff] }
 0x1fe   : > { %3358 = vmatprep.subr.bf16.mxu0 %v5469_v49  ;;  %3399 = vmatprep.subr.bf16.mxu1 %v5471_v52  ;;  %v5605_v49 = vld [vmem:[%s7424_s28 + $0x9c8] sm:$0x33]  ;;  %v5457_v52 = vcombine.high %v5370_v41, %v5378_v42  ;;  %v5459_v55 = vcombine.high %v5371_v44, %v5379_v47  ;;  %v5606_v41 = vld [vmem:[%s7424_s28 + $0x9d0] sm:$0x33] }
 0x1ff   : > { %v5679_v56 = vcombine.high %v5597_v48, %v5605_v49  ;;  %v5541_v42 = vld [vmem:[%s7424_s28 + $0x7c8] sm:$0xff] }
 0x200   : > { %v7769_v4 = vpop.f32.mrf.mxu0  ;;  %v7771_v6 = vpop.f32.mrf.mxu1 }
 0x201   : > { %3359 = vmatpush1.bf16.msra.mxu0 %v5468_v60  ;;  %3400 = vmatpush1.bf16.msra.mxu1 %v5470_v61  ;;  %v5676_v60 = vcombine.low %v5596_v45, %v5604_v46 }
 0x202   : > { %v7773_v9 = vpop.f32.mrf.mxu0  ;;  %3360 = vmatprep.subr.bf16.mxu0 %v5453_v63  ;;  %v7776_v13 = vpop.f32.mrf.mxu1  ;;  %3401 = vmatprep.subr.bf16.mxu1 %v5455_v1  ;;  %v5458_v63 = vcombine.low %v5371_v44, %v5379_v47  ;;  %v5678_v1 = vcombine.low %v5597_v48, %v5605_v49  ;;  %v5607_v44 = vld [vmem:[%s7424_s28 + $0x9d8] sm:$0x33]  ;;  %v5613_v47 = vcombine.high %v5532_v36, %v5540_v37  ;;  %v5542_v36 = vld [vmem:[%s7424_s28 + $0x7d0] sm:$0xff] }
 0x203   : > { %v3992_v16 = vand.u32 %v5676_v60, %v7428_v5 }
 0x204   : > { %v1522_v17 = vpop.f32.mrf.mxu0  ;;  %v1563_v19 = vpop.f32.mrf.mxu1  ;;  %v3998_v18 = vand.u32 %v5678_v1, %v7428_v5 }
 0x205   : > { %3361 = vmatpush1.bf16.msra.mxu0 %v5452_v7  ;;  %3402 = vmatpush1.bf16.msra.mxu1 %v5454_v10  ;;  %v4001_v7 = vand.u32 %v5679_v56, %v7428_v5  ;;  %v5588_v10 = vld [vmem:[%s7424_s28 + $0x940] sm:$0xff] }
 0x206   : > { %v1523_v21 = vpop.f32.mrf.mxu0  ;;  %3434 = vmatprep.subr.bf16.mxu0 %v3174_v11  ;;  %v1564_v24 = vpop.f32.mrf.mxu1  ;;  %3475 = vmatprep.subr.bf16.mxu1 %v3180_v14  ;;  %v5589_v14 = vld [vmem:[%s7424_s28 + $0x948] sm:$0xff]  ;;  %v5661_v62 = vcombine.high %v5580_v8, %v5588_v10 }
 0x207   : > { %v5564_v21 = vld [vmem:[%s7424_s28 + $0x880] sm:$0xff]  ;;  %v5573_v24 = vld [vmem:[%s7424_s28 + $0x8c8] sm:$0xff]  ;;  %v5662_v26 = vcombine.low %v5581_v12, %v5589_v14 }
 0x208   : > { %5528 = vmatmul.mubr.msk.bf16.vlgmr.msra.gmra.mxu0 %vm1428_vm2, %v7714_v53  ;;  %5529 = vmatmul.mubr.msk.bf16.vlgmr.msra.gmra.mxu1 %vm1428_vm2, %v7714_v53 }
 0x209   : > { %3435 = vmatpush1.bf16.msra.mxu0 %v3171_v20  ;;  %3476 = vmatpush1.bf16.msra.mxu1 %v3177_v22  ;;  %v5663_v20 = vcombine.high %v5581_v12, %v5589_v14  ;;  %v5572_v22 = vld [vmem:[%s7424_s28 + $0x8c0] sm:$0xff]  ;;  %v5591_v12 = vld [vmem:[%s7424_s28 + $0x958] sm:$0xff] }
 0x20a   : > { %3436 = vmatprep.subr.bf16.mxu0 %v5505_v23  ;;  %3477 = vmatprep.subr.bf16.mxu1 %v5507_v25  ;;  %v5565_v23 = vld [vmem:[%s7424_s28 + $0x888] sm:$0xff]  ;;  %v5660_v25 = vcombine.low %v5580_v8, %v5588_v10  ;;  %v5645_v27 = vcombine.high %v5564_v21, %v5572_v22  ;;  %v5590_v8 = vld [vmem:[%s7424_s28 + $0x950] sm:$0xff] }
 0x20b   : > { %3460 = vmatprep.mubr.bf16.mxu0 %v6314_v2  ;;  %3501 = vmatprep.mubr.bf16.mxu1 %v6314_v2  ;;  %v5647_v28 = vcombine.high %v5565_v23, %v5573_v24  ;;  %v5646_v34 = vcombine.low %v5565_v23, %v5573_v24  ;;  %v5575_v23 = vld [vmem:[%s7424_s28 + $0x8d8] sm:$0xff] }
 0x20d   : > { %3437 = vmatpush1.bf16.msra.mxu0 %v5504_v30  ;;  %3478 = vmatpush1.bf16.msra.mxu1 %v5506_v31  ;;  %v5556_v30 = vld [vmem:[%s7424_s28 + $0x840] sm:$0xff]  ;;  %v5549_v31 = vld [vmem:[%s7424_s28 + $0x808] sm:$0xff] }
 0x20e   : > { %3438 = vmatprep.subr.bf16.mxu0 %v5489_v32  ;;  %3479 = vmatprep.subr.bf16.mxu1 %v5491_v33  ;;  %v5557_v32 = vld [vmem:[%s7424_s28 + $0x848] sm:$0xff]  ;;  %v5644_v33 = vcombine.low %v5564_v21, %v5572_v22  ;;  %v5629_v35 = vcombine.high %v5548_v29, %v5556_v30  ;;  %v5628_v45 = vcombine.low %v5548_v29, %v5556_v30  ;;  %v5574_v21 = vld [vmem:[%s7424_s28 + $0x8d0] sm:$0xff]  ;;  %v5567_v22 = vld [vmem:[%s7424_s28 + $0x898] sm:$0xff] }
 0x20f   : > { %v5630_v46 = vcombine.low %v5549_v31, %v5557_v32  ;;  %v5558_v29 = vld [vmem:[%s7424_s28 + $0x850] sm:$0xff]  ;;  %v5551_v30 = vld [vmem:[%s7424_s28 + $0x818] sm:$0xff] }
 0x211   : > { %3439 = vmatpush1.bf16.msra.mxu0 %v5488_v38  ;;  %3480 = vmatpush1.bf16.msra.mxu1 %v5490_v39  ;;  %v5631_v38 = vcombine.high %v5549_v31, %v5557_v32  ;;  %v5533_v39 = vld [vmem:[%s7424_s28 + $0x788] sm:$0xff]  ;;  %v5559_v31 = vld [vmem:[%s7424_s28 + $0x858] sm:$0xff] }
 0x212   : > { %3440 = vmatprep.subr.bf16.mxu0 %v5473_v40  ;;  %3481 = vmatprep.subr.bf16.mxu1 %v5475_v43  ;;  %v5598_v40 = vld [vmem:[%s7424_s28 + $0x990] sm:$0xff]  ;;  %v5599_v43 = vld [vmem:[%s7424_s28 + $0x998] sm:$0xff]  ;;  %v5615_v49 = vcombine.high %v5533_v39, %v5541_v42  ;;  %v5635_v37 = vcombine.high %v5551_v30, %v5559_v31 }
 0x213   : > { %v5681_v48 = vcombine.high %v5598_v40, %v5606_v41 }
 0x214   : > { %v7807_v57 = vpop.f32.mrf.mxu0  ;;  %v7809_v58 = vpop.f32.mrf.mxu1 }
 0x215   : > { %3441 = vmatpush1.bf16.msra.mxu0 %v5472_v50  ;;  %3482 = vmatpush1.bf16.msra.mxu1 %v5474_v51  ;;  %v5683_v50 = vcombine.high %v5599_v43, %v5607_v44  ;;  %v4007_v60 = vand.u32 %v5681_v48, %v7428_v5 }
 0x216   : > { %v7811_v61 = vpop.f32.mrf.mxu0  ;;  %3442 = vmatprep.subr.bf16.mxu0 %v5457_v52  ;;  %v7814_v3 = vpop.f32.mrf.mxu1  ;;  %3483 = vmatprep.subr.bf16.mxu1 %v5459_v55  ;;  %v5680_v55 = vcombine.low %v5598_v40, %v5606_v41  ;;  %v5608_v40 = vld [vmem:[%s7424_s28 + $0x9e0] sm:$0x33]  ;;  %v5543_v41 = vld [vmem:[%s7424_s28 + $0x7d8] sm:$0xff] }
 0x217   : > { %v4013_v1 = vand.u32 %v5683_v50, %v7428_v5 }
 0x218   : > { %v1604_v11 = vpop.f32.mrf.mxu0  ;;  %v1645_v15 = vpop.f32.mrf.mxu1 }
 0x219   : > { %3443 = vmatpush1.bf16.msra.mxu0 %v5456_v59  ;;  %3484 = vmatpush1.bf16.msra.mxu1 %v5458_v63  ;;  %v5614_v59 = vcombine.low %v5533_v39, %v5541_v42  ;;  %v5682_v63 = vcombine.low %v5599_v43, %v5607_v44  ;;  %v5583_v11 = vld [vmem:[%s7424_s28 + $0x918] sm:$0xff]  ;;  %v4004_v15 = vand.u32 %v5680_v55, %v7428_v5  ;;  %v5600_v39 = vld [vmem:[%s7424_s28 + $0x9a0] sm:$0xff]  ;;  %v5601_v42 = vld [vmem:[%s7424_s28 + $0x9a8] sm:$0xff] }
 0x21a   : > { %v1605_v17 = vpop.f32.mrf.mxu0  ;;  %4045 = vmatprep.subr.bf16.mxu0 %v3995_v0  ;;  %v1646_v19 = vpop.f32.mrf.mxu1  ;;  %4086 = vmatprep.subr.bf16.mxu1 %v4001_v7  ;;  %v5582_v7 = vld [vmem:[%s7424_s28 + $0x910] sm:$0xff]  ;;  %v5609_v43 = vld [vmem:[%s7424_s28 + $0x9e8] sm:$0x33] }
 0x21b   : > { %v4010_v17 = vand.u32 %v5682_v63, %v7428_v5  ;;  %v5667_v19 = vcombine.high %v5583_v11, %v5591_v12  ;;  %v5664_v24 = vcombine.low %v5582_v7, %v5590_v8 }
 0x21c   : > { %5530 = vmatmul.mubr.msk.bf16.vlgmr.msra.gmra.mxu0 %vm1428_vm2, %v7714_v53  ;;  %5531 = vmatmul.mubr.msk.bf16.vlgmr.msra.gmra.mxu1 %vm1428_vm2, %v7714_v53 }
 0x21d   : > { %4046 = vmatpush1.bf16.msra.mxu0 %v3992_v16  ;;  %4087 = vmatpush1.bf16.msra.mxu1 %v3998_v18  ;;  %v5665_v18 = vcombine.high %v5582_v7, %v5590_v8  ;;  %v5686_v7 = vcombine.low %v5601_v42, %v5609_v43 }
 0x21e   : > { %4047 = vmatprep.subr.bf16.mxu0 %v5661_v62  ;;  %4088 = vmatprep.subr.bf16.mxu1 %v5663_v20  ;;  %v5566_v20 = vld [vmem:[%s7424_s28 + $0x890] sm:$0xff] }
 0x21f   : > { %4071 = vmatprep.mubr.bf16.mxu0 %v6314_v2  ;;  %4112 = vmatprep.mubr.bf16.mxu1 %v6314_v2  ;;  %v5648_v32 = vcombine.low %v5566_v20, %v5574_v21 }
 0x221   : > { %4048 = vmatpush1.bf16.msra.mxu0 %v5660_v25  ;;  %4089 = vmatpush1.bf16.msra.mxu1 %v5662_v26  ;;  %v5666_v25 = vcombine.low %v5583_v11, %v5591_v12  ;;  %v5649_v26 = vcombine.high %v5566_v20, %v5574_v21  ;;  %v5584_v11 = vld [vmem:[%s7424_s28 + $0x920] sm:$0xff] }
 0x222   : > { %4049 = vmatprep.subr.bf16.mxu0 %v5645_v27  ;;  %4090 = vmatprep.subr.bf16.mxu1 %v5647_v28  ;;  %v5651_v27 = vcombine.high %v5567_v22, %v5575_v23  ;;  %v5550_v28 = vld [vmem:[%s7424_s28 + $0x810] sm:$0xff]  ;;  %v5592_v12 = vld [vmem:[%s7424_s28 + $0x960] sm:$0xff] }
 0x223   : > { %v5632_v44 = vcombine.low %v5550_v28, %v5558_v29  ;;  %v5669_v20 = vcombine.high %v5584_v11, %v5592_v12 }
 0x225   : > { %4050 = vmatpush1.bf16.msra.mxu0 %v5644_v33  ;;  %4091 = vmatpush1.bf16.msra.mxu1 %v5646_v34  ;;  %v5650_v33 = vcombine.low %v5567_v22, %v5575_v23  ;;  %v5633_v34 = vcombine.high %v5550_v28, %v5558_v29  ;;  %v5568_v23 = vld [vmem:[%s7424_s28 + $0x8a0] sm:$0xff] }
 0x226   : > { %4051 = vmatprep.subr.bf16.mxu0 %v5629_v35  ;;  %4092 = vmatprep.subr.bf16.mxu1 %v5631_v38  ;;  %v5534_v35 = vld [vmem:[%s7424_s28 + $0x790] sm:$0xff]  ;;  %v5535_v38 = vld [vmem:[%s7424_s28 + $0x798] sm:$0xff] }
 0x227   : > { %v5619_v48 = vcombine.high %v5535_v38, %v5543_v41  ;;  %v5616_v55 = vcombine.low %v5534_v35, %v5542_v36  ;;  %v5618_v63 = vcombine.low %v5535_v38, %v5543_v41  ;;  %v5536_v38 = vld [vmem:[%s7424_s28 + $0x7a0] sm:$0xff]  ;;  %v5537_v41 = vld [vmem:[%s7424_s28 + $0x7a8] sm:$0xff] }
 0x228   : > { %v7845_v51 = vpop.f32.mrf.mxu0  ;;  %v7847_v52 = vpop.f32.mrf.mxu1 }
 0x229   : > { %4052 = vmatpush1.bf16.msra.mxu0 %v5628_v45  ;;  %4093 = vmatpush1.bf16.msra.mxu1 %v5630_v46  ;;  %v5634_v45 = vcombine.low %v5551_v30, %v5559_v31  ;;  %v5617_v46 = vcombine.high %v5534_v35, %v5542_v36  ;;  %v5552_v31 = vld [vmem:[%s7424_s28 + $0x820] sm:$0xff] }
 0x22a   : > { %v7849_v56 = vpop.f32.mrf.mxu0  ;;  %4053 = vmatprep.subr.bf16.mxu0 %v5613_v47  ;;  %v7852_v0 = vpop.f32.mrf.mxu1  ;;  %4094 = vmatprep.subr.bf16.mxu1 %v5615_v49  ;;  %v5685_v47 = vcombine.high %v5600_v39, %v5608_v40  ;;  %v5687_v49 = vcombine.high %v5601_v42, %v5609_v43  ;;  %v5602_v42 = vld [vmem:[%s7424_s28 + $0x9b0] sm:$0xff] }
 0x22b   : > { %v5610_v43 = vld [vmem:[%s7424_s28 + $0x9f0] sm:$0x33] }
 0x22c   : > { %v1686_v10 = vpop.f32.mrf.mxu0  ;;  %v1727_v14 = vpop.f32.mrf.mxu1 }
 0x22d   : > { %4054 = vmatpush1.bf16.msra.mxu0 %v5612_v54  ;;  %4095 = vmatpush1.bf16.msra.mxu1 %v5614_v59  ;;  %v5684_v59 = vcombine.low %v5600_v39, %v5608_v40  ;;  %v4025_v10 = vand.u32 %v5687_v49, %v7428_v5  ;;  %v5544_v39 = vld [vmem:[%s7424_s28 + $0x7e0] sm:$0xff] }
 0x22e   : > { %v1687_v16 = vpop.f32.mrf.mxu0  ;;  %4127 = vmatprep.subr.bf16.mxu0 %v4007_v60  ;;  %v1728_v62 = vpop.f32.mrf.mxu1  ;;  %4168 = vmatprep.subr.bf16.mxu1 %v4013_v1  ;;  %v4019_v1 = vand.u32 %v5685_v47, %v7428_v5  ;;  %v5621_v49 = vcombine.high %v5536_v38, %v5544_v39 }
 0x22f   : > { %v5593_v16 = vld [vmem:[%s7424_s28 + $0x968] sm:$0xff] }
 0x230   : > { %5692 = vmatmul.mubr.msk.bf16.vlgmr.msra.gmra.mxu0 %vm1428_vm2, %v7714_v53  ;;  %5693 = vmatmul.mubr.msk.bf16.vlgmr.msra.gmra.mxu1 %vm1428_vm2, %v7714_v53 }
 0x231   : > { %4128 = vmatpush1.bf16.msra.mxu0 %v4004_v15  ;;  %4169 = vmatpush1.bf16.msra.mxu1 %v4010_v17  ;;  %v5585_v15 = vld [vmem:[%s7424_s28 + $0x928] sm:$0xff] }
 0x232   : > { %4129 = vmatprep.subr.bf16.mxu0 %v5665_v18  ;;  %4170 = vmatprep.subr.bf16.mxu1 %v5667_v19  ;;  %v4016_v18 = vand.u32 %v5684_v59, %v7428_v5  ;;  %v4022_v19 = vand.u32 %v5686_v7, %v7428_v5  ;;  %v5671_v22 = vcombine.high %v5585_v15, %v5593_v16 }
 0x233   : > { %4153 = vmatprep.mubr.bf16.mxu0 %v6314_v2  ;;  %4194 = vmatprep.mubr.bf16.mxu1 %v6314_v2  ;;  %v5670_v28 = vcombine.low %v5585_v15, %v5593_v16 }
 0x235   : > { %4130 = vmatpush1.bf16.msra.mxu0 %v5664_v24  ;;  %4171 = vmatpush1.bf16.msra.mxu1 %v5666_v25  ;;  %v5576_v24 = vld [vmem:[%s7424_s28 + $0x8e0] sm:$0xff]  ;;  %v5569_v25 = vld [vmem:[%s7424_s28 + $0x8a8] sm:$0xff] }
 0x236   : > { %4131 = vmatprep.subr.bf16.mxu0 %v5649_v26  ;;  %4172 = vmatprep.subr.bf16.mxu1 %v5651_v27  ;;  %v5577_v26 = vld [vmem:[%s7424_s28 + $0x8e8] sm:$0xff]  ;;  %v5668_v27 = vcombine.low %v5584_v11, %v5592_v12  ;;  %v5653_v29 = vcombine.high %v5568_v23, %v5576_v24  ;;  %v5652_v35 = vcombine.low %v5568_v23, %v5576_v24 }
 0x237   : > { %v5655_v30 = vcombine.high %v5569_v25, %v5577_v26  ;;  %v5654_v36 = vcombine.low %v5569_v25, %v5577_v26  ;;  %v5688_v11 = vcombine.low %v5602_v42, %v5610_v43 }
 0x239   : > { %4132 = vmatpush1.bf16.msra.mxu0 %v5648_v32  ;;  %4173 = vmatpush1.bf16.msra.mxu1 %v5650_v33  ;;  %v5560_v32 = vld [vmem:[%s7424_s28 + $0x860] sm:$0xff]  ;;  %v5553_v33 = vld [vmem:[%s7424_s28 + $0x828] sm:$0xff]  ;;  %v4028_v24 = vand.u32 %v5688_v11, %v7428_v5 }
 0x23a   : > { %4133 = vmatprep.subr.bf16.mxu0 %v5633_v34  ;;  %4174 = vmatprep.subr.bf16.mxu1 %v5635_v37  ;;  %v5561_v34 = vld [vmem:[%s7424_s28 + $0x868] sm:$0xff]  ;;  %v5637_v37 = vcombine.high %v5552_v31, %v5560_v32  ;;  %v5636_v47 = vcombine.low %v5552_v31, %v5560_v32  ;;  %v5578_v31 = vld [vmem:[%s7424_s28 + $0x8f0] sm:$0xff]  ;;  %v5571_v32 = vld [vmem:[%s7424_s28 + $0x8b8] sm:$0xff] }
 0x23b   : > { %v5639_v40 = vcombine.high %v5553_v33, %v5561_v34 }
 0x23c   : > { %v7883_v50 = vpop.f32.mrf.mxu0  ;;  %v7885_v54 = vpop.f32.mrf.mxu1 }
 0x23d   : > { %4134 = vmatpush1.bf16.msra.mxu0 %v5632_v44  ;;  %4175 = vmatpush1.bf16.msra.mxu1 %v5634_v45  ;;  %v5545_v44 = vld [vmem:[%s7424_s28 + $0x7e8] sm:$0xff]  ;;  %v5603_v45 = vld [vmem:[%s7424_s28 + $0x9b8] sm:$0xff] }
 0x23e   : > { %v7887_v60 = vpop.f32.mrf.mxu0  ;;  %4135 = vmatprep.subr.bf16.mxu0 %v5617_v46  ;;  %v7890_v8 = vpop.f32.mrf.mxu1  ;;  %4176 = vmatprep.subr.bf16.mxu1 %v5619_v48  ;;  %v5611_v46 = vld [vmem:[%s7424_s28 + $0x9f8] sm:$0x33]  ;;  %v5638_v48 = vcombine.low %v5553_v33, %v5561_v34  ;;  %v5623_v59 = vcombine.high %v5537_v41, %v5545_v44 }
 0x23f   : > { %v5690_v16 = vcombine.low %v5603_v45, %v5611_v46  ;;  %v5579_v33 = vld [vmem:[%s7424_s28 + $0x8f8] sm:$0xff] }
 0x240   : > { %v1768_v14 = vpop.f32.mrf.mxu0  ;;  %v1809_v17 = vpop.f32.mrf.mxu1 }
 0x241   : > { %4136 = vmatpush1.bf16.msra.mxu0 %v5616_v55  ;;  %4177 = vmatpush1.bf16.msra.mxu1 %v5618_v63  ;;  %v5689_v55 = vcombine.high %v5602_v42, %v5610_v43  ;;  %v5691_v63 = vcombine.high %v5603_v45, %v5611_v46  ;;  %v5622_v14 = vcombine.low %v5537_v41, %v5545_v44  ;;  %v5538_v45 = vld [vmem:[%s7424_s28 + $0x7b0] sm:$0xff] }
 0x242   : > { %v1769_v62 = vpop.f32.mrf.mxu0  ;;  %4209 = vmatprep.subr.bf16.mxu0 %v4019_v1  ;;  %v1810_v21 = vpop.f32.mrf.mxu1  ;;  %4250 = vmatprep.subr.bf16.mxu1 %v4025_v10  ;;  %v5620_v10 = vcombine.low %v5536_v38, %v5544_v39  ;;  %v4034_v26 = vand.u32 %v5690_v16, %v7428_v5  ;;  %v5562_v38 = vld [vmem:[%s7424_s28 + $0x870] sm:$0xff]  ;;  %v5555_v39 = vld [vmem:[%s7424_s28 + $0x838] sm:$0xff]  ;;  %v5658_v42 = vcombine.low %v5571_v32, %v5579_v33 }
 0x243   : > { %v4031_v15 = vand.u32 %v5689_v55, %v7428_v5  ;;  %v5586_v62 = vld [vmem:[%s7424_s28 + $0x930] sm:$0xff]  ;;  %v5587_v21 = vld [vmem:[%s7424_s28 + $0x938] sm:$0xff] }
 0x244   : > { %5694 = vmatmul.mubr.msk.bf16.vlgmr.msra.gmra.mxu0 %vm1428_vm2, %v7714_v53  ;;  %5695 = vmatmul.mubr.msk.bf16.vlgmr.msra.gmra.mxu1 %vm1428_vm2, %v7714_v53  ;;  %v5546_v46 = vld [vmem:[%s7424_s28 + $0x7f0] sm:$0xff] }
 0x245   : > { %4210 = vmatpush1.bf16.msra.mxu0 %v4016_v18  ;;  %4251 = vmatpush1.bf16.msra.mxu1 %v4022_v19  ;;  %v4037_v18 = vand.u32 %v5691_v63, %v7428_v5  ;;  %v5594_v19 = vld [vmem:[%s7424_s28 + $0x970] sm:$0xff]  ;;  %v5624_v11 = vcombine.low %v5538_v45, %v5546_v46 }
 0x246   : > { %4211 = vmatprep.subr.bf16.mxu0 %v5669_v20  ;;  %4252 = vmatprep.subr.bf16.mxu1 %v5671_v22  ;;  %v5595_v22 = vld [vmem:[%s7424_s28 + $0x978] sm:$0xff]  ;;  %v5672_v5 = vcombine.low %v5586_v62, %v5594_v19 }
 0x247   : > { %4235 = vmatprep.mubr.bf16.mxu0 %v6314_v2  ;;  %4276 = vmatprep.mubr.bf16.mxu1 %v6314_v2  ;;  %v5674_v34 = vcombine.low %v5587_v21, %v5595_v22 }
 0x249   : > { %4212 = vmatpush1.bf16.msra.mxu0 %v5668_v27  ;;  %4253 = vmatpush1.bf16.msra.mxu1 %v5670_v28  ;;  %v5673_v27 = vcombine.high %v5586_v62, %v5594_v19 }
 0x24a   : > { %4213 = vmatprep.subr.bf16.mxu0 %v5653_v29  ;;  %4254 = vmatprep.subr.bf16.mxu1 %v5655_v30  ;;  %v5675_v29 = vcombine.high %v5587_v21, %v5595_v22  ;;  %v5570_v30 = vld [vmem:[%s7424_s28 + $0x8b0] sm:$0xff] }
 0x24b   : > { %v5656_v41 = vcombine.low %v5570_v30, %v5578_v31 }
 0x24d   : > { %4214 = vmatpush1.bf16.msra.mxu0 %v5652_v35  ;;  %4255 = vmatpush1.bf16.msra.mxu1 %v5654_v36  ;;  %v5657_v35 = vcombine.high %v5570_v30, %v5578_v31  ;;  %v5659_v36 = vcombine.high %v5571_v32, %v5579_v33 }
 0x24e   : > { %4215 = vmatprep.subr.bf16.mxu0 %v5637_v37  ;;  %4256 = vmatprep.subr.bf16.mxu1 %v5639_v40  ;;  %v5554_v37 = vld [vmem:[%s7424_s28 + $0x830] sm:$0xff]  ;;  %v5563_v40 = vld [vmem:[%s7424_s28 + $0x878] sm:$0xff] }
 0x24f   : > { %v5641_v43 = vcombine.high %v5554_v37, %v5562_v38  ;;  %v5643_v44 = vcombine.high %v5555_v39, %v5563_v40  ;;  %v5642_v55 = vcombine.low %v5555_v39, %v5563_v40 }
 0x250   : > { %v7921_v1 = vpop.f32.mrf.mxu0  ;;  %v7923_v7 = vpop.f32.mrf.mxu1 }
 0x251   : > { %4216 = vmatpush1.bf16.msra.mxu0 %v5636_v47  ;;  %4257 = vmatpush1.bf16.msra.mxu1 %v5638_v48  ;;  %v5539_v47 = vld [vmem:[%s7424_s28 + $0x7b8] sm:$0xff] }
 0x252   : > { %v7925_v12 = vpop.f32.mrf.mxu0  ;;  %4217 = vmatprep.subr.bf16.mxu0 %v5621_v49  ;;  %v7928_v17 = vpop.f32.mrf.mxu1  ;;  %4258 = vmatprep.subr.bf16.mxu1 %v5623_v59  ;;  %v5547_v48 = vld [vmem:[%s7424_s28 + $0x7f8] sm:$0xff]  ;;  %v5640_v49 = vcombine.low %v5554_v37, %v5562_v38  ;;  %v5625_v59 = vcombine.high %v5538_v45, %v5546_v46 }
 0x253   : > { %v2654_v38 = vmax.f32 %v7773_v9, %v7925_v12 }
 0x254   : > { %v2363_v20 = vpop.f32.mrf.mxu0  ;;  %v2404_v23 = vpop.f32.mrf.mxu1 }
 0x255   : > { %4218 = vmatpush1.bf16.msra.mxu0 %v5620_v10  ;;  %4259 = vmatpush1.bf16.msra.mxu1 %v5622_v14 }
 0x256   : > { %v2364_v25 = vpop.f32.mrf.mxu0  ;;  %4291 = vmatprep.subr.bf16.mxu0 %v4031_v15  ;;  %v2405_v28 = vpop.f32.mrf.mxu1  ;;  %4332 = vmatprep.subr.bf16.mxu1 %v4037_v18  ;;  %v5626_v15 = vcombine.low %v5539_v47, %v5547_v48 }
 0x258   : > { %5696 = vmatmul.mubr.msk.bf16.vlgmr.msra.gmra.mxu0 %vm1428_vm2, %v7714_v53  ;;  %5697 = vmatmul.mubr.msk.bf16.vlgmr.msra.gmra.mxu1 %vm1428_vm2, %v7714_v53 }
 0x259   : > { %4292 = vmatpush1.bf16.msra.mxu0 %v4028_v24  ;;  %4333 = vmatpush1.bf16.msra.mxu1 %v4034_v26 }
 0x25a   : > { %4293 = vmatprep.subr.bf16.mxu0 %v5673_v27  ;;  %4334 = vmatprep.subr.bf16.mxu1 %v5675_v29 }
 0x25b   : > { %4317 = vmatprep.mubr.bf16.mxu0 %v6314_v2  ;;  %4358 = vmatprep.mubr.bf16.mxu1 %v6314_v2  ;;  %v5627_v2 = vcombine.high %v5539_v47, %v5547_v48 }
 0x25d   : > { %4294 = vmatpush1.bf16.msra.mxu0 %v5672_v5  ;;  %4335 = vmatpush1.bf16.msra.mxu1 %v5674_v34 }
 0x25e   : > { %4295 = vmatprep.subr.bf16.mxu0 %v5657_v35  ;;  %4336 = vmatprep.subr.bf16.mxu1 %v5659_v36  ;;  %v2655_v36 = vmax.f32 %v7771_v6, %v7923_v7 }
 0x261   : > { %4296 = vmatpush1.bf16.msra.mxu0 %v5656_v41  ;;  %4337 = vmatpush1.bf16.msra.mxu1 %v5658_v42  ;;  %v2656_v41 = vmax.f32 %v7776_v13, %v7928_v17 }
 0x262   : > { %4297 = vmatprep.subr.bf16.mxu0 %v5641_v43  ;;  %4338 = vmatprep.subr.bf16.mxu1 %v5643_v44 }
 0x264   : > { %v2441_v63 = vpop.f32.mrf.mxu0  ;;  %v2482_v10 = vpop.f32.mrf.mxu1 }
 0x265   : > { %4298 = vmatpush1.bf16.msra.mxu0 %v5640_v49  ;;  %4339 = vmatpush1.bf16.msra.mxu1 %v5642_v55  ;;  %v2657_v9 = vmax.f32 %v7807_v57, %v2441_v63  ;;  %v2659_v12 = vmax.f32 %v7809_v58, %v2482_v10 }
 0x266   : > { %v2443_v14 = vpop.f32.mrf.mxu0  ;;  %4299 = vmatprep.subr.bf16.mxu0 %v5625_v59  ;;  %v2484_v16 = vpop.f32.mrf.mxu1  ;;  %4340 = vmatprep.subr.bf16.mxu1 %v5627_v2 }
 0x267   : > { %v2658_v48 = vmax.f32 %v7811_v61, %v2443_v14  ;;  %v2660_v49 = vmax.f32 %v7814_v3, %v2484_v16 }
 0x268   : > { %v2445_v18 = vpop.f32.mrf.mxu0  ;;  %v2486_v62 = vpop.f32.mrf.mxu1 }
 0x269   : > { %4300 = vmatpush1.bf16.msra.mxu0 %v5624_v11  ;;  %4341 = vmatpush1.bf16.msra.mxu1 %v5626_v15 }
 0x26a   : > { %v2446_v19 = vpop.f32.mrf.mxu0  ;;  %v2487_v20 = vpop.f32.mrf.mxu1 }
 0x26c   : > { %5698 = vmatmul.mubr.msk.bf16.vlgmr.msra.gmra.mxu0 %vm1428_vm2, %v7714_v53  ;;  %5699 = vmatmul.mubr.msk.bf16.vlgmr.msra.gmra.mxu1 %vm1428_vm2, %v7714_v53  ;;  %v2653_v53 = vmax.f32 %v7769_v4, %v7921_v1 }
 0x278   : > { %v2523_v21 = vpop.f32.mrf.mxu0  ;;  %v2564_v22 = vpop.f32.mrf.mxu1 }
 0x279   : > { %v2661_v10 = vmax.f32 %v7845_v51, %v2523_v21  ;;  %v2663_v61 = vmax.f32 %v7847_v52, %v2564_v22 }
 0x27a   : > { %v2525_v23 = vpop.f32.mrf.mxu0  ;;  %v2566_v24 = vpop.f32.mrf.mxu1 }
 0x27b   : > { %v2662_v62 = vmax.f32 %v7849_v56, %v2525_v23  ;;  %v2664_v19 = vmax.f32 %v7852_v0, %v2566_v24 }
 0x27c   : > { %v2527_v25 = vpop.f32.mrf.mxu0  ;;  %v2568_v26 = vpop.f32.mrf.mxu1 }
 0x27e   : > { %v2528_v27 = vpop.f32.mrf.mxu0  ;;  %v2569_v28 = vpop.f32.mrf.mxu1 }
 0x28c   : > { %v2605_v29 = vpop.f32.mrf.mxu0  ;;  %v7959_v30 = vpop.f32.mrf.mxu1 }
 0x28d   : > { %v2665_v22 = vmax.f32 %v7883_v50, %v2605_v29  ;;  %v2667_v56 = vmax.f32 %v7885_v54, %v7959_v30 }
 0x28e   : > { %v7961_v31 = vpop.f32.mrf.mxu0  ;;  %v7963_v32 = vpop.f32.mrf.mxu1 }
 0x28f   : > { %v2666_v0 = vmax.f32 %v7887_v60, %v7961_v31  ;;  %v8020_v31 = vpop.permute.xlu0 %4386 }
 0x290   : > { %v2609_v33 = vpop.f32.mrf.mxu0  ;;  %v2650_v5 = vpop.f32.mrf.mxu1 }
 0x292   : > { %v2610_v34 = vpop.f32.mrf.mxu0  ;;  %v2651_v35 = vpop.f32.mrf.mxu1 }
 0x293   : > { %v2668_v34 = vmax.f32 %v7890_v8, %v7963_v32 }
 0x2a0   : > { %v3216_v37 = vpop.f32.mrf.mxu0  ;;  %v3257_v40 = vpop.f32.mrf.mxu1 }
 0x2a1   : > { %v7971_v39 = vmax.f32 %v2653_v53, %v3216_v37  ;;  %v7975_v42 = vmax.f32 %v2655_v36, %v3257_v40 }
 0x2a2   : > { %v3218_v43 = vpop.f32.mrf.mxu0  ;;  %v3259_v45 = vpop.f32.mrf.mxu1 }
 0x2a3   : > { %v7977_v44 = vmax.f32 %v2654_v38, %v3218_v43  ;;  %v7979_v4 = vmax.f32 %v2656_v41, %v3259_v45 }
 0x2a4   : > { %v3220_v1 = vpop.f32.mrf.mxu0  ;;  %v3261_v6 = vpop.f32.mrf.mxu1 }
 0x2a6   : > { %v3221_v7 = vpop.f32.mrf.mxu0  ;;  %v3262_v46 = vpop.f32.mrf.mxu1 }
 0x2b4   : > { %v3298_v47 = vpop.f32.mrf.mxu0  ;;  %v3339_v17 = vpop.f32.mrf.mxu1 }
 0x2b5   : > { %v7984_v13 = vmax.f32 %v2657_v9, %v3298_v47  ;;  %v7987_v55 = vmax.f32 %v2659_v12, %v3339_v17 }
 0x2b6   : > { %v3300_v59 = vpop.f32.mrf.mxu0  ;;  %v3341_v11 = vpop.f32.mrf.mxu1 }
 0x2b7   : > { %v7989_v2 = vmax.f32 %v2658_v48, %v3300_v59  ;;  %v7991_v15 = vmax.f32 %v2660_v49, %v3341_v11 }
 0x2b8   : > { %v3302_v18 = vpop.f32.mrf.mxu0  ;;  %v3343_v57 = vpop.f32.mrf.mxu1 }
 0x2ba   : > { %v3303_v63 = vpop.f32.mrf.mxu0  ;;  %v3344_v58 = vpop.f32.mrf.mxu1 }
 0x2c8   : > { %v3380_v14 = vpop.f32.mrf.mxu0  ;;  %v3421_v16 = vpop.f32.mrf.mxu1 }
 0x2c9   : > { %v7996_v3 = vmax.f32 %v2661_v10, %v3380_v14  ;;  %v7999_v20 = vmax.f32 %v2663_v61, %v3421_v16 }
 0x2ca   : > { %v3382_v25 = vpop.f32.mrf.mxu0  ;;  %v3423_v27 = vpop.f32.mrf.mxu1 }
 0x2cb   : > { %v8001_v26 = vmax.f32 %v2662_v62, %v3382_v25  ;;  %v8003_v28 = vmax.f32 %v2664_v19, %v3423_v27 }
 0x2cc   : > { %v3384_v33 = vpop.f32.mrf.mxu0  ;;  %v3425_v51 = vpop.f32.mrf.mxu1 }
 0x2ce   : > { %v3385_v21 = vpop.f32.mrf.mxu0  ;;  %v3426_v52 = vpop.f32.mrf.mxu1 }
 0x2dc   : > { %v3462_v23 = vpop.f32.mrf.mxu0  ;;  %v3503_v5 = vpop.f32.mrf.mxu1 }
 0x2dd   : > { %v8010_v24 = vmax.f32 %v2665_v22, %v3462_v23  ;;  %v8014_v35 = vmax.f32 %v2667_v56, %v3503_v5 }
 0x2de   : > { %v3464_v53 = vpop.f32.mrf.mxu0  ;;  %v3505_v50 = vpop.f32.mrf.mxu1 }
 0x2df   : > { %v8016_v36 = vmax.f32 %v2666_v0, %v3464_v53  ;;  %v8018_v29 = vmax.f32 %v2668_v34, %v3505_v50 }
 0x2e0   : > { %v3466_v54 = vpop.f32.mrf.mxu0  ;;  %v3507_v30 = vpop.f32.mrf.mxu1 }
 0x2e2   : > { %v3467_v37 = vpop.f32.mrf.mxu0  ;;  %v3508_v38 = vpop.f32.mrf.mxu1 }
 0x2f0   : > { %v4073_v60 = vpop.f32.mrf.mxu0  ;;  %v4114_v41 = vpop.f32.mrf.mxu1 }
 0x2f1   : > { %v4367_v40 = vmax.f32 %v7971_v39, %v4073_v60  ;;  %v4369_v8 = vmax.f32 %v7975_v42, %v4114_v41 }
 0x2f2   : > { %v4075_v32 = vpop.f32.mrf.mxu0  ;;  %v4116_v1 = vpop.f32.mrf.mxu1 }
 0x2f3   : > { %v4389_v43 = vadd.f32 %v8020_v31, %v4367_v40  ;;  %v4368_v45 = vmax.f32 %v7977_v44, %v4075_v32  ;;  %v4391_v6 = vadd.f32 %v8020_v31, %v4369_v8  ;;  %v4370_v7 = vmax.f32 %v7979_v4, %v4116_v1 }
 0x2f4   : > { %v4077_v46 = vpop.f32.mrf.mxu0  ;;  %v4118_v39 = vpop.f32.mrf.mxu1 }
 0x2f5   : > { %v4405_v9 = vmax.f32 %v4389_v43, 0.0  ;;  %v4390_v12 = vadd.f32 %v8020_v31, %v4368_v45  ;;  %v4407_v47 = vmax.f32 %v4391_v6, 0.0  ;;  %v4392_v48 = vadd.f32 %v8020_v31, %v4370_v7 }
 0x2f6   : > { %v4078_v17 = vpop.f32.mrf.mxu0  ;;  %v4119_v44 = vpop.f32.mrf.mxu1 }
 0x2f7   : > { %4421 = vst [vmem:[%s8032_s12] sm:$0x3f] %v4405_v9  ;;  %v4406_v42 = vmax.f32 %v4390_v12, 0.0  ;;  %4423 = vst [vmem:[%s8032_s12 + $0x10] sm:$0x3f] %v4407_v47  ;;  %v4408_v4 = vmax.f32 %v4392_v48, 0.0 }
 0x2f9   : > { %4422 = vst [vmem:[%s8032_s12 + $0x8] sm:$0x3f] %v4406_v42  ;;  %4424 = vst [vmem:[%s8032_s12 + $0x18] sm:$0x3f] %v4408_v4 }
 0x304   : > { %v4155_v49 = vpop.f32.mrf.mxu0  ;;  %v4196_v11 = vpop.f32.mrf.mxu1 }
 0x305   : > { %v4371_v59 = vmax.f32 %v7984_v13, %v4155_v49  ;;  %v4373_v18 = vmax.f32 %v7987_v55, %v4196_v11 }
 0x306   : > { %v4157_v57 = vpop.f32.mrf.mxu0  ;;  %v4198_v10 = vpop.f32.mrf.mxu1 }
 0x307   : > { %v4393_v63 = vadd.f32 %v8020_v31, %v4371_v59  ;;  %v4372_v58 = vmax.f32 %v7989_v2, %v4157_v57  ;;  %v4395_v61 = vadd.f32 %v8020_v31, %v4373_v18  ;;  %v4374_v14 = vmax.f32 %v7991_v15, %v4198_v10 }
 0x308   : > { %v4159_v62 = vpop.f32.mrf.mxu0  ;;  %v4200_v19 = vpop.f32.mrf.mxu1 }
 0x309   : > { %v4409_v16 = vmax.f32 %v4393_v63, 0.0  ;;  %v4394_v13 = vadd.f32 %v8020_v31, %v4372_v58  ;;  %v4411_v25 = vmax.f32 %v4395_v61, 0.0  ;;  %v4396_v55 = vadd.f32 %v8020_v31, %v4374_v14 }
 0x30a   : > { %v4160_v27 = vpop.f32.mrf.mxu0  ;;  %v4201_v51 = vpop.f32.mrf.mxu1 }
 0x30b   : > { %4425 = vst [vmem:[%s8032_s12 + $0x20] sm:$0x3f] %v4409_v16  ;;  %v4410_v33 = vmax.f32 %v4394_v13, 0.0  ;;  %4427 = vst [vmem:[%s8032_s12 + $0x30] sm:$0x3f] %v4411_v25  ;;  %v4412_v2 = vmax.f32 %v4396_v55, 0.0 }
 0x30d   : > { %4426 = vst [vmem:[%s8032_s12 + $0x28] sm:$0x3f] %v4410_v33  ;;  %4428 = vst [vmem:[%s8032_s12 + $0x38] sm:$0x3f] %v4412_v2 }
 0x318   : > { %v4237_v21 = vpop.f32.mrf.mxu0  ;;  %v4278_v15 = vpop.f32.mrf.mxu1 }
 0x319   : > { %v4375_v52 = vmax.f32 %v7996_v3, %v4237_v21  ;;  %v4377_v22 = vmax.f32 %v7999_v20, %v4278_v15 }
 0x31a   : > { %v4239_v56 = vpop.f32.mrf.mxu0  ;;  %v4280_v5 = vpop.f32.mrf.mxu1 }
 0x31b   : > { %v4397_v23 = vadd.f32 %v8020_v31, %v4375_v52  ;;  %v4376_v0 = vmax.f32 %v8001_v26, %v4239_v56  ;;  %v4399_v34 = vadd.f32 %v8020_v31, %v4377_v22  ;;  %v4378_v53 = vmax.f32 %v8003_v28, %v4280_v5 }
 0x31c   : > { %v4241_v50 = vpop.f32.mrf.mxu0  ;;  %v4282_v30 = vpop.f32.mrf.mxu1 }
 0x31d   : > { %v4413_v54 = vmax.f32 %v4397_v23, 0.0  ;;  %v4398_v3 = vadd.f32 %v8020_v31, %v4376_v0  ;;  %v4415_v37 = vmax.f32 %v4399_v34, 0.0  ;;  %v4400_v20 = vadd.f32 %v8020_v31, %v4378_v53 }
 0x31e   : > { %v4242_v38 = vpop.f32.mrf.mxu0  ;;  %v4283_v40 = vpop.f32.mrf.mxu1 }
 0x31f   : > { %4429 = vst [vmem:[%s8032_s12 + $0x40] sm:$0x3f] %v4413_v54  ;;  %v4414_v60 = vmax.f32 %v4398_v3, 0.0  ;;  %4431 = vst [vmem:[%s8032_s12 + $0x50] sm:$0x3f] %v4415_v37  ;;  %v4416_v26 = vmax.f32 %v4400_v20, 0.0 }
 0x321   : > { %4430 = vst [vmem:[%s8032_s12 + $0x48] sm:$0x3f] %v4414_v60  ;;  %4432 = vst [vmem:[%s8032_s12 + $0x58] sm:$0x3f] %v4416_v26 }
 0x32c   : > { %v4319_v41 = vpop.f32.mrf.mxu0  ;;  %v4360_v28 = vpop.f32.mrf.mxu1 }
 0x32d   : > { %v4379_v8 = vmax.f32 %v8010_v24, %v4319_v41  ;;  %v4381_v32 = vmax.f32 %v8014_v35, %v4360_v28 }
 0x32e   : > { %v4321_v43 = vpop.f32.mrf.mxu0  ;;  %v4362_v6 = vpop.f32.mrf.mxu1 }
 0x32f   : > { %v4401_v45 = vadd.f32 %v8020_v31, %v4379_v8  ;;  %v4380_v1 = vmax.f32 %v8016_v36, %v4321_v43  ;;  %v4403_v7 = vadd.f32 %v8020_v31, %v4381_v32  ;;  %v4382_v46 = vmax.f32 %v8018_v29, %v4362_v6 }
 0x330   : > { %v4323_v9 = vpop.f32.mrf.mxu0  ;;  %v4364_v39 = vpop.f32.mrf.mxu1 }
 0x331   : > { %v4417_v12 = vmax.f32 %v4401_v45, 0.0  ;;  %v4402_v24 = vadd.f32 %v8020_v31, %v4380_v1  ;;  %v4419_v47 = vmax.f32 %v4403_v7, 0.0  ;;  %v4404_v35 = vadd.f32 %v8020_v31, %v4382_v46  ;;  %4443 = sbr.rel (!%p6368_p5) target bundleno = 968 (0x3c8), region = 102 }
 0x332   : > { %v4324_v48 = vpop.f32.mrf.mxu0  ;;  %v4365_v42 = vpop.f32.mrf.mxu1 }
 0x333   : > { %4433 = vst [vmem:[%s8032_s12 + $0x60] sm:$0x3f] %v4417_v12  ;;  %v4418_v17 = vmax.f32 %v4402_v24, 0.0  ;;  %4435 = vst [vmem:[%s8032_s12 + $0x70] sm:$0x3f] %v4419_v47  ;;  %v4420_v36 = vmax.f32 %v4404_v35, 0.0 }
 0x335   : > { %4434 = vst [vmem:[%s8032_s12 + $0x68] sm:$0x3f] %v4418_v17  ;;  %4436 = vst [vmem:[%s8032_s12 + $0x78] sm:$0x3f] %v4420_v36 }
 0x336   : > { %s8545_s25 = smov (!%p4446_p1, %s4445_s25), 16 }
 0x337   : > { %s5702_s11 = sshll.u32 %s8545_s25, 7  ;;  %s8083_s17 = sshll.u32 %s8545_s25, 3 }
 0x338   : > { %p5706_p2 = scmp.eq.s32.totalorder %s5702_s11, 0 }
 0x339   : > { %p4456_p3 = scmp.lt.u32.totalorder (!%p5706_p2), %s8083_s17, 8 }
 0x33a   : > { %4455 = sbr.rel (%p5706_p2) target bundleno = 968 (0x3c8), region = 106 }
 0x33f   : > { %4459 = sbr.rel (%p4456_p3) target bundleno = 959 (0x3bf), region = 110  ;;  %s8087_s20 = sand.u32 (!%p4456_p3), 7, %s8083_s17  }
 0x340   : > { %p4476_p5 = scmp.eq.s32.totalorder (!%p4456_p3), %s8087_s20, 0  ;;  %p5707_p4 = scmp.ne.s32.totalorder (!%p4456_p3), %s8087_s20, 0 }
 0x344   : > { %4479 = sbr.rel (%p5707_p4) target bundleno = 895 (0x37f), region = 125  ;;  %s4480_s15 = sshrl.u32 (!%p5707_p4), %s8083_s17, 3 }
 0x345   : > { %s8094_s5 = sshrl.u32 (!%p5707_p4), %s4480_s15, 6 }
 0x346   : > { %p5708_p6 = scmp.le.s32.totalorder (!%p5707_p4), %s8094_s5, 0 }
 0x349   : > { %5004 = sbr.rel (%p5708_p6) target bundleno = 879 (0x36f), region = 276  ;;  %s8521_s22 = smov (!%p5708_p6), %s8081_s6 }
 0x34a   : > { %s8522_s24 = smov (!%p5708_p6), %s8032_s12  ;;  %s8103_s30 = smov (!%p5708_p6), 0  }
 0x34b   : > { %s8105_s7 = smov (!%p5708_p6), 0  }
 0x34e LB: >> { %v4493_v29 = vld [vmem:[%s6253_s24] sm:$0xff]  ;;  %v4495_v31 = vld [vmem:[%s6253_s24 + $0x8] sm:$0xff]  ;;  %v4497_v44 = vld [vmem:[%s6253_s24 + $0x10] sm:$0xff]  ;;  %s4621_s28 = sadd.s32 1, %s6257_s30  ;;  %s4487_s7 = sadd.s32 1, %s6261_s7   ;;  %s6261_s7 = sphi %s8105_s7, %s4487_s7   ;;  %s6257_s30 = sphi %s8103_s30, %s8525_s30   ;;  %s6253_s24 = sphi %s8522_s24, %s8524_s24   ;;  %s6249_s22 = sphi %s8521_s22, %s8523_s22  }
 0x34f   : >> { %4494 = vst [vmem:[%s6249_s22] sm:$0xff] %v4493_v29  ;;  %4496 = vst [vmem:[%s6249_s22 + $0x8] sm:$0xff] %v4495_v31  ;;  %v4499_v4 = vld [vmem:[%s6253_s24 + $0x18] sm:$0xff]  ;;  %v4501_v49 = vld [vmem:[%s6253_s24 + $0x20] sm:$0xff]  ;;  %p4622_p7 = scmp.ge.s32.totalorder %s4621_s28, %s8094_s5  ;;  %p4486_p8 = scmp.ge.s32.totalorder %s4487_s7, %s8094_s5 }
 0x350   : >> { %4498 = vst [vmem:[%s6249_s22 + $0x10] sm:$0xff] %v4497_v44  ;;  %v4503_v59 = vld [vmem:[%s6253_s24 + $0x28] sm:$0xff]  ;;  %4500 = vst [vmem:[%s6249_s22 + $0x18] sm:$0xff] %v4499_v4  ;;  %v4505_v11 = vld [vmem:[%s6253_s24 + $0x30] sm:$0xff] }
 0x351   : >> { %4502 = vst [vmem:[%s6249_s22 + $0x20] sm:$0xff] %v4501_v49  ;;  %4504 = vst [vmem:[%s6249_s22 + $0x28] sm:$0xff] %v4503_v59  ;;  %v4507_v18 = vld [vmem:[%s6253_s24 + $0x38] sm:$0xff]  ;;  %v4509_v57 = vld [vmem:[%s6253_s24 + $0x40] sm:$0xff]  ;;  %s8547_s28 = smov (%p4622_p7, %s4621_s28), 0 }
 0x352   : >> { %4506 = vst [vmem:[%s6249_s22 + $0x30] sm:$0xff] %v4505_v11  ;;  %4508 = vst [vmem:[%s6249_s22 + $0x38] sm:$0xff] %v4507_v18  ;;  %v4511_v63 = vld [vmem:[%s6253_s24 + $0x48] sm:$0xff]  ;;  %v4513_v58 = vld [vmem:[%s6253_s24 + $0x50] sm:$0xff]  ;;  %s5709_s14 = sshll.u32 %s8547_s28, 9  ;;  %s8525_s30 = smov %s8547_s28 }
 0x353   : >> { %4510 = vst [vmem:[%s6249_s22 + $0x40] sm:$0xff] %v4509_v57  ;;  %v4515_v10 = vld [vmem:[%s6253_s24 + $0x58] sm:$0xff]  ;;  %4512 = vst [vmem:[%s6249_s22 + $0x48] sm:$0xff] %v4511_v63  ;;  %v4517_v61 = vld [vmem:[%s6253_s24 + $0x60] sm:$0xff]  ;;  %s8161_s4 = scalar_lea.vmem %s8032_s12, %s5709_s14 [#allocation3]   ;;  %s8164_s18 = scalar_lea.vmem %s8081_s6, %s5709_s14  }
 0x354   : >> { %4514 = vst [vmem:[%s6249_s22 + $0x50] sm:$0xff] %v4513_v58  ;;  %4516 = vst [vmem:[%s6249_s22 + $0x58] sm:$0xff] %v4515_v10  ;;  %v4519_v14 = vld [vmem:[%s6253_s24 + $0x68] sm:$0xff]  ;;  %v4521_v62 = vld [vmem:[%s6253_s24 + $0x70] sm:$0xff] }
 0x355   : >> { %4518 = vst [vmem:[%s6249_s22 + $0x60] sm:$0xff] %v4517_v61  ;;  %4520 = vst [vmem:[%s6249_s22 + $0x68] sm:$0xff] %v4519_v14  ;;  %v4523_v16 = vld [vmem:[%s6253_s24 + $0x78] sm:$0xff]  ;;  %v4525_v13 = vld [vmem:[%s6253_s24 + $0x80] sm:$0xff] }
 0x356   : >> { %4522 = vst [vmem:[%s6249_s22 + $0x70] sm:$0xff] %v4521_v62  ;;  %v4527_v19 = vld [vmem:[%s6253_s24 + $0x88] sm:$0xff]  ;;  %4524 = vst [vmem:[%s6249_s22 + $0x78] sm:$0xff] %v4523_v16  ;;  %v4529_v25 = vld [vmem:[%s6253_s24 + $0x90] sm:$0xff] }
 0x357   : >> { %4526 = vst [vmem:[%s6249_s22 + $0x80] sm:$0xff] %v4525_v13  ;;  %4528 = vst [vmem:[%s6249_s22 + $0x88] sm:$0xff] %v4527_v19  ;;  %v4531_v55 = vld [vmem:[%s6253_s24 + $0x98] sm:$0xff]  ;;  %v4533_v27 = vld [vmem:[%s6253_s24 + $0xa0] sm:$0xff] }
 0x358   : >> { %4530 = vst [vmem:[%s6249_s22 + $0x90] sm:$0xff] %v4529_v25  ;;  %4532 = vst [vmem:[%s6249_s22 + $0x98] sm:$0xff] %v4531_v55  ;;  %v4535_v33 = vld [vmem:[%s6253_s24 + $0xa8] sm:$0xff]  ;;  %v4537_v51 = vld [vmem:[%s6253_s24 + $0xb0] sm:$0xff] }
 0x359   : >> { %4534 = vst [vmem:[%s6249_s22 + $0xa0] sm:$0xff] %v4533_v27  ;;  %v4539_v2 = vld [vmem:[%s6253_s24 + $0xb8] sm:$0xff]  ;;  %4536 = vst [vmem:[%s6249_s22 + $0xa8] sm:$0xff] %v4535_v33  ;;  %v4541_v21 = vld [vmem:[%s6253_s24 + $0xc0] sm:$0xff] }
 0x35a   : >> { %4538 = vst [vmem:[%s6249_s22 + $0xb0] sm:$0xff] %v4537_v51  ;;  %4540 = vst [vmem:[%s6249_s22 + $0xb8] sm:$0xff] %v4539_v2  ;;  %v4543_v52 = vld [vmem:[%s6253_s24 + $0xc8] sm:$0xff]  ;;  %v4545_v15 = vld [vmem:[%s6253_s24 + $0xd0] sm:$0xff] }
 0x35b   : >> { %4542 = vst [vmem:[%s6249_s22 + $0xc0] sm:$0xff] %v4541_v21  ;;  %4544 = vst [vmem:[%s6249_s22 + $0xc8] sm:$0xff] %v4543_v52  ;;  %v4547_v22 = vld [vmem:[%s6253_s24 + $0xd8] sm:$0xff]  ;;  %v4549_v56 = vld [vmem:[%s6253_s24 + $0xe0] sm:$0xff] }
 0x35c   : >> { %4546 = vst [vmem:[%s6249_s22 + $0xd0] sm:$0xff] %v4545_v15  ;;  %v4551_v23 = vld [vmem:[%s6253_s24 + $0xe8] sm:$0xff]  ;;  %4548 = vst [vmem:[%s6249_s22 + $0xd8] sm:$0xff] %v4547_v22  ;;  %v4553_v0 = vld [vmem:[%s6253_s24 + $0xf0] sm:$0xff] }
 0x35d   : >> { %4550 = vst [vmem:[%s6249_s22 + $0xe0] sm:$0xff] %v4549_v56  ;;  %4552 = vst [vmem:[%s6249_s22 + $0xe8] sm:$0xff] %v4551_v23  ;;  %v4555_v5 = vld [vmem:[%s6253_s24 + $0xf8] sm:$0xff]  ;;  %v4557_v34 = vld [vmem:[%s6253_s24 + $0x100] sm:$0xff] }
 0x35e   : >> { %4554 = vst [vmem:[%s6249_s22 + $0xf0] sm:$0xff] %v4553_v0  ;;  %4556 = vst [vmem:[%s6249_s22 + $0xf8] sm:$0xff] %v4555_v5  ;;  %v4559_v53 = vld [vmem:[%s6253_s24 + $0x108] sm:$0xff]  ;;  %v4561_v50 = vld [vmem:[%s6253_s24 + $0x110] sm:$0xff] }
 0x35f   : >> { %4558 = vst [vmem:[%s6249_s22 + $0x100] sm:$0xff] %v4557_v34  ;;  %v4563_v54 = vld [vmem:[%s6253_s24 + $0x118] sm:$0xff]  ;;  %4560 = vst [vmem:[%s6249_s22 + $0x108] sm:$0xff] %v4559_v53  ;;  %v4565_v3 = vld [vmem:[%s6253_s24 + $0x120] sm:$0xff] }
 0x360   : >> { %4562 = vst [vmem:[%s6249_s22 + $0x110] sm:$0xff] %v4561_v50  ;;  %4564 = vst [vmem:[%s6249_s22 + $0x118] sm:$0xff] %v4563_v54  ;;  %v4567_v30 = vld [vmem:[%s6253_s24 + $0x128] sm:$0xff]  ;;  %v4569_v37 = vld [vmem:[%s6253_s24 + $0x130] sm:$0xff] }
 0x361   : >> { %4566 = vst [vmem:[%s6249_s22 + $0x120] sm:$0xff] %v4565_v3  ;;  %4568 = vst [vmem:[%s6249_s22 + $0x128] sm:$0xff] %v4567_v30  ;;  %v4571_v20 = vld [vmem:[%s6253_s24 + $0x138] sm:$0xff]  ;;  %v4573_v38 = vld [vmem:[%s6253_s24 + $0x140] sm:$0xff] }
 0x362   : >> { %4570 = vst [vmem:[%s6249_s22 + $0x130] sm:$0xff] %v4569_v37  ;;  %v4575_v60 = vld [vmem:[%s6253_s24 + $0x148] sm:$0xff]  ;;  %4572 = vst [vmem:[%s6249_s22 + $0x138] sm:$0xff] %v4571_v20  ;;  %v4577_v40 = vld [vmem:[%s6253_s24 + $0x150] sm:$0xff] }
 0x363   : >> { %4574 = vst [vmem:[%s6249_s22 + $0x140] sm:$0xff] %v4573_v38  ;;  %4576 = vst [vmem:[%s6249_s22 + $0x148] sm:$0xff] %v4575_v60  ;;  %v4579_v26 = vld [vmem:[%s6253_s24 + $0x158] sm:$0xff]  ;;  %v4581_v41 = vld [vmem:[%s6253_s24 + $0x160] sm:$0xff] }
 0x364   : >> { %4578 = vst [vmem:[%s6249_s22 + $0x150] sm:$0xff] %v4577_v40  ;;  %4580 = vst [vmem:[%s6249_s22 + $0x158] sm:$0xff] %v4579_v26  ;;  %v4583_v8 = vld [vmem:[%s6253_s24 + $0x168] sm:$0xff]  ;;  %v4585_v28 = vld [vmem:[%s6253_s24 + $0x170] sm:$0xff] }
 0x365   : >> { %4582 = vst [vmem:[%s6249_s22 + $0x160] sm:$0xff] %v4581_v41  ;;  %v4587_v32 = vld [vmem:[%s6253_s24 + $0x178] sm:$0xff]  ;;  %4584 = vst [vmem:[%s6249_s22 + $0x168] sm:$0xff] %v4583_v8  ;;  %v4589_v43 = vld [vmem:[%s6253_s24 + $0x180] sm:$0xff] }
 0x366   : >> { %4586 = vst [vmem:[%s6249_s22 + $0x170] sm:$0xff] %v4585_v28  ;;  %4588 = vst [vmem:[%s6249_s22 + $0x178] sm:$0xff] %v4587_v32  ;;  %v4591_v45 = vld [vmem:[%s6253_s24 + $0x188] sm:$0xff]  ;;  %v4593_v1 = vld [vmem:[%s6253_s24 + $0x190] sm:$0xff] }
 0x367   : >> { %4590 = vst [vmem:[%s6249_s22 + $0x180] sm:$0xff] %v4589_v43  ;;  %4592 = vst [vmem:[%s6249_s22 + $0x188] sm:$0xff] %v4591_v45  ;;  %v4595_v6 = vld [vmem:[%s6253_s24 + $0x198] sm:$0xff]  ;;  %v4597_v7 = vld [vmem:[%s6253_s24 + $0x1a0] sm:$0xff] }
 0x368   : >> { %4594 = vst [vmem:[%s6249_s22 + $0x190] sm:$0xff] %v4593_v1  ;;  %v4599_v46 = vld [vmem:[%s6253_s24 + $0x1a8] sm:$0xff]  ;;  %4596 = vst [vmem:[%s6249_s22 + $0x198] sm:$0xff] %v4595_v6  ;;  %v4601_v9 = vld [vmem:[%s6253_s24 + $0x1b0] sm:$0xff] }
 0x369   : >> { %4598 = vst [vmem:[%s6249_s22 + $0x1a0] sm:$0xff] %v4597_v7  ;;  %4600 = vst [vmem:[%s6249_s22 + $0x1a8] sm:$0xff] %v4599_v46  ;;  %v4603_v12 = vld [vmem:[%s6253_s24 + $0x1b8] sm:$0xff]  ;;  %v4605_v24 = vld [vmem:[%s6253_s24 + $0x1c0] sm:$0xff] }
 0x36a   : >> { %4602 = vst [vmem:[%s6249_s22 + $0x1b0] sm:$0xff] %v4601_v9  ;;  %4604 = vst [vmem:[%s6249_s22 + $0x1b8] sm:$0xff] %v4603_v12  ;;  %v4607_v39 = vld [vmem:[%s6253_s24 + $0x1c8] sm:$0xff]  ;;  %v4609_v47 = vld [vmem:[%s6253_s24 + $0x1d0] sm:$0xff]  ;;  %4489 = sbr.rel (!%p4486_p8) target bundleno = 846 (0x34e), region = 282 }
 0x36b   : >> { %4606 = vst [vmem:[%s6249_s22 + $0x1c0] sm:$0xff] %v4605_v24  ;;  %v4611_v35 = vld [vmem:[%s6253_s24 + $0x1d8] sm:$0xff]  ;;  %4608 = vst [vmem:[%s6249_s22 + $0x1c8] sm:$0xff] %v4607_v39  ;;  %v4613_v48 = vld [vmem:[%s6253_s24 + $0x1e0] sm:$0xff] }
 0x36c   : >> { %4610 = vst [vmem:[%s6249_s22 + $0x1d0] sm:$0xff] %v4609_v47  ;;  %4612 = vst [vmem:[%s6249_s22 + $0x1d8] sm:$0xff] %v4611_v35  ;;  %v4615_v17 = vld [vmem:[%s6253_s24 + $0x1e8] sm:$0xff]  ;;  %v4617_v42 = vld [vmem:[%s6253_s24 + $0x1f0] sm:$0xff] }
 0x36d   : >> { %4614 = vst [vmem:[%s6249_s22 + $0x1e0] sm:$0xff] %v4613_v48  ;;  %4616 = vst [vmem:[%s6249_s22 + $0x1e8] sm:$0xff] %v4615_v17  ;;  %v4619_v36 = vld [vmem:[%s6253_s24 + $0x1f8] sm:$0xff]  ;;  %s8524_s24 = smov %s8161_s4 }
 0x36e   : >> { %4618 = vst [vmem:[%s6249_s22 + $0x1f0] sm:$0xff] %v4617_v42  ;;  %4620 = vst [vmem:[%s6249_s22 + $0x1f8] sm:$0xff] %v4619_v36  ;;  %s8523_s22 = smov %s8164_s18 }
 0x36f PF: > { %s8270_s9 = sand.u32 63, %s4480_s15   ;;  %s5737_s23 = sshll.u32 %s8094_s5, 13 }
 0x370   : > { %s4632_s26 = sshra.s32 %s5737_s23, 4  ;;  %p5714_p9 = scmp.le.s32.totalorder %s8270_s9, 0 }
 0x371   : > { %s4633_s27 = scalar_lea.vmem %s8032_s12, %s4632_s26 [#allocation3]   ;;  %s4636_s29 = scalar_lea.vmem %s8081_s6, %s4632_s26  }
 0x372   : > { %5018 = sbr.rel (%p5714_p9) target bundleno = 895 (0x37f), region = 287  ;;  %s6263_s21 = smov (!%p5714_p9), %s4636_s29  }
 0x373   : > { %s6267_s25 = smov (!%p5714_p9), %s4633_s27   ;;  %s6271_s8 = smov (!%p5714_p9), 0  }
 0x374   : > { %s6275_s10 = smov (!%p5714_p9), 0  }
 0x377 LB: >> { %v4648_v29 = vld [vmem:[%s6269_s25] sm:$0xff]  ;;  %s4650_s11 = sadd.s32 1, %s6273_s8  ;;  %s4642_s10 = sadd.s32 1, %s6277_s10   ;;  %s6277_s10 = sphi %s6275_s10, %s4642_s10   ;;  %s6273_s8 = sphi %s6271_s8, %s6272_s8   ;;  %s6269_s25 = sphi %s6267_s25, %s4655_s25   ;;  %s6265_s21 = sphi %s6263_s21, %s4656_s21  }
 0x378   : >> { %4649 = vst [vmem:[%s6265_s21] sm:$0xff] %v4648_v29  ;;  %p4651_p10 = scmp.ge.s32.totalorder %s4650_s11, %s8270_s9  ;;  %p4641_p11 = scmp.ge.s32.totalorder %s4642_s10, %s8270_s9 }
 0x37a   : >> { %s8549_s11 = smov (%p4651_p10, %s4650_s11), 0  ;;  %4644 = sbr.rel (!%p4641_p11) target bundleno = 887 (0x377), region = 293 }
 0x37b   : >> { %s5715_s15 = sshll.u32 %s8549_s11, 3  ;;  %s6272_s8 = smov %s8549_s11  }
 0x37c   : >> { %s4655_s25 = scalar_lea.vmem %s4633_s27, %s5715_s15 [#allocation3]   ;;  %s4656_s21 = scalar_lea.vmem %s4636_s29, %s5715_s15  }
 0x37f PF: > { %4659 = sbr.rel (%p4476_p5) target bundleno = 959 (0x3bf), region = 143  ;;  %s8282_s5 = ssub.s32 (!%p4476_p5), %s8083_s17, %s8087_s20 }
 0x380   : > { %s4665_s22 = sshrl.u32 (!%p4476_p5), %s8083_s17, 3  ;;  %s4662_s24 = scalar_lea.vmem (!%p4476_p5), %s8032_s12, %s8282_s5 [#allocation3] }
 0x381   : > { %s4664_s30 = scalar_lea.vmem (!%p4476_p5), %s8081_s6, %s8282_s5  ;;  %s8291_s7 = sshrl.u32 (!%p4476_p5), %s4665_s22, 6 }
 0x382   : > { %p5717_p12 = scmp.le.s32.totalorder (!%p4476_p5), %s8291_s7, 0 }
 0x384   : > { %5032 = sbr.rel (%p5717_p12) target bundleno = 938 (0x3aa), region = 298  ;;  %s8526_s28 = smov (!%p5717_p12), %s8081_s6 }
 0x385   : > { %s8527_s14 = smov (!%p5717_p12), %s8032_s12  ;;  %s8300_s4 = smov (!%p5717_p12), 0  }
 0x386   : > { %s8302_s18 = smov (!%p5717_p12), 0  }
 0x389 LB: >> { %v4678_v31 = vld [vmem:[%s6285_s14] sm:$0xff]  ;;  %v4680_v44 = vld [vmem:[%s6285_s14 + $0x8] sm:$0xff]  ;;  %v4682_v4 = vld [vmem:[%s6285_s14 + $0x10] sm:$0xff]  ;;  %s4806_s9 = sadd.s32 1, %s6289_s4  ;;  %s4672_s18 = sadd.s32 1, %s6293_s18   ;;  %s6293_s18 = sphi %s8302_s18, %s4672_s18   ;;  %s6289_s4 = sphi %s8300_s4, %s8530_s4   ;;  %s6285_s14 = sphi %s8527_s14, %s8529_s14   ;;  %s6281_s28 = sphi %s8526_s28, %s8528_s28  }
 0x38a   : >> { %4679 = vst [vmem:[%s6281_s28] sm:$0xff] %v4678_v31  ;;  %4681 = vst [vmem:[%s6281_s28 + $0x8] sm:$0xff] %v4680_v44  ;;  %v4684_v49 = vld [vmem:[%s6285_s14 + $0x18] sm:$0xff]  ;;  %v4686_v59 = vld [vmem:[%s6285_s14 + $0x20] sm:$0xff]  ;;  %p4807_p13 = scmp.ge.s32.totalorder %s4806_s9, %s8291_s7  ;;  %p4671_p0 = scmp.ge.s32.totalorder %s4672_s18, %s8291_s7 }
 0x38b   : >> { %4683 = vst [vmem:[%s6281_s28 + $0x10] sm:$0xff] %v4682_v4  ;;  %v4688_v11 = vld [vmem:[%s6285_s14 + $0x28] sm:$0xff]  ;;  %4685 = vst [vmem:[%s6281_s28 + $0x18] sm:$0xff] %v4684_v49  ;;  %v4690_v18 = vld [vmem:[%s6285_s14 + $0x30] sm:$0xff] }
 0x38c   : >> { %4687 = vst [vmem:[%s6281_s28 + $0x20] sm:$0xff] %v4686_v59  ;;  %4689 = vst [vmem:[%s6281_s28 + $0x28] sm:$0xff] %v4688_v11  ;;  %v4692_v57 = vld [vmem:[%s6285_s14 + $0x38] sm:$0xff]  ;;  %v4694_v63 = vld [vmem:[%s6285_s14 + $0x40] sm:$0xff]  ;;  %s8551_s9 = smov (%p4807_p13, %s4806_s9), 0 }
 0x38d   : >> { %4691 = vst [vmem:[%s6281_s28 + $0x30] sm:$0xff] %v4690_v18  ;;  %4693 = vst [vmem:[%s6281_s28 + $0x38] sm:$0xff] %v4692_v57  ;;  %v4696_v58 = vld [vmem:[%s6285_s14 + $0x48] sm:$0xff]  ;;  %v4698_v10 = vld [vmem:[%s6285_s14 + $0x50] sm:$0xff]  ;;  %s5718_s23 = sshll.u32 %s8551_s9, 9  ;;  %s8530_s4 = smov %s8551_s9 }
 0x38e   : >> { %4695 = vst [vmem:[%s6281_s28 + $0x40] sm:$0xff] %v4694_v63  ;;  %v4700_v61 = vld [vmem:[%s6285_s14 + $0x58] sm:$0xff]  ;;  %4697 = vst [vmem:[%s6281_s28 + $0x48] sm:$0xff] %v4696_v58  ;;  %v4702_v14 = vld [vmem:[%s6285_s14 + $0x60] sm:$0xff]  ;;  %s8358_s26 = scalar_lea.vmem %s8032_s12, %s5718_s23 [#allocation3]   ;;  %s8361_s27 = scalar_lea.vmem %s8081_s6, %s5718_s23  }
 0x38f   : >> { %4699 = vst [vmem:[%s6281_s28 + $0x50] sm:$0xff] %v4698_v10  ;;  %4701 = vst [vmem:[%s6281_s28 + $0x58] sm:$0xff] %v4700_v61  ;;  %v4704_v62 = vld [vmem:[%s6285_s14 + $0x68] sm:$0xff]  ;;  %v4706_v16 = vld [vmem:[%s6285_s14 + $0x70] sm:$0xff] }
 0x390   : >> { %4703 = vst [vmem:[%s6281_s28 + $0x60] sm:$0xff] %v4702_v14  ;;  %4705 = vst [vmem:[%s6281_s28 + $0x68] sm:$0xff] %v4704_v62  ;;  %v4708_v13 = vld [vmem:[%s6285_s14 + $0x78] sm:$0xff]  ;;  %v4710_v19 = vld [vmem:[%s6285_s14 + $0x80] sm:$0xff] }
 0x391   : >> { %4707 = vst [vmem:[%s6281_s28 + $0x70] sm:$0xff] %v4706_v16  ;;  %v4712_v25 = vld [vmem:[%s6285_s14 + $0x88] sm:$0xff]  ;;  %4709 = vst [vmem:[%s6281_s28 + $0x78] sm:$0xff] %v4708_v13  ;;  %v4714_v55 = vld [vmem:[%s6285_s14 + $0x90] sm:$0xff] }
 0x392   : >> { %4711 = vst [vmem:[%s6281_s28 + $0x80] sm:$0xff] %v4710_v19  ;;  %4713 = vst [vmem:[%s6281_s28 + $0x88] sm:$0xff] %v4712_v25  ;;  %v4716_v27 = vld [vmem:[%s6285_s14 + $0x98] sm:$0xff]  ;;  %v4718_v33 = vld [vmem:[%s6285_s14 + $0xa0] sm:$0xff] }
 0x393   : >> { %4715 = vst [vmem:[%s6281_s28 + $0x90] sm:$0xff] %v4714_v55  ;;  %4717 = vst [vmem:[%s6281_s28 + $0x98] sm:$0xff] %v4716_v27  ;;  %v4720_v51 = vld [vmem:[%s6285_s14 + $0xa8] sm:$0xff]  ;;  %v4722_v2 = vld [vmem:[%s6285_s14 + $0xb0] sm:$0xff] }
 0x394   : >> { %4719 = vst [vmem:[%s6281_s28 + $0xa0] sm:$0xff] %v4718_v33  ;;  %v4724_v21 = vld [vmem:[%s6285_s14 + $0xb8] sm:$0xff]  ;;  %4721 = vst [vmem:[%s6281_s28 + $0xa8] sm:$0xff] %v4720_v51  ;;  %v4726_v52 = vld [vmem:[%s6285_s14 + $0xc0] sm:$0xff] }
 0x395   : >> { %4723 = vst [vmem:[%s6281_s28 + $0xb0] sm:$0xff] %v4722_v2  ;;  %4725 = vst [vmem:[%s6281_s28 + $0xb8] sm:$0xff] %v4724_v21  ;;  %v4728_v15 = vld [vmem:[%s6285_s14 + $0xc8] sm:$0xff]  ;;  %v4730_v22 = vld [vmem:[%s6285_s14 + $0xd0] sm:$0xff] }
 0x396   : >> { %4727 = vst [vmem:[%s6281_s28 + $0xc0] sm:$0xff] %v4726_v52  ;;  %4729 = vst [vmem:[%s6281_s28 + $0xc8] sm:$0xff] %v4728_v15  ;;  %v4732_v56 = vld [vmem:[%s6285_s14 + $0xd8] sm:$0xff]  ;;  %v4734_v23 = vld [vmem:[%s6285_s14 + $0xe0] sm:$0xff] }
 0x397   : >> { %4731 = vst [vmem:[%s6281_s28 + $0xd0] sm:$0xff] %v4730_v22  ;;  %v4736_v0 = vld [vmem:[%s6285_s14 + $0xe8] sm:$0xff]  ;;  %4733 = vst [vmem:[%s6281_s28 + $0xd8] sm:$0xff] %v4732_v56  ;;  %v4738_v5 = vld [vmem:[%s6285_s14 + $0xf0] sm:$0xff] }
 0x398   : >> { %4735 = vst [vmem:[%s6281_s28 + $0xe0] sm:$0xff] %v4734_v23  ;;  %4737 = vst [vmem:[%s6281_s28 + $0xe8] sm:$0xff] %v4736_v0  ;;  %v4740_v34 = vld [vmem:[%s6285_s14 + $0xf8] sm:$0xff]  ;;  %v4742_v53 = vld [vmem:[%s6285_s14 + $0x100] sm:$0xff] }
 0x399   : >> { %4739 = vst [vmem:[%s6281_s28 + $0xf0] sm:$0xff] %v4738_v5  ;;  %4741 = vst [vmem:[%s6281_s28 + $0xf8] sm:$0xff] %v4740_v34  ;;  %v4744_v50 = vld [vmem:[%s6285_s14 + $0x108] sm:$0xff]  ;;  %v4746_v54 = vld [vmem:[%s6285_s14 + $0x110] sm:$0xff] }
 0x39a   : >> { %4743 = vst [vmem:[%s6281_s28 + $0x100] sm:$0xff] %v4742_v53  ;;  %v4748_v3 = vld [vmem:[%s6285_s14 + $0x118] sm:$0xff]  ;;  %4745 = vst [vmem:[%s6281_s28 + $0x108] sm:$0xff] %v4744_v50  ;;  %v4750_v30 = vld [vmem:[%s6285_s14 + $0x120] sm:$0xff] }
 0x39b   : >> { %4747 = vst [vmem:[%s6281_s28 + $0x110] sm:$0xff] %v4746_v54  ;;  %4749 = vst [vmem:[%s6281_s28 + $0x118] sm:$0xff] %v4748_v3  ;;  %v4752_v37 = vld [vmem:[%s6285_s14 + $0x128] sm:$0xff]  ;;  %v4754_v20 = vld [vmem:[%s6285_s14 + $0x130] sm:$0xff] }
 0x39c   : >> { %4751 = vst [vmem:[%s6281_s28 + $0x120] sm:$0xff] %v4750_v30  ;;  %4753 = vst [vmem:[%s6281_s28 + $0x128] sm:$0xff] %v4752_v37  ;;  %v4756_v38 = vld [vmem:[%s6285_s14 + $0x138] sm:$0xff]  ;;  %v4758_v60 = vld [vmem:[%s6285_s14 + $0x140] sm:$0xff] }
 0x39d   : >> { %4755 = vst [vmem:[%s6281_s28 + $0x130] sm:$0xff] %v4754_v20  ;;  %v4760_v40 = vld [vmem:[%s6285_s14 + $0x148] sm:$0xff]  ;;  %4757 = vst [vmem:[%s6281_s28 + $0x138] sm:$0xff] %v4756_v38  ;;  %v4762_v26 = vld [vmem:[%s6285_s14 + $0x150] sm:$0xff] }
 0x39e   : >> { %4759 = vst [vmem:[%s6281_s28 + $0x140] sm:$0xff] %v4758_v60  ;;  %4761 = vst [vmem:[%s6281_s28 + $0x148] sm:$0xff] %v4760_v40  ;;  %v4764_v41 = vld [vmem:[%s6285_s14 + $0x158] sm:$0xff]  ;;  %v4766_v8 = vld [vmem:[%s6285_s14 + $0x160] sm:$0xff] }
 0x39f   : >> { %4763 = vst [vmem:[%s6281_s28 + $0x150] sm:$0xff] %v4762_v26  ;;  %4765 = vst [vmem:[%s6281_s28 + $0x158] sm:$0xff] %v4764_v41  ;;  %v4768_v28 = vld [vmem:[%s6285_s14 + $0x168] sm:$0xff]  ;;  %v4770_v32 = vld [vmem:[%s6285_s14 + $0x170] sm:$0xff] }
 0x3a0   : >> { %4767 = vst [vmem:[%s6281_s28 + $0x160] sm:$0xff] %v4766_v8  ;;  %v4772_v43 = vld [vmem:[%s6285_s14 + $0x178] sm:$0xff]  ;;  %4769 = vst [vmem:[%s6281_s28 + $0x168] sm:$0xff] %v4768_v28  ;;  %v4774_v45 = vld [vmem:[%s6285_s14 + $0x180] sm:$0xff] }
 0x3a1   : >> { %4771 = vst [vmem:[%s6281_s28 + $0x170] sm:$0xff] %v4770_v32  ;;  %4773 = vst [vmem:[%s6281_s28 + $0x178] sm:$0xff] %v4772_v43  ;;  %v4776_v1 = vld [vmem:[%s6285_s14 + $0x188] sm:$0xff]  ;;  %v4778_v6 = vld [vmem:[%s6285_s14 + $0x190] sm:$0xff] }
 0x3a2   : >> { %4775 = vst [vmem:[%s6281_s28 + $0x180] sm:$0xff] %v4774_v45  ;;  %4777 = vst [vmem:[%s6281_s28 + $0x188] sm:$0xff] %v4776_v1  ;;  %v4780_v7 = vld [vmem:[%s6285_s14 + $0x198] sm:$0xff]  ;;  %v4782_v46 = vld [vmem:[%s6285_s14 + $0x1a0] sm:$0xff] }
 0x3a3   : >> { %4779 = vst [vmem:[%s6281_s28 + $0x190] sm:$0xff] %v4778_v6  ;;  %v4784_v9 = vld [vmem:[%s6285_s14 + $0x1a8] sm:$0xff]  ;;  %4781 = vst [vmem:[%s6281_s28 + $0x198] sm:$0xff] %v4780_v7  ;;  %v4786_v12 = vld [vmem:[%s6285_s14 + $0x1b0] sm:$0xff] }
 0x3a4   : >> { %4783 = vst [vmem:[%s6281_s28 + $0x1a0] sm:$0xff] %v4782_v46  ;;  %4785 = vst [vmem:[%s6281_s28 + $0x1a8] sm:$0xff] %v4784_v9  ;;  %v4788_v24 = vld [vmem:[%s6285_s14 + $0x1b8] sm:$0xff]  ;;  %v4790_v39 = vld [vmem:[%s6285_s14 + $0x1c0] sm:$0xff] }
 0x3a5   : >> { %4787 = vst [vmem:[%s6281_s28 + $0x1b0] sm:$0xff] %v4786_v12  ;;  %4789 = vst [vmem:[%s6281_s28 + $0x1b8] sm:$0xff] %v4788_v24  ;;  %v4792_v47 = vld [vmem:[%s6285_s14 + $0x1c8] sm:$0xff]  ;;  %v4794_v35 = vld [vmem:[%s6285_s14 + $0x1d0] sm:$0xff]  ;;  %4674 = sbr.rel (!%p4671_p0) target bundleno = 905 (0x389), region = 304 }
 0x3a6   : >> { %4791 = vst [vmem:[%s6281_s28 + $0x1c0] sm:$0xff] %v4790_v39  ;;  %v4796_v48 = vld [vmem:[%s6285_s14 + $0x1d8] sm:$0xff]  ;;  %4793 = vst [vmem:[%s6281_s28 + $0x1c8] sm:$0xff] %v4792_v47  ;;  %v4798_v17 = vld [vmem:[%s6285_s14 + $0x1e0] sm:$0xff] }
 0x3a7   : >> { %4795 = vst [vmem:[%s6281_s28 + $0x1d0] sm:$0xff] %v4794_v35  ;;  %4797 = vst [vmem:[%s6281_s28 + $0x1d8] sm:$0xff] %v4796_v48  ;;  %v4800_v42 = vld [vmem:[%s6285_s14 + $0x1e8] sm:$0xff]  ;;  %v4802_v36 = vld [vmem:[%s6285_s14 + $0x1f0] sm:$0xff] }
 0x3a8   : >> { %4799 = vst [vmem:[%s6281_s28 + $0x1e0] sm:$0xff] %v4798_v17  ;;  %4801 = vst [vmem:[%s6281_s28 + $0x1e8] sm:$0xff] %v4800_v42  ;;  %v4804_v29 = vld [vmem:[%s6285_s14 + $0x1f8] sm:$0xff]  ;;  %s8529_s14 = smov %s8358_s26 }
 0x3a9   : >> { %4803 = vst [vmem:[%s6281_s28 + $0x1f0] sm:$0xff] %v4802_v36  ;;  %4805 = vst [vmem:[%s6281_s28 + $0x1f8] sm:$0xff] %v4804_v29  ;;  %s8528_s28 = smov %s8361_s27 }
 0x3aa PF: > { %s8467_s29 = sand.u32 63, %s4665_s22   ;;  %s5739_s21 = sshll.u32 %s8291_s7, 13 }
 0x3ab   : > { %s4817_s25 = sshra.s32 %s5739_s21, 4  ;;  %p5723_p1 = scmp.le.s32.totalorder %s8467_s29, 0 }
 0x3ac   : > { %s4818_s8 = scalar_lea.vmem %s8032_s12, %s4817_s25 [#allocation3]   ;;  %s4821_s10 = scalar_lea.vmem %s8081_s6, %s4817_s25  }
 0x3ad   : > { %5046 = sbr.rel (%p5723_p1) target bundleno = 954 (0x3ba), region = 309  ;;  %s6295_s11 = smov (!%p5723_p1), %s4821_s10  }
 0x3ae   : > { %s6299_s15 = smov (!%p5723_p1), %s4818_s8   ;;  %s6303_s9 = smov (!%p5723_p1), 0  }
 0x3af   : > { %s6307_s18 = smov (!%p5723_p1), 0  }
 0x3b2 LB: >> { %v4833_v31 = vld [vmem:[%s6301_s15] sm:$0xff]  ;;  %s4835_s22 = sadd.s32 1, %s6305_s9  ;;  %s4827_s18 = sadd.s32 1, %s6309_s18   ;;  %s6309_s18 = sphi %s6307_s18, %s4827_s18   ;;  %s6305_s9 = sphi %s6303_s9, %s6304_s9   ;;  %s6301_s15 = sphi %s6299_s15, %s4840_s15   ;;  %s6297_s11 = sphi %s6295_s11, %s4841_s11  }
 0x3b3   : >> { %4834 = vst [vmem:[%s6297_s11] sm:$0xff] %v4833_v31  ;;  %p4836_p2 = scmp.ge.s32.totalorder %s4835_s22, %s8467_s29  ;;  %p4826_p3 = scmp.ge.s32.totalorder %s4827_s18, %s8467_s29 }
 0x3b5   : >> { %s8553_s22 = smov (%p4836_p2, %s4835_s22), 0  ;;  %4829 = sbr.rel (!%p4826_p3) target bundleno = 946 (0x3b2), region = 315 }
 0x3b6   : >> { %s5724_s7 = sshll.u32 %s8553_s22, 3  ;;  %s6304_s9 = smov %s8553_s22  }
 0x3b7   : >> { %s4840_s15 = scalar_lea.vmem %s4818_s8, %s5724_s7 [#allocation3]   ;;  %s4841_s11 = scalar_lea.vmem %s4821_s10, %s5724_s7  }
 0x3ba PF: > { %s6315_s28 = smov 1  }
 0x3bb   : > { %s4842_s14 = sshll.u32 %s6315_s28, %s8087_s20 }
 0x3bc   : > { %s5726_s4 = sadd.s32 4294967295, %s4842_s14 }
 0x3bd   : > { %v4852_v44 = vld [vmem:[%s4662_s24] sm:%s5726_s4] }
 0x3be   : > { %4853 = vst [vmem:[%s4664_s30] sm:%s5726_s4] %v4852_v44 }
 0x3bf PF: > { %p5727_p5 = scmp.ge.u32.totalorder %s8083_s17, 8 }
 0x3c0   : > { %s6316_s23 = smov (!%p5727_p5), 1  }
 0x3c1   : > { %4462 = sbr.rel (%p5727_p5) target bundleno = 968 (0x3c8), region = 114  ;;  %s4463_s26 = sshll.u32 (!%p5727_p5), %s6316_s23, %s8083_s17 }
 0x3c2   : > { %s5728_s27 = sadd.s32 (!%p5727_p5), 4294967295, %s4463_s26 }
 0x3c6   : > { %v4473_v4 = vld [vmem:[%s8032_s12] sm:%s5728_s27] }
 0x3c7   : > { %4474 = vst [vmem:[%s8081_s6] sm:%s5728_s27] %v4473_v4 }
 0x3c8 PF: > { %p10_p4 = scmp.ge.s32.totalorder %s6356_s16, 6   ;;  %s8531_s12 = smov %s6177_s13 }
 0x3c9   : > { %s8532_s13 = smov %s6366_s19  ;;  %s8533_s14 = smov %s6356_s16 }
 0x3ca   :  { %12 = sbr.rel (!%p10_p4) target bundleno = 2 (0x2), region = 326 }

// kernel: lenet_forward.4
= control target key start
LH: loop header
LB: loop body
LE: loop exit
PB: predicated region body
PF: predicated region fallthrough
CT: control target
= control target key end

     0   :  { %s4636_s12 = smov 0   ;;  %s4638_s13 = smov 0   ;;  %s5833_s0 = inlined_call_operand.vmem [shape: bf16[16,150], index: 0, kind: input, shape index: {}]   ;;  %s5834_s1 = inlined_call_operand.vmem [shape: f32[16,1], index: 1, kind: input, shape index: {}]   ;;  %s5835_s2 = inlined_call_operand.vmem [shape: bf16[4,150,1682], index: 2, kind: input, shape index: {}]   ;;  %s5836_s3 = inlined_call_operand.vmem [shape: f32[16,1682], index: 3, kind: output, shape index: {}]  }
   0x1   :  { %s4640_s14 = smov 0  }
   0x2 LB: > { %s3468_s15 = sadd.s32 4294967295, %s4613_s14   ;;  %s4653_s16 = sadd.s32 1, %s4613_s14   ;;  %s4613_s14 = sphi %s4640_s14, %s5840_s14   ;;  %s4609_s13 = sphi %s4638_s13, %s5839_s13   ;;  %s4605_s12 = sphi %s4636_s12, %s5838_s12  }
   0x3   : > { %s59_s17 = ssub.s32 %s4613_s14, %s4653_s16  ;;  %s62_s18 = sadd.s32 1, %s4609_s13 }
   0x4   : > { %p60_p0 = scmp.eq.s32.totalorder %s59_s17, 0  ;;  %p69_p1 = scmp.ne.s32.totalorder %s4609_s13, %s4605_s12 }
   0x5   : > { %p70_p2 = scmp.eq.s32.totalorder %s4613_s14, 0  ;;  %p99_p3 = scmp.eq.s32.totalorder %s3468_s15, 1 }
   0x6   : > { %s4664_s19 = scalar_select %p60_p0, %s4609_s13, %s62_s18  }
   0x7   : > { %p71_p4 = por %p70_p2, %p69_p1  ;;  %p4666_p5 = por %p99_p3, %p69_p1 }
   0x8   : > { %p3471_p6 = scmp.ge.s32.totalorder %s4613_s14, 2 }
   0xa   : > { %127 = sbr.rel (%p3471_p6) target bundleno = 184 (0xb8), region = 24 }
   0xf   : > { %130 = sbr.rel (!%p71_p4) target bundleno = 184 (0xb8), region = 28  ;;  %s132_s21 = sand.u32 (%p71_p4), 1, %s4609_s13  }
  0x10   : > { %s4167_s22 = smul.u32 (%p71_p4), 28, %s4613_s14 }
  0x11   : > { %s4169_s23 = smul.u32 (%p71_p4), 2128, %s132_s21 }
  0x12   : > { %s4676_s26 = scalar_lea.vmem (%p71_p4), %s5835_s2, %s4167_s22 }
  0x13   : > { %v152_v0 = vld [vmem:[%s4676_s26] sm:$0xff] (%p71_p4)  ;;  %v154_v1 = vld [vmem:[%s4676_s26 + $0x8] sm:$0xff] (%p71_p4)  ;;  %v156_v2 = vld [vmem:[%s4676_s26 + $0x10] sm:$0xff] (%p71_p4)  ;;  %s4681_s27 = scalar_lea.vmem (%p71_p4), [#allocation2], %s4169_s23 }
  0x14   : > { %153 = vst [vmem:[%s4681_s27] sm:$0xff] %v152_v0  ;;  %155 = vst [vmem:[%s4681_s27 + $0x8] sm:$0xff] %v154_v1  ;;  %v158_v3 = vld [vmem:[%s4676_s26 + $0x38] sm:$0xff]  ;;  %v160_v4 = vld [vmem:[%s4676_s26 + $0x40] sm:$0xff] }
  0x15   : > { %157 = vst [vmem:[%s4681_s27 + $0x10] sm:$0xff] %v156_v2  ;;  %v162_v5 = vld [vmem:[%s4676_s26 + $0x48] sm:$0xff]  ;;  %159 = vst [vmem:[%s4681_s27 + $0x1c] sm:$0xff] %v158_v3  ;;  %v164_v6 = vld [vmem:[%s4676_s26 + $0x70] sm:$0xff] }
  0x16   : > { %161 = vst [vmem:[%s4681_s27 + $0x24] sm:$0xff] %v160_v4  ;;  %163 = vst [vmem:[%s4681_s27 + $0x2c] sm:$0xff] %v162_v5  ;;  %v166_v7 = vld [vmem:[%s4676_s26 + $0x78] sm:$0xff]  ;;  %v168_v8 = vld [vmem:[%s4676_s26 + $0x80] sm:$0xff] }
  0x17   : > { %165 = vst [vmem:[%s4681_s27 + $0x38] sm:$0xff] %v164_v6  ;;  %167 = vst [vmem:[%s4681_s27 + $0x40] sm:$0xff] %v166_v7  ;;  %v170_v9 = vld [vmem:[%s4676_s26 + $0xa8] sm:$0xff]  ;;  %v172_v10 = vld [vmem:[%s4676_s26 + $0xb0] sm:$0xff] }
  0x18   : > { %169 = vst [vmem:[%s4681_s27 + $0x48] sm:$0xff] %v168_v8  ;;  %v174_v11 = vld [vmem:[%s4676_s26 + $0xb8] sm:$0xff]  ;;  %171 = vst [vmem:[%s4681_s27 + $0x54] sm:$0xff] %v170_v9  ;;  %v176_v12 = vld [vmem:[%s4676_s26 + $0xe0] sm:$0xff] }
  0x19   : > { %173 = vst [vmem:[%s4681_s27 + $0x5c] sm:$0xff] %v172_v10  ;;  %175 = vst [vmem:[%s4681_s27 + $0x64] sm:$0xff] %v174_v11  ;;  %v178_v13 = vld [vmem:[%s4676_s26 + $0xe8] sm:$0xff]  ;;  %v180_v14 = vld [vmem:[%s4676_s26 + $0xf0] sm:$0xff] }
  0x1a   : > { %177 = vst [vmem:[%s4681_s27 + $0x70] sm:$0xff] %v176_v12  ;;  %179 = vst [vmem:[%s4681_s27 + $0x78] sm:$0xff] %v178_v13  ;;  %v182_v15 = vld [vmem:[%s4676_s26 + $0x118] sm:$0xff]  ;;  %v184_v16 = vld [vmem:[%s4676_s26 + $0x120] sm:$0xff] }
  0x1b   : > { %181 = vst [vmem:[%s4681_s27 + $0x80] sm:$0xff] %v180_v14  ;;  %v186_v17 = vld [vmem:[%s4676_s26 + $0x128] sm:$0xff]  ;;  %183 = vst [vmem:[%s4681_s27 + $0x8c] sm:$0xff] %v182_v15  ;;  %v188_v18 = vld [vmem:[%s4676_s26 + $0x150] sm:$0xff] }
  0x1c   : > { %185 = vst [vmem:[%s4681_s27 + $0x94] sm:$0xff] %v184_v16  ;;  %187 = vst [vmem:[%s4681_s27 + $0x9c] sm:$0xff] %v186_v17  ;;  %v190_v19 = vld [vmem:[%s4676_s26 + $0x158] sm:$0xff]  ;;  %v192_v20 = vld [vmem:[%s4676_s26 + $0x160] sm:$0xff] }
  0x1d   : > { %189 = vst [vmem:[%s4681_s27 + $0xa8] sm:$0xff] %v188_v18  ;;  %191 = vst [vmem:[%s4681_s27 + $0xb0] sm:$0xff] %v190_v19  ;;  %v194_v21 = vld [vmem:[%s4676_s26 + $0x188] sm:$0xff]  ;;  %v196_v22 = vld [vmem:[%s4676_s26 + $0x190] sm:$0xff] }
  0x1e   : > { %193 = vst [vmem:[%s4681_s27 + $0xb8] sm:$0xff] %v192_v20  ;;  %v198_v23 = vld [vmem:[%s4676_s26 + $0x198] sm:$0xff]  ;;  %195 = vst [vmem:[%s4681_s27 + $0xc4] sm:$0xff] %v194_v21  ;;  %v200_v24 = vld [vmem:[%s4676_s26 + $0x1c0] sm:$0xff] }
  0x1f   : > { %197 = vst [vmem:[%s4681_s27 + $0xcc] sm:$0xff] %v196_v22  ;;  %199 = vst [vmem:[%s4681_s27 + $0xd4] sm:$0xff] %v198_v23  ;;  %v202_v25 = vld [vmem:[%s4676_s26 + $0x1c8] sm:$0xff]  ;;  %v204_v26 = vld [vmem:[%s4676_s26 + $0x1d0] sm:$0xff] }
  0x20   : > { %201 = vst [vmem:[%s4681_s27 + $0xe0] sm:$0xff] %v200_v24  ;;  %203 = vst [vmem:[%s4681_s27 + $0xe8] sm:$0xff] %v202_v25  ;;  %v206_v27 = vld [vmem:[%s4676_s26 + $0x1f8] sm:$0xff]  ;;  %v208_v28 = vld [vmem:[%s4676_s26 + $0x200] sm:$0xff] }
  0x21   : > { %205 = vst [vmem:[%s4681_s27 + $0xf0] sm:$0xff] %v204_v26  ;;  %v210_v29 = vld [vmem:[%s4676_s26 + $0x208] sm:$0xff]  ;;  %207 = vst [vmem:[%s4681_s27 + $0xfc] sm:$0xff] %v206_v27  ;;  %v212_v30 = vld [vmem:[%s4676_s26 + $0x230] sm:$0xff] }
  0x22   : > { %209 = vst [vmem:[%s4681_s27 + $0x104] sm:$0xff] %v208_v28  ;;  %211 = vst [vmem:[%s4681_s27 + $0x10c] sm:$0xff] %v210_v29  ;;  %v214_v31 = vld [vmem:[%s4676_s26 + $0x238] sm:$0xff]  ;;  %v216_v32 = vld [vmem:[%s4676_s26 + $0x240] sm:$0xff] }
  0x23   : > { %213 = vst [vmem:[%s4681_s27 + $0x118] sm:$0xff] %v212_v30  ;;  %215 = vst [vmem:[%s4681_s27 + $0x120] sm:$0xff] %v214_v31  ;;  %v218_v33 = vld [vmem:[%s4676_s26 + $0x268] sm:$0xff]  ;;  %v220_v34 = vld [vmem:[%s4676_s26 + $0x270] sm:$0xff] }
  0x24   : > { %217 = vst [vmem:[%s4681_s27 + $0x128] sm:$0xff] %v216_v32  ;;  %v222_v35 = vld [vmem:[%s4676_s26 + $0x278] sm:$0xff]  ;;  %219 = vst [vmem:[%s4681_s27 + $0x134] sm:$0xff] %v218_v33  ;;  %v224_v36 = vld [vmem:[%s4676_s26 + $0x2a0] sm:$0xff] }
  0x25   : > { %221 = vst [vmem:[%s4681_s27 + $0x13c] sm:$0xff] %v220_v34  ;;  %223 = vst [vmem:[%s4681_s27 + $0x144] sm:$0xff] %v222_v35  ;;  %v226_v37 = vld [vmem:[%s4676_s26 + $0x2a8] sm:$0xff]  ;;  %v228_v38 = vld [vmem:[%s4676_s26 + $0x2b0] sm:$0xff] }
  0x26   : > { %225 = vst [vmem:[%s4681_s27 + $0x150] sm:$0xff] %v224_v36  ;;  %227 = vst [vmem:[%s4681_s27 + $0x158] sm:$0xff] %v226_v37  ;;  %v230_v39 = vld [vmem:[%s4676_s26 + $0x2d8] sm:$0xff]  ;;  %v232_v40 = vld [vmem:[%s4676_s26 + $0x2e0] sm:$0xff] }
  0x27   : > { %229 = vst [vmem:[%s4681_s27 + $0x160] sm:$0xff] %v228_v38  ;;  %v234_v41 = vld [vmem:[%s4676_s26 + $0x2e8] sm:$0xff]  ;;  %231 = vst [vmem:[%s4681_s27 + $0x16c] sm:$0xff] %v230_v39  ;;  %v236_v42 = vld [vmem:[%s4676_s26 + $0x310] sm:$0xff] }
  0x28   : > { %233 = vst [vmem:[%s4681_s27 + $0x174] sm:$0xff] %v232_v40  ;;  %235 = vst [vmem:[%s4681_s27 + $0x17c] sm:$0xff] %v234_v41  ;;  %v238_v43 = vld [vmem:[%s4676_s26 + $0x318] sm:$0xff]  ;;  %v240_v44 = vld [vmem:[%s4676_s26 + $0x320] sm:$0xff] }
  0x29   : > { %237 = vst [vmem:[%s4681_s27 + $0x188] sm:$0xff] %v236_v42  ;;  %239 = vst [vmem:[%s4681_s27 + $0x190] sm:$0xff] %v238_v43  ;;  %v242_v45 = vld [vmem:[%s4676_s26 + $0x348] sm:$0xff]  ;;  %v244_v46 = vld [vmem:[%s4676_s26 + $0x350] sm:$0xff] }
  0x2a   : > { %241 = vst [vmem:[%s4681_s27 + $0x198] sm:$0xff] %v240_v44  ;;  %v246_v47 = vld [vmem:[%s4676_s26 + $0x358] sm:$0xff]  ;;  %243 = vst [vmem:[%s4681_s27 + $0x1a4] sm:$0xff] %v242_v45  ;;  %v248_v48 = vld [vmem:[%s4676_s26 + $0x380] sm:$0xff] }
  0x2b   : > { %245 = vst [vmem:[%s4681_s27 + $0x1ac] sm:$0xff] %v244_v46  ;;  %247 = vst [vmem:[%s4681_s27 + $0x1b4] sm:$0xff] %v246_v47  ;;  %v250_v49 = vld [vmem:[%s4676_s26 + $0x388] sm:$0xff]  ;;  %v252_v50 = vld [vmem:[%s4676_s26 + $0x390] sm:$0xff] }
  0x2c   : > { %249 = vst [vmem:[%s4681_s27 + $0x1c0] sm:$0xff] %v248_v48  ;;  %251 = vst [vmem:[%s4681_s27 + $0x1c8] sm:$0xff] %v250_v49  ;;  %v254_v51 = vld [vmem:[%s4676_s26 + $0x3b8] sm:$0xff]  ;;  %v256_v52 = vld [vmem:[%s4676_s26 + $0x3c0] sm:$0xff] }
  0x2d   : > { %253 = vst [vmem:[%s4681_s27 + $0x1d0] sm:$0xff] %v252_v50  ;;  %v258_v53 = vld [vmem:[%s4676_s26 + $0x3c8] sm:$0xff]  ;;  %255 = vst [vmem:[%s4681_s27 + $0x1dc] sm:$0xff] %v254_v51  ;;  %v260_v54 = vld [vmem:[%s4676_s26 + $0x3f0] sm:$0xff] }
  0x2e   : > { %257 = vst [vmem:[%s4681_s27 + $0x1e4] sm:$0xff] %v256_v52  ;;  %259 = vst [vmem:[%s4681_s27 + $0x1ec] sm:$0xff] %v258_v53  ;;  %v262_v55 = vld [vmem:[%s4676_s26 + $0x3f8] sm:$0xff]  ;;  %v264_v56 = vld [vmem:[%s4676_s26 + $0x400] sm:$0xff] }
  0x2f   : > { %261 = vst [vmem:[%s4681_s27 + $0x1f8] sm:$0xff] %v260_v54  ;;  %263 = vst [vmem:[%s4681_s27 + $0x200] sm:$0xff] %v262_v55  ;;  %v266_v57 = vld [vmem:[%s4676_s26 + $0x428] sm:$0xff]  ;;  %v268_v58 = vld [vmem:[%s4676_s26 + $0x430] sm:$0xff] }
  0x30   : > { %265 = vst [vmem:[%s4681_s27 + $0x208] sm:$0xff] %v264_v56  ;;  %v270_v59 = vld [vmem:[%s4676_s26 + $0x438] sm:$0xff]  ;;  %267 = vst [vmem:[%s4681_s27 + $0x214] sm:$0xff] %v266_v57  ;;  %v272_v60 = vld [vmem:[%s4676_s26 + $0x460] sm:$0xff] }
  0x31   : > { %269 = vst [vmem:[%s4681_s27 + $0x21c] sm:$0xff] %v268_v58  ;;  %271 = vst [vmem:[%s4681_s27 + $0x224] sm:$0xff] %v270_v59  ;;  %v274_v61 = vld [vmem:[%s4676_s26 + $0x468] sm:$0xff]  ;;  %v276_v62 = vld [vmem:[%s4676_s26 + $0x470] sm:$0xff] }
  0x32   : > { %273 = vst [vmem:[%s4681_s27 + $0x230] sm:$0xff] %v272_v60  ;;  %275 = vst [vmem:[%s4681_s27 + $0x238] sm:$0xff] %v274_v61  ;;  %v278_v63 = vld [vmem:[%s4676_s26 + $0x498] sm:$0xff]  ;;  %v280_v0 = vld [vmem:[%s4676_s26 + $0x4a0] sm:$0xff] }
  0x33   : > { %277 = vst [vmem:[%s4681_s27 + $0x240] sm:$0xff] %v276_v62  ;;  %v282_v1 = vld [vmem:[%s4676_s26 + $0x4a8] sm:$0xff]  ;;  %279 = vst [vmem:[%s4681_s27 + $0x24c] sm:$0xff] %v278_v63  ;;  %v284_v2 = vld [vmem:[%s4676_s26 + $0x4d0] sm:$0xff] }
  0x34   : > { %281 = vst [vmem:[%s4681_s27 + $0x254] sm:$0xff] %v280_v0  ;;  %283 = vst [vmem:[%s4681_s27 + $0x25c] sm:$0xff] %v282_v1  ;;  %v286_v3 = vld [vmem:[%s4676_s26 + $0x4d8] sm:$0xff]  ;;  %v288_v4 = vld [vmem:[%s4676_s26 + $0x4e0] sm:$0xff] }
  0x35   : > { %285 = vst [vmem:[%s4681_s27 + $0x268] sm:$0xff] %v284_v2  ;;  %287 = vst [vmem:[%s4681_s27 + $0x270] sm:$0xff] %v286_v3  ;;  %v290_v5 = vld [vmem:[%s4676_s26 + $0x508] sm:$0xff]  ;;  %v292_v6 = vld [vmem:[%s4676_s26 + $0x510] sm:$0xff] }
  0x36   : > { %289 = vst [vmem:[%s4681_s27 + $0x278] sm:$0xff] %v288_v4  ;;  %v294_v7 = vld [vmem:[%s4676_s26 + $0x518] sm:$0xff]  ;;  %291 = vst [vmem:[%s4681_s27 + $0x284] sm:$0xff] %v290_v5  ;;  %v296_v8 = vld [vmem:[%s4676_s26 + $0x540] sm:$0xff] }
  0x37   : > { %293 = vst [vmem:[%s4681_s27 + $0x28c] sm:$0xff] %v292_v6  ;;  %295 = vst [vmem:[%s4681_s27 + $0x294] sm:$0xff] %v294_v7  ;;  %v298_v9 = vld [vmem:[%s4676_s26 + $0x548] sm:$0xff]  ;;  %v300_v10 = vld [vmem:[%s4676_s26 + $0x550] sm:$0xff] }
  0x38   : > { %297 = vst [vmem:[%s4681_s27 + $0x2a0] sm:$0xff] %v296_v8  ;;  %299 = vst [vmem:[%s4681_s27 + $0x2a8] sm:$0xff] %v298_v9  ;;  %v302_v11 = vld [vmem:[%s4676_s26 + $0x578] sm:$0xff]  ;;  %v304_v12 = vld [vmem:[%s4676_s26 + $0x580] sm:$0xff] }
  0x39   : > { %301 = vst [vmem:[%s4681_s27 + $0x2b0] sm:$0xff] %v300_v10  ;;  %v306_v13 = vld [vmem:[%s4676_s26 + $0x588] sm:$0xff]  ;;  %303 = vst [vmem:[%s4681_s27 + $0x2bc] sm:$0xff] %v302_v11  ;;  %v308_v14 = vld [vmem:[%s4676_s26 + $0x5b0] sm:$0xff] }
  0x3a   : > { %305 = vst [vmem:[%s4681_s27 + $0x2c4] sm:$0xff] %v304_v12  ;;  %307 = vst [vmem:[%s4681_s27 + $0x2cc] sm:$0xff] %v306_v13  ;;  %v310_v15 = vld [vmem:[%s4676_s26 + $0x5b8] sm:$0xff]  ;;  %v312_v16 = vld [vmem:[%s4676_s26 + $0x5c0] sm:$0xff] }
  0x3b   : > { %309 = vst [vmem:[%s4681_s27 + $0x2d8] sm:$0xff] %v308_v14  ;;  %311 = vst [vmem:[%s4681_s27 + $0x2e0] sm:$0xff] %v310_v15  ;;  %v314_v17 = vld [vmem:[%s4676_s26 + $0x5e8] sm:$0xff]  ;;  %v316_v18 = vld [vmem:[%s4676_s26 + $0x5f0] sm:$0xff] }
  0x3c   : > { %313 = vst [vmem:[%s4681_s27 + $0x2e8] sm:$0xff] %v312_v16  ;;  %v318_v19 = vld [vmem:[%s4676_s26 + $0x5f8] sm:$0xff]  ;;  %315 = vst [vmem:[%s4681_s27 + $0x2f4] sm:$0xff] %v314_v17  ;;  %v320_v20 = vld [vmem:[%s4676_s26 + $0x620] sm:$0xff] }
  0x3d   : > { %317 = vst [vmem:[%s4681_s27 + $0x2fc] sm:$0xff] %v316_v18  ;;  %319 = vst [vmem:[%s4681_s27 + $0x304] sm:$0xff] %v318_v19  ;;  %v322_v21 = vld [vmem:[%s4676_s26 + $0x628] sm:$0xff]  ;;  %v324_v22 = vld [vmem:[%s4676_s26 + $0x630] sm:$0xff] }
  0x3e   : > { %321 = vst [vmem:[%s4681_s27 + $0x310] sm:$0xff] %v320_v20  ;;  %323 = vst [vmem:[%s4681_s27 + $0x318] sm:$0xff] %v322_v21  ;;  %v326_v23 = vld [vmem:[%s4676_s26 + $0x658] sm:$0xff]  ;;  %v328_v24 = vld [vmem:[%s4676_s26 + $0x660] sm:$0xff] }
  0x3f   : > { %325 = vst [vmem:[%s4681_s27 + $0x320] sm:$0xff] %v324_v22  ;;  %v330_v25 = vld [vmem:[%s4676_s26 + $0x668] sm:$0xff]  ;;  %327 = vst [vmem:[%s4681_s27 + $0x32c] sm:$0xff] %v326_v23  ;;  %v332_v26 = vld [vmem:[%s4676_s26 + $0x690] sm:$0xff] }
  0x40   : > { %329 = vst [vmem:[%s4681_s27 + $0x334] sm:$0xff] %v328_v24  ;;  %331 = vst [vmem:[%s4681_s27 + $0x33c] sm:$0xff] %v330_v25  ;;  %v334_v27 = vld [vmem:[%s4676_s26 + $0x698] sm:$0xff]  ;;  %v336_v28 = vld [vmem:[%s4676_s26 + $0x6a0] sm:$0xff] }
  0x41   : > { %333 = vst [vmem:[%s4681_s27 + $0x348] sm:$0xff] %v332_v26  ;;  %335 = vst [vmem:[%s4681_s27 + $0x350] sm:$0xff] %v334_v27  ;;  %v338_v29 = vld [vmem:[%s4676_s26 + $0x6c8] sm:$0xff]  ;;  %v340_v30 = vld [vmem:[%s4676_s26 + $0x6d0] sm:$0xff] }
  0x42   : > { %337 = vst [vmem:[%s4681_s27 + $0x358] sm:$0xff] %v336_v28  ;;  %v342_v31 = vld [vmem:[%s4676_s26 + $0x6d8] sm:$0xff]  ;;  %339 = vst [vmem:[%s4681_s27 + $0x364] sm:$0xff] %v338_v29  ;;  %v344_v32 = vld [vmem:[%s4676_s26 + $0x700] sm:$0xff] }
  0x43   : > { %341 = vst [vmem:[%s4681_s27 + $0x36c] sm:$0xff] %v340_v30  ;;  %343 = vst [vmem:[%s4681_s27 + $0x374] sm:$0xff] %v342_v31  ;;  %v346_v33 = vld [vmem:[%s4676_s26 + $0x708] sm:$0xff]  ;;  %v348_v34 = vld [vmem:[%s4676_s26 + $0x710] sm:$0xff] }
  0x44   : > { %345 = vst [vmem:[%s4681_s27 + $0x380] sm:$0xff] %v344_v32  ;;  %347 = vst [vmem:[%s4681_s27 + $0x388] sm:$0xff] %v346_v33  ;;  %v350_v35 = vld [vmem:[%s4676_s26 + $0x738] sm:$0xff]  ;;  %v352_v36 = vld [vmem:[%s4676_s26 + $0x740] sm:$0xff] }
  0x45   : > { %349 = vst [vmem:[%s4681_s27 + $0x390] sm:$0xff] %v348_v34  ;;  %v354_v37 = vld [vmem:[%s4676_s26 + $0x748] sm:$0xff]  ;;  %351 = vst [vmem:[%s4681_s27 + $0x39c] sm:$0xff] %v350_v35  ;;  %v356_v38 = vld [vmem:[%s4676_s26 + $0x770] sm:$0xff] }
  0x46   : > { %353 = vst [vmem:[%s4681_s27 + $0x3a4] sm:$0xff] %v352_v36  ;;  %355 = vst [vmem:[%s4681_s27 + $0x3ac] sm:$0xff] %v354_v37  ;;  %v358_v39 = vld [vmem:[%s4676_s26 + $0x778] sm:$0xff]  ;;  %v360_v40 = vld [vmem:[%s4676_s26 + $0x780] sm:$0xff] }
  0x47   : > { %357 = vst [vmem:[%s4681_s27 + $0x3b8] sm:$0xff] %v356_v38  ;;  %359 = vst [vmem:[%s4681_s27 + $0x3c0] sm:$0xff] %v358_v39  ;;  %v362_v41 = vld [vmem:[%s4676_s26 + $0x7a8] sm:$0xff]  ;;  %v364_v42 = vld [vmem:[%s4676_s26 + $0x7b0] sm:$0xff] }
  0x48   : > { %361 = vst [vmem:[%s4681_s27 + $0x3c8] sm:$0xff] %v360_v40  ;;  %v366_v43 = vld [vmem:[%s4676_s26 + $0x7b8] sm:$0xff]  ;;  %363 = vst [vmem:[%s4681_s27 + $0x3d4] sm:$0xff] %v362_v41  ;;  %v368_v44 = vld [vmem:[%s4676_s26 + $0x7e0] sm:$0xff] }
  0x49   : > { %365 = vst [vmem:[%s4681_s27 + $0x3dc] sm:$0xff] %v364_v42  ;;  %367 = vst [vmem:[%s4681_s27 + $0x3e4] sm:$0xff] %v366_v43  ;;  %v370_v45 = vld [vmem:[%s4676_s26 + $0x7e8] sm:$0xff]  ;;  %v372_v46 = vld [vmem:[%s4676_s26 + $0x7f0] sm:$0xff] }
  0x4a   : > { %369 = vst [vmem:[%s4681_s27 + $0x3f0] sm:$0xff] %v368_v44  ;;  %371 = vst [vmem:[%s4681_s27 + $0x3f8] sm:$0xff] %v370_v45  ;;  %v374_v47 = vld [vmem:[%s4676_s26 + $0x818] sm:$0xff]  ;;  %v376_v48 = vld [vmem:[%s4676_s26 + $0x820] sm:$0xff] }
  0x4b   : > { %373 = vst [vmem:[%s4681_s27 + $0x400] sm:$0xff] %v372_v46  ;;  %v378_v49 = vld [vmem:[%s4676_s26 + $0x828] sm:$0xff]  ;;  %375 = vst [vmem:[%s4681_s27 + $0x40c] sm:$0xff] %v374_v47  ;;  %v380_v50 = vld [vmem:[%s4676_s26 + $0x850] sm:$0xff] }
  0x4c   : > { %377 = vst [vmem:[%s4681_s27 + $0x414] sm:$0xff] %v376_v48  ;;  %379 = vst [vmem:[%s4681_s27 + $0x41c] sm:$0xff] %v378_v49  ;;  %v382_v51 = vld [vmem:[%s4676_s26 + $0x858] sm:$0xff]  ;;  %v384_v52 = vld [vmem:[%s4676_s26 + $0x860] sm:$0xff] }
  0x4d   : > { %381 = vst [vmem:[%s4681_s27 + $0x428] sm:$0xff] %v380_v50  ;;  %383 = vst [vmem:[%s4681_s27 + $0x430] sm:$0xff] %v382_v51  ;;  %v386_v53 = vld [vmem:[%s4676_s26 + $0x888] sm:$0xff]  ;;  %v388_v54 = vld [vmem:[%s4676_s26 + $0x890] sm:$0xff] }
  0x4e   : > { %385 = vst [vmem:[%s4681_s27 + $0x438] sm:$0xff] %v384_v52  ;;  %v390_v55 = vld [vmem:[%s4676_s26 + $0x898] sm:$0xff]  ;;  %387 = vst [vmem:[%s4681_s27 + $0x444] sm:$0xff] %v386_v53  ;;  %v392_v56 = vld [vmem:[%s4676_s26 + $0x8c0] sm:$0xff] }
  0x4f   : > { %389 = vst [vmem:[%s4681_s27 + $0x44c] sm:$0xff] %v388_v54  ;;  %391 = vst [vmem:[%s4681_s27 + $0x454] sm:$0xff] %v390_v55  ;;  %v394_v57 = vld [vmem:[%s4676_s26 + $0x8c8] sm:$0xff]  ;;  %v396_v58 = vld [vmem:[%s4676_s26 + $0x8d0] sm:$0xff] }
  0x50   : > { %393 = vst [vmem:[%s4681_s27 + $0x460] sm:$0xff] %v392_v56  ;;  %395 = vst [vmem:[%s4681_s27 + $0x468] sm:$0xff] %v394_v57  ;;  %v398_v59 = vld [vmem:[%s4676_s26 + $0x8f8] sm:$0xff]  ;;  %v400_v60 = vld [vmem:[%s4676_s26 + $0x900] sm:$0xff] }
  0x51   : > { %397 = vst [vmem:[%s4681_s27 + $0x470] sm:$0xff] %v396_v58  ;;  %v402_v61 = vld [vmem:[%s4676_s26 + $0x908] sm:$0xff]  ;;  %399 = vst [vmem:[%s4681_s27 + $0x47c] sm:$0xff] %v398_v59  ;;  %v404_v62 = vld [vmem:[%s4676_s26 + $0x930] sm:$0xff] }
  0x52   : > { %401 = vst [vmem:[%s4681_s27 + $0x484] sm:$0xff] %v400_v60  ;;  %403 = vst [vmem:[%s4681_s27 + $0x48c] sm:$0xff] %v402_v61  ;;  %v406_v63 = vld [vmem:[%s4676_s26 + $0x938] sm:$0xff]  ;;  %v408_v0 = vld [vmem:[%s4676_s26 + $0x940] sm:$0xff] }
  0x53   : > { %405 = vst [vmem:[%s4681_s27 + $0x498] sm:$0xff] %v404_v62  ;;  %407 = vst [vmem:[%s4681_s27 + $0x4a0] sm:$0xff] %v406_v63  ;;  %v410_v1 = vld [vmem:[%s4676_s26 + $0x968] sm:$0xff]  ;;  %v412_v2 = vld [vmem:[%s4676_s26 + $0x970] sm:$0xff] }
  0x54   : > { %409 = vst [vmem:[%s4681_s27 + $0x4a8] sm:$0xff] %v408_v0  ;;  %v414_v3 = vld [vmem:[%s4676_s26 + $0x978] sm:$0xff]  ;;  %411 = vst [vmem:[%s4681_s27 + $0x4b4] sm:$0xff] %v410_v1  ;;  %v416_v4 = vld [vmem:[%s4676_s26 + $0x9a0] sm:$0xff] }
  0x55   : > { %413 = vst [vmem:[%s4681_s27 + $0x4bc] sm:$0xff] %v412_v2  ;;  %415 = vst [vmem:[%s4681_s27 + $0x4c4] sm:$0xff] %v414_v3  ;;  %v418_v5 = vld [vmem:[%s4676_s26 + $0x9a8] sm:$0xff]  ;;  %v420_v6 = vld [vmem:[%s4676_s26 + $0x9b0] sm:$0xff] }
  0x56   : > { %417 = vst [vmem:[%s4681_s27 + $0x4d0] sm:$0xff] %v416_v4  ;;  %419 = vst [vmem:[%s4681_s27 + $0x4d8] sm:$0xff] %v418_v5  ;;  %v422_v7 = vld [vmem:[%s4676_s26 + $0x9d8] sm:$0xff]  ;;  %v424_v8 = vld [vmem:[%s4676_s26 + $0x9e0] sm:$0xff] }
  0x57   : > { %421 = vst [vmem:[%s4681_s27 + $0x4e0] sm:$0xff] %v420_v6  ;;  %v426_v9 = vld [vmem:[%s4676_s26 + $0x9e8] sm:$0xff]  ;;  %423 = vst [vmem:[%s4681_s27 + $0x4ec] sm:$0xff] %v422_v7  ;;  %v428_v10 = vld [vmem:[%s4676_s26 + $0xa10] sm:$0xff] }
  0x58   : > { %425 = vst [vmem:[%s4681_s27 + $0x4f4] sm:$0xff] %v424_v8  ;;  %427 = vst [vmem:[%s4681_s27 + $0x4fc] sm:$0xff] %v426_v9  ;;  %v430_v11 = vld [vmem:[%s4676_s26 + $0xa18] sm:$0xff]  ;;  %v432_v12 = vld [vmem:[%s4676_s26 + $0xa20] sm:$0xff] }
  0x59   : > { %429 = vst [vmem:[%s4681_s27 + $0x508] sm:$0xff] %v428_v10  ;;  %431 = vst [vmem:[%s4681_s27 + $0x510] sm:$0xff] %v430_v11  ;;  %v434_v13 = vld [vmem:[%s4676_s26 + $0xa48] sm:$0xff]  ;;  %v436_v14 = vld [vmem:[%s4676_s26 + $0xa50] sm:$0xff] }
  0x5a   : > { %433 = vst [vmem:[%s4681_s27 + $0x518] sm:$0xff] %v432_v12  ;;  %v438_v15 = vld [vmem:[%s4676_s26 + $0xa58] sm:$0xff]  ;;  %435 = vst [vmem:[%s4681_s27 + $0x524] sm:$0xff] %v434_v13  ;;  %v440_v16 = vld [vmem:[%s4676_s26 + $0xa80] sm:$0xff] }
  0x5b   : > { %437 = vst [vmem:[%s4681_s27 + $0x52c] sm:$0xff] %v436_v14  ;;  %439 = vst [vmem:[%s4681_s27 + $0x534] sm:$0xff] %v438_v15  ;;  %v442_v17 = vld [vmem:[%s4676_s26 + $0xa88] sm:$0xff]  ;;  %v444_v18 = vld [vmem:[%s4676_s26 + $0xa90] sm:$0xff] }
  0x5c   : > { %441 = vst [vmem:[%s4681_s27 + $0x540] sm:$0xff] %v440_v16  ;;  %443 = vst [vmem:[%s4681_s27 + $0x548] sm:$0xff] %v442_v17  ;;  %v446_v19 = vld [vmem:[%s4676_s26 + $0xab8] sm:$0xff]  ;;  %v448_v20 = vld [vmem:[%s4676_s26 + $0xac0] sm:$0xff] }
  0x5d   : > { %445 = vst [vmem:[%s4681_s27 + $0x550] sm:$0xff] %v444_v18  ;;  %v450_v21 = vld [vmem:[%s4676_s26 + $0xac8] sm:$0xff]  ;;  %447 = vst [vmem:[%s4681_s27 + $0x55c] sm:$0xff] %v446_v19  ;;  %v452_v22 = vld [vmem:[%s4676_s26 + $0xaf0] sm:$0xff] }
  0x5e   : > { %449 = vst [vmem:[%s4681_s27 + $0x564] sm:$0xff] %v448_v20  ;;  %451 = vst [vmem:[%s4681_s27 + $0x56c] sm:$0xff] %v450_v21  ;;  %v454_v23 = vld [vmem:[%s4676_s26 + $0xaf8] sm:$0xff]  ;;  %v456_v24 = vld [vmem:[%s4676_s26 + $0xb00] sm:$0xff] }
  0x5f   : > { %453 = vst [vmem:[%s4681_s27 + $0x578] sm:$0xff] %v452_v22  ;;  %455 = vst [vmem:[%s4681_s27 + $0x580] sm:$0xff] %v454_v23  ;;  %v458_v25 = vld [vmem:[%s4676_s26 + $0xb28] sm:$0xff]  ;;  %v460_v26 = vld [vmem:[%s4676_s26 + $0xb30] sm:$0xff] }
  0x60   : > { %457 = vst [vmem:[%s4681_s27 + $0x588] sm:$0xff] %v456_v24  ;;  %v462_v27 = vld [vmem:[%s4676_s26 + $0xb38] sm:$0xff]  ;;  %459 = vst [vmem:[%s4681_s27 + $0x594] sm:$0xff] %v458_v25  ;;  %v464_v28 = vld [vmem:[%s4676_s26 + $0xb60] sm:$0xff] }
  0x61   : > { %461 = vst [vmem:[%s4681_s27 + $0x59c] sm:$0xff] %v460_v26  ;;  %463 = vst [vmem:[%s4681_s27 + $0x5a4] sm:$0xff] %v462_v27  ;;  %v466_v29 = vld [vmem:[%s4676_s26 + $0xb68] sm:$0xff]  ;;  %v468_v30 = vld [vmem:[%s4676_s26 + $0xb70] sm:$0xff] }
  0x62   : > { %465 = vst [vmem:[%s4681_s27 + $0x5b0] sm:$0xff] %v464_v28  ;;  %467 = vst [vmem:[%s4681_s27 + $0x5b8] sm:$0xff] %v466_v29  ;;  %v470_v31 = vld [vmem:[%s4676_s26 + $0xb98] sm:$0xff]  ;;  %v472_v32 = vld [vmem:[%s4676_s26 + $0xba0] sm:$0xff] }
  0x63   : > { %469 = vst [vmem:[%s4681_s27 + $0x5c0] sm:$0xff] %v468_v30  ;;  %v474_v33 = vld [vmem:[%s4676_s26 + $0xba8] sm:$0xff]  ;;  %471 = vst [vmem:[%s4681_s27 + $0x5cc] sm:$0xff] %v470_v31  ;;  %v476_v34 = vld [vmem:[%s4676_s26 + $0xbd0] sm:$0xff] }
  0x64   : > { %473 = vst [vmem:[%s4681_s27 + $0x5d4] sm:$0xff] %v472_v32  ;;  %475 = vst [vmem:[%s4681_s27 + $0x5dc] sm:$0xff] %v474_v33  ;;  %v478_v35 = vld [vmem:[%s4676_s26 + $0xbd8] sm:$0xff]  ;;  %v480_v36 = vld [vmem:[%s4676_s26 + $0xbe0] sm:$0xff] }
  0x65   : > { %477 = vst [vmem:[%s4681_s27 + $0x5e8] sm:$0xff] %v476_v34  ;;  %479 = vst [vmem:[%s4681_s27 + $0x5f0] sm:$0xff] %v478_v35  ;;  %v482_v37 = vld [vmem:[%s4676_s26 + $0xc08] sm:$0xff]  ;;  %v484_v38 = vld [vmem:[%s4676_s26 + $0xc10] sm:$0xff] }
  0x66   : > { %481 = vst [vmem:[%s4681_s27 + $0x5f8] sm:$0xff] %v480_v36  ;;  %v486_v39 = vld [vmem:[%s4676_s26 + $0xc18] sm:$0xff]  ;;  %483 = vst [vmem:[%s4681_s27 + $0x604] sm:$0xff] %v482_v37  ;;  %v488_v40 = vld [vmem:[%s4676_s26 + $0xc40] sm:$0xff] }
  0x67   : > { %485 = vst [vmem:[%s4681_s27 + $0x60c] sm:$0xff] %v484_v38  ;;  %487 = vst [vmem:[%s4681_s27 + $0x614] sm:$0xff] %v486_v39  ;;  %v490_v41 = vld [vmem:[%s4676_s26 + $0xc48] sm:$0xff]  ;;  %v492_v42 = vld [vmem:[%s4676_s26 + $0xc50] sm:$0xff] }
  0x68   : > { %489 = vst [vmem:[%s4681_s27 + $0x620] sm:$0xff] %v488_v40  ;;  %491 = vst [vmem:[%s4681_s27 + $0x628] sm:$0xff] %v490_v41  ;;  %v494_v43 = vld [vmem:[%s4676_s26 + $0xc78] sm:$0xff]  ;;  %v496_v44 = vld [vmem:[%s4676_s26 + $0xc80] sm:$0xff] }
  0x69   : > { %493 = vst [vmem:[%s4681_s27 + $0x630] sm:$0xff] %v492_v42  ;;  %v498_v45 = vld [vmem:[%s4676_s26 + $0xc88] sm:$0xff]  ;;  %495 = vst [vmem:[%s4681_s27 + $0x63c] sm:$0xff] %v494_v43  ;;  %v500_v46 = vld [vmem:[%s4676_s26 + $0xcb0] sm:$0xff] }
  0x6a   : > { %497 = vst [vmem:[%s4681_s27 + $0x644] sm:$0xff] %v496_v44  ;;  %499 = vst [vmem:[%s4681_s27 + $0x64c] sm:$0xff] %v498_v45  ;;  %v502_v47 = vld [vmem:[%s4676_s26 + $0xcb8] sm:$0xff]  ;;  %v504_v48 = vld [vmem:[%s4676_s26 + $0xcc0] sm:$0xff] }
  0x6b   : > { %501 = vst [vmem:[%s4681_s27 + $0x658] sm:$0xff] %v500_v46  ;;  %503 = vst [vmem:[%s4681_s27 + $0x660] sm:$0xff] %v502_v47  ;;  %v506_v49 = vld [vmem:[%s4676_s26 + $0xce8] sm:$0xff]  ;;  %v508_v50 = vld [vmem:[%s4676_s26 + $0xcf0] sm:$0xff] }
  0x6c   : > { %505 = vst [vmem:[%s4681_s27 + $0x668] sm:$0xff] %v504_v48  ;;  %v510_v51 = vld [vmem:[%s4676_s26 + $0xcf8] sm:$0xff]  ;;  %507 = vst [vmem:[%s4681_s27 + $0x674] sm:$0xff] %v506_v49  ;;  %v512_v52 = vld [vmem:[%s4676_s26 + $0xd20] sm:$0xff] }
  0x6d   : > { %509 = vst [vmem:[%s4681_s27 + $0x67c] sm:$0xff] %v508_v50  ;;  %511 = vst [vmem:[%s4681_s27 + $0x684] sm:$0xff] %v510_v51  ;;  %v514_v53 = vld [vmem:[%s4676_s26 + $0xd28] sm:$0xff]  ;;  %v516_v54 = vld [vmem:[%s4676_s26 + $0xd30] sm:$0xff] }
  0x6e   : > { %513 = vst [vmem:[%s4681_s27 + $0x690] sm:$0xff] %v512_v52  ;;  %515 = vst [vmem:[%s4681_s27 + $0x698] sm:$0xff] %v514_v53  ;;  %v518_v55 = vld [vmem:[%s4676_s26 + $0xd58] sm:$0xff]  ;;  %v520_v56 = vld [vmem:[%s4676_s26 + $0xd60] sm:$0xff] }
  0x6f   : > { %517 = vst [vmem:[%s4681_s27 + $0x6a0] sm:$0xff] %v516_v54  ;;  %v522_v57 = vld [vmem:[%s4676_s26 + $0xd68] sm:$0xff]  ;;  %519 = vst [vmem:[%s4681_s27 + $0x6ac] sm:$0xff] %v518_v55  ;;  %v524_v58 = vld [vmem:[%s4676_s26 + $0xd90] sm:$0xff] }
  0x70   : > { %521 = vst [vmem:[%s4681_s27 + $0x6b4] sm:$0xff] %v520_v56  ;;  %523 = vst [vmem:[%s4681_s27 + $0x6bc] sm:$0xff] %v522_v57  ;;  %v526_v59 = vld [vmem:[%s4676_s26 + $0xd98] sm:$0xff]  ;;  %v528_v60 = vld [vmem:[%s4676_s26 + $0xda0] sm:$0xff] }
  0x71   : > { %525 = vst [vmem:[%s4681_s27 + $0x6c8] sm:$0xff] %v524_v58  ;;  %527 = vst [vmem:[%s4681_s27 + $0x6d0] sm:$0xff] %v526_v59  ;;  %v530_v61 = vld [vmem:[%s4676_s26 + $0xdc8] sm:$0xff]  ;;  %v532_v62 = vld [vmem:[%s4676_s26 + $0xdd0] sm:$0xff] }
  0x72   : > { %529 = vst [vmem:[%s4681_s27 + $0x6d8] sm:$0xff] %v528_v60  ;;  %v534_v63 = vld [vmem:[%s4676_s26 + $0xdd8] sm:$0xff]  ;;  %531 = vst [vmem:[%s4681_s27 + $0x6e4] sm:$0xff] %v530_v61  ;;  %v536_v0 = vld [vmem:[%s4676_s26 + $0xe00] sm:$0xff] }
  0x73   : > { %533 = vst [vmem:[%s4681_s27 + $0x6ec] sm:$0xff] %v532_v62  ;;  %535 = vst [vmem:[%s4681_s27 + $0x6f4] sm:$0xff] %v534_v63  ;;  %v538_v1 = vld [vmem:[%s4676_s26 + $0xe08] sm:$0xff]  ;;  %v540_v2 = vld [vmem:[%s4676_s26 + $0xe10] sm:$0xff] }
  0x74   : > { %537 = vst [vmem:[%s4681_s27 + $0x700] sm:$0xff] %v536_v0  ;;  %539 = vst [vmem:[%s4681_s27 + $0x708] sm:$0xff] %v538_v1  ;;  %v542_v3 = vld [vmem:[%s4676_s26 + $0xe38] sm:$0xff]  ;;  %v544_v4 = vld [vmem:[%s4676_s26 + $0xe40] sm:$0xff] }
  0x75   : > { %541 = vst [vmem:[%s4681_s27 + $0x710] sm:$0xff] %v540_v2  ;;  %v546_v5 = vld [vmem:[%s4676_s26 + $0xe48] sm:$0xff]  ;;  %543 = vst [vmem:[%s4681_s27 + $0x71c] sm:$0xff] %v542_v3  ;;  %v548_v6 = vld [vmem:[%s4676_s26 + $0xe70] sm:$0xff] }
  0x76   : > { %545 = vst [vmem:[%s4681_s27 + $0x724] sm:$0xff] %v544_v4  ;;  %547 = vst [vmem:[%s4681_s27 + $0x72c] sm:$0xff] %v546_v5  ;;  %v550_v7 = vld [vmem:[%s4676_s26 + $0xe78] sm:$0xff]  ;;  %v552_v8 = vld [vmem:[%s4676_s26 + $0xe80] sm:$0xff] }
  0x77   : > { %549 = vst [vmem:[%s4681_s27 + $0x738] sm:$0xff] %v548_v6  ;;  %551 = vst [vmem:[%s4681_s27 + $0x740] sm:$0xff] %v550_v7  ;;  %v554_v9 = vld [vmem:[%s4676_s26 + $0xea8] sm:$0xff]  ;;  %v556_v10 = vld [vmem:[%s4676_s26 + $0xeb0] sm:$0xff] }
  0x78   : > { %553 = vst [vmem:[%s4681_s27 + $0x748] sm:$0xff] %v552_v8  ;;  %v558_v11 = vld [vmem:[%s4676_s26 + $0xeb8] sm:$0xff]  ;;  %555 = vst [vmem:[%s4681_s27 + $0x754] sm:$0xff] %v554_v9  ;;  %v560_v12 = vld [vmem:[%s4676_s26 + $0xee0] sm:$0xff] }
  0x79   : > { %557 = vst [vmem:[%s4681_s27 + $0x75c] sm:$0xff] %v556_v10  ;;  %559 = vst [vmem:[%s4681_s27 + $0x764] sm:$0xff] %v558_v11  ;;  %v562_v13 = vld [vmem:[%s4676_s26 + $0xee8] sm:$0xff]  ;;  %v564_v14 = vld [vmem:[%s4676_s26 + $0xef0] sm:$0xff] }
  0x7a   : > { %561 = vst [vmem:[%s4681_s27 + $0x770] sm:$0xff] %v560_v12  ;;  %563 = vst [vmem:[%s4681_s27 + $0x778] sm:$0xff] %v562_v13  ;;  %v566_v15 = vld [vmem:[%s4676_s26 + $0xf18] sm:$0xff]  ;;  %v568_v16 = vld [vmem:[%s4676_s26 + $0xf20] sm:$0xff] }
  0x7b   : > { %565 = vst [vmem:[%s4681_s27 + $0x780] sm:$0xff] %v564_v14  ;;  %v570_v17 = vld [vmem:[%s4676_s26 + $0xf28] sm:$0xff]  ;;  %567 = vst [vmem:[%s4681_s27 + $0x78c] sm:$0xff] %v566_v15  ;;  %v572_v18 = vld [vmem:[%s4676_s26 + $0xf50] sm:$0xff] }
  0x7c   : > { %569 = vst [vmem:[%s4681_s27 + $0x794] sm:$0xff] %v568_v16  ;;  %571 = vst [vmem:[%s4681_s27 + $0x79c] sm:$0xff] %v570_v17  ;;  %v574_v19 = vld [vmem:[%s4676_s26 + $0xf58] sm:$0xff]  ;;  %v576_v20 = vld [vmem:[%s4676_s26 + $0xf60] sm:$0xff] }
  0x7d   : > { %573 = vst [vmem:[%s4681_s27 + $0x7a8] sm:$0xff] %v572_v18  ;;  %575 = vst [vmem:[%s4681_s27 + $0x7b0] sm:$0xff] %v574_v19  ;;  %v578_v21 = vld [vmem:[%s4676_s26 + $0xf88] sm:$0xff]  ;;  %v580_v22 = vld [vmem:[%s4676_s26 + $0xf90] sm:$0xff] }
  0x7e   : > { %577 = vst [vmem:[%s4681_s27 + $0x7b8] sm:$0xff] %v576_v20  ;;  %v582_v23 = vld [vmem:[%s4676_s26 + $0xf98] sm:$0xff]  ;;  %579 = vst [vmem:[%s4681_s27 + $0x7c4] sm:$0xff] %v578_v21  ;;  %v584_v24 = vld [vmem:[%s4676_s26 + $0xfc0] sm:$0xff] }
  0x7f   : > { %581 = vst [vmem:[%s4681_s27 + $0x7cc] sm:$0xff] %v580_v22  ;;  %583 = vst [vmem:[%s4681_s27 + $0x7d4] sm:$0xff] %v582_v23  ;;  %v586_v25 = vld [vmem:[%s4676_s26 + $0xfc8] sm:$0xff]  ;;  %v588_v26 = vld [vmem:[%s4676_s26 + $0xfd0] sm:$0xff] }
  0x80   : > { %585 = vst [vmem:[%s4681_s27 + $0x7e0] sm:$0xff] %v584_v24  ;;  %587 = vst [vmem:[%s4681_s27 + $0x7e8] sm:$0xff] %v586_v25  ;;  %v590_v27 = vld [vmem:[%s4676_s26 + $0xff8] sm:$0xff]  ;;  %v592_v28 = vld [vmem:[%s4676_s26 + $0x1000] sm:$0xff] }
  0x81   : > { %589 = vst [vmem:[%s4681_s27 + $0x7f0] sm:$0xff] %v588_v26  ;;  %v594_v29 = vld [vmem:[%s4676_s26 + $0x1008] sm:$0xff]  ;;  %591 = vst [vmem:[%s4681_s27 + $0x7fc] sm:$0xff] %v590_v27  ;;  %v596_v30 = vld [vmem:[%s4676_s26 + $0x1030] sm:$0xff] }
  0x82   : > { %593 = vst [vmem:[%s4681_s27 + $0x804] sm:$0xff] %v592_v28  ;;  %595 = vst [vmem:[%s4681_s27 + $0x80c] sm:$0xff] %v594_v29  ;;  %v598_v31 = vld [vmem:[%s4676_s26 + $0x1038] sm:$0xff]  ;;  %v600_v32 = vld [vmem:[%s4676_s26 + $0x1040] sm:$0xff] }
  0x83   : > { %597 = vst [vmem:[%s4681_s27 + $0x818] sm:$0xff] %v596_v30  ;;  %599 = vst [vmem:[%s4681_s27 + $0x820] sm:$0xff] %v598_v31  ;;  %v602_v33 = vld [vmem:[%s4676_s26 + $0x1068] sm:$0xff]  ;;  %v604_v34 = vld [vmem:[%s4676_s26 + $0x1070] sm:$0xff] }
  0x84   : > { %601 = vst [vmem:[%s4681_s27 + $0x828] sm:$0xff] %v600_v32  ;;  %v606_v35 = vld [vmem:[%s4676_s26 + $0x1078] sm:$0xff]  ;;  %603 = vst [vmem:[%s4681_s27 + $0x834] sm:$0xff] %v602_v33  ;;  %v3475_v37 = vld [vmem:[%s4676_s26 + $0x50] sm:$0xf] }
  0x85   : > { %605 = vst [vmem:[%s4681_s27 + $0x83c] sm:$0xff] %v604_v34  ;;  %607 = vst [vmem:[%s4681_s27 + $0x844] sm:$0xff] %v606_v35  ;;  %v3473_v36 = vld [vmem:[%s4676_s26 + $0x18] sm:$0xf]  ;;  %v3477_v38 = vld [vmem:[%s4676_s26 + $0x88] sm:$0xf] }
  0x86   : > { %3474 = vst [vmem:[%s4681_s27 + $0x18] sm:$0xf] %v3473_v36  ;;  %3476 = vst [vmem:[%s4681_s27 + $0x34] sm:$0xf] %v3475_v37  ;;  %v3479_v39 = vld [vmem:[%s4676_s26 + $0xc0] sm:$0xf] }
  0x87   : > { %3478 = vst [vmem:[%s4681_s27 + $0x50] sm:$0xf] %v3477_v38  ;;  %v3481_v40 = vld [vmem:[%s4676_s26 + $0xf8] sm:$0xf]  ;;  %v3483_v41 = vld [vmem:[%s4676_s26 + $0x130] sm:$0xf] }
  0x88   : > { %3480 = vst [vmem:[%s4681_s27 + $0x6c] sm:$0xf] %v3479_v39  ;;  %3482 = vst [vmem:[%s4681_s27 + $0x88] sm:$0xf] %v3481_v40  ;;  %v3485_v42 = vld [vmem:[%s4676_s26 + $0x168] sm:$0xf] }
  0x89   : > { %3484 = vst [vmem:[%s4681_s27 + $0xa4] sm:$0xf] %v3483_v41  ;;  %v3487_v43 = vld [vmem:[%s4676_s26 + $0x1a0] sm:$0xf]  ;;  %v3489_v44 = vld [vmem:[%s4676_s26 + $0x1d8] sm:$0xf] }
  0x8a   : > { %3486 = vst [vmem:[%s4681_s27 + $0xc0] sm:$0xf] %v3485_v42  ;;  %3488 = vst [vmem:[%s4681_s27 + $0xdc] sm:$0xf] %v3487_v43  ;;  %v3491_v45 = vld [vmem:[%s4676_s26 + $0x210] sm:$0xf] }
  0x8b   : > { %3490 = vst [vmem:[%s4681_s27 + $0xf8] sm:$0xf] %v3489_v44  ;;  %v3493_v46 = vld [vmem:[%s4676_s26 + $0x248] sm:$0xf]  ;;  %v3495_v47 = vld [vmem:[%s4676_s26 + $0x280] sm:$0xf] }
  0x8c   : > { %3492 = vst [vmem:[%s4681_s27 + $0x114] sm:$0xf] %v3491_v45  ;;  %3494 = vst [vmem:[%s4681_s27 + $0x130] sm:$0xf] %v3493_v46  ;;  %v3497_v48 = vld [vmem:[%s4676_s26 + $0x2b8] sm:$0xf] }
  0x8d   : > { %3496 = vst [vmem:[%s4681_s27 + $0x14c] sm:$0xf] %v3495_v47  ;;  %v3499_v49 = vld [vmem:[%s4676_s26 + $0x2f0] sm:$0xf]  ;;  %v3501_v50 = vld [vmem:[%s4676_s26 + $0x328] sm:$0xf] }
  0x8e   : > { %3498 = vst [vmem:[%s4681_s27 + $0x168] sm:$0xf] %v3497_v48  ;;  %3500 = vst [vmem:[%s4681_s27 + $0x184] sm:$0xf] %v3499_v49  ;;  %v3503_v51 = vld [vmem:[%s4676_s26 + $0x360] sm:$0xf] }
  0x8f   : > { %3502 = vst [vmem:[%s4681_s27 + $0x1a0] sm:$0xf] %v3501_v50  ;;  %v3505_v52 = vld [vmem:[%s4676_s26 + $0x398] sm:$0xf]  ;;  %v3507_v53 = vld [vmem:[%s4676_s26 + $0x3d0] sm:$0xf] }
  0x90   : > { %3504 = vst [vmem:[%s4681_s27 + $0x1bc] sm:$0xf] %v3503_v51  ;;  %3506 = vst [vmem:[%s4681_s27 + $0x1d8] sm:$0xf] %v3505_v52  ;;  %v3509_v54 = vld [vmem:[%s4676_s26 + $0x408] sm:$0xf] }
  0x91   : > { %3508 = vst [vmem:[%s4681_s27 + $0x1f4] sm:$0xf] %v3507_v53  ;;  %v3511_v55 = vld [vmem:[%s4676_s26 + $0x440] sm:$0xf]  ;;  %v3513_v56 = vld [vmem:[%s4676_s26 + $0x478] sm:$0xf] }
  0x92   : > { %3510 = vst [vmem:[%s4681_s27 + $0x210] sm:$0xf] %v3509_v54  ;;  %3512 = vst [vmem:[%s4681_s27 + $0x22c] sm:$0xf] %v3511_v55  ;;  %v3515_v57 = vld [vmem:[%s4676_s26 + $0x4b0] sm:$0xf] }
  0x93   : > { %3514 = vst [vmem:[%s4681_s27 + $0x248] sm:$0xf] %v3513_v56  ;;  %v3517_v58 = vld [vmem:[%s4676_s26 + $0x4e8] sm:$0xf]  ;;  %v3519_v59 = vld [vmem:[%s4676_s26 + $0x520] sm:$0xf] }
  0x94   : > { %3516 = vst [vmem:[%s4681_s27 + $0x264] sm:$0xf] %v3515_v57  ;;  %3518 = vst [vmem:[%s4681_s27 + $0x280] sm:$0xf] %v3517_v58  ;;  %v3521_v60 = vld [vmem:[%s4676_s26 + $0x558] sm:$0xf] }
  0x95   : > { %3520 = vst [vmem:[%s4681_s27 + $0x29c] sm:$0xf] %v3519_v59  ;;  %v3523_v61 = vld [vmem:[%s4676_s26 + $0x590] sm:$0xf]  ;;  %v3525_v62 = vld [vmem:[%s4676_s26 + $0x5c8] sm:$0xf] }
  0x96   : > { %3522 = vst [vmem:[%s4681_s27 + $0x2b8] sm:$0xf] %v3521_v60  ;;  %3524 = vst [vmem:[%s4681_s27 + $0x2d4] sm:$0xf] %v3523_v61  ;;  %v3527_v63 = vld [vmem:[%s4676_s26 + $0x600] sm:$0xf] }
  0x97   : > { %3526 = vst [vmem:[%s4681_s27 + $0x2f0] sm:$0xf] %v3525_v62  ;;  %v3529_v0 = vld [vmem:[%s4676_s26 + $0x638] sm:$0xf]  ;;  %v3531_v1 = vld [vmem:[%s4676_s26 + $0x670] sm:$0xf] }
  0x98   : > { %3528 = vst [vmem:[%s4681_s27 + $0x30c] sm:$0xf] %v3527_v63  ;;  %3530 = vst [vmem:[%s4681_s27 + $0x328] sm:$0xf] %v3529_v0  ;;  %v3533_v2 = vld [vmem:[%s4676_s26 + $0x6a8] sm:$0xf] }
  0x99   : > { %3532 = vst [vmem:[%s4681_s27 + $0x344] sm:$0xf] %v3531_v1  ;;  %v3535_v3 = vld [vmem:[%s4676_s26 + $0x6e0] sm:$0xf]  ;;  %v3537_v4 = vld [vmem:[%s4676_s26 + $0x718] sm:$0xf] }
  0x9a   : > { %3534 = vst [vmem:[%s4681_s27 + $0x360] sm:$0xf] %v3533_v2  ;;  %3536 = vst [vmem:[%s4681_s27 + $0x37c] sm:$0xf] %v3535_v3  ;;  %v3539_v5 = vld [vmem:[%s4676_s26 + $0x750] sm:$0xf] }
  0x9b   : > { %3538 = vst [vmem:[%s4681_s27 + $0x398] sm:$0xf] %v3537_v4  ;;  %v3541_v6 = vld [vmem:[%s4676_s26 + $0x788] sm:$0xf]  ;;  %v3543_v7 = vld [vmem:[%s4676_s26 + $0x7c0] sm:$0xf] }
  0x9c   : > { %3540 = vst [vmem:[%s4681_s27 + $0x3b4] sm:$0xf] %v3539_v5  ;;  %3542 = vst [vmem:[%s4681_s27 + $0x3d0] sm:$0xf] %v3541_v6  ;;  %v3545_v8 = vld [vmem:[%s4676_s26 + $0x7f8] sm:$0xf] }
  0x9d   : > { %3544 = vst [vmem:[%s4681_s27 + $0x3ec] sm:$0xf] %v3543_v7  ;;  %v3547_v9 = vld [vmem:[%s4676_s26 + $0x830] sm:$0xf]  ;;  %v3549_v10 = vld [vmem:[%s4676_s26 + $0x868] sm:$0xf] }
  0x9e   : > { %3546 = vst [vmem:[%s4681_s27 + $0x408] sm:$0xf] %v3545_v8  ;;  %3548 = vst [vmem:[%s4681_s27 + $0x424] sm:$0xf] %v3547_v9  ;;  %v3551_v11 = vld [vmem:[%s4676_s26 + $0x8a0] sm:$0xf] }
  0x9f   : > { %3550 = vst [vmem:[%s4681_s27 + $0x440] sm:$0xf] %v3549_v10  ;;  %v3553_v12 = vld [vmem:[%s4676_s26 + $0x8d8] sm:$0xf]  ;;  %v3555_v13 = vld [vmem:[%s4676_s26 + $0x910] sm:$0xf] }
  0xa0   : > { %3552 = vst [vmem:[%s4681_s27 + $0x45c] sm:$0xf] %v3551_v11  ;;  %3554 = vst [vmem:[%s4681_s27 + $0x478] sm:$0xf] %v3553_v12  ;;  %v3557_v14 = vld [vmem:[%s4676_s26 + $0x948] sm:$0xf] }
  0xa1   : > { %3556 = vst [vmem:[%s4681_s27 + $0x494] sm:$0xf] %v3555_v13  ;;  %v3559_v15 = vld [vmem:[%s4676_s26 + $0x980] sm:$0xf]  ;;  %v3561_v16 = vld [vmem:[%s4676_s26 + $0x9b8] sm:$0xf] }
  0xa2   : > { %3558 = vst [vmem:[%s4681_s27 + $0x4b0] sm:$0xf] %v3557_v14  ;;  %3560 = vst [vmem:[%s4681_s27 + $0x4cc] sm:$0xf] %v3559_v15  ;;  %v3563_v17 = vld [vmem:[%s4676_s26 + $0x9f0] sm:$0xf] }
  0xa3   : > { %3562 = vst [vmem:[%s4681_s27 + $0x4e8] sm:$0xf] %v3561_v16  ;;  %v3565_v18 = vld [vmem:[%s4676_s26 + $0xa28] sm:$0xf]  ;;  %v3567_v19 = vld [vmem:[%s4676_s26 + $0xa60] sm:$0xf] }
  0xa4   : > { %3564 = vst [vmem:[%s4681_s27 + $0x504] sm:$0xf] %v3563_v17  ;;  %3566 = vst [vmem:[%s4681_s27 + $0x520] sm:$0xf] %v3565_v18  ;;  %v3569_v20 = vld [vmem:[%s4676_s26 + $0xa98] sm:$0xf] }
  0xa5   : > { %3568 = vst [vmem:[%s4681_s27 + $0x53c] sm:$0xf] %v3567_v19  ;;  %v3571_v21 = vld [vmem:[%s4676_s26 + $0xad0] sm:$0xf]  ;;  %v3573_v22 = vld [vmem:[%s4676_s26 + $0xb08] sm:$0xf] }
  0xa6   : > { %3570 = vst [vmem:[%s4681_s27 + $0x558] sm:$0xf] %v3569_v20  ;;  %3572 = vst [vmem:[%s4681_s27 + $0x574] sm:$0xf] %v3571_v21  ;;  %v3575_v23 = vld [vmem:[%s4676_s26 + $0xb40] sm:$0xf] }
  0xa7   : > { %3574 = vst [vmem:[%s4681_s27 + $0x590] sm:$0xf] %v3573_v22  ;;  %v3577_v24 = vld [vmem:[%s4676_s26 + $0xb78] sm:$0xf]  ;;  %v3579_v25 = vld [vmem:[%s4676_s26 + $0xbb0] sm:$0xf] }
  0xa8   : > { %3576 = vst [vmem:[%s4681_s27 + $0x5ac] sm:$0xf] %v3575_v23  ;;  %3578 = vst [vmem:[%s4681_s27 + $0x5c8] sm:$0xf] %v3577_v24  ;;  %v3581_v26 = vld [vmem:[%s4676_s26 + $0xbe8] sm:$0xf] }
  0xa9   : > { %3580 = vst [vmem:[%s4681_s27 + $0x5e4] sm:$0xf] %v3579_v25  ;;  %v3583_v27 = vld [vmem:[%s4676_s26 + $0xc20] sm:$0xf]  ;;  %v3585_v28 = vld [vmem:[%s4676_s26 + $0xc58] sm:$0xf] }
  0xaa   : > { %3582 = vst [vmem:[%s4681_s27 + $0x600] sm:$0xf] %v3581_v26  ;;  %3584 = vst [vmem:[%s4681_s27 + $0x61c] sm:$0xf] %v3583_v27  ;;  %v3587_v29 = vld [vmem:[%s4676_s26 + $0xc90] sm:$0xf] }
  0xab   : > { %3586 = vst [vmem:[%s4681_s27 + $0x638] sm:$0xf] %v3585_v28  ;;  %v3589_v30 = vld [vmem:[%s4676_s26 + $0xcc8] sm:$0xf]  ;;  %v3591_v31 = vld [vmem:[%s4676_s26 + $0xd00] sm:$0xf] }
  0xac   : > { %3588 = vst [vmem:[%s4681_s27 + $0x654] sm:$0xf] %v3587_v29  ;;  %3590 = vst [vmem:[%s4681_s27 + $0x670] sm:$0xf] %v3589_v30  ;;  %v3593_v32 = vld [vmem:[%s4676_s26 + $0xd38] sm:$0xf] }
  0xad   : > { %3592 = vst [vmem:[%s4681_s27 + $0x68c] sm:$0xf] %v3591_v31  ;;  %v3595_v33 = vld [vmem:[%s4676_s26 + $0xd70] sm:$0xf]  ;;  %v3597_v34 = vld [vmem:[%s4676_s26 + $0xda8] sm:$0xf] }
  0xae   : > { %3594 = vst [vmem:[%s4681_s27 + $0x6a8] sm:$0xf] %v3593_v32  ;;  %3596 = vst [vmem:[%s4681_s27 + $0x6c4] sm:$0xf] %v3595_v33  ;;  %v3599_v35 = vld [vmem:[%s4676_s26 + $0xde0] sm:$0xf] }
  0xaf   : > { %3598 = vst [vmem:[%s4681_s27 + $0x6e0] sm:$0xf] %v3597_v34  ;;  %v3601_v36 = vld [vmem:[%s4676_s26 + $0xe18] sm:$0xf]  ;;  %v3603_v37 = vld [vmem:[%s4676_s26 + $0xe50] sm:$0xf] }
  0xb0   : > { %3600 = vst [vmem:[%s4681_s27 + $0x6fc] sm:$0xf] %v3599_v35  ;;  %3602 = vst [vmem:[%s4681_s27 + $0x718] sm:$0xf] %v3601_v36  ;;  %v3605_v38 = vld [vmem:[%s4676_s26 + $0xe88] sm:$0xf] }
  0xb1   : > { %3604 = vst [vmem:[%s4681_s27 + $0x734] sm:$0xf] %v3603_v37  ;;  %v3607_v39 = vld [vmem:[%s4676_s26 + $0xec0] sm:$0xf]  ;;  %v3609_v40 = vld [vmem:[%s4676_s26 + $0xef8] sm:$0xf] }
  0xb2   : > { %3606 = vst [vmem:[%s4681_s27 + $0x750] sm:$0xf] %v3605_v38  ;;  %3608 = vst [vmem:[%s4681_s27 + $0x76c] sm:$0xf] %v3607_v39  ;;  %v3611_v41 = vld [vmem:[%s4676_s26 + $0xf30] sm:$0xf] }
  0xb3   : > { %3610 = vst [vmem:[%s4681_s27 + $0x788] sm:$0xf] %v3609_v40  ;;  %v3613_v42 = vld [vmem:[%s4676_s26 + $0xf68] sm:$0xf]  ;;  %v3615_v43 = vld [vmem:[%s4676_s26 + $0xfa0] sm:$0xf] }
  0xb4   : > { %3612 = vst [vmem:[%s4681_s27 + $0x7a4] sm:$0xf] %v3611_v41  ;;  %3614 = vst [vmem:[%s4681_s27 + $0x7c0] sm:$0xf] %v3613_v42  ;;  %v3617_v44 = vld [vmem:[%s4676_s26 + $0xfd8] sm:$0xf] }
  0xb5   : > { %3616 = vst [vmem:[%s4681_s27 + $0x7dc] sm:$0xf] %v3615_v43  ;;  %v3619_v45 = vld [vmem:[%s4676_s26 + $0x1010] sm:$0xf]  ;;  %v3621_v46 = vld [vmem:[%s4676_s26 + $0x1048] sm:$0xf] }
  0xb6   : > { %3618 = vst [vmem:[%s4681_s27 + $0x7f8] sm:$0xf] %v3617_v44  ;;  %3620 = vst [vmem:[%s4681_s27 + $0x814] sm:$0xf] %v3619_v45  ;;  %v3623_v47 = vld [vmem:[%s4676_s26 + $0x1080] sm:$0xf] }
  0xb7   : > { %3622 = vst [vmem:[%s4681_s27 + $0x830] sm:$0xf] %v3621_v46  ;;  %3624 = vst [vmem:[%s4681_s27 + $0x84c] sm:$0xf] %v3623_v47 }
  0xb8 PF: > { %p3625_p7 = scmp.ge.s32.totalorder %s4613_s14, 1  ;;  %p772_p8 = scmp.lt.s32.totalorder %s4613_s14, 3 }
  0xba   : > { %p773_p9 = pnand %p3625_p7, %p772_p8 }
  0xbb   : > { %s779_s28 = sand.u32 (!%p773_p9), 1, %s4605_s12  }
  0xbc   : > { %776 = sbr.rel (%p773_p9) target bundleno = 729 (0x2d9), region = 54 }
  0xbd   : > { %s4170_s4 = smul.u32 (!%p773_p9), 2128, %s779_s28 }
  0xbe   : > { %s4171_s23 = smul.u32 (!%p773_p9), 112, %s779_s28 }
  0xbf   : > { %s5303_s5 = scalar_lea.vmem (!%p773_p9), [#allocation2], %s4170_s4 }
  0xc0   : > { %s5769_s12 = scalar_lea.vmem (!%p773_p9), [#allocation3], %s4171_s23 }
  0xc1   : > { %v5294_v48 = vld [vmem:[%s5833_s0 + $0x4] ss:$8 sps:$4 sm:$0xff]   ;;  %vm1233_vm0 = vcmask 179200   ;;  %v4615_v49 = vmov 0   ;;  %vm1237_vm1 = vcmask 1042432   ;;  %s4168_s24 = smul.u32 (%p4666_p5), 56, %s3468_s15 }
  0xc2   : > { %3699 = vmatprep.mubr.msk.bf16.mxu0 %vm1233_vm0, %v5294_v48  ;;  %3701 = vmatprep.mubr.msk.bf16.mxu1 %vm1233_vm0, %v5294_v48  ;;  %v4198_v50 = vld [vmem:[%s5303_s5 + $0x18c] ss:$28 sps:$4 sm:$0xff]   ;;  %v4200_v51 = vld [vmem:[%s5303_s5 + $0x194] ss:$28 sps:$4 sm:$0xff]   ;;  %v4206_v55 = vld [vmem:[%s5303_s5 + $0x15c] ss:$28 sps:$4 sm:$0xff]  }
  0xc3   : > { %4197 = vset.pattern.permute.xlu0 %v4615_v49  ;;  %1259 = vmatprep.subr.bf16.mxu0 %v4198_v50  ;;  %v4202_v52 = vld [vmem:[%s5303_s5 + $0x188] ss:$28 sps:$4 sm:$0xff]   ;;  %v4203_v53 = vld [vmem:[%s5303_s5 + $0x190] ss:$28 sps:$4 sm:$0xff]   ;;  %v4209_v57 = vld [vmem:[%s5303_s5 + $0x158] ss:$28 sps:$4 sm:$0xff]   ;;  %s3364_s25 = scalar_lea.vmem (%p4666_p5), %s5836_s3, %s4168_s24 }
  0xc4   : > { %1302 = vmatprep.subr.bf16.mxu1 %v4200_v51  ;;  %v4204_v54 = vld [vmem:[%s5303_s5 + $0x154] ss:$28 sps:$4 sm:$0xff]   ;;  %1260 = vmatpush1.bf16.msra.mxu0 %v4202_v52  ;;  %v4210_v58 = vld [vmem:[%s5303_s5 + $0x11c] ss:$28 sps:$4 sm:$0xff]   ;;  %v4212_v59 = vld [vmem:[%s5303_s5 + $0x124] ss:$28 sps:$4 sm:$0xff]  }
  0xc5   : > { %1303 = vmatpush1.bf16.msra.mxu1 %v4203_v53  ;;  %v4208_v56 = vld [vmem:[%s5303_s5 + $0x150] ss:$28 sps:$4 sm:$0xff]   ;;  %1261 = vmatprep.subr.bf16.mxu0 %v4204_v54  ;;  %v4214_v60 = vld [vmem:[%s5303_s5 + $0x118] ss:$28 sps:$4 sm:$0xff]   ;;  %v4215_v61 = vld [vmem:[%s5303_s5 + $0x120] ss:$28 sps:$4 sm:$0xff]  }
  0xc6   : > { %1304 = vmatprep.subr.bf16.mxu1 %v4206_v55  ;;  %v4216_v62 = vld [vmem:[%s5303_s5 + $0xe4] ss:$28 sps:$4 sm:$0xff]   ;;  %v4218_v63 = vld [vmem:[%s5303_s5 + $0xec] ss:$28 sps:$4 sm:$0xff]   ;;  %v4224_v3 = vld [vmem:[%s5303_s5 + $0xb4] ss:$28 sps:$4 sm:$0xff]  }
  0xc7   : > { %v4220_v0 = vld [vmem:[%s5303_s5 + $0xe0] ss:$28 sps:$4 sm:$0xff]   ;;  %v4221_v1 = vld [vmem:[%s5303_s5 + $0xe8] ss:$28 sps:$4 sm:$0xff]   ;;  %v4227_v5 = vld [vmem:[%s5303_s5 + $0xb0] ss:$28 sps:$4 sm:$0xff]  }
  0xc8   : > { %1262 = vmatpush1.bf16.msra.mxu0 %v4208_v56  ;;  %v4222_v2 = vld [vmem:[%s5303_s5 + $0xac] ss:$28 sps:$4 sm:$0xff]   ;;  %v4228_v6 = vld [vmem:[%s5303_s5 + $0x74] ss:$28 sps:$4 sm:$0xff]   ;;  %v4230_v7 = vld [vmem:[%s5303_s5 + $0x7c] ss:$28 sps:$4 sm:$0xff]  }
  0xc9   : > { %1305 = vmatpush1.bf16.msra.mxu1 %v4209_v57  ;;  %1263 = vmatprep.subr.bf16.mxu0 %v4210_v58  ;;  %v4226_v4 = vld [vmem:[%s5303_s5 + $0xa8] ss:$28 sps:$4 sm:$0xff]   ;;  %v4232_v8 = vld [vmem:[%s5303_s5 + $0x70] ss:$28 sps:$4 sm:$0xff]   ;;  %v4233_v9 = vld [vmem:[%s5303_s5 + $0x78] ss:$28 sps:$4 sm:$0xff]  }
  0xca   : > { %1306 = vmatprep.subr.bf16.mxu1 %v4212_v59  ;;  %v4234_v10 = vld [vmem:[%s5303_s5 + $0x3c] ss:$28 sps:$4 sm:$0xff]   ;;  %v4236_v11 = vld [vmem:[%s5303_s5 + $0x44] ss:$28 sps:$4 sm:$0xff]   ;;  %v4242_v15 = vld [vmem:[%s5303_s5 + $0xc] ss:$28 sps:$4 sm:$0xff]  }
  0xcb   : > { %v4238_v12 = vld [vmem:[%s5303_s5 + $0x38] ss:$28 sps:$4 sm:$0xff]   ;;  %v4239_v13 = vld [vmem:[%s5303_s5 + $0x40] ss:$28 sps:$4 sm:$0xff]   ;;  %v4245_v19 = vld [vmem:[%s5303_s5 + $0x8] ss:$28 sps:$4 sm:$0xff]  }
  0xcc   : > { %1264 = vmatpush1.bf16.msra.mxu0 %v4214_v60  ;;  %v4240_v14 = vld [vmem:[%s5303_s5 + $0x4] ss:$28 sps:$4 sm:$0xff]   ;;  %v878_v16 = vld [vmem:[%s5303_s5 + $0x1f8] sm:$0x77]  ;;  %v4252_v25 = vld [vmem:[%s5303_s5 + $0x1cc] ss:$28 sps:$4 sm:$0xff]  }
  0xcd   : > { %1307 = vmatpush1.bf16.msra.mxu1 %v4215_v61  ;;  %1265 = vmatprep.subr.bf16.mxu0 %v4216_v62  ;;  %v879_v17 = vld [vmem:[%s5303_s5 + $0x200] sm:$0x77]  ;;  %v3692_v20 = vcombine.high %v878_v16, %v878_v16  ;;  %v3691_v22 = vcombine.low %v878_v16, %v878_v16  ;;  %v4261_v30 = vld [vmem:[%s5303_s5 + $0x19c] ss:$28 sps:$4 sm:$0xff]   ;;  %v4269_v37 = vld [vmem:[%s5303_s5 + $0x12c] ss:$28 sps:$4 sm:$0xff]  }
  0xce   : > { %1308 = vmatprep.subr.bf16.mxu1 %v4218_v63  ;;  %v4244_v18 = vld [vmem:[%s5303_s5] ss:$28 sps:$4 sm:$0xff]   ;;  %v3694_v21 = vcombine.high %v879_v17, %v879_v17  ;;  %v3693_v23 = vcombine.low %v879_v17, %v879_v17  ;;  %v4255_v29 = vld [vmem:[%s5303_s5 + $0x1c8] ss:$28 sps:$4 sm:$0xff]   ;;  %v4259_v32 = vld [vmem:[%s5303_s5 + $0x198] ss:$28 sps:$4 sm:$0xff]  }
  0xcf   : > { %v4250_v24 = vld [vmem:[%s5303_s5 + $0x1c4] ss:$28 sps:$4 sm:$0xff]   ;;  %v1239_v26 = vsel %vm1237_vm1, %v3691_v22, 0  ;;  %v4270_v39 = vld [vmem:[%s5303_s5 + $0x130] ss:$28 sps:$4 sm:$0xff]  }
  0xd0   : > { %1266 = vmatpush1.bf16.msra.mxu0 %v4220_v0  ;;  %v1245_v27 = vsel %vm1237_vm1, %v3693_v23, 0  ;;  %v4254_v28 = vld [vmem:[%s5303_s5 + $0x1c0] ss:$28 sps:$4 sm:$0xff]   ;;  %v4266_v36 = vld [vmem:[%s5303_s5 + $0x168] ss:$28 sps:$4 sm:$0xff]  }
  0xd1   : > { %1309 = vmatpush1.bf16.msra.mxu1 %v4221_v1  ;;  %1267 = vmatprep.subr.bf16.mxu0 %v4222_v2  ;;  %v5351_v31 = vld [vmem:[%s5833_s0] ss:$8 sps:$4 sm:$0xff]  }
  0xd2   : > { %1310 = vmatprep.subr.bf16.mxu1 %v4224_v3  ;;  %v4262_v33 = vld [vmem:[%s5303_s5 + $0x1a0] ss:$28 sps:$4 sm:$0xff]   ;;  %v4267_v38 = vld [vmem:[%s5303_s5 + $0x128] ss:$28 sps:$4 sm:$0xff]   ;;  %v4273_v40 = vld [vmem:[%s5303_s5 + $0xf4] ss:$28 sps:$4 sm:$0xff]  }
  0xd3   : > { %v4265_v34 = vld [vmem:[%s5303_s5 + $0x164] ss:$28 sps:$4 sm:$0xff]   ;;  %v4271_v41 = vld [vmem:[%s5303_s5 + $0xf0] ss:$28 sps:$4 sm:$0xff]   ;;  %v4274_v42 = vld [vmem:[%s5303_s5 + $0xf8] ss:$28 sps:$4 sm:$0xff]  }
  0xd4   : > { %1268 = vmatpush1.bf16.msra.mxu0 %v4226_v4  ;;  %v4263_v35 = vld [vmem:[%s5303_s5 + $0x160] ss:$28 sps:$4 sm:$0xff]   ;;  %v4275_v44 = vld [vmem:[%s5303_s5 + $0xb8] ss:$28 sps:$4 sm:$0xff]   ;;  %v4282_v50 = vld [vmem:[%s5303_s5 + $0x88] ss:$28 sps:$4 sm:$0xff]  }
  0xd5   : > { %1311 = vmatpush1.bf16.msra.mxu1 %v4227_v5  ;;  %1269 = vmatprep.subr.bf16.mxu0 %v4228_v6  ;;  %v4277_v43 = vld [vmem:[%s5303_s5 + $0xbc] ss:$28 sps:$4 sm:$0xff]   ;;  %v4281_v46 = vld [vmem:[%s5303_s5 + $0x84] ss:$28 sps:$4 sm:$0xff]   ;;  %v4285_v51 = vld [vmem:[%s5303_s5 + $0x4c] ss:$28 sps:$4 sm:$0xff]  }
  0xd6   : > { %1312 = vmatprep.subr.bf16.mxu1 %v4230_v7  ;;  %v4278_v45 = vld [vmem:[%s5303_s5 + $0xc0] ss:$28 sps:$4 sm:$0xff]   ;;  %v4283_v52 = vld [vmem:[%s5303_s5 + $0x48] ss:$28 sps:$4 sm:$0xff]   ;;  %v4286_v53 = vld [vmem:[%s5303_s5 + $0x50] ss:$28 sps:$4 sm:$0xff]  }
  0xd7   : > { %v4279_v47 = vld [vmem:[%s5303_s5 + $0x80] ss:$28 sps:$4 sm:$0xff]   ;;  %v4289_v54 = vld [vmem:[%s5303_s5 + $0x14] ss:$28 sps:$4 sm:$0xff]   ;;  %v880_v55 = vld [vmem:[%s5303_s5 + $0x208] sm:$0x77] }
  0xd8   : > { %1270 = vmatpush1.bf16.msra.mxu0 %v4232_v8  ;;  %v4287_v56 = vld [vmem:[%s5303_s5 + $0x10] ss:$28 sps:$4 sm:$0xff]   ;;  %v4290_v57 = vld [vmem:[%s5303_s5 + $0x18] ss:$28 sps:$4 sm:$0xff]   ;;  %v3696_v58 = vcombine.high %v880_v55, %v880_v55  ;;  %v3695_v59 = vcombine.low %v880_v55, %v880_v55  ;;  %v4300_v2 = vld [vmem:[%s5303_s5 + $0x3a0] ss:$28 sps:$4 sm:$0xff]  }
  0xd9   : > { %1313 = vmatpush1.bf16.msra.mxu1 %v4233_v9  ;;  %1271 = vmatprep.subr.bf16.mxu0 %v4234_v10  ;;  %v4293_v60 = vld [vmem:[%s5303_s5 + $0x210] ss:$0 sps:$4 sm:$0x77]   ;;  %v4297_v1 = vld [vmem:[%s5303_s5 + $0x1d8] ss:$28 sps:$4 sm:$0xff]  }
  0xda   : > { %1314 = vmatprep.subr.bf16.mxu1 %v4236_v11  ;;  %v4296_v61 = vld [vmem:[%s5303_s5 + $0x1d4] ss:$28 sps:$4 sm:$0xff]   ;;  %v1251_v62 = vsel %vm1237_vm1, %v3695_v59, 0  ;;  %v1257_v63 = vsel %vm1237_vm1, %v4293_v60, 0  ;;  %v4303_v3 = vld [vmem:[%s5303_s5 + $0x3a8] ss:$28 sps:$4 sm:$0xff]  }
  0xdb   : > { %v4294_v0 = vld [vmem:[%s5303_s5 + $0x1d0] ss:$28 sps:$4 sm:$0xff]   ;;  %v4298_v4 = vld [vmem:[%s5303_s5 + $0x39c] ss:$28 sps:$4 sm:$0xff]   ;;  %v4301_v5 = vld [vmem:[%s5303_s5 + $0x3a4] ss:$28 sps:$4 sm:$0xff]  }
  0xdc   : > { %1272 = vmatpush1.bf16.msra.mxu0 %v4238_v12  ;;  %v4306_v6 = vld [vmem:[%s5303_s5 + $0x368] ss:$28 sps:$4 sm:$0xff]   ;;  %v4309_v7 = vld [vmem:[%s5303_s5 + $0x370] ss:$28 sps:$4 sm:$0xff]   ;;  %v4315_v11 = vld [vmem:[%s5303_s5 + $0x338] ss:$28 sps:$4 sm:$0xff]  }
  0xdd   : > { %1315 = vmatpush1.bf16.msra.mxu1 %v4239_v13  ;;  %1273 = vmatprep.subr.bf16.mxu0 %v4240_v14  ;;  %v4304_v8 = vld [vmem:[%s5303_s5 + $0x364] ss:$28 sps:$4 sm:$0xff]   ;;  %v4307_v9 = vld [vmem:[%s5303_s5 + $0x36c] ss:$28 sps:$4 sm:$0xff]   ;;  %v4313_v13 = vld [vmem:[%s5303_s5 + $0x334] ss:$28 sps:$4 sm:$0xff]  }
  0xde   : > { %1316 = vmatprep.subr.bf16.mxu1 %v4242_v15  ;;  %v4312_v10 = vld [vmem:[%s5303_s5 + $0x330] ss:$28 sps:$4 sm:$0xff]   ;;  %v4318_v14 = vld [vmem:[%s5303_s5 + $0x2f8] ss:$28 sps:$4 sm:$0xff]   ;;  %v4321_v15 = vld [vmem:[%s5303_s5 + $0x300] ss:$28 sps:$4 sm:$0xff]  }
  0xdf   : > { %v4310_v12 = vld [vmem:[%s5303_s5 + $0x32c] ss:$28 sps:$4 sm:$0xff]   ;;  %v4316_v16 = vld [vmem:[%s5303_s5 + $0x2f4] ss:$28 sps:$4 sm:$0xff]   ;;  %v4319_v17 = vld [vmem:[%s5303_s5 + $0x2fc] ss:$28 sps:$4 sm:$0xff]  }
  0xe0   : > { %1274 = vmatpush1.bf16.msra.mxu0 %v4244_v18  ;;  %v4324_v18 = vld [vmem:[%s5303_s5 + $0x2c0] ss:$28 sps:$4 sm:$0xff]   ;;  %v4330_v22 = vld [vmem:[%s5303_s5 + $0x288] ss:$28 sps:$4 sm:$0xff]   ;;  %v4333_v23 = vld [vmem:[%s5303_s5 + $0x290] ss:$28 sps:$4 sm:$0xff]  }
  0xe1   : > { %1317 = vmatpush1.bf16.msra.mxu1 %v4245_v19  ;;  %3698 = vmatprep.subr.msk.bf16.mxu0 %vm1237_vm1, %v3692_v20  ;;  %v4327_v19 = vld [vmem:[%s5303_s5 + $0x2c8] ss:$28 sps:$4 sm:$0xff]   ;;  %v4322_v20 = vld [vmem:[%s5303_s5 + $0x2bc] ss:$28 sps:$4 sm:$0xff]  }
  0xe2   : > { %3700 = vmatprep.subr.msk.bf16.mxu1 %vm1237_vm1, %v3694_v21  ;;  %v4325_v21 = vld [vmem:[%s5303_s5 + $0x2c4] ss:$28 sps:$4 sm:$0xff]   ;;  %v4371_v60 = vld [vmem:[%s5303_s5 + $0x30c] ss:$28 sps:$4 sm:$0xff]  }
  0xe3   : > { %v4366_v55 = vld [vmem:[%s5303_s5 + $0x340] ss:$28 sps:$4 sm:$0xff]  }
  0xe4   : > { %1288 = vmatpush2.bf16.msra.mxu0 %v1239_v26  ;;  %v4336_v26 = vld [vmem:[%s5303_s5 + $0x250] ss:$28 sps:$4 sm:$0xff]   ;;  %v4368_v59 = vld [vmem:[%s5303_s5 + $0x304] ss:$28 sps:$4 sm:$0xff]  }
  0xe5   : > { %1331 = vmatpush2.bf16.msra.mxu1 %v1245_v27  ;;  %1289 = vmatprep.subr.bf16.mxu0 %v4250_v24  ;;  %v4328_v24 = vld [vmem:[%s5303_s5 + $0x284] ss:$28 sps:$4 sm:$0xff]   ;;  %v4339_v27 = vld [vmem:[%s5303_s5 + $0x258] ss:$28 sps:$4 sm:$0xff]  }
  0xe6   : > { %1332 = vmatprep.subr.bf16.mxu1 %v4252_v25  ;;  %v4331_v25 = vld [vmem:[%s5303_s5 + $0x28c] ss:$28 sps:$4 sm:$0xff]  }
  0xe8   : > { %1290 = vmatpush2.bf16.msra.mxu0 %v4254_v28  ;;  %v4334_v28 = vld [vmem:[%s5303_s5 + $0x24c] ss:$28 sps:$4 sm:$0xff]  }
  0xe9   : > { %1333 = vmatpush2.bf16.msra.mxu1 %v4255_v29  ;;  %1345 = vmatprep.subr.bf16.mxu0 %v4261_v30  ;;  %v4337_v29 = vld [vmem:[%s5303_s5 + $0x254] ss:$28 sps:$4 sm:$0xff]  }
  0xea   : > { %1388 = vmatprep.subr.bf16.mxu1 %v4615_v49  ;;  %v4342_v30 = vld [vmem:[%s5303_s5 + $0x218] ss:$28 sps:$4 sm:$0xff]  }
  0xeb   : > { %1292 = vmatmul.mubr.bf16.vlgmr.msra.gmra.mxu0 %v5351_v31 }
  0xec   : > { %1335 = vmatmul.mubr.bf16.vlgmr.msra.gmra.mxu1 %v5351_v31  ;;  %1346 = vmatpush1.bf16.msra.mxu0 %v4259_v32  ;;  %v4345_v32 = vld [vmem:[%s5303_s5 + $0x220] ss:$28 sps:$4 sm:$0xff]  }
  0xed   : > { %1389 = vmatpush1.bf16.msra.mxu1 %v4262_v33  ;;  %1347 = vmatprep.subr.bf16.mxu0 %v4265_v34  ;;  %v3777_v33 = vld [vmem:[%s5303_s5 + $0x40c] sm:$0x77]  ;;  %v3778_v34 = vld [vmem:[%s5303_s5 + $0x414] sm:$0x77] }
  0xee   : > { %1390 = vmatprep.subr.bf16.mxu1 %v4615_v49  ;;  %3703 = vmatprep.mubr.msk.bf16.mxu0 %vm1233_vm0, %v5294_v48 }
  0xef   : > { %3704 = vmatprep.mubr.msk.bf16.mxu1 %vm1233_vm0, %v5294_v48 }
  0xf0   : > { %1348 = vmatpush1.bf16.msra.mxu0 %v4263_v35  ;;  %v4340_v35 = vld [vmem:[%s5303_s5 + $0x214] ss:$28 sps:$4 sm:$0xff]  }
  0xf1   : > { %1391 = vmatpush1.bf16.msra.mxu1 %v4266_v36  ;;  %1349 = vmatprep.subr.bf16.mxu0 %v4269_v37  ;;  %v4343_v36 = vld [vmem:[%s5303_s5 + $0x21c] ss:$28 sps:$4 sm:$0xff]   ;;  %v3845_v37 = vcombine.high %v3777_v33, %v3777_v33 }
  0xf2   : > { %1392 = vmatprep.subr.bf16.mxu1 %v4615_v49 }
  0xf4   : > { %1350 = vmatpush1.bf16.msra.mxu0 %v4267_v38  ;;  %v3847_v38 = vcombine.high %v3778_v34, %v3778_v34 }
  0xf5   : > { %1393 = vmatpush1.bf16.msra.mxu1 %v4270_v39  ;;  %1351 = vmatprep.subr.bf16.mxu0 %v4273_v40  ;;  %v3844_v39 = vcombine.low %v3777_v33, %v3777_v33  ;;  %v3846_v40 = vcombine.low %v3778_v34, %v3778_v34  ;;  %v4416_v33 = vld [vmem:[%s5303_s5 + $0x510] ss:$28 sps:$4 sm:$0xff]  }
  0xf6   : > { %1394 = vmatprep.subr.bf16.mxu1 %v4615_v49  ;;  %v4421_v34 = vld [vmem:[%s5303_s5 + $0x4d4] ss:$28 sps:$4 sm:$0xff]  }
  0xf8   : > { %1352 = vmatpush1.bf16.msra.mxu0 %v4271_v41  ;;  %v4352_v41 = vld [vmem:[%s5303_s5 + $0x3d8] ss:$28 sps:$4 sm:$0xff]  }
  0xf9   : > { %1395 = vmatpush1.bf16.msra.mxu1 %v4274_v42  ;;  %1353 = vmatprep.subr.bf16.mxu0 %v4277_v43  ;;  %v1849_v42 = vsel %vm1237_vm1, %v3844_v39, 0  ;;  %v1855_v43 = vsel %vm1237_vm1, %v3846_v40, 0  ;;  %v4430_v39 = vld [vmem:[%s5303_s5 + $0x4a4] ss:$28 sps:$4 sm:$0xff]   ;;  %v4425_v40 = vld [vmem:[%s5303_s5 + $0x498] ss:$28 sps:$4 sm:$0xff]  }
  0xfa   : > { %1396 = vmatprep.subr.bf16.mxu1 %v4615_v49 }
  0xfc   : > { %1354 = vmatpush1.bf16.msra.mxu0 %v4275_v44  ;;  %v4355_v44 = vld [vmem:[%s5303_s5 + $0x3e0] ss:$28 sps:$4 sm:$0xff]  }
  0xfd   : > { %1397 = vmatpush1.bf16.msra.mxu1 %v4278_v45  ;;  %1355 = vmatprep.subr.bf16.mxu0 %v4281_v46  ;;  %v4350_v45 = vld [vmem:[%s5303_s5 + $0x3d4] ss:$28 sps:$4 sm:$0xff]   ;;  %v4353_v46 = vld [vmem:[%s5303_s5 + $0x3dc] ss:$28 sps:$4 sm:$0xff]  }
  0xfe   : > { %1398 = vmatprep.subr.bf16.mxu1 %v4615_v49 }
 0x100   : > { %1356 = vmatpush1.bf16.msra.mxu0 %v4279_v47  ;;  %v4358_v47 = vld [vmem:[%s5303_s5 + $0x3b0] ss:$28 sps:$4 sm:$0xff]  }
 0x101   : > { %1399 = vmatpush1.bf16.msra.mxu1 %v4282_v50  ;;  %1357 = vmatprep.subr.bf16.mxu0 %v4285_v51  ;;  %v4356_v50 = vld [vmem:[%s5303_s5 + $0x3ac] ss:$28 sps:$4 sm:$0xff]   ;;  %v4359_v51 = vld [vmem:[%s5303_s5 + $0x3b4] ss:$28 sps:$4 sm:$0xff]  }
 0x102   : > { %1400 = vmatprep.subr.bf16.mxu1 %v4615_v49 }
 0x104   : > { %1358 = vmatpush1.bf16.msra.mxu0 %v4283_v52  ;;  %v4362_v52 = vld [vmem:[%s5303_s5 + $0x378] ss:$28 sps:$4 sm:$0xff]  }
 0x105   : > { %1401 = vmatpush1.bf16.msra.mxu1 %v4286_v53  ;;  %1359 = vmatprep.subr.bf16.mxu0 %v4289_v54  ;;  %v4360_v53 = vld [vmem:[%s5303_s5 + $0x374] ss:$28 sps:$4 sm:$0xff]   ;;  %v4363_v54 = vld [vmem:[%s5303_s5 + $0x37c] ss:$28 sps:$4 sm:$0xff]  }
 0x106   : > { %1402 = vmatprep.subr.bf16.mxu1 %v4615_v49 }
 0x108   : > { %1360 = vmatpush1.bf16.msra.mxu0 %v4287_v56  ;;  %v4364_v56 = vld [vmem:[%s5303_s5 + $0x33c] ss:$28 sps:$4 sm:$0xff]  }
 0x109   : > { %1403 = vmatpush1.bf16.msra.mxu1 %v4290_v57  ;;  %3702 = vmatprep.subr.msk.bf16.mxu0 %vm1237_vm1, %v3696_v58  ;;  %v4367_v57 = vld [vmem:[%s5303_s5 + $0x344] ss:$28 sps:$4 sm:$0xff]  }
 0x10a   : > { %1416 = vmatprep.subr.bf16.mxu1 %v4615_v49  ;;  %v4370_v58 = vld [vmem:[%s5303_s5 + $0x308] ss:$28 sps:$4 sm:$0xff]  }
 0x10c   : > { %1374 = vmatpush2.bf16.msra.mxu0 %v1251_v62  ;;  %v4375_v62 = vld [vmem:[%s5303_s5 + $0x2d4] ss:$28 sps:$4 sm:$0xff]  }
 0x10d   : > { %1417 = vmatpush2.bf16.msra.mxu1 %v1257_v63  ;;  %1375 = vmatprep.subr.bf16.mxu0 %v4296_v61  ;;  %v4372_v61 = vld [vmem:[%s5303_s5 + $0x2cc] ss:$28 sps:$4 sm:$0xff]   ;;  %v4378_v63 = vld [vmem:[%s5303_s5 + $0x298] ss:$28 sps:$4 sm:$0xff]  }
 0x10e   : > { %1418 = vmatprep.subr.bf16.mxu1 %v4615_v49 }
 0x110   : > { %1376 = vmatpush2.bf16.msra.mxu0 %v4294_v0  ;;  %v4376_v0 = vld [vmem:[%s5303_s5 + $0x294] ss:$28 sps:$4 sm:$0xff]  }
 0x111   : > { %1419 = vmatpush2.bf16.msra.mxu1 %v4297_v1  ;;  %1869 = vmatprep.subr.bf16.mxu0 %v4300_v2  ;;  %v4379_v1 = vld [vmem:[%s5303_s5 + $0x29c] ss:$28 sps:$4 sm:$0xff]  }
 0x112   : > { %1912 = vmatprep.subr.bf16.mxu1 %v4303_v3  ;;  %v4382_v2 = vld [vmem:[%s5303_s5 + $0x260] ss:$28 sps:$4 sm:$0xff]  }
 0x113   : > { %1378 = vmatmul.mubr.bf16.vlgmr.msra.gmra.mxu0 %v5351_v31  ;;  %v4380_v3 = vld [vmem:[%s5303_s5 + $0x25c] ss:$28 sps:$4 sm:$0xff]  }
 0x114   : > { %1421 = vmatmul.mubr.bf16.vlgmr.msra.gmra.mxu1 %v5351_v31  ;;  %1870 = vmatpush1.bf16.msra.mxu0 %v4298_v4  ;;  %v4383_v4 = vld [vmem:[%s5303_s5 + $0x264] ss:$28 sps:$4 sm:$0xff]  }
 0x115   : > { %1913 = vmatpush1.bf16.msra.mxu1 %v4301_v5  ;;  %1871 = vmatprep.subr.bf16.mxu0 %v4306_v6  ;;  %v4386_v5 = vld [vmem:[%s5303_s5 + $0x228] ss:$28 sps:$4 sm:$0xff]   ;;  %v3779_v6 = vld [vmem:[%s5303_s5 + $0x41c] sm:$0x77] }
 0x116   : > { %1914 = vmatprep.subr.bf16.mxu1 %v4309_v7  ;;  %3852 = vmatprep.mubr.msk.bf16.mxu0 %vm1233_vm0, %v5294_v48  ;;  %v4384_v7 = vld [vmem:[%s5303_s5 + $0x224] ss:$28 sps:$4 sm:$0xff]  }
 0x117   : > { %3854 = vmatprep.mubr.msk.bf16.mxu1 %vm1233_vm0, %v5294_v48 }
 0x118   : > { %1872 = vmatpush1.bf16.msra.mxu0 %v4304_v8  ;;  %v4387_v8 = vld [vmem:[%s5303_s5 + $0x22c] ss:$28 sps:$4 sm:$0xff]  }
 0x119   : > { %1915 = vmatpush1.bf16.msra.mxu1 %v4307_v9  ;;  %1873 = vmatprep.subr.bf16.mxu0 %v4312_v10  ;;  %v3849_v9 = vcombine.high %v3779_v6, %v3779_v6  ;;  %v3848_v10 = vcombine.low %v3779_v6, %v3779_v6  ;;  %v4460_v6 = vld [vmem:[%s5303_s5 + $0x590] ss:$28 sps:$4 sm:$0xff]  }
 0x11a   : > { %1916 = vmatprep.subr.bf16.mxu1 %v4315_v11  ;;  %v4390_v11 = vld [vmem:[%s5303_s5 + $0x424] ss:$0 sps:$4 sm:$0x77]  }
 0x11c   : > { %1874 = vmatpush1.bf16.msra.mxu0 %v4310_v12  ;;  %v1861_v12 = vsel %vm1237_vm1, %v3848_v10, 0  ;;  %v4467_v10 = vld [vmem:[%s5303_s5 + $0x51c] ss:$28 sps:$4 sm:$0xff]  }
 0x11d   : > { %1917 = vmatpush1.bf16.msra.mxu1 %v4313_v13  ;;  %1875 = vmatprep.subr.bf16.mxu0 %v4318_v14  ;;  %v1867_v13 = vsel %vm1237_vm1, %v4390_v11, 0  ;;  %v4393_v14 = vld [vmem:[%s5303_s5 + $0x3e8] ss:$28 sps:$4 sm:$0xff]   ;;  %v4465_v11 = vld [vmem:[%s5303_s5 + $0x518] ss:$28 sps:$4 sm:$0xff]  }
 0x11e   : > { %1918 = vmatprep.subr.bf16.mxu1 %v4321_v15  ;;  %v4391_v15 = vld [vmem:[%s5303_s5 + $0x3e4] ss:$28 sps:$4 sm:$0xff]  }
 0x120   : > { %1876 = vmatpush1.bf16.msra.mxu0 %v4316_v16  ;;  %v4394_v16 = vld [vmem:[%s5303_s5 + $0x3ec] ss:$28 sps:$4 sm:$0xff]  }
 0x121   : > { %1919 = vmatpush1.bf16.msra.mxu1 %v4319_v17  ;;  %1877 = vmatprep.subr.bf16.mxu0 %v4324_v18  ;;  %v4397_v17 = vld [vmem:[%s5303_s5 + $0x5b4] ss:$28 sps:$4 sm:$0xff]   ;;  %v4400_v18 = vld [vmem:[%s5303_s5 + $0x5bc] ss:$28 sps:$4 sm:$0xff]  }
 0x122   : > { %1920 = vmatprep.subr.bf16.mxu1 %v4327_v19  ;;  %v4395_v19 = vld [vmem:[%s5303_s5 + $0x5b0] ss:$28 sps:$4 sm:$0xff]  }
 0x124   : > { %1878 = vmatpush1.bf16.msra.mxu0 %v4322_v20  ;;  %v4398_v20 = vld [vmem:[%s5303_s5 + $0x5b8] ss:$28 sps:$4 sm:$0xff]  }
 0x125   : > { %1921 = vmatpush1.bf16.msra.mxu1 %v4325_v21  ;;  %1879 = vmatprep.subr.bf16.mxu0 %v4330_v22  ;;  %v4403_v21 = vld [vmem:[%s5303_s5 + $0x57c] ss:$28 sps:$4 sm:$0xff]   ;;  %v4406_v22 = vld [vmem:[%s5303_s5 + $0x584] ss:$28 sps:$4 sm:$0xff]  }
 0x126   : > { %1922 = vmatprep.subr.bf16.mxu1 %v4333_v23  ;;  %v4401_v23 = vld [vmem:[%s5303_s5 + $0x578] ss:$28 sps:$4 sm:$0xff]  }
 0x128   : > { %1880 = vmatpush1.bf16.msra.mxu0 %v4328_v24  ;;  %v4404_v24 = vld [vmem:[%s5303_s5 + $0x580] ss:$28 sps:$4 sm:$0xff]  }
 0x129   : > { %1923 = vmatpush1.bf16.msra.mxu1 %v4331_v25  ;;  %1881 = vmatprep.subr.bf16.mxu0 %v4336_v26  ;;  %v4409_v25 = vld [vmem:[%s5303_s5 + $0x544] ss:$28 sps:$4 sm:$0xff]   ;;  %v4412_v26 = vld [vmem:[%s5303_s5 + $0x54c] ss:$28 sps:$4 sm:$0xff]  }
 0x12a   : > { %1924 = vmatprep.subr.bf16.mxu1 %v4339_v27  ;;  %v5511_v27 = vld [vmem:[%s5833_s0 + $0x4] ss:$8 sps:$4 sm:$0xff]  }
 0x12c   : > { %1882 = vmatpush1.bf16.msra.mxu0 %v4334_v28  ;;  %v4410_v28 = vld [vmem:[%s5303_s5 + $0x548] ss:$28 sps:$4 sm:$0xff]  }
 0x12d   : > { %1925 = vmatpush1.bf16.msra.mxu1 %v4337_v29  ;;  %1883 = vmatprep.subr.bf16.mxu0 %v4342_v30  ;;  %v4415_v29 = vld [vmem:[%s5303_s5 + $0x50c] ss:$28 sps:$4 sm:$0xff]   ;;  %v4418_v30 = vld [vmem:[%s5303_s5 + $0x514] ss:$28 sps:$4 sm:$0xff]  }
 0x12e   : > { %1926 = vmatprep.subr.bf16.mxu1 %v4345_v32  ;;  %v4413_v32 = vld [vmem:[%s5303_s5 + $0x508] ss:$28 sps:$4 sm:$0xff]  }
 0x130   : > { %1884 = vmatpush1.bf16.msra.mxu0 %v4340_v35  ;;  %v4424_v35 = vld [vmem:[%s5303_s5 + $0x4dc] ss:$28 sps:$4 sm:$0xff]  }
 0x131   : > { %1927 = vmatpush1.bf16.msra.mxu1 %v4343_v36  ;;  %3851 = vmatprep.subr.msk.bf16.mxu0 %vm1237_vm1, %v3845_v37  ;;  %v4419_v36 = vld [vmem:[%s5303_s5 + $0x4d0] ss:$28 sps:$4 sm:$0xff]   ;;  %v4422_v37 = vld [vmem:[%s5303_s5 + $0x4d8] ss:$28 sps:$4 sm:$0xff]  }
 0x132   : > { %3853 = vmatprep.subr.msk.bf16.mxu1 %vm1237_vm1, %v3847_v38  ;;  %v4427_v38 = vld [vmem:[%s5303_s5 + $0x49c] ss:$28 sps:$4 sm:$0xff]  }
 0x134   : > { %1898 = vmatpush2.bf16.msra.mxu0 %v1849_v42  ;;  %v4433_v42 = vld [vmem:[%s5303_s5 + $0x464] ss:$28 sps:$4 sm:$0xff]  }
 0x135   : > { %1941 = vmatpush2.bf16.msra.mxu1 %v1855_v43  ;;  %1899 = vmatprep.subr.bf16.mxu0 %v4352_v41  ;;  %v4428_v41 = vld [vmem:[%s5303_s5 + $0x4a0] ss:$28 sps:$4 sm:$0xff]   ;;  %v4436_v43 = vld [vmem:[%s5303_s5 + $0x46c] ss:$28 sps:$4 sm:$0xff]  }
 0x136   : > { %1942 = vmatprep.subr.bf16.mxu1 %v4355_v44  ;;  %v4431_v44 = vld [vmem:[%s5303_s5 + $0x460] ss:$28 sps:$4 sm:$0xff]  }
 0x138   : > { %1900 = vmatpush2.bf16.msra.mxu0 %v4350_v45  ;;  %v4434_v45 = vld [vmem:[%s5303_s5 + $0x468] ss:$28 sps:$4 sm:$0xff]  }
 0x139   : > { %1943 = vmatpush2.bf16.msra.mxu1 %v4353_v46  ;;  %1955 = vmatprep.subr.bf16.mxu0 %v4358_v47  ;;  %v4439_v46 = vld [vmem:[%s5303_s5 + $0x42c] ss:$28 sps:$4 sm:$0xff]   ;;  %v4442_v47 = vld [vmem:[%s5303_s5 + $0x434] ss:$28 sps:$4 sm:$0xff]  }
 0x13a   : > { %1998 = vmatprep.subr.bf16.mxu1 %v4615_v49 }
 0x13b   : > { %1902 = vmatmul.mubr.bf16.vlgmr.msra.gmra.mxu0 %v5351_v31 }
 0x13c   : > { %1945 = vmatmul.mubr.bf16.vlgmr.msra.gmra.mxu1 %v5351_v31  ;;  %1956 = vmatpush1.bf16.msra.mxu0 %v4356_v50  ;;  %v3930_v50 = vld [vmem:[%s5303_s5 + $0x620] sm:$0x77] }
 0x13d   : > { %1999 = vmatpush1.bf16.msra.mxu1 %v4359_v51  ;;  %1957 = vmatprep.subr.bf16.mxu0 %v4362_v52  ;;  %v3931_v51 = vld [vmem:[%s5303_s5 + $0x628] sm:$0x77] }
 0x13e   : > { %2000 = vmatprep.subr.bf16.mxu1 %v4615_v49  ;;  %3856 = vmatprep.mubr.msk.bf16.mxu0 %vm1233_vm0, %v5294_v48  ;;  %v4437_v52 = vld [vmem:[%s5303_s5 + $0x428] ss:$28 sps:$4 sm:$0xff]  }
 0x13f   : > { %3857 = vmatprep.mubr.msk.bf16.mxu1 %vm1233_vm0, %v5294_v48  ;;  %v4374_v48 = vld [vmem:[%s5303_s5 + $0x2d0] ss:$28 sps:$4 sm:$0xff]  }
 0x140   : > { %1958 = vmatpush1.bf16.msra.mxu0 %v4360_v53  ;;  %v4440_v53 = vld [vmem:[%s5303_s5 + $0x430] ss:$28 sps:$4 sm:$0xff]  }
 0x141   : > { %2001 = vmatpush1.bf16.msra.mxu1 %v4363_v54  ;;  %1959 = vmatprep.subr.bf16.mxu0 %v4366_v55  ;;  %v3998_v54 = vcombine.high %v3930_v50, %v3930_v50  ;;  %v4000_v55 = vcombine.high %v3931_v51, %v3931_v51 }
 0x142   : > { %2002 = vmatprep.subr.bf16.mxu1 %v4615_v49 }
 0x144   : > { %1960 = vmatpush1.bf16.msra.mxu0 %v4364_v56  ;;  %v3997_v56 = vcombine.low %v3930_v50, %v3930_v50  ;;  %v4512_v50 = vld [vmem:[%s5303_s5 + $0x720] ss:$28 sps:$4 sm:$0xff]  }
 0x145   : > { %2003 = vmatpush1.bf16.msra.mxu1 %v4367_v57  ;;  %1961 = vmatprep.subr.bf16.mxu0 %v4370_v58  ;;  %v3999_v57 = vcombine.low %v3931_v51, %v3931_v51  ;;  %v4515_v51 = vld [vmem:[%s5303_s5 + $0x728] ss:$28 sps:$4 sm:$0xff]  }
 0x146   : > { %2004 = vmatprep.subr.bf16.mxu1 %v4615_v49  ;;  %v2473_v58 = vsel %vm1237_vm1, %v3997_v56, 0  ;;  %v4516_v56 = vld [vmem:[%s5303_s5 + $0x6e4] ss:$28 sps:$4 sm:$0xff]  }
 0x148   : > { %1962 = vmatpush1.bf16.msra.mxu0 %v4368_v59  ;;  %v2479_v59 = vsel %vm1237_vm1, %v3999_v57, 0  ;;  %v4519_v57 = vld [vmem:[%s5303_s5 + $0x6ec] ss:$28 sps:$4 sm:$0xff]  }
 0x149   : > { %2005 = vmatpush1.bf16.msra.mxu1 %v4371_v60  ;;  %1963 = vmatprep.subr.bf16.mxu0 %v4374_v48  ;;  %v4449_v60 = vld [vmem:[%s5303_s5 + $0x5ec] ss:$28 sps:$4 sm:$0xff]   ;;  %v4452_v48 = vld [vmem:[%s5303_s5 + $0x5f4] ss:$28 sps:$4 sm:$0xff]  }
 0x14a   : > { %2006 = vmatprep.subr.bf16.mxu1 %v4615_v49 }
 0x14c   : > { %1964 = vmatpush1.bf16.msra.mxu0 %v4372_v61  ;;  %v3301_v61 = vld [vmem:[%s5834_s1] sm:$0xff] }
 0x14d   : > { %2007 = vmatpush1.bf16.msra.mxu1 %v4375_v62  ;;  %1965 = vmatprep.subr.bf16.mxu0 %v4378_v63  ;;  %v4447_v62 = vld [vmem:[%s5303_s5 + $0x5e8] ss:$28 sps:$4 sm:$0xff]   ;;  %v4450_v63 = vld [vmem:[%s5303_s5 + $0x5f0] ss:$28 sps:$4 sm:$0xff]  }
 0x14e   : > { %2008 = vmatprep.subr.bf16.mxu1 %v4615_v49  ;;  %3305 = vperm.xlu0 %4197, %v3301_v61  }
 0x150   : > { %1966 = vmatpush1.bf16.msra.mxu0 %v4376_v0  ;;  %v4455_v0 = vld [vmem:[%s5303_s5 + $0x5c4] ss:$28 sps:$4 sm:$0xff]  }
 0x151   : > { %2009 = vmatpush1.bf16.msra.mxu1 %v4379_v1  ;;  %1967 = vmatprep.subr.bf16.mxu0 %v4382_v2  ;;  %v4453_v1 = vld [vmem:[%s5303_s5 + $0x5c0] ss:$28 sps:$4 sm:$0xff]   ;;  %v4456_v2 = vld [vmem:[%s5303_s5 + $0x5c8] ss:$28 sps:$4 sm:$0xff]  }
 0x152   : > { %2010 = vmatprep.subr.bf16.mxu1 %v4615_v49 }
 0x154   : > { %1968 = vmatpush1.bf16.msra.mxu0 %v4380_v3  ;;  %v4459_v3 = vld [vmem:[%s5303_s5 + $0x58c] ss:$28 sps:$4 sm:$0xff]  }
 0x155   : > { %2011 = vmatpush1.bf16.msra.mxu1 %v4383_v4  ;;  %1969 = vmatprep.subr.bf16.mxu0 %v4386_v5  ;;  %v5560_v4 = vld [vmem:[%s5833_s0] ss:$8 sps:$4 sm:$0xff]  }
 0x156   : > { %2012 = vmatprep.subr.bf16.mxu1 %v4615_v49  ;;  %v4457_v5 = vld [vmem:[%s5303_s5 + $0x588] ss:$28 sps:$4 sm:$0xff]  }
 0x158   : > { %1970 = vmatpush1.bf16.msra.mxu0 %v4384_v7  ;;  %v4463_v7 = vld [vmem:[%s5303_s5 + $0x554] ss:$28 sps:$4 sm:$0xff]  }
 0x159   : > { %2013 = vmatpush1.bf16.msra.mxu1 %v4387_v8  ;;  %3855 = vmatprep.subr.msk.bf16.mxu0 %vm1237_vm1, %v3849_v9  ;;  %v4461_v8 = vld [vmem:[%s5303_s5 + $0x550] ss:$28 sps:$4 sm:$0xff]   ;;  %v4464_v9 = vld [vmem:[%s5303_s5 + $0x558] ss:$28 sps:$4 sm:$0xff]  }
 0x15a   : > { %2026 = vmatprep.subr.bf16.mxu1 %v4615_v49 }
 0x15c   : > { %1984 = vmatpush2.bf16.msra.mxu0 %v1861_v12  ;;  %v4468_v12 = vld [vmem:[%s5303_s5 + $0x520] ss:$28 sps:$4 sm:$0xff]  }
 0x15d   : > { %2027 = vmatpush2.bf16.msra.mxu1 %v1867_v13  ;;  %1985 = vmatprep.subr.bf16.mxu0 %v4393_v14  ;;  %v4471_v13 = vld [vmem:[%s5303_s5 + $0x4e4] ss:$28 sps:$4 sm:$0xff]  }
 0x15e   : > { %2028 = vmatprep.subr.bf16.mxu1 %v4615_v49  ;;  %v4469_v14 = vld [vmem:[%s5303_s5 + $0x4e0] ss:$28 sps:$4 sm:$0xff]  }
 0x160   : > { %1986 = vmatpush2.bf16.msra.mxu0 %v4391_v15  ;;  %v4472_v15 = vld [vmem:[%s5303_s5 + $0x4e8] ss:$28 sps:$4 sm:$0xff]  }
 0x161   : > { %2029 = vmatpush2.bf16.msra.mxu1 %v4394_v16  ;;  %2493 = vmatprep.subr.bf16.mxu0 %v4397_v17  ;;  %v4475_v16 = vld [vmem:[%s5303_s5 + $0x4ac] ss:$28 sps:$4 sm:$0xff]  }
 0x162   : > { %2536 = vmatprep.subr.bf16.mxu1 %v4400_v18  ;;  %v4473_v17 = vld [vmem:[%s5303_s5 + $0x4a8] ss:$28 sps:$4 sm:$0xff]   ;;  %v4476_v18 = vld [vmem:[%s5303_s5 + $0x4b0] ss:$28 sps:$4 sm:$0xff]  }
 0x163   : > { %1988 = vmatmul.mubr.bf16.vlgmr.msra.gmra.mxu0 %v5351_v31 }
 0x164   : > { %2031 = vmatmul.mubr.bf16.vlgmr.msra.gmra.mxu1 %v5351_v31  ;;  %2494 = vmatpush1.bf16.msra.mxu0 %v4395_v19  ;;  %v4407_v31 = vld [vmem:[%s5303_s5 + $0x540] ss:$28 sps:$4 sm:$0xff]   ;;  %v4479_v19 = vld [vmem:[%s5303_s5 + $0x474] ss:$28 sps:$4 sm:$0xff]  }
 0x165   : > { %2537 = vmatpush1.bf16.msra.mxu1 %v4398_v20  ;;  %2495 = vmatprep.subr.bf16.mxu0 %v4403_v21  ;;  %v4477_v20 = vld [vmem:[%s5303_s5 + $0x470] ss:$28 sps:$4 sm:$0xff]   ;;  %v4480_v21 = vld [vmem:[%s5303_s5 + $0x478] ss:$28 sps:$4 sm:$0xff]  }
 0x166   : > { %2538 = vmatprep.subr.bf16.mxu1 %v4406_v22  ;;  %4005 = vmatprep.mubr.msk.bf16.mxu0 %vm1233_vm0, %v5511_v27  ;;  %v4483_v22 = vld [vmem:[%s5303_s5 + $0x43c] ss:$28 sps:$4 sm:$0xff]  }
 0x167   : > { %4007 = vmatprep.mubr.msk.bf16.mxu1 %vm1233_vm0, %v5511_v27 }
 0x168   : > { %2496 = vmatpush1.bf16.msra.mxu0 %v4401_v23  ;;  %v3932_v23 = vld [vmem:[%s5303_s5 + $0x630] sm:$0x77] }
 0x169   : > { %2539 = vmatpush1.bf16.msra.mxu1 %v4404_v24  ;;  %2497 = vmatprep.subr.bf16.mxu0 %v4409_v25  ;;  %v4481_v24 = vld [vmem:[%s5303_s5 + $0x438] ss:$28 sps:$4 sm:$0xff]   ;;  %v4484_v25 = vld [vmem:[%s5303_s5 + $0x440] ss:$28 sps:$4 sm:$0xff]  }
 0x16a   : > { %2540 = vmatprep.subr.bf16.mxu1 %v4412_v26  ;;  %v4002_v26 = vcombine.high %v3932_v23, %v3932_v23 }
 0x16c   : > { %2498 = vmatpush1.bf16.msra.mxu0 %v4407_v31  ;;  %v4001_v31 = vcombine.low %v3932_v23, %v3932_v23 }
 0x16d   : > { %2541 = vmatpush1.bf16.msra.mxu1 %v4410_v28  ;;  %2499 = vmatprep.subr.bf16.mxu0 %v4415_v29  ;;  %v4487_v28 = vld [vmem:[%s5303_s5 + $0x638] ss:$0 sps:$4 sm:$0x77]  }
 0x16e   : > { %2542 = vmatprep.subr.bf16.mxu1 %v4418_v30  ;;  %v3302_v29 = vld [vmem:[%s5834_s1 + $0x8] sm:$0xff]  ;;  %v2485_v30 = vsel %vm1237_vm1, %v4001_v31, 0 }
 0x16f   : > { %3310 = vperm.xlu0 %4197, %v3302_v29   ;;  %v4553_v31 = vld [vmem:[%s5303_s5 + $0x7dc] ss:$28 sps:$4 sm:$0xff]  }
 0x170   : > { %2500 = vmatpush1.bf16.msra.mxu0 %v4413_v32  ;;  %v2491_v32 = vsel %vm1237_vm1, %v4487_v28, 0  ;;  %v4556_v29 = vld [vmem:[%s5303_s5 + $0x7a0] ss:$28 sps:$4 sm:$0xff]  }
 0x171   : > { %2543 = vmatpush1.bf16.msra.mxu1 %v4416_v33  ;;  %2501 = vmatprep.subr.bf16.mxu0 %v4421_v34  ;;  %v4490_v33 = vld [vmem:[%s5303_s5 + $0x5fc] ss:$28 sps:$4 sm:$0xff]  }
 0x172   : > { %2544 = vmatprep.subr.bf16.mxu1 %v4424_v35  ;;  %v4488_v34 = vld [vmem:[%s5303_s5 + $0x5f8] ss:$28 sps:$4 sm:$0xff]   ;;  %v4491_v35 = vld [vmem:[%s5303_s5 + $0x600] ss:$28 sps:$4 sm:$0xff]  }
 0x174   : > { %2502 = vmatpush1.bf16.msra.mxu0 %v4419_v36  ;;  %v4494_v36 = vld [vmem:[%s5303_s5 + $0x7c8] ss:$28 sps:$4 sm:$0xff]  }
 0x175   : > { %2545 = vmatpush1.bf16.msra.mxu1 %v4422_v37  ;;  %2503 = vmatprep.subr.bf16.mxu0 %v4427_v38  ;;  %v4497_v37 = vld [vmem:[%s5303_s5 + $0x7d0] ss:$28 sps:$4 sm:$0xff]   ;;  %v4492_v38 = vld [vmem:[%s5303_s5 + $0x7c4] ss:$28 sps:$4 sm:$0xff]  }
 0x176   : > { %2546 = vmatprep.subr.bf16.mxu1 %v4430_v39  ;;  %v4495_v39 = vld [vmem:[%s5303_s5 + $0x7cc] ss:$28 sps:$4 sm:$0xff]  }
 0x178   : > { %2504 = vmatpush1.bf16.msra.mxu0 %v4425_v40  ;;  %v4500_v40 = vld [vmem:[%s5303_s5 + $0x790] ss:$28 sps:$4 sm:$0xff]  }
 0x179   : > { %2547 = vmatpush1.bf16.msra.mxu1 %v4428_v41  ;;  %2505 = vmatprep.subr.bf16.mxu0 %v4433_v42  ;;  %v4503_v41 = vld [vmem:[%s5303_s5 + $0x798] ss:$28 sps:$4 sm:$0xff]   ;;  %v4498_v42 = vld [vmem:[%s5303_s5 + $0x78c] ss:$28 sps:$4 sm:$0xff]  }
 0x17a   : > { %2548 = vmatprep.subr.bf16.mxu1 %v4436_v43  ;;  %v4501_v43 = vld [vmem:[%s5303_s5 + $0x794] ss:$28 sps:$4 sm:$0xff]  }
 0x17c   : > { %2506 = vmatpush1.bf16.msra.mxu0 %v4431_v44  ;;  %v4506_v44 = vld [vmem:[%s5303_s5 + $0x758] ss:$28 sps:$4 sm:$0xff]  }
 0x17d   : > { %2549 = vmatpush1.bf16.msra.mxu1 %v4434_v45  ;;  %2507 = vmatprep.subr.bf16.mxu0 %v4439_v46  ;;  %v4509_v45 = vld [vmem:[%s5303_s5 + $0x760] ss:$28 sps:$4 sm:$0xff]   ;;  %v4504_v46 = vld [vmem:[%s5303_s5 + $0x754] ss:$28 sps:$4 sm:$0xff]  }
 0x17e   : > { %2550 = vmatprep.subr.bf16.mxu1 %v4442_v47  ;;  %v4507_v47 = vld [vmem:[%s5303_s5 + $0x75c] ss:$28 sps:$4 sm:$0xff]  }
 0x180   : > { %2508 = vmatpush1.bf16.msra.mxu0 %v4437_v52  ;;  %v4510_v52 = vld [vmem:[%s5303_s5 + $0x71c] ss:$28 sps:$4 sm:$0xff]  }
 0x181   : > { %2551 = vmatpush1.bf16.msra.mxu1 %v4440_v53  ;;  %4004 = vmatprep.subr.msk.bf16.mxu0 %vm1237_vm1, %v3998_v54  ;;  %v4513_v53 = vld [vmem:[%s5303_s5 + $0x724] ss:$28 sps:$4 sm:$0xff]  }
 0x182   : > { %4006 = vmatprep.subr.msk.bf16.mxu1 %vm1237_vm1, %v4000_v55  ;;  %v4518_v54 = vld [vmem:[%s5303_s5 + $0x6e8] ss:$28 sps:$4 sm:$0xff]   ;;  %v4521_v55 = vld [vmem:[%s5303_s5 + $0x6f0] ss:$28 sps:$4 sm:$0xff]  }
 0x184   : > { %2522 = vmatpush2.bf16.msra.mxu0 %v2473_v58  ;;  %v4524_v58 = vld [vmem:[%s5303_s5 + $0x6b0] ss:$28 sps:$4 sm:$0xff]  }
 0x185   : > { %2565 = vmatpush2.bf16.msra.mxu1 %v2479_v59  ;;  %2523 = vmatprep.subr.bf16.mxu0 %v4449_v60  ;;  %v4527_v59 = vld [vmem:[%s5303_s5 + $0x6b8] ss:$28 sps:$4 sm:$0xff]   ;;  %v4522_v60 = vld [vmem:[%s5303_s5 + $0x6ac] ss:$28 sps:$4 sm:$0xff]  }
 0x186   : > { %2566 = vmatprep.subr.bf16.mxu1 %v4452_v48  ;;  %v4525_v48 = vld [vmem:[%s5303_s5 + $0x6b4] ss:$28 sps:$4 sm:$0xff]  }
 0x188   : > { %2524 = vmatpush2.bf16.msra.mxu0 %v4447_v62  ;;  %v4530_v62 = vld [vmem:[%s5303_s5 + $0x678] ss:$28 sps:$4 sm:$0xff]  }
 0x189   : > { %2567 = vmatpush2.bf16.msra.mxu1 %v4450_v63  ;;  %2579 = vmatprep.subr.bf16.mxu0 %v4455_v0  ;;  %v4533_v63 = vld [vmem:[%s5303_s5 + $0x680] ss:$28 sps:$4 sm:$0xff]   ;;  %v4528_v0 = vld [vmem:[%s5303_s5 + $0x674] ss:$28 sps:$4 sm:$0xff]  }
 0x18a   : > { %2622 = vmatprep.subr.bf16.mxu1 %v4615_v49 }
 0x18b   : > { %2526 = vmatmul.mubr.bf16.vlgmr.msra.gmra.mxu0 %v5560_v4 }
 0x18c   : > { %2569 = vmatmul.mubr.bf16.vlgmr.msra.gmra.mxu1 %v5560_v4  ;;  %2580 = vmatpush1.bf16.msra.mxu0 %v4453_v1  ;;  %v4531_v1 = vld [vmem:[%s5303_s5 + $0x67c] ss:$28 sps:$4 sm:$0xff]  }
 0x18d   : > { %2623 = vmatpush1.bf16.msra.mxu1 %v4456_v2  ;;  %2581 = vmatprep.subr.bf16.mxu0 %v4459_v3  ;;  %v4536_v3 = vld [vmem:[%s5303_s5 + $0x640] ss:$28 sps:$4 sm:$0xff]  }
 0x18e   : > { %2624 = vmatprep.subr.bf16.mxu1 %v4615_v49  ;;  %4009 = vmatprep.mubr.msk.bf16.mxu0 %vm1233_vm0, %v5511_v27 }
 0x18f   : > { %4010 = vmatprep.mubr.msk.bf16.mxu1 %vm1233_vm0, %v5511_v27 }
 0x190   : > { %2582 = vmatpush1.bf16.msra.mxu0 %v4457_v5  ;;  %v4539_v5 = vld [vmem:[%s5303_s5 + $0x648] ss:$28 sps:$4 sm:$0xff]  }
 0x191   : > { %2625 = vmatpush1.bf16.msra.mxu1 %v4460_v6  ;;  %2583 = vmatprep.subr.bf16.mxu0 %v4463_v7  ;;  %v4083_v6 = vld [vmem:[%s5303_s5 + $0x834] sm:$0x77]  ;;  %v4084_v7 = vld [vmem:[%s5303_s5 + $0x83c] sm:$0x77] }
 0x192   : > { %2626 = vmatprep.subr.bf16.mxu1 %v4615_v49 }
 0x194   : > { %2584 = vmatpush1.bf16.msra.mxu0 %v4461_v8  ;;  %v4534_v8 = vld [vmem:[%s5303_s5 + $0x63c] ss:$28 sps:$4 sm:$0xff]  }
 0x195   : > { %2627 = vmatpush1.bf16.msra.mxu1 %v4464_v9  ;;  %2585 = vmatprep.subr.bf16.mxu0 %v4467_v10  ;;  %v4537_v9 = vld [vmem:[%s5303_s5 + $0x644] ss:$28 sps:$4 sm:$0xff]   ;;  %v4151_v10 = vcombine.high %v4083_v6, %v4083_v6 }
 0x196   : > { %2628 = vmatprep.subr.bf16.mxu1 %v4615_v49 }
 0x198   : > { %2586 = vmatpush1.bf16.msra.mxu0 %v4465_v11 }
 0x199   : > { %2629 = vmatpush1.bf16.msra.mxu1 %v4468_v12  ;;  %2587 = vmatprep.subr.bf16.mxu0 %v4471_v13  ;;  %v4153_v12 = vcombine.high %v4084_v7, %v4084_v7  ;;  %v4150_v13 = vcombine.low %v4083_v6, %v4083_v6 }
 0x19a   : > { %2630 = vmatprep.subr.bf16.mxu1 %v4615_v49 }
 0x19c   : > { %2588 = vmatpush1.bf16.msra.mxu0 %v4469_v14  ;;  %v4152_v14 = vcombine.low %v4084_v7, %v4084_v7 }
 0x19d   : > { %2631 = vmatpush1.bf16.msra.mxu1 %v4472_v15  ;;  %2589 = vmatprep.subr.bf16.mxu0 %v4475_v16  ;;  %v3097_v16 = vsel %vm1237_vm1, %v4150_v13, 0 }
 0x19e   : > { %2632 = vmatprep.subr.bf16.mxu1 %v4615_v49 }
 0x1a0   : > { %2590 = vmatpush1.bf16.msra.mxu0 %v4473_v17  ;;  %v3103_v17 = vsel %vm1237_vm1, %v4152_v14, 0 }
 0x1a1   : > { %2633 = vmatpush1.bf16.msra.mxu1 %v4476_v18  ;;  %2591 = vmatprep.subr.bf16.mxu0 %v4479_v19  ;;  %v4546_v18 = vld [vmem:[%s5303_s5 + $0x800] ss:$28 sps:$4 sm:$0xff]   ;;  %v4549_v19 = vld [vmem:[%s5303_s5 + $0x808] ss:$28 sps:$4 sm:$0xff]  }
 0x1a2   : > { %2634 = vmatprep.subr.bf16.mxu1 %v4615_v49 }
 0x1a4   : > { %2592 = vmatpush1.bf16.msra.mxu0 %v4477_v20 }
 0x1a5   : > { %2635 = vmatpush1.bf16.msra.mxu1 %v4480_v21  ;;  %2593 = vmatprep.subr.bf16.mxu0 %v4483_v22  ;;  %v4544_v21 = vld [vmem:[%s5303_s5 + $0x7fc] ss:$28 sps:$4 sm:$0xff]   ;;  %v4547_v22 = vld [vmem:[%s5303_s5 + $0x804] ss:$28 sps:$4 sm:$0xff]  }
 0x1a6   : > { %2636 = vmatprep.subr.bf16.mxu1 %v4615_v49 }
 0x1a8   : > { %2594 = vmatpush1.bf16.msra.mxu0 %v4481_v24  ;;  %v4552_v24 = vld [vmem:[%s5303_s5 + $0x7d8] ss:$28 sps:$4 sm:$0xff]  }
 0x1a9   : > { %2637 = vmatpush1.bf16.msra.mxu1 %v4484_v25  ;;  %4008 = vmatprep.subr.msk.bf16.mxu0 %vm1237_vm1, %v4002_v26  ;;  %v4550_v26 = vld [vmem:[%s5303_s5 + $0x7d4] ss:$28 sps:$4 sm:$0xff]  }
 0x1aa   : > { %2650 = vmatprep.subr.bf16.mxu1 %v4615_v49 }
 0x1ac   : > { %2608 = vmatpush2.bf16.msra.mxu0 %v2485_v30  ;;  %v5638_v61 = vpop.f32.mrf.mxu1  ;;  %v4554_v30 = vld [vmem:[%s5303_s5 + $0x79c] ss:$28 sps:$4 sm:$0xff]  }
 0x1ad   : > { %2651 = vmatpush2.bf16.msra.mxu1 %v2491_v32  ;;  %2609 = vmatprep.subr.bf16.mxu0 %v4490_v33  ;;  %v4557_v32 = vld [vmem:[%s5303_s5 + $0x7a4] ss:$28 sps:$4 sm:$0xff]  }
 0x1ae   : > { %2652 = vmatprep.subr.bf16.mxu1 %v4615_v49  ;;  %v5644_v2 = vpop.f32.mrf.mxu1  ;;  %v4560_v33 = vld [vmem:[%s5303_s5 + $0x768] ss:$28 sps:$4 sm:$0xff]  }
 0x1b0   : > { %2610 = vmatpush2.bf16.msra.mxu0 %v4488_v34  ;;  %v5652_v11 = vpop.f32.mrf.mxu1  ;;  %v4558_v34 = vld [vmem:[%s5303_s5 + $0x764] ss:$28 sps:$4 sm:$0xff]  }
 0x1b1   : > { %2653 = vmatpush2.bf16.msra.mxu1 %v4491_v35  ;;  %3117 = vmatprep.subr.bf16.mxu0 %v4494_v36  ;;  %v4561_v35 = vld [vmem:[%s5303_s5 + $0x76c] ss:$28 sps:$4 sm:$0xff]  }
 0x1b2   : > { %3160 = vmatprep.subr.bf16.mxu1 %v4497_v37  ;;  %v5654_v15 = vpop.f32.mrf.mxu1  ;;  %v4564_v36 = vld [vmem:[%s5303_s5 + $0x730] ss:$28 sps:$4 sm:$0xff]  }
 0x1b3   : > { %2612 = vmatmul.mubr.bf16.vlgmr.msra.gmra.mxu0 %v5560_v4  ;;  %v4562_v37 = vld [vmem:[%s5303_s5 + $0x72c] ss:$28 sps:$4 sm:$0xff]  }
 0x1b4   : > { %2655 = vmatmul.mubr.bf16.vlgmr.msra.gmra.mxu1 %v5560_v4  ;;  %3118 = vmatpush1.bf16.msra.mxu0 %v4492_v38  ;;  %v4565_v38 = vld [vmem:[%s5303_s5 + $0x734] ss:$28 sps:$4 sm:$0xff]  }
 0x1b5   : > { %3161 = vmatpush1.bf16.msra.mxu1 %v4495_v39  ;;  %3119 = vmatprep.subr.bf16.mxu0 %v4500_v40  ;;  %v4566_v39 = vld [vmem:[%s5303_s5 + $0x6f4] ss:$28 sps:$4 sm:$0xff]   ;;  %v4569_v40 = vld [vmem:[%s5303_s5 + $0x6fc] ss:$28 sps:$4 sm:$0xff]  }
 0x1b6   : > { %3162 = vmatprep.subr.bf16.mxu1 %v4503_v41  ;;  %4158 = vmatprep.mubr.msk.bf16.mxu0 %vm1233_vm0, %v5511_v27  ;;  %v4572_v41 = vld [vmem:[%s5303_s5 + $0x6c0] ss:$28 sps:$4 sm:$0xff]  }
 0x1b7   : > { %4160 = vmatprep.mubr.msk.bf16.mxu1 %vm1233_vm0, %v5511_v27 }
 0x1b8   : > { %3120 = vmatpush1.bf16.msra.mxu0 %v4498_v42  ;;  %v4570_v42 = vld [vmem:[%s5303_s5 + $0x6bc] ss:$28 sps:$4 sm:$0xff]  }
 0x1b9   : > { %3163 = vmatpush1.bf16.msra.mxu1 %v4501_v43  ;;  %3121 = vmatprep.subr.bf16.mxu0 %v4506_v44  ;;  %v4573_v43 = vld [vmem:[%s5303_s5 + $0x6c4] ss:$28 sps:$4 sm:$0xff]  }
 0x1ba   : > { %3164 = vmatprep.subr.bf16.mxu1 %v4509_v45  ;;  %v4576_v44 = vld [vmem:[%s5303_s5 + $0x688] ss:$28 sps:$4 sm:$0xff]  }
 0x1bb   : > { %v4574_v45 = vld [vmem:[%s5303_s5 + $0x684] ss:$28 sps:$4 sm:$0xff]  }
 0x1bc   : > { %3122 = vmatpush1.bf16.msra.mxu0 %v4504_v46  ;;  %v4577_v46 = vld [vmem:[%s5303_s5 + $0x68c] ss:$28 sps:$4 sm:$0xff]  }
 0x1bd   : > { %3165 = vmatpush1.bf16.msra.mxu1 %v4507_v47  ;;  %3123 = vmatprep.subr.bf16.mxu0 %v4512_v50  ;;  %v4580_v47 = vld [vmem:[%s5303_s5 + $0x650] ss:$28 sps:$4 sm:$0xff]   ;;  %v4085_v50 = vld [vmem:[%s5303_s5 + $0x844] sm:$0x77] }
 0x1be   : > { %3166 = vmatprep.subr.bf16.mxu1 %v4515_v51  ;;  %v4578_v51 = vld [vmem:[%s5303_s5 + $0x64c] ss:$28 sps:$4 sm:$0xff]  }
 0x1c0   : > { %3124 = vmatpush1.bf16.msra.mxu0 %v4510_v52  ;;  %v4581_v52 = vld [vmem:[%s5303_s5 + $0x654] ss:$28 sps:$4 sm:$0xff]  }
 0x1c1   : > { %3167 = vmatpush1.bf16.msra.mxu1 %v4513_v53  ;;  %3125 = vmatprep.subr.bf16.mxu0 %v4518_v54  ;;  %v4155_v53 = vcombine.high %v4085_v50, %v4085_v50  ;;  %v4154_v54 = vcombine.low %v4085_v50, %v4085_v50 }
 0x1c2   : > { %3168 = vmatprep.subr.bf16.mxu1 %v4521_v55  ;;  %v4584_v55 = vld [vmem:[%s5303_s5 + $0x84c] ss:$0 sps:$4 sm:$0x77]  }
 0x1c4   : > { %3126 = vmatpush1.bf16.msra.mxu0 %v4516_v56  ;;  %v3109_v56 = vsel %vm1237_vm1, %v4154_v54, 0 }
 0x1c5   : > { %3169 = vmatpush1.bf16.msra.mxu1 %v4519_v57  ;;  %3127 = vmatprep.subr.bf16.mxu0 %v4524_v58  ;;  %v3115_v57 = vsel %vm1237_vm1, %v4584_v55, 0  ;;  %v4587_v58 = vld [vmem:[%s5303_s5 + $0x810] ss:$28 sps:$4 sm:$0xff]  }
 0x1c6   : > { %3170 = vmatprep.subr.bf16.mxu1 %v4527_v59 }
 0x1c8   : > { %3128 = vmatpush1.bf16.msra.mxu0 %v4522_v60  ;;  %v4585_v60 = vld [vmem:[%s5303_s5 + $0x80c] ss:$28 sps:$4 sm:$0xff]  }
 0x1c9   : > { %3171 = vmatpush1.bf16.msra.mxu1 %v4525_v48  ;;  %3129 = vmatprep.subr.bf16.mxu0 %v4530_v62  ;;  %v4588_v48 = vld [vmem:[%s5303_s5 + $0x814] ss:$28 sps:$4 sm:$0xff]  }
 0x1ca   : > { %3172 = vmatprep.subr.bf16.mxu1 %v4533_v63 }
 0x1cc   : > { %3130 = vmatpush1.bf16.msra.mxu0 %v4528_v0 }
 0x1cd   : > { %3173 = vmatpush1.bf16.msra.mxu1 %v4531_v1  ;;  %3131 = vmatprep.subr.bf16.mxu0 %v4536_v3 }
 0x1ce   : > { %3174 = vmatprep.subr.bf16.mxu1 %v4539_v5 }
 0x1d0   : > { %3132 = vmatpush1.bf16.msra.mxu0 %v4534_v8  ;;  %v1293_v8 = vpop.f32.mrf.mxu0 }
 0x1d1   : > { %3175 = vmatpush1.bf16.msra.mxu1 %v4537_v9  ;;  %4157 = vmatprep.subr.msk.bf16.mxu0 %vm1237_vm1, %v4151_v10 }
 0x1d2   : > { %4159 = vmatprep.subr.msk.bf16.mxu1 %vm1237_vm1, %v4153_v12  ;;  %v1295_v9 = vpop.f32.mrf.mxu0 }
 0x1d4   : > { %v5662_v20 = vpop.f32.mrf.mxu1  ;;  %3146 = vmatpush2.bf16.msra.mxu0 %v3097_v16 }
 0x1d5   : > { %3189 = vmatpush2.bf16.msra.mxu1 %v3103_v17  ;;  %3147 = vmatprep.subr.bf16.mxu0 %v4546_v18 }
 0x1d6   : > { %v1424_v23 = vpop.f32.mrf.mxu1  ;;  %3190 = vmatprep.subr.bf16.mxu1 %v4549_v19 }
 0x1d8   : > { %v5667_v25 = vpop.f32.mrf.mxu1  ;;  %3148 = vmatpush2.bf16.msra.mxu0 %v4544_v21 }
 0x1d9   : > { %3191 = vmatpush2.bf16.msra.mxu1 %v4547_v22  ;;  %3203 = vmatprep.subr.bf16.mxu0 %v4552_v24 }
 0x1da   : > { %v1427_v28 = vpop.f32.mrf.mxu1  ;;  %3246 = vmatprep.subr.bf16.mxu1 %v4615_v49 }
 0x1db   : > { %3150 = vmatmul.mubr.bf16.vlgmr.msra.gmra.mxu0 %v5560_v4 }
 0x1dc   : > { %3193 = vmatmul.mubr.bf16.vlgmr.msra.gmra.mxu1 %v5560_v4  ;;  %3204 = vmatpush1.bf16.msra.mxu0 %v4550_v26 }
 0x1dd   : > { %3247 = vmatpush1.bf16.msra.mxu1 %v4553_v31  ;;  %3205 = vmatprep.subr.bf16.mxu0 %v4556_v29 }
 0x1de   : > { %3248 = vmatprep.subr.bf16.mxu1 %v4615_v49  ;;  %4162 = vmatprep.mubr.msk.bf16.mxu0 %vm1233_vm0, %v5511_v27 }
 0x1df   : > { %4163 = vmatprep.mubr.msk.bf16.mxu1 %vm1233_vm0, %v5511_v27  ;;  %v4568_v27 = vld [vmem:[%s5303_s5 + $0x6f8] ss:$28 sps:$4 sm:$0xff]  }
 0x1e0   : > { %3206 = vmatpush1.bf16.msra.mxu0 %v4554_v30 }
 0x1e1   : > { %3249 = vmatpush1.bf16.msra.mxu1 %v4557_v32  ;;  %3207 = vmatprep.subr.bf16.mxu0 %v4560_v33 }
 0x1e2   : > { %3250 = vmatprep.subr.bf16.mxu1 %v4615_v49 }
 0x1e4   : > { %3208 = vmatpush1.bf16.msra.mxu0 %v4558_v34 }
 0x1e5   : > { %3251 = vmatpush1.bf16.msra.mxu1 %v4561_v35  ;;  %3209 = vmatprep.subr.bf16.mxu0 %v4564_v36 }
 0x1e6   : > { %3252 = vmatprep.subr.bf16.mxu1 %v4615_v49 }
 0x1e8   : > { %3210 = vmatpush1.bf16.msra.mxu0 %v4562_v37 }
 0x1e9   : > { %3253 = vmatpush1.bf16.msra.mxu1 %v4565_v38  ;;  %3211 = vmatprep.subr.bf16.mxu0 %v4568_v27 }
 0x1ea   : > { %3254 = vmatprep.subr.bf16.mxu1 %v4615_v49 }
 0x1ec   : > { %3212 = vmatpush1.bf16.msra.mxu0 %v4566_v39 }
 0x1ed   : > { %3255 = vmatpush1.bf16.msra.mxu1 %v4569_v40  ;;  %3213 = vmatprep.subr.bf16.mxu0 %v4572_v41 }
 0x1ee   : > { %3256 = vmatprep.subr.bf16.mxu1 %v4615_v49 }
 0x1f0   : > { %3214 = vmatpush1.bf16.msra.mxu0 %v4570_v42 }
 0x1f1   : > { %3257 = vmatpush1.bf16.msra.mxu1 %v4573_v43  ;;  %3215 = vmatprep.subr.bf16.mxu0 %v4576_v44 }
 0x1f2   : > { %3258 = vmatprep.subr.bf16.mxu1 %v4615_v49 }
 0x1f4   : > { %3216 = vmatpush1.bf16.msra.mxu0 %v4574_v45 }
 0x1f5   : > { %3259 = vmatpush1.bf16.msra.mxu1 %v4577_v46  ;;  %3217 = vmatprep.subr.bf16.mxu0 %v4580_v47 }
 0x1f6   : > { %3260 = vmatprep.subr.bf16.mxu1 %v4615_v49 }
 0x1f8   : > { %3218 = vmatpush1.bf16.msra.mxu0 %v4578_v51 }
 0x1f9   : > { %3261 = vmatpush1.bf16.msra.mxu1 %v4581_v52  ;;  %4161 = vmatprep.subr.msk.bf16.mxu0 %vm1237_vm1, %v4155_v53  ;;  %v5756_v52 = vpop.permute.xlu0 %3305 }
 0x1fa   : > { %3274 = vmatprep.subr.bf16.mxu1 %v4615_v49 }
 0x1fc   : > { %v1946_v59 = vpop.f32.mrf.mxu1  ;;  %3232 = vmatpush2.bf16.msra.mxu0 %v3109_v56 }
 0x1fd   : > { %3275 = vmatpush2.bf16.msra.mxu1 %v3115_v57  ;;  %3233 = vmatprep.subr.bf16.mxu0 %v4587_v58  ;;  %v2041_v44 = vmax.f32 %v5638_v61, %v1946_v59 }
 0x1fe   : > { %v1948_v62 = vpop.f32.mrf.mxu1  ;;  %3276 = vmatprep.subr.bf16.mxu1 %v4615_v49  ;;  %v1297_v49 = vpop.f32.mrf.mxu0 }
 0x1ff   : > { %v2042_v47 = vmax.f32 %v5644_v2, %v1948_v62 }
 0x200   : > { %v5716_v63 = vpop.f32.mrf.mxu1  ;;  %3234 = vmatpush2.bf16.msra.mxu0 %v4585_v60  ;;  %v1299_v10 = vpop.f32.mrf.mxu0 }
 0x201   : > { %3277 = vmatpush2.bf16.msra.mxu1 %v4588_v48  ;;  %v2048_v61 = vmax.f32 %v5652_v11, %v5716_v63 }
 0x202   : > { %v5718_v0 = vpop.f32.mrf.mxu1  ;;  %v5724_v12 = vpop.f32.mrf.mxu0 }
 0x203   : > { %v2049_v1 = vmax.f32 %v5654_v15, %v5718_v0  ;;  %3236 = vmatmul.mubr.bf16.vlgmr.msra.gmra.mxu0 %v5560_v4 }
 0x204   : > { %3279 = vmatmul.mubr.bf16.vlgmr.msra.gmra.mxu1 %v5560_v4  ;;  %v5726_v13 = vpop.f32.mrf.mxu0 }
 0x206   : > { %v5728_v14 = vpop.f32.mrf.mxu0 }
 0x208   : > { %v5730_v16 = vpop.f32.mrf.mxu0 }
 0x20a   : > { %v1903_v17 = vpop.f32.mrf.mxu0 }
 0x20c   : > { %v1905_v19 = vpop.f32.mrf.mxu0 }
 0x20d   : > { %v2040_v46 = vmax.f32 %v1295_v9, %v1905_v19 }
 0x20e   : > { %v1907_v21 = vpop.f32.mrf.mxu0 }
 0x20f   : > { %v2046_v60 = vmax.f32 %v1297_v49, %v1907_v21 }
 0x210   : > { %v1909_v23 = vpop.f32.mrf.mxu0 }
 0x211   : > { %v2047_v59 = vmax.f32 %v1299_v10, %v1909_v23 }
 0x223   : > { %v5732_v24 = vpop.f32.mrf.mxu0 }
 0x224   : > { %v2032_v3 = vpop.f32.mrf.mxu1 }
 0x225   : > { %v2045_v31 = vmax.f32 %v5662_v20, %v2032_v3  ;;  %v5737_v30 = vpop.f32.mrf.mxu0 }
 0x226   : > { %v2034_v5 = vpop.f32.mrf.mxu1 }
 0x227   : > { %v5742_v36 = vpop.f32.mrf.mxu0 }
 0x228   : > { %v2035_v6 = vpop.f32.mrf.mxu1 }
 0x229   : > { %v2052_v33 = vmax.f32 %v5667_v25, %v2035_v6  ;;  %v5744_v38 = vpop.f32.mrf.mxu0  ;;  %v2039_v25 = vmax.f32 %v1293_v8, %v1903_v17 }
 0x22a   : > { %v2037_v7 = vpop.f32.mrf.mxu1 }
 0x24b   : > { %v2527_v27 = vpop.f32.mrf.mxu0 }
 0x24c   : > { %v2570_v18 = vpop.f32.mrf.mxu1  ;;  %v2663_v50 = vmax.f32 %v2039_v25, %v2527_v27  ;;  %v2044_v25 = vmax.f32 %v5726_v13, %v5737_v30 }
 0x24d   : > { %v2529_v39 = vpop.f32.mrf.mxu0  ;;  %v2665_v51 = vmax.f32 %v2041_v44, %v2570_v18 }
 0x24e   : > { %v2572_v4 = vpop.f32.mrf.mxu1  ;;  %v2664_v55 = vmax.f32 %v2040_v46, %v2529_v39 }
 0x24f   : > { %v2531_v20 = vpop.f32.mrf.mxu0  ;;  %v2666_v56 = vmax.f32 %v2042_v47, %v2572_v4  ;;  %v3311_v4 = vpop.permute.xlu0 %3310 }
 0x250   : > { %v2574_v22 = vpop.f32.mrf.mxu1  ;;  %v2670_v7 = vmax.f32 %v2046_v60, %v2531_v20 }
 0x251   : > { %v2533_v40 = vpop.f32.mrf.mxu0  ;;  %v2672_v8 = vmax.f32 %v2048_v61, %v2574_v22 }
 0x252   : > { %v2576_v26 = vpop.f32.mrf.mxu1  ;;  %v2671_v9 = vmax.f32 %v2047_v59, %v2533_v40  ;;  %v2043_v40 = vmax.f32 %v5724_v12, %v5732_v24 }
 0x253   : > { %v2673_v17 = vmax.f32 %v2049_v1, %v2576_v26 }
 0x273   : > { %v5746_v41 = vpop.f32.mrf.mxu0 }
 0x274   : > { %v2656_v28 = vpop.f32.mrf.mxu1  ;;  %v2667_v44 = vmax.f32 %v2043_v40, %v5746_v41 }
 0x275   : > { %v5735_v29 = vmax.f32 %v2045_v31, %v2656_v28  ;;  %v5748_v42 = vpop.f32.mrf.mxu0 }
 0x276   : > { %v2658_v32 = vpop.f32.mrf.mxu1 }
 0x277   : > { %v5750_v43 = vpop.f32.mrf.mxu0 }
 0x278   : > { %v2659_v34 = vpop.f32.mrf.mxu1 }
 0x279   : > { %v5740_v35 = vmax.f32 %v2052_v33, %v2659_v34  ;;  %v5753_v45 = vpop.f32.mrf.mxu0 }
 0x27a   : > { %v2661_v37 = vpop.f32.mrf.mxu1 }
 0x29b   : > { %v3151_v53 = vpop.f32.mrf.mxu0 }
 0x29c   : > { %v3194_v54 = vpop.f32.mrf.mxu1  ;;  %v3287_v57 = vmax.f32 %v2663_v50, %v3151_v53  ;;  %v2050_v50 = vmax.f32 %v5728_v14, %v5742_v36 }
 0x29d   : > { %v3289_v58 = vmax.f32 %v2665_v51, %v3194_v54  ;;  %v3153_v48 = vpop.f32.mrf.mxu0  ;;  %v2668_v51 = vmax.f32 %v2044_v25, %v5748_v42 }
 0x29e   : > { %v3196_v3 = vpop.f32.mrf.mxu1  ;;  %v3313_v2 = vadd.f32 %v5756_v52, %v3287_v57  ;;  %v3288_v5 = vmax.f32 %v2664_v55, %v3153_v48  ;;  %v2051_v55 = vmax.f32 %v5730_v16, %v5744_v38  ;;  %v2674_v13 = vmax.f32 %v2050_v50, %v5750_v43 }
 0x29f   : > { %v3315_v62 = vadd.f32 %v5756_v52, %v3289_v58  ;;  %v3290_v6 = vmax.f32 %v2666_v56, %v3196_v3  ;;  %v3155_v49 = vpop.f32.mrf.mxu0 }
 0x2a0   : > { %v3198_v18 = vpop.f32.mrf.mxu1  ;;  %v3327_v19 = vmax.f32 %v3313_v2, 0.0  ;;  %v3314_v63 = vadd.f32 %v5756_v52, %v3288_v5  ;;  %v3294_v21 = vmax.f32 %v2670_v7, %v3155_v49  ;;  %v2675_v14 = vmax.f32 %v2051_v55, %v5753_v45 }
 0x2a1   : > { %v3329_v11 = vmax.f32 %v3315_v62, 0.0  ;;  %v3316_v10 = vadd.f32 %v5756_v52, %v3290_v6  ;;  %v3296_v23 = vmax.f32 %v2672_v8, %v3198_v18  ;;  %v3157_v31 = vpop.f32.mrf.mxu0 }
 0x2a2   : > { %v3200_v28 = vpop.f32.mrf.mxu1  ;;  %3341 = vst [vmem:[%s5769_s12] sm:$0xff] %v3327_v19  ;;  %v3328_v15 = vmax.f32 %v3314_v63, 0.0  ;;  %v3295_v1 = vmax.f32 %v2671_v9, %v3157_v31  ;;  %v3320_v26 = vadd.f32 %v3311_v4, %v3294_v21 }
 0x2a3   : > { %3343 = vst [vmem:[%s5769_s12 + $0x10] sm:$0xff] %v3329_v11  ;;  %v3330_v0 = vmax.f32 %v3316_v10, 0.0  ;;  %v3297_v22 = vmax.f32 %v2673_v17, %v3200_v28  ;;  %v3322_v32 = vadd.f32 %v3311_v4, %v3296_v23 }
 0x2a4   : > { %3342 = vst [vmem:[%s5769_s12 + $0x8] sm:$0xff] %v3328_v15  ;;  %v3321_v33 = vadd.f32 %v3311_v4, %v3295_v1  ;;  %v3334_v37 = vmax.f32 %v3320_v26, 0.0 }
 0x2a5   : > { %3344 = vst [vmem:[%s5769_s12 + $0x18] sm:$0xff] %v3330_v0  ;;  %v3323_v34 = vadd.f32 %v3311_v4, %v3297_v22  ;;  %v3336_v27 = vmax.f32 %v3322_v32, 0.0 }
 0x2a6   : > { %v3335_v39 = vmax.f32 %v3321_v33, 0.0  ;;  %3348 = vst [vmem:[%s5769_s12 + $0x38] sm:$0xff] %v3334_v37 }
 0x2a7   : > { %v3337_v20 = vmax.f32 %v3323_v34, 0.0  ;;  %3350 = vst [vmem:[%s5769_s12 + $0x48] sm:$0xff] %v3336_v27 }
 0x2a8   : > { %3349 = vst [vmem:[%s5769_s12 + $0x40] sm:$0xff] %v3335_v39 }
 0x2a9   : > { %3351 = vst [vmem:[%s5769_s12 + $0x50] sm:$0xff] %v3337_v20 }
 0x2aa   : > { %v3381_v6 = vld [vmem:[%s5769_s12 + $0x10] sm:$0xff] (%p4666_p5) }
 0x2ab   : > { %3382 = vst [vmem:[%s3364_s25 + $0x10] sm:$0xff] (%p4666_p5), %v3381_v6 }
 0x2ac   : > { %v3383_v7 = vld [vmem:[%s5769_s12 + $0x18] sm:$0xff] (%p4666_p5) }
 0x2ad   : > { %v3391_v49 = vld [vmem:[%s5769_s12 + $0x38] sm:$0xff] (%p4666_p5)  ;;  %3384 = vst [vmem:[%s3364_s25 + $0x18] sm:$0xff] (%p4666_p5), %v3383_v7 }
 0x2ae   : > { %3392 = vst [vmem:[%s3364_s25 + $0x70] sm:$0xff] (%p4666_p5), %v3391_v49  ;;  %v3395_v19 = vld [vmem:[%s5769_s12 + $0x48] sm:$0xff] (%p4666_p5) }
 0x2af   : > { %v3393_v18 = vld [vmem:[%s5769_s12 + $0x40] sm:$0xff] (%p4666_p5)  ;;  %3396 = vst [vmem:[%s3364_s25 + $0x80] sm:$0xff] (%p4666_p5), %v3395_v19 }
 0x2b0   : > { %3394 = vst [vmem:[%s3364_s25 + $0x78] sm:$0xff] (%p4666_p5), %v3393_v18  ;;  %v3397_v11 = vld [vmem:[%s5769_s12 + $0x50] sm:$0xff] (%p4666_p5) }
 0x2b1   : > { %3398 = vst [vmem:[%s3364_s25 + $0x88] sm:$0xff] (%p4666_p5), %v3397_v11 }
 0x2c3   : > { %v3237_v46 = vpop.f32.mrf.mxu0 }
 0x2c4   : > { %v3280_v47 = vpop.f32.mrf.mxu1  ;;  %v3291_v53 = vmax.f32 %v2667_v44, %v3237_v46 }
 0x2c5   : > { %v3293_v54 = vmax.f32 %v5735_v29, %v3280_v47  ;;  %v3239_v56 = vpop.f32.mrf.mxu0 }
 0x2c6   : > { %v3282_v12 = vpop.f32.mrf.mxu1  ;;  %v3317_v24 = vadd.f32 %v5756_v52, %v3291_v53  ;;  %v3292_v41 = vmax.f32 %v2668_v51, %v3239_v56 }
 0x2c7   : > { %v3319_v30 = vadd.f32 %v5756_v52, %v3293_v54  ;;  %v3241_v36 = vpop.f32.mrf.mxu0 }
 0x2c8   : > { %v3283_v42 = vpop.f32.mrf.mxu1  ;;  %v3331_v29 = vmax.f32 %v3317_v24, 0.0  ;;  %v3318_v16 = vadd.f32 %v5756_v52, %v3292_v41  ;;  %v3298_v38 = vmax.f32 %v2674_v13, %v3241_v36  ;;  %v3379_v52 = vld [vmem:[%s5769_s12 + $0x8] sm:$0xff] (%p4666_p5) }
 0x2c9   : > { %v3333_v57 = vmax.f32 %v3319_v30, 0.0  ;;  %v3300_v58 = vmax.f32 %v5740_v35, %v3283_v42  ;;  %v3243_v43 = vpop.f32.mrf.mxu0  ;;  %v3377_v35 = vld [vmem:[%s5769_s12] sm:$0xff] (%p4666_p5)  ;;  %3380 = vst [vmem:[%s3364_s25 + $0x8] sm:$0xff] (%p4666_p5), %v3379_v52 }
 0x2ca   : > { %v3285_v60 = vpop.f32.mrf.mxu1  ;;  %3345 = vst [vmem:[%s5769_s12 + $0x20] sm:$0xff] %v3331_v29  ;;  %v3332_v61 = vmax.f32 %v3318_v16, 0.0  ;;  %v3324_v59 = vadd.f32 %v3311_v4, %v3298_v38  ;;  %v3299_v45 = vmax.f32 %v2675_v14, %v3243_v43  ;;  %3378 = vst [vmem:[%s3364_s25] sm:$0xff] (%p4666_p5), %v3377_v35 }
 0x2cb   : > { %3347 = vst [vmem:[%s5769_s12 + $0x30] sm:$0xff] %v3333_v57  ;;  %v3326_v48 = vadd.f32 %v3311_v4, %v3300_v58 }
 0x2cc   : > { %3346 = vst [vmem:[%s5769_s12 + $0x28] sm:$0xff] %v3332_v61  ;;  %v3338_v3 = vmax.f32 %v3324_v59, 0.0  ;;  %v3325_v2 = vadd.f32 %v3311_v4, %v3299_v45  ;;  %3361 = sbr.rel (!%p4666_p5) target bundleno = 729 (0x2d9), region = 62 }
 0x2cd   : > { %v3340_v62 = vmax.f32 %v3326_v48, 0.0 }
 0x2ce   : > { %3352 = vst [vmem:[%s5769_s12 + $0x58] sm:$0xff] %v3338_v3  ;;  %v3339_v5 = vmax.f32 %v3325_v2, 0.0 }
 0x2cf   : > { %3354 = vst [vmem:[%s5769_s12 + $0x68] sm:$0xff] %v3340_v62 }
 0x2d0   : > { %3353 = vst [vmem:[%s5769_s12 + $0x60] sm:$0xff] %v3339_v5 }
 0x2d1   : > { %v3385_v8 = vld [vmem:[%s5769_s12 + $0x20] sm:$0xff] }
 0x2d2   : > { %v3389_v17 = vld [vmem:[%s5769_s12 + $0x30] sm:$0xff]  ;;  %3386 = vst [vmem:[%s3364_s25 + $0x20] sm:$0xff] %v3385_v8 }
 0x2d3   : > { %v3387_v9 = vld [vmem:[%s5769_s12 + $0x28] sm:$0xff]  ;;  %3390 = vst [vmem:[%s3364_s25 + $0x30] sm:$0xff] %v3389_v17 }
 0x2d4   : > { %3388 = vst [vmem:[%s3364_s25 + $0x28] sm:$0xff] %v3387_v9 }
 0x2d5   : > { %v3399_v63 = vld [vmem:[%s5769_s12 + $0x58] sm:$0xff] }
 0x2d6   : > { %3400 = vst [vmem:[%s3364_s25 + $0x90] sm:$0xff] %v3399_v63  ;;  %v3403_v4 = vld [vmem:[%s5769_s12 + $0x68] sm:$0xff] }
 0x2d7   : > { %v3401_v10 = vld [vmem:[%s5769_s12 + $0x60] sm:$0xff]  ;;  %3404 = vst [vmem:[%s3364_s25 + $0xa0] sm:$0xff] %v3403_v4 }
 0x2d8   : > { %3402 = vst [vmem:[%s3364_s25 + $0x98] sm:$0xff] %v3401_v10 }
 0x2d9 PF: > { %p10_p10 = scmp.ge.s32.totalorder %s4653_s16, 4   ;;  %s5838_s12 = smov %s4609_s13 }
 0x2da   : > { %s5839_s13 = smov %s4664_s19  ;;  %s5840_s14 = smov %s4653_s16 }
 0x2db   :  { %12 = sbr.rel (!%p10_p10) target bundleno = 2 (0x2), region = 125 }

// kernel: lenet_forward.5
= control target key start
LH: loop header
LB: loop body
LE: loop exit
PB: predicated region body
PF: predicated region fallthrough
CT: control target
= control target key end

     0   :  { %v86_v27 = vlaneseq  ;;  %v12803_v35 = vmov 1983009808   ;;  %vm7479_vm0 = vcmask 130048   ;;  %s15635_s0 = inlined_call_operand.vmem [shape: f32[2,13456], index: 0, kind: input, shape index: {}]   ;;  %s15636_s1 = inlined_call_operand.vmem [shape: bf16[13456,120], index: 1, kind: input, shape index: {}]   ;;  %s15637_s2 = inlined_call_operand.vmem [shape: f32[1,120], index: 2, kind: input, shape index: {}]   ;;  %s15638_s3 = inlined_call_operand.vmem [shape: bf16[120,84], index: 3, kind: input, shape index: {}]   ;;  %s15639_s4 = inlined_call_operand.vmem [shape: f32[1,84], index: 4, kind: input, shape index: {}]   ;;  %s15640_s5 = inlined_call_operand.vmem [shape: bf16[84,10], index: 5, kind: input, shape index: {}]   ;;  %s15641_s6 = inlined_call_operand.vmem [shape: f32[1,10], index: 6, kind: input, shape index: {}]   ;;  %s15642_s7 = inlined_call_operand.hbm [shape: f32[2,10], index: 7, kind: output, shape index: {}]  }
   0x1   :  { %v11900_v0 = vld [vmem:[%s15636_s1 + $0x78] sm:$0xff]   ;;  %v11904_v4 = vld [vmem:[%s15636_s1 + $0x70] sm:$0xff]   ;;  %v11908_v8 = vld [vmem:[%s15636_s1 + $0x68] sm:$0xff]   ;;  %v84_v36 = vunpack.c.l.s4 %v12803_v35 }
   0x2   :  { %v11901_v1 = vld [vmem:[%s15636_s1 + $0x38] sm:$0xff]   ;;  %10699 = vmatprep.subr.bf16.mxu0 %v11900_v0  ;;  %v11905_v5 = vld [vmem:[%s15636_s1 + $0x30] sm:$0xff]   ;;  %v11909_v9 = vld [vmem:[%s15636_s1 + $0x28] sm:$0xff]   ;;  %v87_v32 = vshrl.u32 %v86_v27, 7 }
   0x3   :  { %v11902_v2 = vld [vmem:[%s15636_s1 + $0xf8] sm:$0xff]   ;;  %10700 = vmatpush3.bf16.msra.mxu0 %v11901_v1  ;;  %v11906_v6 = vld [vmem:[%s15636_s1 + $0xf0] sm:$0xff]   ;;  %v11910_v10 = vld [vmem:[%s15636_s1 + $0xe8] sm:$0xff]   ;;  %v85_v38 = vunpack.c.0.s8 %v84_v36 }
   0x4   :  { %v11903_v3 = vld [vmem:[%s15636_s1 + $0xb8] sm:$0xff]   ;;  %10721 = vmatprep.subr.bf16.mxu1 %v11902_v2  ;;  %10701 = vmatprep.subr.bf16.mxu0 %v11904_v4  ;;  %v11907_v7 = vld [vmem:[%s15636_s1 + $0xb0] sm:$0xff]   ;;  %v11911_v11 = vld [vmem:[%s15636_s1 + $0xa8] sm:$0xff]  }
   0x5   :  { %10722 = vmatpush3.bf16.msra.mxu1 %v11903_v3  ;;  %v11912_v12 = vld [vmem:[%s15636_s1 + $0x60] sm:$0xff]   ;;  %v11916_v16 = vld [vmem:[%s15636_s1 + $0x58] sm:$0xff]   ;;  %v11920_v20 = vld [vmem:[%s15636_s1 + $0x50] sm:$0xff]   ;;  %v12953_v41 = vsub.s32 %v85_v38, %v87_v32 }
   0x6   :  { %10723 = vmatprep.subr.bf16.mxu1 %v11906_v6  ;;  %v11913_v13 = vld [vmem:[%s15636_s1 + $0x20] sm:$0xff]   ;;  %v11917_v17 = vld [vmem:[%s15636_s1 + $0x18] sm:$0xff]   ;;  %v11921_v21 = vld [vmem:[%s15636_s1 + $0x10] sm:$0xff]  }
   0x7   :  { %10702 = vmatpush3.bf16.msra.mxu0 %v11905_v5  ;;  %v11914_v14 = vld [vmem:[%s15636_s1 + $0xe0] sm:$0xff]   ;;  %v11918_v18 = vld [vmem:[%s15636_s1 + $0xd8] sm:$0xff]   ;;  %v11922_v22 = vld [vmem:[%s15636_s1 + $0xd0] sm:$0xff]  }
   0x8   :  { %10703 = vmatprep.subr.bf16.mxu0 %v11908_v8  ;;  %v11915_v15 = vld [vmem:[%s15636_s1 + $0xa0] sm:$0xff]   ;;  %v11919_v19 = vld [vmem:[%s15636_s1 + $0x98] sm:$0xff]   ;;  %v11923_v23 = vld [vmem:[%s15636_s1 + $0x90] sm:$0xff]  }
   0x9   :  { %10724 = vmatpush3.bf16.msra.mxu1 %v11907_v7  ;;  %v11924_v24 = vld [vmem:[%s15636_s1 + $0x48] sm:$0xff]   ;;  %v11928_v29 = vld [vmem:[%s15636_s1 + $0x40] sm:$0xff]   ;;  %v11932_v37 = vld [vmem:[%s15636_s1 + $0x178] sm:$0xff]  }
   0xa   :  { %10725 = vmatprep.subr.bf16.mxu1 %v11910_v10  ;;  %v11925_v25 = vld [vmem:[%s15636_s1 + $0x8] sm:$0xff]   ;;  %v11929_v30 = vld [vmem:[%s15636_s1] sm:$0xff]   ;;  %v11935_v40 = vld [vmem:[%s15636_s1 + $0x1f8] sm:$0xff]  }
   0xb   :  { %10704 = vmatpush3.bf16.msra.mxu0 %v11909_v9  ;;  %v11926_v26 = vld [vmem:[%s15636_s1 + $0xc8] sm:$0xff]   ;;  %v11930_v31 = vld [vmem:[%s15636_s1 + $0xc0] sm:$0xff]   ;;  %v11934_v46 = vld [vmem:[%s15636_s1 + $0x138] sm:$0xff]  }
   0xc   :  { %10705 = vmatprep.subr.bf16.mxu0 %v11912_v12  ;;  %v11927_v28 = vld [vmem:[%s15636_s1 + $0x88] sm:$0xff]   ;;  %v28_v33 = vld [vmem:[%s15635_s0] sm:$0xff]  ;;  %v11936_v49 = vld [vmem:[%s15636_s1 + $0x1b8] sm:$0xff]  }
   0xd   :  { %10726 = vmatpush3.bf16.msra.mxu1 %v11911_v11  ;;  %v11931_v34 = vld [vmem:[%s15636_s1 + $0x80] sm:$0xff]   ;;  %v82_v39 = vcombine.high %v28_v33, %v28_v33  ;;  %v89_v42 = vrot.slane %v28_v33, %v12953_v41  ;;  %v11937_v52 = vld [vmem:[%s15636_s1 + $0x170] sm:$0xff]   ;;  %v11941_v56 = vld [vmem:[%s15636_s1 + $0x168] sm:$0xff]  }
   0xe   :  { %10727 = vmatprep.subr.bf16.mxu1 %v11914_v14  ;;  %v11939_v53 = vld [vmem:[%s15636_s1 + $0x1f0] sm:$0xff]   ;;  %v11943_v57 = vld [vmem:[%s15636_s1 + $0x1e8] sm:$0xff]   ;;  %v11945_v60 = vld [vmem:[%s15636_s1 + $0x160] sm:$0xff]  }
   0xf   :  { %10706 = vmatpush3.bf16.msra.mxu0 %v11913_v13  ;;  %v96_v43 = vrot.slane %v82_v39, %v12953_v41  ;;  %v97_v44 = vcombine.high %v89_v42, %v89_v42  ;;  %v638_v47 = vpack.c.bf16 %v89_v42, %v89_v42  ;;  %v11938_v54 = vld [vmem:[%s15636_s1 + $0x130] sm:$0xff]   ;;  %v11942_v58 = vld [vmem:[%s15636_s1 + $0x128] sm:$0xff]   ;;  %v11947_v61 = vld [vmem:[%s15636_s1 + $0x1e0] sm:$0xff]  }
  0x10   :  { %10707 = vmatprep.subr.bf16.mxu0 %v11916_v16  ;;  %v11940_v55 = vld [vmem:[%s15636_s1 + $0x1b0] sm:$0xff]   ;;  %v11944_v59 = vld [vmem:[%s15636_s1 + $0x1a8] sm:$0xff]   ;;  %v11946_v62 = vld [vmem:[%s15636_s1 + $0x120] sm:$0xff]  }
  0x11   :  { %10728 = vmatpush3.bf16.msra.mxu1 %v11915_v15  ;;  %v98_v45 = vcombine.high %v96_v43, %v96_v43  ;;  %v640_v48 = vpack.c.bf16 %v96_v43, %v96_v43  ;;  %v639_v50 = vpack.c.bf16 %v97_v44, %v97_v44  ;;  %v11948_v63 = vld [vmem:[%s15636_s1 + $0x1a0] sm:$0xff]   ;;  %v11949_v0 = vld [vmem:[%s15636_s1 + $0x158] sm:$0xff]   ;;  %v11953_v4 = vld [vmem:[%s15636_s1 + $0x150] sm:$0xff]  }
  0x12   :  { %10729 = vmatprep.subr.bf16.mxu1 %v11918_v18  ;;  %v11951_v1 = vld [vmem:[%s15636_s1 + $0x1d8] sm:$0xff]   ;;  %v11955_v5 = vld [vmem:[%s15636_s1 + $0x1d0] sm:$0xff]   ;;  %v11957_v8 = vld [vmem:[%s15636_s1 + $0x148] sm:$0xff]  }
  0x13   :  { %10708 = vmatpush3.bf16.msra.mxu0 %v11917_v17  ;;  %v641_v51 = vpack.c.bf16 %v98_v45, %v98_v45  ;;  %7515 = vmatprep.mubr.bf16.mxu0 %v639_v50  ;;  %v11950_v2 = vld [vmem:[%s15636_s1 + $0x118] sm:$0xff]   ;;  %v11954_v6 = vld [vmem:[%s15636_s1 + $0x110] sm:$0xff]   ;;  %v11959_v9 = vld [vmem:[%s15636_s1 + $0x1c8] sm:$0xff]  }
  0x14   :  { %10709 = vmatprep.subr.bf16.mxu0 %v11920_v20  ;;  %v11952_v3 = vld [vmem:[%s15636_s1 + $0x198] sm:$0xff]   ;;  %v11956_v7 = vld [vmem:[%s15636_s1 + $0x190] sm:$0xff]   ;;  %v29_v10 = vld [vmem:[%s15635_s0 + $0x8] sm:$0xff] }
  0x15   :  { %10730 = vmatpush3.bf16.msra.mxu1 %v11919_v19  ;;  %7555 = vmatprep.mubr.bf16.mxu1 %v641_v51  ;;  %v11958_v11 = vld [vmem:[%s15636_s1 + $0x108] sm:$0xff]   ;;  %v106_v12 = vrot.slane %v29_v10, %v12953_v41  ;;  %v99_v13 = vcombine.high %v29_v10, %v29_v10  ;;  %v11961_v15 = vld [vmem:[%s15636_s1 + $0x140] sm:$0xff]   ;;  %v11971_v32 = vld [vmem:[%s15636_s1 + $0x230] sm:$0xff]  }
  0x16   :  { %10731 = vmatprep.subr.bf16.mxu1 %v11922_v22  ;;  %v11960_v14 = vld [vmem:[%s15636_s1 + $0x188] sm:$0xff]   ;;  %v11963_v18 = vld [vmem:[%s15636_s1 + $0x1c0] sm:$0xff]   ;;  %v11973_v33 = vld [vmem:[%s15636_s1 + $0x2b0] sm:$0xff]  }
  0x17   :  { %10710 = vmatpush3.bf16.msra.mxu0 %v11921_v21  ;;  %v114_v16 = vcombine.high %v106_v12, %v106_v12  ;;  %v113_v17 = vrot.slane %v99_v13, %v12953_v41  ;;  %v11962_v19 = vld [vmem:[%s15636_s1 + $0x100] sm:$0xff]   ;;  %v642_v27 = vpack.c.bf16 %v106_v12, %v106_v12  ;;  %v11976_v35 = vld [vmem:[%s15636_s1 + $0x2e8] sm:$0xff]   ;;  %v11982_v43 = vld [vmem:[%s15636_s1 + $0x258] sm:$0xff]  }
  0x18   :  { %10711 = vmatprep.subr.bf16.mxu0 %v11924_v24  ;;  %v11964_v22 = vld [vmem:[%s15636_s1 + $0x180] sm:$0xff]   ;;  %v11975_v36 = vld [vmem:[%s15636_s1 + $0x228] sm:$0xff]   ;;  %v11984_v44 = vld [vmem:[%s15636_s1 + $0x2d8] sm:$0xff]  }
  0x19   :  { %10732 = vmatpush3.bf16.msra.mxu1 %v11923_v23  ;;  %v643_v20 = vpack.c.bf16 %v114_v16, %v114_v16  ;;  %v115_v21 = vcombine.high %v113_v17, %v113_v17  ;;  %v11965_v23 = vld [vmem:[%s15636_s1 + $0x278] sm:$0xff]   ;;  %v11978_v38 = vld [vmem:[%s15636_s1 + $0x260] sm:$0xff]   ;;  %v11989_v50 = vld [vmem:[%s15636_s1 + $0x290] sm:$0xff]  }
  0x1a   :  { %10733 = vmatprep.subr.bf16.mxu1 %v11926_v26  ;;  %v11967_v26 = vld [vmem:[%s15636_s1 + $0x238] sm:$0xff]   ;;  %v11980_v39 = vld [vmem:[%s15636_s1 + $0x2e0] sm:$0xff]   ;;  %v11990_v51 = vld [vmem:[%s15636_s1 + $0x248] sm:$0xff]  }
  0x1b   :  { %10712 = vmatpush3.bf16.msra.mxu0 %v11925_v25  ;;  %v645_v24 = vpack.c.bf16 %v115_v21, %v115_v21  ;;  %v11968_v25 = vld [vmem:[%s15636_s1 + $0x2f8] sm:$0xff]   ;;  %v11981_v42 = vld [vmem:[%s15636_s1 + $0x2a0] sm:$0xff]   ;;  %v12005_v10 = vld [vmem:[%s15636_s1 + $0x3f0] sm:$0xff]  }
  0x1c   :  { %10713 = vmatprep.subr.bf16.mxu0 %v11928_v29  ;;  %v11969_v29 = vld [vmem:[%s15636_s1 + $0x2b8] sm:$0xff]   ;;  %v12006_v12 = vld [vmem:[%s15636_s1 + $0x3b0] sm:$0xff]   ;;  %v12007_v13 = vld [vmem:[%s15636_s1 + $0x368] sm:$0xff]  }
  0x1d   :  { %10734 = vmatpush3.bf16.msra.mxu1 %v11927_v28  ;;  %v644_v28 = vpack.c.bf16 %v113_v17, %v113_v17  ;;  %v11983_v45 = vld [vmem:[%s15636_s1 + $0x218] sm:$0xff]   ;;  %v12010_v16 = vld [vmem:[%s15636_s1 + $0x3a8] sm:$0xff]   ;;  %v12011_v17 = vld [vmem:[%s15636_s1 + $0x360] sm:$0xff]  }
  0x1e   :  { %10735 = vmatprep.subr.bf16.mxu1 %v11930_v31  ;;  %v11972_v31 = vld [vmem:[%s15636_s1 + $0x2f0] sm:$0xff]   ;;  %v12015_v21 = vld [vmem:[%s15636_s1 + $0x358] sm:$0xff]  }
  0x1f   :  { %10714 = vmatpush3.bf16.msra.mxu0 %v11929_v30  ;;  %v11970_v30 = vld [vmem:[%s15636_s1 + $0x270] sm:$0xff]  }
  0x20   :  { %10743 = vmatprep.subr.bf16.mxu0 %v11932_v37  ;;  %v11977_v37 = vld [vmem:[%s15636_s1 + $0x2a8] sm:$0xff]  }
  0x21   :  { %10736 = vmatpush3.bf16.msra.mxu1 %v11931_v34  ;;  %v11974_v34 = vld [vmem:[%s15636_s1 + $0x268] sm:$0xff]  }
  0x22   :  { %10765 = vmatprep.subr.bf16.mxu1 %v11935_v40  ;;  %7516 = vmatmul.mubr.bf16.vlgmr.msra.gmra.mxu0 %v638_v47  ;;  %v11979_v40 = vld [vmem:[%s15636_s1 + $0x220] sm:$0xff]   ;;  %v11986_v47 = vld [vmem:[%s15636_s1 + $0x250] sm:$0xff]  }
  0x23   :  { %10744 = vmatpush3.bf16.msra.mxu0 %v11934_v46  ;;  %7595 = vmatprep.mubr.bf16.mxu0 %v643_v20  ;;  %v11985_v46 = vld [vmem:[%s15636_s1 + $0x298] sm:$0xff]   ;;  %v12014_v20 = vld [vmem:[%s15636_s1 + $0x3a0] sm:$0xff]  }
  0x24   :  { %7556 = vmatmul.mubr.bf16.vlgmr.msra.gmra.mxu1 %v640_v48  ;;  %10745 = vmatprep.subr.bf16.mxu0 %v11937_v52  ;;  %v11988_v48 = vld [vmem:[%s15636_s1 + $0x2d0] sm:$0xff]   ;;  %v11992_v52 = vld [vmem:[%s15636_s1 + $0x2c8] sm:$0xff]  }
  0x25   :  { %10766 = vmatpush3.bf16.msra.mxu1 %v11936_v49  ;;  %7635 = vmatprep.mubr.bf16.mxu1 %v645_v24  ;;  %v11987_v49 = vld [vmem:[%s15636_s1 + $0x210] sm:$0xff]   ;;  %v12018_v24 = vld [vmem:[%s15636_s1 + $0x398] sm:$0xff]  }
  0x26   :  { %10767 = vmatprep.subr.bf16.mxu1 %v11939_v53  ;;  %v30_v53 = vld [vmem:[%s15635_s0 + $0x10] sm:$0xff] }
  0x27   :  { %10746 = vmatpush3.bf16.msra.mxu0 %v11938_v54  ;;  %v11991_v54 = vld [vmem:[%s15636_s1 + $0x208] sm:$0xff]  }
  0x28   :  { %10747 = vmatprep.subr.bf16.mxu0 %v11941_v56  ;;  %v116_v56 = vcombine.high %v30_v53, %v30_v53 }
  0x29   :  { %10768 = vmatpush3.bf16.msra.mxu1 %v11940_v55  ;;  %v123_v55 = vrot.slane %v30_v53, %v12953_v41  ;;  %v12038_v53 = vld [vmem:[%s15636_s1 + $0x4f0] sm:$0xff]  }
  0x2a   :  { %10769 = vmatprep.subr.bf16.mxu1 %v11943_v57  ;;  %v11993_v57 = vld [vmem:[%s15636_s1 + $0x288] sm:$0xff]  }
  0x2b   :  { %10748 = vmatpush3.bf16.msra.mxu0 %v11942_v58  ;;  %v11994_v58 = vld [vmem:[%s15636_s1 + $0x240] sm:$0xff]  }
  0x2c   :  { %10749 = vmatprep.subr.bf16.mxu0 %v11945_v60  ;;  %v130_v60 = vrot.slane %v116_v56, %v12953_v41  ;;  %v12040_v56 = vld [vmem:[%s15636_s1 + $0x468] sm:$0xff]  }
  0x2d   :  { %10770 = vmatpush3.bf16.msra.mxu1 %v11944_v59  ;;  %v131_v59 = vcombine.high %v123_v55, %v123_v55 }
  0x2e   :  { %10771 = vmatprep.subr.bf16.mxu1 %v11947_v61  ;;  %v11996_v61 = vld [vmem:[%s15636_s1 + $0x2c0] sm:$0xff]  }
  0x2f   :  { %10750 = vmatpush3.bf16.msra.mxu0 %v11946_v62  ;;  %v11995_v62 = vld [vmem:[%s15636_s1 + $0x200] sm:$0xff]  }
  0x30   :  { %10751 = vmatprep.subr.bf16.mxu0 %v11949_v0  ;;  %v132_v0 = vcombine.high %v130_v60, %v130_v60 }
  0x31   :  { %10772 = vmatpush3.bf16.msra.mxu1 %v11948_v63  ;;  %v647_v63 = vpack.c.bf16 %v131_v59, %v131_v59  ;;  %v12043_v59 = vld [vmem:[%s15636_s1 + $0x4a8] sm:$0xff]  }
  0x32   :  { %10773 = vmatprep.subr.bf16.mxu1 %v11951_v1  ;;  %v11997_v1 = vld [vmem:[%s15636_s1 + $0x280] sm:$0xff]  }
  0x33   :  { %10752 = vmatpush3.bf16.msra.mxu0 %v11950_v2  ;;  %v11998_v2 = vld [vmem:[%s15636_s1 + $0x378] sm:$0xff]  }
  0x34   :  { %10753 = vmatprep.subr.bf16.mxu0 %v11953_v4  ;;  %v12001_v4 = vld [vmem:[%s15636_s1 + $0x3f8] sm:$0xff]  }
  0x35   :  { %10774 = vmatpush3.bf16.msra.mxu1 %v11952_v3  ;;  %v649_v3 = vpack.c.bf16 %v132_v0, %v132_v0  ;;  %v12048_v0 = vld [vmem:[%s15636_s1 + $0x458] sm:$0xff]  }
  0x36   :  { %10775 = vmatprep.subr.bf16.mxu1 %v11955_v5  ;;  %v12000_v5 = vld [vmem:[%s15636_s1 + $0x338] sm:$0xff]  }
  0x37   :  { %10754 = vmatpush3.bf16.msra.mxu0 %v11954_v6  ;;  %v646_v6 = vpack.c.bf16 %v123_v55, %v123_v55  ;;  %v12039_v55 = vld [vmem:[%s15636_s1 + $0x4b0] sm:$0xff]  }
  0x38   :  { %10755 = vmatprep.subr.bf16.mxu0 %v11957_v8  ;;  %v12002_v8 = vld [vmem:[%s15636_s1 + $0x3b8] sm:$0xff]  }
  0x39   :  { %10776 = vmatpush3.bf16.msra.mxu1 %v11956_v7  ;;  %v648_v7 = vpack.c.bf16 %v130_v60, %v130_v60  ;;  %v12044_v60 = vld [vmem:[%s15636_s1 + $0x460] sm:$0xff]  }
  0x3a   :  { %10777 = vmatprep.subr.bf16.mxu1 %v11959_v9  ;;  %v12003_v9 = vld [vmem:[%s15636_s1 + $0x370] sm:$0xff]  }
  0x3b   :  { %10756 = vmatpush3.bf16.msra.mxu0 %v11958_v11  ;;  %v12004_v11 = vld [vmem:[%s15636_s1 + $0x330] sm:$0xff]  }
  0x3c   :  { %10757 = vmatprep.subr.bf16.mxu0 %v11961_v15  ;;  %v12008_v15 = vld [vmem:[%s15636_s1 + $0x328] sm:$0xff]  }
  0x3d   :  { %10778 = vmatpush3.bf16.msra.mxu1 %v11960_v14  ;;  %v12009_v14 = vld [vmem:[%s15636_s1 + $0x3e8] sm:$0xff]  }
  0x3e   :  { %10779 = vmatprep.subr.bf16.mxu1 %v11963_v18  ;;  %v12013_v18 = vld [vmem:[%s15636_s1 + $0x3e0] sm:$0xff]  }
  0x3f   :  { %10758 = vmatpush3.bf16.msra.mxu0 %v11962_v19  ;;  %v12012_v19 = vld [vmem:[%s15636_s1 + $0x320] sm:$0xff]  }
  0x40   :  { %10787 = vmatprep.subr.bf16.mxu0 %v11965_v23  ;;  %v12016_v23 = vld [vmem:[%s15636_s1 + $0x318] sm:$0xff]  }
  0x41   :  { %10780 = vmatpush3.bf16.msra.mxu1 %v11964_v22  ;;  %v12017_v22 = vld [vmem:[%s15636_s1 + $0x3d8] sm:$0xff]  }
  0x42   :  { %10809 = vmatprep.subr.bf16.mxu1 %v11968_v25  ;;  %7596 = vmatmul.mubr.bf16.vlgmr.msra.gmra.mxu0 %v642_v27  ;;  %v12019_v25 = vld [vmem:[%s15636_s1 + $0x350] sm:$0xff]  }
  0x43   :  { %10788 = vmatpush3.bf16.msra.mxu0 %v11967_v26  ;;  %7675 = vmatprep.mubr.bf16.mxu0 %v647_v63  ;;  %v12021_v26 = vld [vmem:[%s15636_s1 + $0x3d0] sm:$0xff]   ;;  %v12047_v63 = vld [vmem:[%s15636_s1 + $0x4a0] sm:$0xff]  }
  0x44   :  { %7636 = vmatmul.mubr.bf16.vlgmr.msra.gmra.mxu1 %v644_v28  ;;  %10789 = vmatprep.subr.bf16.mxu0 %v11970_v30  ;;  %v12020_v27 = vld [vmem:[%s15636_s1 + $0x310] sm:$0xff]   ;;  %v12025_v30 = vld [vmem:[%s15636_s1 + $0x3c8] sm:$0xff]  }
  0x45   :  { %10810 = vmatpush3.bf16.msra.mxu1 %v11969_v29  ;;  %7715 = vmatprep.mubr.bf16.mxu1 %v649_v3  ;;  %v12022_v28 = vld [vmem:[%s15636_s1 + $0x390] sm:$0xff]   ;;  %v12023_v29 = vld [vmem:[%s15636_s1 + $0x348] sm:$0xff]   ;;  %v12051_v3 = vld [vmem:[%s15636_s1 + $0x498] sm:$0xff]  }
  0x46   :  { %10811 = vmatprep.subr.bf16.mxu1 %v11972_v31  ;;  %v12024_v31 = vld [vmem:[%s15636_s1 + $0x308] sm:$0xff]  }
  0x47   :  { %10790 = vmatpush3.bf16.msra.mxu0 %v11971_v32  ;;  %v31_v32 = vld [vmem:[%s15635_s0 + $0x18] sm:$0xff] }
  0x48   :  { %10791 = vmatprep.subr.bf16.mxu0 %v11974_v34  ;;  %v140_v34 = vrot.slane %v31_v32, %v12953_v41 }
  0x49   :  { %10812 = vmatpush3.bf16.msra.mxu1 %v11973_v33  ;;  %v12026_v33 = vld [vmem:[%s15636_s1 + $0x388] sm:$0xff]  }
  0x4a   :  { %10813 = vmatprep.subr.bf16.mxu1 %v11976_v35  ;;  %v133_v35 = vcombine.high %v31_v32, %v31_v32  ;;  %v12070_v32 = vld [vmem:[%s15636_s1 + $0x530] sm:$0xff]  }
  0x4b   :  { %10792 = vmatpush3.bf16.msra.mxu0 %v11975_v36  ;;  %v12027_v36 = vld [vmem:[%s15636_s1 + $0x340] sm:$0xff]  }
  0x4c   :  { %10793 = vmatprep.subr.bf16.mxu0 %v11978_v38  ;;  %v148_v38 = vcombine.high %v140_v34, %v140_v34 }
  0x4d   :  { %10814 = vmatpush3.bf16.msra.mxu1 %v11977_v37  ;;  %v12029_v37 = vld [vmem:[%s15636_s1 + $0x3c0] sm:$0xff]  }
  0x4e   :  { %10815 = vmatprep.subr.bf16.mxu1 %v11980_v39  ;;  %v147_v39 = vrot.slane %v133_v35, %v12953_v41  ;;  %v12075_v35 = vld [vmem:[%s15636_s1 + $0x5e8] sm:$0xff]  }
  0x4f   :  { %10794 = vmatpush3.bf16.msra.mxu0 %v11979_v40  ;;  %v12028_v40 = vld [vmem:[%s15636_s1 + $0x300] sm:$0xff]  }
  0x50   :  { %10795 = vmatprep.subr.bf16.mxu0 %v11982_v43  ;;  %v12030_v43 = vld [vmem:[%s15636_s1 + $0x380] sm:$0xff]  }
  0x51   :  { %10816 = vmatpush3.bf16.msra.mxu1 %v11981_v42  ;;  %v651_v42 = vpack.c.bf16 %v148_v38, %v148_v38  ;;  %v12077_v38 = vld [vmem:[%s15636_s1 + $0x560] sm:$0xff]  }
  0x52   :  { %10817 = vmatprep.subr.bf16.mxu1 %v11984_v44  ;;  %v149_v44 = vcombine.high %v147_v39, %v147_v39 }
  0x53   :  { %10796 = vmatpush3.bf16.msra.mxu0 %v11983_v45  ;;  %v12031_v45 = vld [vmem:[%s15636_s1 + $0x478] sm:$0xff]  }
  0x54   :  { %10797 = vmatprep.subr.bf16.mxu0 %v11986_v47  ;;  %v12034_v47 = vld [vmem:[%s15636_s1 + $0x4f8] sm:$0xff]  }
  0x55   :  { %10818 = vmatpush3.bf16.msra.mxu1 %v11985_v46  ;;  %v653_v46 = vpack.c.bf16 %v149_v44, %v149_v44  ;;  %v12083_v44 = vld [vmem:[%s15636_s1 + $0x5d8] sm:$0xff]  }
  0x56   :  { %10819 = vmatprep.subr.bf16.mxu1 %v11988_v48  ;;  %v12033_v48 = vld [vmem:[%s15636_s1 + $0x438] sm:$0xff]  }
  0x57   :  { %10798 = vmatpush3.bf16.msra.mxu0 %v11987_v49  ;;  %v650_v49 = vpack.c.bf16 %v140_v34, %v140_v34  ;;  %v12073_v34 = vld [vmem:[%s15636_s1 + $0x568] sm:$0xff]  }
  0x58   :  { %10799 = vmatprep.subr.bf16.mxu0 %v11990_v51  ;;  %v12035_v51 = vld [vmem:[%s15636_s1 + $0x4b8] sm:$0xff]  }
  0x59   :  { %10820 = vmatpush3.bf16.msra.mxu1 %v11989_v50  ;;  %v652_v50 = vpack.c.bf16 %v147_v39, %v147_v39  ;;  %v12079_v39 = vld [vmem:[%s15636_s1 + $0x5e0] sm:$0xff]  }
  0x5a   :  { %10821 = vmatprep.subr.bf16.mxu1 %v11992_v52  ;;  %v12036_v52 = vld [vmem:[%s15636_s1 + $0x470] sm:$0xff]  }
  0x5b   :  { %10800 = vmatpush3.bf16.msra.mxu0 %v11991_v54  ;;  %v12037_v54 = vld [vmem:[%s15636_s1 + $0x430] sm:$0xff]  }
  0x5c   :  { %10801 = vmatprep.subr.bf16.mxu0 %v11994_v58  ;;  %v12041_v58 = vld [vmem:[%s15636_s1 + $0x428] sm:$0xff]  }
  0x5d   :  { %10822 = vmatpush3.bf16.msra.mxu1 %v11993_v57  ;;  %v12042_v57 = vld [vmem:[%s15636_s1 + $0x4e8] sm:$0xff]  }
  0x5e   :  { %10823 = vmatprep.subr.bf16.mxu1 %v11996_v61  ;;  %v12046_v61 = vld [vmem:[%s15636_s1 + $0x4e0] sm:$0xff]  }
  0x5f   :  { %10802 = vmatpush3.bf16.msra.mxu0 %v11995_v62  ;;  %v12045_v62 = vld [vmem:[%s15636_s1 + $0x420] sm:$0xff]  }
  0x60   :  { %10831 = vmatprep.subr.bf16.mxu0 %v11998_v2  ;;  %v12049_v2 = vld [vmem:[%s15636_s1 + $0x418] sm:$0xff]  }
  0x61   :  { %10824 = vmatpush3.bf16.msra.mxu1 %v11997_v1  ;;  %v12050_v1 = vld [vmem:[%s15636_s1 + $0x4d8] sm:$0xff]  }
  0x62   :  { %10853 = vmatprep.subr.bf16.mxu1 %v12001_v4  ;;  %7676 = vmatmul.mubr.bf16.vlgmr.msra.gmra.mxu0 %v646_v6  ;;  %v12052_v4 = vld [vmem:[%s15636_s1 + $0x450] sm:$0xff]  }
  0x63   :  { %10832 = vmatpush3.bf16.msra.mxu0 %v12000_v5  ;;  %7755 = vmatprep.mubr.bf16.mxu0 %v651_v42  ;;  %v12054_v5 = vld [vmem:[%s15636_s1 + $0x4d0] sm:$0xff]   ;;  %v12080_v42 = vld [vmem:[%s15636_s1 + $0x5a0] sm:$0xff]  }
  0x64   :  { %7716 = vmatmul.mubr.bf16.vlgmr.msra.gmra.mxu1 %v648_v7  ;;  %10833 = vmatprep.subr.bf16.mxu0 %v12003_v9  ;;  %v12053_v6 = vld [vmem:[%s15636_s1 + $0x410] sm:$0xff]   ;;  %v12058_v9 = vld [vmem:[%s15636_s1 + $0x4c8] sm:$0xff]  }
  0x65   :  { %10854 = vmatpush3.bf16.msra.mxu1 %v12002_v8  ;;  %7795 = vmatprep.mubr.bf16.mxu1 %v653_v46  ;;  %v12055_v7 = vld [vmem:[%s15636_s1 + $0x490] sm:$0xff]   ;;  %v12056_v8 = vld [vmem:[%s15636_s1 + $0x448] sm:$0xff]   ;;  %v12084_v46 = vld [vmem:[%s15636_s1 + $0x598] sm:$0xff]  }
  0x66   :  { %10855 = vmatprep.subr.bf16.mxu1 %v12005_v10  ;;  %v12057_v10 = vld [vmem:[%s15636_s1 + $0x408] sm:$0xff]  }
  0x67   :  { %10834 = vmatpush3.bf16.msra.mxu0 %v12004_v11  ;;  %v32_v11 = vld [vmem:[%s15635_s0 + $0x20] sm:$0xff] }
  0x68   :  { %10835 = vmatprep.subr.bf16.mxu0 %v12007_v13  ;;  %v157_v13 = vrot.slane %v32_v11, %v12953_v41 }
  0x69   :  { %10856 = vmatpush3.bf16.msra.mxu1 %v12006_v12  ;;  %v12059_v12 = vld [vmem:[%s15636_s1 + $0x488] sm:$0xff]  }
  0x6a   :  { %10857 = vmatprep.subr.bf16.mxu1 %v12009_v14  ;;  %v150_v14 = vcombine.high %v32_v11, %v32_v11  ;;  %v12103_v11 = vld [vmem:[%s15636_s1 + $0x630] sm:$0xff]  }
  0x6b   :  { %10836 = vmatpush3.bf16.msra.mxu0 %v12008_v15  ;;  %v12060_v15 = vld [vmem:[%s15636_s1 + $0x440] sm:$0xff]  }
  0x6c   :  { %10837 = vmatprep.subr.bf16.mxu0 %v12011_v17  ;;  %v165_v17 = vcombine.high %v157_v13, %v157_v13 }
  0x6d   :  { %10858 = vmatpush3.bf16.msra.mxu1 %v12010_v16  ;;  %v12062_v16 = vld [vmem:[%s15636_s1 + $0x4c0] sm:$0xff]  }
  0x6e   :  { %10859 = vmatprep.subr.bf16.mxu1 %v12013_v18  ;;  %v164_v18 = vrot.slane %v150_v14, %v12953_v41  ;;  %v12108_v14 = vld [vmem:[%s15636_s1 + $0x6e8] sm:$0xff]  }
  0x6f   :  { %10838 = vmatpush3.bf16.msra.mxu0 %v12012_v19  ;;  %v12061_v19 = vld [vmem:[%s15636_s1 + $0x400] sm:$0xff]  }
  0x70   :  { %10839 = vmatprep.subr.bf16.mxu0 %v12015_v21  ;;  %v12063_v21 = vld [vmem:[%s15636_s1 + $0x480] sm:$0xff]  }
  0x71   :  { %10860 = vmatpush3.bf16.msra.mxu1 %v12014_v20  ;;  %v655_v20 = vpack.c.bf16 %v165_v17, %v165_v17  ;;  %v12110_v17 = vld [vmem:[%s15636_s1 + $0x660] sm:$0xff]  }
  0x72   :  { %10861 = vmatprep.subr.bf16.mxu1 %v12017_v22  ;;  %v166_v22 = vcombine.high %v164_v18, %v164_v18 }
  0x73   :  { %10840 = vmatpush3.bf16.msra.mxu0 %v12016_v23  ;;  %v12064_v23 = vld [vmem:[%s15636_s1 + $0x578] sm:$0xff]  }
  0x74   :  { %10841 = vmatprep.subr.bf16.mxu0 %v12019_v25  ;;  %v12067_v25 = vld [vmem:[%s15636_s1 + $0x5f8] sm:$0xff]  }
  0x75   :  { %10862 = vmatpush3.bf16.msra.mxu1 %v12018_v24  ;;  %v657_v24 = vpack.c.bf16 %v166_v22, %v166_v22  ;;  %v12116_v22 = vld [vmem:[%s15636_s1 + $0x6d8] sm:$0xff]  }
  0x76   :  { %10863 = vmatprep.subr.bf16.mxu1 %v12021_v26  ;;  %v12066_v26 = vld [vmem:[%s15636_s1 + $0x538] sm:$0xff]  }
  0x77   :  { %10842 = vmatpush3.bf16.msra.mxu0 %v12020_v27  ;;  %v654_v27 = vpack.c.bf16 %v157_v13, %v157_v13  ;;  %v12106_v13 = vld [vmem:[%s15636_s1 + $0x668] sm:$0xff]  }
  0x78   :  { %10843 = vmatprep.subr.bf16.mxu0 %v12023_v29  ;;  %v12068_v29 = vld [vmem:[%s15636_s1 + $0x5b8] sm:$0xff]  }
  0x79   :  { %10864 = vmatpush3.bf16.msra.mxu1 %v12022_v28  ;;  %v656_v28 = vpack.c.bf16 %v164_v18, %v164_v18  ;;  %v12112_v18 = vld [vmem:[%s15636_s1 + $0x6e0] sm:$0xff]  }
  0x7a   :  { %10865 = vmatprep.subr.bf16.mxu1 %v12025_v30  ;;  %v12069_v30 = vld [vmem:[%s15636_s1 + $0x570] sm:$0xff]  }
  0x7b   :  { %10844 = vmatpush3.bf16.msra.mxu0 %v12024_v31  ;;  %v12071_v31 = vld [vmem:[%s15636_s1 + $0x5f0] sm:$0xff]  }
  0x7c   :  { %10845 = vmatprep.subr.bf16.mxu0 %v12027_v36  ;;  %v12074_v36 = vld [vmem:[%s15636_s1 + $0x528] sm:$0xff]  }
  0x7d   :  { %10866 = vmatpush3.bf16.msra.mxu1 %v12026_v33  ;;  %v12072_v33 = vld [vmem:[%s15636_s1 + $0x5b0] sm:$0xff]  }
  0x7e   :  { %10867 = vmatprep.subr.bf16.mxu1 %v12029_v37  ;;  %v12076_v37 = vld [vmem:[%s15636_s1 + $0x5a8] sm:$0xff]  }
  0x7f   :  { %10846 = vmatpush3.bf16.msra.mxu0 %v12028_v40  ;;  %v12078_v40 = vld [vmem:[%s15636_s1 + $0x520] sm:$0xff]  }
  0x80   :  { %10875 = vmatprep.subr.bf16.mxu0 %v12031_v45  ;;  %v12082_v45 = vld [vmem:[%s15636_s1 + $0x518] sm:$0xff]  }
  0x81   :  { %10868 = vmatpush3.bf16.msra.mxu1 %v12030_v43  ;;  %v12081_v43 = vld [vmem:[%s15636_s1 + $0x558] sm:$0xff]  }
  0x82   :  { %10897 = vmatprep.subr.bf16.mxu1 %v12034_v47  ;;  %7756 = vmatmul.mubr.bf16.vlgmr.msra.gmra.mxu0 %v650_v49  ;;  %v12085_v47 = vld [vmem:[%s15636_s1 + $0x550] sm:$0xff]  }
  0x83   :  { %10876 = vmatpush3.bf16.msra.mxu0 %v12033_v48  ;;  %7835 = vmatprep.mubr.bf16.mxu0 %v655_v20  ;;  %v12087_v48 = vld [vmem:[%s15636_s1 + $0x5d0] sm:$0xff]   ;;  %v12113_v20 = vld [vmem:[%s15636_s1 + $0x6a0] sm:$0xff]  }
  0x84   :  { %7796 = vmatmul.mubr.bf16.vlgmr.msra.gmra.mxu1 %v652_v50  ;;  %10877 = vmatprep.subr.bf16.mxu0 %v12036_v52  ;;  %v12086_v49 = vld [vmem:[%s15636_s1 + $0x510] sm:$0xff]   ;;  %v12091_v52 = vld [vmem:[%s15636_s1 + $0x5c8] sm:$0xff]  }
  0x85   :  { %10898 = vmatpush3.bf16.msra.mxu1 %v12035_v51  ;;  %7875 = vmatprep.mubr.bf16.mxu1 %v657_v24  ;;  %v12088_v50 = vld [vmem:[%s15636_s1 + $0x590] sm:$0xff]   ;;  %v12089_v51 = vld [vmem:[%s15636_s1 + $0x548] sm:$0xff]   ;;  %v12117_v24 = vld [vmem:[%s15636_s1 + $0x698] sm:$0xff]  }
  0x86   :  { %10899 = vmatprep.subr.bf16.mxu1 %v12038_v53  ;;  %v12090_v53 = vld [vmem:[%s15636_s1 + $0x508] sm:$0xff]  }
  0x87   :  { %10878 = vmatpush3.bf16.msra.mxu0 %v12037_v54  ;;  %v33_v54 = vld [vmem:[%s15635_s0 + $0x28] sm:$0xff] }
  0x88   :  { %10879 = vmatprep.subr.bf16.mxu0 %v12040_v56  ;;  %v174_v56 = vrot.slane %v33_v54, %v12953_v41 }
  0x89   :  { %10900 = vmatpush3.bf16.msra.mxu1 %v12039_v55  ;;  %v12092_v55 = vld [vmem:[%s15636_s1 + $0x588] sm:$0xff]  }
  0x8a   :  { %10901 = vmatprep.subr.bf16.mxu1 %v12042_v57  ;;  %v167_v57 = vcombine.high %v33_v54, %v33_v54  ;;  %v12136_v54 = vld [vmem:[%s15636_s1 + $0x730] sm:$0xff]  }
  0x8b   :  { %10880 = vmatpush3.bf16.msra.mxu0 %v12041_v58  ;;  %v12093_v58 = vld [vmem:[%s15636_s1 + $0x540] sm:$0xff]  }
  0x8c   :  { %10881 = vmatprep.subr.bf16.mxu0 %v12044_v60  ;;  %v182_v60 = vcombine.high %v174_v56, %v174_v56 }
  0x8d   :  { %10902 = vmatpush3.bf16.msra.mxu1 %v12043_v59  ;;  %v12095_v59 = vld [vmem:[%s15636_s1 + $0x5c0] sm:$0xff]  }
  0x8e   :  { %10903 = vmatprep.subr.bf16.mxu1 %v12046_v61  ;;  %v181_v61 = vrot.slane %v167_v57, %v12953_v41 }
  0x8f   :  { %10882 = vmatpush3.bf16.msra.mxu0 %v12045_v62  ;;  %v12094_v62 = vld [vmem:[%s15636_s1 + $0x500] sm:$0xff]  }
  0x90   :  { %10883 = vmatprep.subr.bf16.mxu0 %v12048_v0  ;;  %v12096_v0 = vld [vmem:[%s15636_s1 + $0x580] sm:$0xff]  }
  0x91   :  { %10904 = vmatpush3.bf16.msra.mxu1 %v12047_v63  ;;  %v659_v63 = vpack.c.bf16 %v182_v60, %v182_v60 }
  0x92   :  { %10905 = vmatprep.subr.bf16.mxu1 %v12050_v1  ;;  %v183_v1 = vcombine.high %v181_v61, %v181_v61 }
  0x93   :  { %10884 = vmatpush3.bf16.msra.mxu0 %v12049_v2  ;;  %v12097_v2 = vld [vmem:[%s15636_s1 + $0x678] sm:$0xff]  }
  0x94   :  { %10885 = vmatprep.subr.bf16.mxu0 %v12052_v4  ;;  %v12100_v4 = vld [vmem:[%s15636_s1 + $0x6f8] sm:$0xff]  }
  0x95   :  { %10906 = vmatpush3.bf16.msra.mxu1 %v12051_v3  ;;  %v661_v3 = vpack.c.bf16 %v183_v1, %v183_v1  ;;  %v12140_v1 = vld [vmem:[%s15636_s1 + $0x728] sm:$0xff]  }
  0x96   :  { %10907 = vmatprep.subr.bf16.mxu1 %v12054_v5  ;;  %v12099_v5 = vld [vmem:[%s15636_s1 + $0x638] sm:$0xff]  }
  0x97   :  { %10886 = vmatpush3.bf16.msra.mxu0 %v12053_v6  ;;  %v658_v6 = vpack.c.bf16 %v174_v56, %v174_v56  ;;  %v9838_v56 = vld [vmem:[%s15637_s2] ss:$0 sm:$0xff] }
  0x98   :  { %10887 = vmatprep.subr.bf16.mxu0 %v12056_v8  ;;  %v12101_v8 = vld [vmem:[%s15636_s1 + $0x6b8] sm:$0xff]  }
  0x99   :  { %10908 = vmatpush3.bf16.msra.mxu1 %v12055_v7  ;;  %v660_v7 = vpack.c.bf16 %v181_v61, %v181_v61 }
  0x9a   :  { %10909 = vmatprep.subr.bf16.mxu1 %v12058_v9  ;;  %v12102_v9 = vld [vmem:[%s15636_s1 + $0x670] sm:$0xff]  }
  0x9b   :  { %10888 = vmatpush3.bf16.msra.mxu0 %v12057_v10  ;;  %v12104_v10 = vld [vmem:[%s15636_s1 + $0x6f0] sm:$0xff]  }
  0x9c   :  { %10889 = vmatprep.subr.bf16.mxu0 %v12060_v15  ;;  %v12107_v15 = vld [vmem:[%s15636_s1 + $0x628] sm:$0xff]  }
  0x9d   :  { %10910 = vmatpush3.bf16.msra.mxu1 %v12059_v12  ;;  %v12105_v12 = vld [vmem:[%s15636_s1 + $0x6b0] sm:$0xff]  }
  0x9e   :  { %10911 = vmatprep.subr.bf16.mxu1 %v12062_v16  ;;  %v12109_v16 = vld [vmem:[%s15636_s1 + $0x6a8] sm:$0xff]  }
  0x9f   :  { %10890 = vmatpush3.bf16.msra.mxu0 %v12061_v19  ;;  %v12111_v19 = vld [vmem:[%s15636_s1 + $0x620] sm:$0xff]  }
  0xa0   :  { %10919 = vmatprep.subr.bf16.mxu0 %v12064_v23  ;;  %v12115_v23 = vld [vmem:[%s15636_s1 + $0x618] sm:$0xff]  }
  0xa1   :  { %10912 = vmatpush3.bf16.msra.mxu1 %v12063_v21  ;;  %v12114_v21 = vld [vmem:[%s15636_s1 + $0x658] sm:$0xff]  }
  0xa2   :  { %10941 = vmatprep.subr.bf16.mxu1 %v12067_v25  ;;  %7836 = vmatmul.mubr.bf16.vlgmr.msra.gmra.mxu0 %v654_v27  ;;  %v12118_v25 = vld [vmem:[%s15636_s1 + $0x650] sm:$0xff]  }
  0xa3   :  { %10920 = vmatpush3.bf16.msra.mxu0 %v12066_v26  ;;  %7915 = vmatprep.mubr.bf16.mxu0 %v659_v63  ;;  %v12120_v26 = vld [vmem:[%s15636_s1 + $0x6d0] sm:$0xff]  }
  0xa4   :  { %7876 = vmatmul.mubr.bf16.vlgmr.msra.gmra.mxu1 %v656_v28  ;;  %10921 = vmatprep.subr.bf16.mxu0 %v12069_v30  ;;  %v12119_v27 = vld [vmem:[%s15636_s1 + $0x610] sm:$0xff]   ;;  %v12124_v30 = vld [vmem:[%s15636_s1 + $0x6c8] sm:$0xff]  }
  0xa5   :  { %10942 = vmatpush3.bf16.msra.mxu1 %v12068_v29  ;;  %7955 = vmatprep.mubr.bf16.mxu1 %v661_v3  ;;  %v12121_v28 = vld [vmem:[%s15636_s1 + $0x690] sm:$0xff]   ;;  %v12122_v29 = vld [vmem:[%s15636_s1 + $0x648] sm:$0xff]  }
  0xa6   :  { %10943 = vmatprep.subr.bf16.mxu1 %v12071_v31  ;;  %v12123_v31 = vld [vmem:[%s15636_s1 + $0x608] sm:$0xff]  }
  0xa7   :  { %10922 = vmatpush3.bf16.msra.mxu0 %v12070_v32  ;;  %v12125_v32 = vld [vmem:[%s15636_s1 + $0x688] sm:$0xff]  }
  0xa8   :  { %10923 = vmatprep.subr.bf16.mxu0 %v12073_v34  ;;  %v12126_v34 = vld [vmem:[%s15636_s1 + $0x640] sm:$0xff]   ;;  %v12142_v3 = vld [vmem:[%s15636_s1 + $0x7a8] sm:$0xff]  }
  0xa9   :  { %10944 = vmatpush3.bf16.msra.mxu1 %v12072_v33  ;;  %v34_v33 = vld [vmem:[%s15635_s0 + $0x30] sm:$0xff] }
  0xaa   :  { %10945 = vmatprep.subr.bf16.mxu1 %v12075_v35  ;;  %v191_v35 = vrot.slane %v34_v33, %v12953_v41 }
  0xab   :  { %10924 = vmatpush3.bf16.msra.mxu0 %v12074_v36  ;;  %v184_v36 = vcombine.high %v34_v33, %v34_v33 }
  0xac   :  { %10925 = vmatprep.subr.bf16.mxu0 %v12077_v38  ;;  %v199_v38 = vcombine.high %v191_v35, %v191_v35 }
  0xad   :  { %10946 = vmatpush3.bf16.msra.mxu1 %v12076_v37  ;;  %v12128_v37 = vld [vmem:[%s15636_s1 + $0x6c0] sm:$0xff]  }
  0xae   :  { %10947 = vmatprep.subr.bf16.mxu1 %v12079_v39  ;;  %v198_v39 = vrot.slane %v184_v36, %v12953_v41  ;;  %v12163_v36 = vld [vmem:[%s15636_s1 + $0x878] sm:$0xff]  }
  0xaf   :  { %10926 = vmatpush3.bf16.msra.mxu0 %v12078_v40  ;;  %v12127_v40 = vld [vmem:[%s15636_s1 + $0x600] sm:$0xff]  }
  0xb0   :  { %10927 = vmatprep.subr.bf16.mxu0 %v12081_v43  ;;  %v12129_v43 = vld [vmem:[%s15636_s1 + $0x680] sm:$0xff]  }
  0xb1   :  { %10948 = vmatpush3.bf16.msra.mxu1 %v12080_v42  ;;  %v663_v42 = vpack.c.bf16 %v199_v38, %v199_v38  ;;  %v12165_v38 = vld [vmem:[%s15636_s1 + $0x838] sm:$0xff]  }
  0xb2   :  { %10949 = vmatprep.subr.bf16.mxu1 %v12083_v44  ;;  %v200_v44 = vcombine.high %v198_v39, %v198_v39 }
  0xb3   :  { %10928 = vmatpush3.bf16.msra.mxu0 %v12082_v45  ;;  %v12130_v45 = vld [vmem:[%s15636_s1 + $0x778] sm:$0xff]  }
  0xb4   :  { %10929 = vmatprep.subr.bf16.mxu0 %v12085_v47  ;;  %v12132_v47 = vld [vmem:[%s15636_s1 + $0x738] sm:$0xff]  }
  0xb5   :  { %10950 = vmatpush3.bf16.msra.mxu1 %v12084_v46  ;;  %v665_v46 = vpack.c.bf16 %v200_v44, %v200_v44  ;;  %v12168_v44 = vld [vmem:[%s15636_s1 + $0x870] sm:$0xff]  }
  0xb6   :  { %10951 = vmatprep.subr.bf16.mxu1 %v12087_v48  ;;  %v12133_v48 = vld [vmem:[%s15636_s1 + $0x7f8] sm:$0xff]  }
  0xb7   :  { %10930 = vmatpush3.bf16.msra.mxu0 %v12086_v49  ;;  %v662_v49 = vpack.c.bf16 %v191_v35, %v191_v35 }
  0xb8   :  { %10931 = vmatprep.subr.bf16.mxu0 %v12089_v51  ;;  %v12134_v51 = vld [vmem:[%s15636_s1 + $0x7b8] sm:$0xff]  }
  0xb9   :  { %10952 = vmatpush3.bf16.msra.mxu1 %v12088_v50  ;;  %v664_v50 = vpack.c.bf16 %v198_v39, %v198_v39  ;;  %v12166_v39 = vld [vmem:[%s15636_s1 + $0x8f8] sm:$0xff]  }
  0xba   :  { %10953 = vmatprep.subr.bf16.mxu1 %v12091_v52  ;;  %v12135_v52 = vld [vmem:[%s15636_s1 + $0x770] sm:$0xff]  }
  0xbb   :  { %10932 = vmatpush3.bf16.msra.mxu0 %v12090_v53  ;;  %v12137_v53 = vld [vmem:[%s15636_s1 + $0x7f0] sm:$0xff]  }
  0xbc   :  { %10933 = vmatprep.subr.bf16.mxu0 %v12093_v58  ;;  %v12138_v58 = vld [vmem:[%s15636_s1 + $0x7b0] sm:$0xff]  }
  0xbd   :  { %10954 = vmatpush3.bf16.msra.mxu1 %v12092_v55 }
  0xbe   :  { %10955 = vmatprep.subr.bf16.mxu1 %v12095_v59  ;;  %v12139_v59 = vld [vmem:[%s15636_s1 + $0x768] sm:$0xff]  }
  0xbf   :  { %10934 = vmatpush3.bf16.msra.mxu0 %v12094_v62  ;;  %v12141_v62 = vld [vmem:[%s15636_s1 + $0x7e8] sm:$0xff]  }
  0xc0   :  { %10963 = vmatprep.subr.bf16.mxu0 %v12097_v2 }
  0xc1   :  { %10956 = vmatpush3.bf16.msra.mxu1 %v12096_v0 }
  0xc2   :  { %10985 = vmatprep.subr.bf16.mxu1 %v12100_v4  ;;  %7916 = vmatmul.mubr.bf16.vlgmr.msra.gmra.mxu0 %v658_v6  ;;  %v12143_v6 = vld [vmem:[%s15636_s1 + $0x760] sm:$0xff]  }
  0xc3   :  { %10964 = vmatpush3.bf16.msra.mxu0 %v12099_v5  ;;  %7995 = vmatprep.mubr.bf16.mxu0 %v663_v42 }
  0xc4   :  { %7956 = vmatmul.mubr.bf16.vlgmr.msra.gmra.mxu1 %v660_v7  ;;  %10965 = vmatprep.subr.bf16.mxu0 %v12102_v9 }
  0xc5   :  { %10986 = vmatpush3.bf16.msra.mxu1 %v12101_v8  ;;  %8035 = vmatprep.mubr.bf16.mxu1 %v665_v46  ;;  %v12145_v8 = vld [vmem:[%s15636_s1 + $0x7e0] sm:$0xff]   ;;  %v12169_v46 = vld [vmem:[%s15636_s1 + $0x830] sm:$0xff]  }
  0xc6   :  { %10987 = vmatprep.subr.bf16.mxu1 %v12104_v10 }
  0xc7   :  { %10966 = vmatpush3.bf16.msra.mxu0 %v12103_v11  ;;  %v12144_v11 = vld [vmem:[%s15636_s1 + $0x720] sm:$0xff]  }
  0xc8   :  { %10967 = vmatprep.subr.bf16.mxu0 %v12106_v13  ;;  %v12147_v13 = vld [vmem:[%s15636_s1 + $0x758] sm:$0xff]  }
  0xc9   :  { %10988 = vmatpush3.bf16.msra.mxu1 %v12105_v12  ;;  %v12146_v12 = vld [vmem:[%s15636_s1 + $0x7a0] sm:$0xff]  }
  0xca   :  { %10989 = vmatprep.subr.bf16.mxu1 %v12108_v14  ;;  %v12149_v14 = vld [vmem:[%s15636_s1 + $0x7d8] sm:$0xff]  }
  0xcb   :  { %10968 = vmatpush3.bf16.msra.mxu0 %v12107_v15  ;;  %v12148_v15 = vld [vmem:[%s15636_s1 + $0x718] sm:$0xff]  }
  0xcc   :  { %10969 = vmatprep.subr.bf16.mxu0 %v12110_v17  ;;  %v12151_v17 = vld [vmem:[%s15636_s1 + $0x750] sm:$0xff]  }
  0xcd   :  { %10990 = vmatpush3.bf16.msra.mxu1 %v12109_v16  ;;  %v12150_v16 = vld [vmem:[%s15636_s1 + $0x798] sm:$0xff]  }
  0xce   :  { %10991 = vmatprep.subr.bf16.mxu1 %v12112_v18  ;;  %v12153_v18 = vld [vmem:[%s15636_s1 + $0x7d0] sm:$0xff]  }
  0xcf   :  { %10970 = vmatpush3.bf16.msra.mxu0 %v12111_v19  ;;  %v12152_v19 = vld [vmem:[%s15636_s1 + $0x710] sm:$0xff]  }
  0xd0   :  { %10971 = vmatprep.subr.bf16.mxu0 %v12114_v21  ;;  %v12155_v21 = vld [vmem:[%s15636_s1 + $0x748] sm:$0xff]  }
  0xd1   :  { %10992 = vmatpush3.bf16.msra.mxu1 %v12113_v20  ;;  %v12154_v20 = vld [vmem:[%s15636_s1 + $0x790] sm:$0xff]  }
  0xd2   :  { %10993 = vmatprep.subr.bf16.mxu1 %v12116_v22  ;;  %v12157_v22 = vld [vmem:[%s15636_s1 + $0x7c8] sm:$0xff]  }
  0xd3   :  { %10972 = vmatpush3.bf16.msra.mxu0 %v12115_v23  ;;  %v12156_v23 = vld [vmem:[%s15636_s1 + $0x708] sm:$0xff]  }
  0xd4   :  { %10973 = vmatprep.subr.bf16.mxu0 %v12118_v25  ;;  %v35_v25 = vld [vmem:[%s15635_s0 + $0x38] sm:$0xff] }
  0xd5   :  { %10994 = vmatpush3.bf16.msra.mxu1 %v12117_v24  ;;  %v12158_v24 = vld [vmem:[%s15636_s1 + $0x788] sm:$0xff]  }
  0xd6   :  { %10995 = vmatprep.subr.bf16.mxu1 %v12120_v26  ;;  %v12159_v26 = vld [vmem:[%s15636_s1 + $0x740] sm:$0xff]  }
  0xd7   :  { %10974 = vmatpush3.bf16.msra.mxu0 %v12119_v27  ;;  %v208_v27 = vrot.slane %v35_v25, %v12953_v41 }
  0xd8   :  { %10975 = vmatprep.subr.bf16.mxu0 %v12122_v29  ;;  %v12161_v29 = vld [vmem:[%s15636_s1 + $0x7c0] sm:$0xff]  }
  0xd9   :  { %10996 = vmatpush3.bf16.msra.mxu1 %v12121_v28  ;;  %v201_v28 = vcombine.high %v35_v25, %v35_v25 }
  0xda   :  { %10997 = vmatprep.subr.bf16.mxu1 %v12124_v30  ;;  %v216_v30 = vcombine.high %v208_v27, %v208_v27 }
  0xdb   :  { %10976 = vmatpush3.bf16.msra.mxu0 %v12123_v31  ;;  %v215_v31 = vrot.slane %v201_v28, %v12953_v41  ;;  %v12198_v28 = vld [vmem:[%s15636_s1 + $0x938] sm:$0xff]  }
  0xdc   :  { %10977 = vmatprep.subr.bf16.mxu0 %v12126_v34  ;;  %v667_v33 = vpack.c.bf16 %v216_v30, %v216_v30  ;;  %v12162_v34 = vld [vmem:[%s15636_s1 + $0x780] sm:$0xff]  }
  0xdd   :  { %10998 = vmatpush3.bf16.msra.mxu1 %v12125_v32  ;;  %v12160_v32 = vld [vmem:[%s15636_s1 + $0x700] sm:$0xff]   ;;  %v217_v35 = vcombine.high %v215_v31, %v215_v31  ;;  %v668_v42 = vpack.c.bf16 %v215_v31, %v215_v31 }
  0xde   :  { %10999 = vmatprep.subr.bf16.mxu1 %v12128_v37 }
  0xdf   :  { %10978 = vmatpush3.bf16.msra.mxu0 %v12127_v40  ;;  %v669_v37 = vpack.c.bf16 %v217_v35, %v217_v35  ;;  %v666_v40 = vpack.c.bf16 %v208_v27, %v208_v27  ;;  %v12203_v35 = vld [vmem:[%s15636_s1 + $0x9f0] sm:$0xff]  }
  0xe0   :  { %11007 = vmatprep.subr.bf16.mxu0 %v12130_v45  ;;  %v12170_v45 = vld [vmem:[%s15636_s1 + $0x8f0] sm:$0xff]  }
  0xe1   :  { %11000 = vmatpush3.bf16.msra.mxu1 %v12129_v43  ;;  %v12167_v43 = vld [vmem:[%s15636_s1 + $0x8b8] sm:$0xff]  }
  0xe2   :  { %11029 = vmatprep.subr.bf16.mxu1 %v12133_v48  ;;  %v10715_v55 = vpop.f32.mrf.mxu0  ;;  %7996 = vmatmul.mubr.bf16.vlgmr.msra.gmra.mxu0 %v662_v49  ;;  %v12171_v49 = vld [vmem:[%s15636_s1 + $0x8b0] sm:$0xff]  }
  0xe3   :  { %11008 = vmatpush3.bf16.msra.mxu0 %v12132_v47  ;;  %8075 = vmatprep.mubr.bf16.mxu0 %v667_v33  ;;  %v12200_v33 = vld [vmem:[%s15636_s1 + $0x9b8] sm:$0xff]  }
  0xe4   :  { %v10737_v57 = vpop.f32.mrf.mxu1  ;;  %8036 = vmatmul.mubr.bf16.vlgmr.msra.gmra.mxu1 %v664_v50  ;;  %v10716_v60 = vpop.f32.mrf.mxu0  ;;  %11009 = vmatprep.subr.bf16.mxu0 %v12135_v52  ;;  %v12172_v50 = vld [vmem:[%s15636_s1 + $0x868] sm:$0xff]  }
  0xe5   :  { %11030 = vmatpush3.bf16.msra.mxu1 %v12134_v51  ;;  %v10717_v63 = vadd.f32 %v10716_v60, %v10715_v55  ;;  %8115 = vmatprep.mubr.bf16.mxu1 %v669_v37 }
  0xe6   :  { %v10738_v61 = vpop.f32.mrf.mxu1  ;;  %11031 = vmatprep.subr.bf16.mxu1 %v12137_v53  ;;  %v10718_v2 = vpop.f32.mrf.mxu0  ;;  %v12174_v53 = vld [vmem:[%s15636_s1 + $0x8e8] sm:$0xff]  }
  0xe7   :  { %v10739_v0 = vadd.f32 %v10738_v61, %v10737_v57  ;;  %v7518_v5 = vadd.f32 %v10717_v63, %v9838_v56  ;;  %11010 = vmatpush3.bf16.msra.mxu0 %v12136_v54  ;;  %v12173_v56 = vld [vmem:[%s15636_s1 + $0x828] sm:$0xff]   ;;  %v12176_v61 = vld [vmem:[%s15636_s1 + $0x860] sm:$0xff]  }
  0xe8   :  { %v10740_v4 = vpop.f32.mrf.mxu1  ;;  %v10719_v7 = vpop.f32.mrf.mxu0  ;;  %11011 = vmatprep.subr.bf16.mxu0 %v12139_v59  ;;  %v12178_v63 = vld [vmem:[%s15636_s1 + $0x8e0] sm:$0xff]  }
  0xe9   :  { %11032 = vmatpush3.bf16.msra.mxu1 %v12138_v58  ;;  %v13602_v10 = vadd.f32 %v10739_v0, %v7518_v5  ;;  %v12175_v58 = vld [vmem:[%s15636_s1 + $0x8a8] sm:$0xff]   ;;  %v12177_v2 = vld [vmem:[%s15636_s1 + $0x820] sm:$0xff]   ;;  %v12180_v4 = vld [vmem:[%s15636_s1 + $0x858] sm:$0xff]  }
  0xea   :  { %11033 = vmatprep.subr.bf16.mxu1 %v12141_v62  ;;  %v10741_v9 = vpop.f32.mrf.mxu1  ;;  %v12182_v5 = vld [vmem:[%s15636_s1 + $0x8d8] sm:$0xff]  }
  0xeb   :  { %11012 = vmatpush3.bf16.msra.mxu0 %v12140_v1  ;;  %v12183_v7 = vld [vmem:[%s15636_s1 + $0x898] sm:$0xff]   ;;  %v12186_v9 = vld [vmem:[%s15636_s1 + $0x8d0] sm:$0xff]  }
  0xec   :  { %11013 = vmatprep.subr.bf16.mxu0 %v12143_v6  ;;  %v12181_v6 = vld [vmem:[%s15636_s1 + $0x818] sm:$0xff]  }
  0xed   :  { %11034 = vmatpush3.bf16.msra.mxu1 %v12142_v3  ;;  %v12179_v3 = vld [vmem:[%s15636_s1 + $0x8a0] sm:$0xff]  }
  0xee   :  { %11035 = vmatprep.subr.bf16.mxu1 %v12145_v8  ;;  %v12184_v8 = vld [vmem:[%s15636_s1 + $0x850] sm:$0xff]  }
  0xef   :  { %11014 = vmatpush3.bf16.msra.mxu0 %v12144_v11  ;;  %v12187_v11 = vld [vmem:[%s15636_s1 + $0x890] sm:$0xff]  }
  0xf0   :  { %11015 = vmatprep.subr.bf16.mxu0 %v12147_v13  ;;  %v12190_v13 = vld [vmem:[%s15636_s1 + $0x8c8] sm:$0xff]  }
  0xf1   :  { %11036 = vmatpush3.bf16.msra.mxu1 %v12146_v12  ;;  %v12188_v12 = vld [vmem:[%s15636_s1 + $0x848] sm:$0xff]  }
  0xf2   :  { %11037 = vmatprep.subr.bf16.mxu1 %v12149_v14  ;;  %v12189_v14 = vld [vmem:[%s15636_s1 + $0x808] sm:$0xff]  }
  0xf3   :  { %11016 = vmatpush3.bf16.msra.mxu0 %v12148_v15  ;;  %v12191_v15 = vld [vmem:[%s15636_s1 + $0x888] sm:$0xff]  }
  0xf4   :  { %11017 = vmatprep.subr.bf16.mxu0 %v12151_v17  ;;  %v36_v17 = vld [vmem:[%s15635_s0 + $0x40] sm:$0xff] }
  0xf5   :  { %11038 = vmatpush3.bf16.msra.mxu1 %v12150_v16  ;;  %v12192_v16 = vld [vmem:[%s15636_s1 + $0x840] sm:$0xff]  }
  0xf6   :  { %11039 = vmatprep.subr.bf16.mxu1 %v12153_v18  ;;  %v12194_v18 = vld [vmem:[%s15636_s1 + $0x8c0] sm:$0xff]  }
  0xf7   :  { %11018 = vmatpush3.bf16.msra.mxu0 %v12152_v19  ;;  %v225_v19 = vrot.slane %v36_v17, %v12953_v41 }
  0xf8   :  { %11019 = vmatprep.subr.bf16.mxu0 %v12155_v21  ;;  %v12193_v21 = vld [vmem:[%s15636_s1 + $0x800] sm:$0xff]  }
  0xf9   :  { %11040 = vmatpush3.bf16.msra.mxu1 %v12154_v20  ;;  %v218_v20 = vcombine.high %v36_v17, %v36_v17  ;;  %v670_v30 = vpack.c.bf16 %v225_v19, %v225_v19  ;;  %v12229_v17 = vld [vmem:[%s15636_s1 + $0xa78] sm:$0xff]  }
  0xfa   :  { %11041 = vmatprep.subr.bf16.mxu1 %v12157_v22  ;;  %v233_v22 = vcombine.high %v225_v19, %v225_v19  ;;  %v12231_v19 = vld [vmem:[%s15636_s1 + $0xa38] sm:$0xff]  }
  0xfb   :  { %11020 = vmatpush3.bf16.msra.mxu0 %v12156_v23  ;;  %v232_v23 = vrot.slane %v218_v20, %v12953_v41  ;;  %v12232_v20 = vld [vmem:[%s15636_s1 + $0xaf8] sm:$0xff]  }
  0xfc   :  { %11021 = vmatprep.subr.bf16.mxu0 %v12159_v26  ;;  %v671_v25 = vpack.c.bf16 %v233_v22, %v233_v22  ;;  %v12196_v26 = vld [vmem:[%s15636_s1 + $0x978] sm:$0xff]  }
  0xfd   :  { %11042 = vmatpush3.bf16.msra.mxu1 %v12158_v24  ;;  %v12195_v24 = vld [vmem:[%s15636_s1 + $0x880] sm:$0xff]   ;;  %v234_v27 = vcombine.high %v232_v23, %v232_v23 }
  0xfe   :  { %11043 = vmatprep.subr.bf16.mxu1 %v12161_v29  ;;  %v12199_v29 = vld [vmem:[%s15636_s1 + $0x9f8] sm:$0xff]  }
  0xff   :  { %11022 = vmatpush3.bf16.msra.mxu0 %v12160_v32  ;;  %v673_v31 = vpack.c.bf16 %v234_v27, %v234_v27  ;;  %v672_v32 = vpack.c.bf16 %v232_v23, %v232_v23  ;;  %v12235_v27 = vld [vmem:[%s15636_s1 + $0xa30] sm:$0xff]  }
 0x100   :  { %11051 = vmatprep.subr.bf16.mxu0 %v12163_v36  ;;  %v12202_v36 = vld [vmem:[%s15636_s1 + $0x930] sm:$0xff]  }
 0x101   :  { %11044 = vmatpush3.bf16.msra.mxu1 %v12162_v34  ;;  %v12201_v34 = vld [vmem:[%s15636_s1 + $0x970] sm:$0xff]  }
 0x102   :  { %11073 = vmatprep.subr.bf16.mxu1 %v12166_v39  ;;  %v10759_v47 = vpop.f32.mrf.mxu0  ;;  %8076 = vmatmul.mubr.bf16.vlgmr.msra.gmra.mxu0 %v666_v40  ;;  %v12204_v39 = vld [vmem:[%s15636_s1 + $0x9b0] sm:$0xff]   ;;  %v12205_v40 = vld [vmem:[%s15636_s1 + $0x968] sm:$0xff]  }
 0x103   :  { %11052 = vmatpush3.bf16.msra.mxu0 %v12165_v38  ;;  %8155 = vmatprep.mubr.bf16.mxu0 %v671_v25  ;;  %v12234_v25 = vld [vmem:[%s15636_s1 + $0xa70] sm:$0xff]  }
 0x104   :  { %v10781_v48 = vpop.f32.mrf.mxu1  ;;  %8116 = vmatmul.mubr.bf16.vlgmr.msra.gmra.mxu1 %v668_v42  ;;  %v10760_v51 = vpop.f32.mrf.mxu0  ;;  %11053 = vmatprep.subr.bf16.mxu0 %v12168_v44  ;;  %v12207_v44 = vld [vmem:[%s15636_s1 + $0x9e8] sm:$0xff]  }
 0x105   :  { %11074 = vmatpush3.bf16.msra.mxu1 %v12167_v43  ;;  %v10761_v54 = vadd.f32 %v10760_v51, %v10759_v47  ;;  %8195 = vmatprep.mubr.bf16.mxu1 %v673_v31  ;;  %v12206_v47 = vld [vmem:[%s15636_s1 + $0x928] sm:$0xff]  }
 0x106   :  { %v10782_v52 = vpop.f32.mrf.mxu1  ;;  %11075 = vmatprep.subr.bf16.mxu1 %v12170_v45  ;;  %v10762_v57 = vpop.f32.mrf.mxu0  ;;  %v12238_v31 = vld [vmem:[%s15636_s1 + $0xa68] sm:$0xff]  }
 0x107   :  { %v10783_v55 = vadd.f32 %v10782_v52, %v10781_v48  ;;  %v7598_v60 = vadd.f32 %v10761_v54, %v13602_v10  ;;  %11054 = vmatpush3.bf16.msra.mxu0 %v12169_v46  ;;  %v12185_v10 = vld [vmem:[%s15636_s1 + $0x810] sm:$0xff]   ;;  %v12209_v52 = vld [vmem:[%s15636_s1 + $0x960] sm:$0xff]  }
 0x108   :  { %v10784_v59 = vpop.f32.mrf.mxu1  ;;  %v10763_v62 = vpop.f32.mrf.mxu0  ;;  %11055 = vmatprep.subr.bf16.mxu0 %v12172_v50  ;;  %v12211_v54 = vld [vmem:[%s15636_s1 + $0x9e0] sm:$0xff]  }
 0x109   :  { %11076 = vmatpush3.bf16.msra.mxu1 %v12171_v49  ;;  %v13706_v1 = vadd.f32 %v10783_v55, %v7598_v60  ;;  %v12208_v49 = vld [vmem:[%s15636_s1 + $0x9a8] sm:$0xff]   ;;  %v12210_v57 = vld [vmem:[%s15636_s1 + $0x920] sm:$0xff]   ;;  %v12213_v59 = vld [vmem:[%s15636_s1 + $0x958] sm:$0xff]  }
 0x10a   :  { %11077 = vmatprep.subr.bf16.mxu1 %v12174_v53  ;;  %v10785_v0 = vpop.f32.mrf.mxu1  ;;  %v12215_v60 = vld [vmem:[%s15636_s1 + $0x9d8] sm:$0xff]  }
 0x10b   :  { %11056 = vmatpush3.bf16.msra.mxu0 %v12173_v56  ;;  %v12216_v62 = vld [vmem:[%s15636_s1 + $0x998] sm:$0xff]   ;;  %v12219_v0 = vld [vmem:[%s15636_s1 + $0x9d0] sm:$0xff]  }
 0x10c   :  { %11057 = vmatprep.subr.bf16.mxu0 %v12176_v61  ;;  %v12214_v61 = vld [vmem:[%s15636_s1 + $0x918] sm:$0xff]  }
 0x10d   :  { %11078 = vmatpush3.bf16.msra.mxu1 %v12175_v58  ;;  %v12212_v58 = vld [vmem:[%s15636_s1 + $0x9a0] sm:$0xff]  }
 0x10e   :  { %11079 = vmatprep.subr.bf16.mxu1 %v12178_v63  ;;  %v12217_v63 = vld [vmem:[%s15636_s1 + $0x950] sm:$0xff]  }
 0x10f   :  { %11058 = vmatpush3.bf16.msra.mxu0 %v12177_v2  ;;  %v12220_v2 = vld [vmem:[%s15636_s1 + $0x990] sm:$0xff]  }
 0x110   :  { %11059 = vmatprep.subr.bf16.mxu0 %v12180_v4  ;;  %v12223_v4 = vld [vmem:[%s15636_s1 + $0x9c8] sm:$0xff]  }
 0x111   :  { %11080 = vmatpush3.bf16.msra.mxu1 %v12179_v3  ;;  %v12221_v3 = vld [vmem:[%s15636_s1 + $0x948] sm:$0xff]  }
 0x112   :  { %11081 = vmatprep.subr.bf16.mxu1 %v12182_v5  ;;  %v12222_v5 = vld [vmem:[%s15636_s1 + $0x908] sm:$0xff]  }
 0x113   :  { %11060 = vmatpush3.bf16.msra.mxu0 %v12181_v6  ;;  %v12224_v6 = vld [vmem:[%s15636_s1 + $0x988] sm:$0xff]  }
 0x114   :  { %11061 = vmatprep.subr.bf16.mxu0 %v12184_v8  ;;  %v37_v8 = vld [vmem:[%s15635_s0 + $0x48] sm:$0xff] }
 0x115   :  { %11082 = vmatpush3.bf16.msra.mxu1 %v12183_v7  ;;  %v12225_v7 = vld [vmem:[%s15636_s1 + $0x940] sm:$0xff]  }
 0x116   :  { %11083 = vmatprep.subr.bf16.mxu1 %v12186_v9  ;;  %v12227_v9 = vld [vmem:[%s15636_s1 + $0x9c0] sm:$0xff]  }
 0x117   :  { %11062 = vmatpush3.bf16.msra.mxu0 %v12185_v10  ;;  %v242_v10 = vrot.slane %v37_v8, %v12953_v41 }
 0x118   :  { %11063 = vmatprep.subr.bf16.mxu0 %v12188_v12  ;;  %v12226_v12 = vld [vmem:[%s15636_s1 + $0x900] sm:$0xff]  }
 0x119   :  { %11084 = vmatpush3.bf16.msra.mxu1 %v12187_v11  ;;  %v235_v11 = vcombine.high %v37_v8, %v37_v8  ;;  %v12262_v8 = vld [vmem:[%s15636_s1 + $0xb78] sm:$0xff]  }
 0x11a   :  { %11085 = vmatprep.subr.bf16.mxu1 %v12190_v13  ;;  %v250_v13 = vcombine.high %v242_v10, %v242_v10 }
 0x11b   :  { %11064 = vmatpush3.bf16.msra.mxu0 %v12189_v14  ;;  %v249_v14 = vrot.slane %v235_v11, %v12953_v41  ;;  %v12265_v11 = vld [vmem:[%s15636_s1 + $0xbf8] sm:$0xff]  }
 0x11c   :  { %11065 = vmatprep.subr.bf16.mxu0 %v12192_v16  ;;  %v675_v16 = vpack.c.bf16 %v250_v13, %v250_v13 }
 0x11d   :  { %11086 = vmatpush3.bf16.msra.mxu1 %v12191_v15  ;;  %v12228_v15 = vld [vmem:[%s15636_s1 + $0x980] sm:$0xff]   ;;  %v676_v23 = vpack.c.bf16 %v249_v14, %v249_v14 }
 0x11e   :  { %11087 = vmatprep.subr.bf16.mxu1 %v12194_v18  ;;  %v251_v18 = vcombine.high %v249_v14, %v249_v14 }
 0x11f   :  { %11066 = vmatpush3.bf16.msra.mxu0 %v12193_v21  ;;  %v674_v21 = vpack.c.bf16 %v242_v10, %v242_v10  ;;  %v12264_v10 = vld [vmem:[%s15636_s1 + $0xb38] sm:$0xff]  }
 0x120   :  { %11095 = vmatprep.subr.bf16.mxu0 %v12196_v26  ;;  %v677_v22 = vpack.c.bf16 %v251_v18, %v251_v18  ;;  %v12236_v26 = vld [vmem:[%s15636_s1 + $0xaf0] sm:$0xff]  }
 0x121   :  { %11088 = vmatpush3.bf16.msra.mxu1 %v12195_v24  ;;  %v12233_v24 = vld [vmem:[%s15636_s1 + $0xab8] sm:$0xff]   ;;  %v12268_v18 = vld [vmem:[%s15636_s1 + $0xb30] sm:$0xff]  }
 0x122   :  { %11117 = vmatprep.subr.bf16.mxu1 %v12199_v29  ;;  %v10803_v37 = vpop.f32.mrf.mxu0  ;;  %8156 = vmatmul.mubr.bf16.vlgmr.msra.gmra.mxu0 %v670_v30  ;;  %v12237_v30 = vld [vmem:[%s15636_s1 + $0xab0] sm:$0xff]  }
 0x123   :  { %11096 = vmatpush3.bf16.msra.mxu0 %v12198_v28  ;;  %8235 = vmatprep.mubr.bf16.mxu0 %v675_v16  ;;  %v12267_v16 = vld [vmem:[%s15636_s1 + $0xb70] sm:$0xff]  }
 0x124   :  { %v10825_v38 = vpop.f32.mrf.mxu1  ;;  %8196 = vmatmul.mubr.bf16.vlgmr.msra.gmra.mxu1 %v672_v32  ;;  %v10804_v42 = vpop.f32.mrf.mxu0  ;;  %11097 = vmatprep.subr.bf16.mxu0 %v12201_v34  ;;  %v12240_v34 = vld [vmem:[%s15636_s1 + $0xae8] sm:$0xff]  }
 0x125   :  { %11118 = vmatpush3.bf16.msra.mxu1 %v12200_v33  ;;  %v10805_v45 = vadd.f32 %v10804_v42, %v10803_v37  ;;  %8275 = vmatprep.mubr.bf16.mxu1 %v677_v22  ;;  %v12239_v37 = vld [vmem:[%s15636_s1 + $0xa28] sm:$0xff]  }
 0x126   :  { %v10826_v43 = vpop.f32.mrf.mxu1  ;;  %11119 = vmatprep.subr.bf16.mxu1 %v12203_v35  ;;  %v10806_v48 = vpop.f32.mrf.mxu0  ;;  %v12271_v22 = vld [vmem:[%s15636_s1 + $0xb68] sm:$0xff]  }
 0x127   :  { %v10827_v46 = vadd.f32 %v10826_v43, %v10825_v38  ;;  %v7678_v51 = vadd.f32 %v10805_v45, %v13706_v1  ;;  %11098 = vmatpush3.bf16.msra.mxu0 %v12202_v36  ;;  %v12218_v1 = vld [vmem:[%s15636_s1 + $0x910] sm:$0xff]   ;;  %v12242_v43 = vld [vmem:[%s15636_s1 + $0xa60] sm:$0xff]  }
 0x128   :  { %v10828_v50 = vpop.f32.mrf.mxu1  ;;  %v10807_v53 = vpop.f32.mrf.mxu0  ;;  %11099 = vmatprep.subr.bf16.mxu0 %v12205_v40  ;;  %v12244_v45 = vld [vmem:[%s15636_s1 + $0xae0] sm:$0xff]  }
 0x129   :  { %11120 = vmatpush3.bf16.msra.mxu1 %v12204_v39  ;;  %v13810_v56 = vadd.f32 %v10827_v46, %v7678_v51  ;;  %v12241_v39 = vld [vmem:[%s15636_s1 + $0xaa8] sm:$0xff]   ;;  %v12243_v48 = vld [vmem:[%s15636_s1 + $0xa20] sm:$0xff]   ;;  %v12246_v50 = vld [vmem:[%s15636_s1 + $0xa58] sm:$0xff]  }
 0x12a   :  { %11121 = vmatprep.subr.bf16.mxu1 %v12207_v44  ;;  %v10829_v55 = vpop.f32.mrf.mxu1  ;;  %v12248_v51 = vld [vmem:[%s15636_s1 + $0xad8] sm:$0xff]  }
 0x12b   :  { %11100 = vmatpush3.bf16.msra.mxu0 %v12206_v47  ;;  %v12249_v53 = vld [vmem:[%s15636_s1 + $0xa98] sm:$0xff]   ;;  %v12252_v55 = vld [vmem:[%s15636_s1 + $0xad0] sm:$0xff]  }
 0x12c   :  { %11101 = vmatprep.subr.bf16.mxu0 %v12209_v52  ;;  %v12247_v52 = vld [vmem:[%s15636_s1 + $0xa18] sm:$0xff]  }
 0x12d   :  { %11122 = vmatpush3.bf16.msra.mxu1 %v12208_v49  ;;  %v12245_v49 = vld [vmem:[%s15636_s1 + $0xaa0] sm:$0xff]  }
 0x12e   :  { %11123 = vmatprep.subr.bf16.mxu1 %v12211_v54  ;;  %v12250_v54 = vld [vmem:[%s15636_s1 + $0xa50] sm:$0xff]  }
 0x12f   :  { %11102 = vmatpush3.bf16.msra.mxu0 %v12210_v57  ;;  %v12253_v57 = vld [vmem:[%s15636_s1 + $0xa90] sm:$0xff]  }
 0x130   :  { %11103 = vmatprep.subr.bf16.mxu0 %v12213_v59  ;;  %v12256_v59 = vld [vmem:[%s15636_s1 + $0xac8] sm:$0xff]  }
 0x131   :  { %11124 = vmatpush3.bf16.msra.mxu1 %v12212_v58  ;;  %v12254_v58 = vld [vmem:[%s15636_s1 + $0xa48] sm:$0xff]  }
 0x132   :  { %11125 = vmatprep.subr.bf16.mxu1 %v12215_v60  ;;  %v12255_v60 = vld [vmem:[%s15636_s1 + $0xa08] sm:$0xff]  }
 0x133   :  { %11104 = vmatpush3.bf16.msra.mxu0 %v12214_v61  ;;  %v12257_v61 = vld [vmem:[%s15636_s1 + $0xa88] sm:$0xff]  }
 0x134   :  { %11105 = vmatprep.subr.bf16.mxu0 %v12217_v63  ;;  %v38_v63 = vld [vmem:[%s15635_s0 + $0x50] sm:$0xff] }
 0x135   :  { %11126 = vmatpush3.bf16.msra.mxu1 %v12216_v62  ;;  %v12258_v62 = vld [vmem:[%s15636_s1 + $0xa40] sm:$0xff]  }
 0x136   :  { %11127 = vmatprep.subr.bf16.mxu1 %v12219_v0  ;;  %v12260_v0 = vld [vmem:[%s15636_s1 + $0xac0] sm:$0xff]  }
 0x137   :  { %11106 = vmatpush3.bf16.msra.mxu0 %v12218_v1  ;;  %v259_v1 = vrot.slane %v38_v63, %v12953_v41 }
 0x138   :  { %11107 = vmatprep.subr.bf16.mxu0 %v12221_v3  ;;  %v12259_v3 = vld [vmem:[%s15636_s1 + $0xa00] sm:$0xff]  }
 0x139   :  { %11128 = vmatpush3.bf16.msra.mxu1 %v12220_v2  ;;  %v252_v2 = vcombine.high %v38_v63, %v38_v63 }
 0x13a   :  { %11129 = vmatprep.subr.bf16.mxu1 %v12223_v4  ;;  %v267_v4 = vcombine.high %v259_v1, %v259_v1 }
 0x13b   :  { %11108 = vmatpush3.bf16.msra.mxu0 %v12222_v5  ;;  %v266_v5 = vrot.slane %v252_v2, %v12953_v41 }
 0x13c   :  { %11109 = vmatprep.subr.bf16.mxu0 %v12225_v7  ;;  %v679_v7 = vpack.c.bf16 %v267_v4, %v267_v4 }
 0x13d   :  { %11130 = vmatpush3.bf16.msra.mxu1 %v12224_v6  ;;  %v12261_v6 = vld [vmem:[%s15636_s1 + $0xa80] sm:$0xff]   ;;  %v680_v14 = vpack.c.bf16 %v266_v5, %v266_v5 }
 0x13e   :  { %11131 = vmatprep.subr.bf16.mxu1 %v12227_v9  ;;  %v268_v9 = vcombine.high %v266_v5, %v266_v5 }
 0x13f   :  { %11110 = vmatpush3.bf16.msra.mxu0 %v12226_v12  ;;  %v678_v12 = vpack.c.bf16 %v259_v1, %v259_v1  ;;  %v12298_v1 = vld [vmem:[%s15636_s1 + $0xcf8] sm:$0xff]  }
 0x140   :  { %11139 = vmatprep.subr.bf16.mxu0 %v12229_v17  ;;  %v681_v13 = vpack.c.bf16 %v268_v9, %v268_v9  ;;  %v12269_v17 = vld [vmem:[%s15636_s1 + $0xbf0] sm:$0xff]  }
 0x141   :  { %11132 = vmatpush3.bf16.msra.mxu1 %v12228_v15  ;;  %v12266_v15 = vld [vmem:[%s15636_s1 + $0xbb8] sm:$0xff]  }
 0x142   :  { %11161 = vmatprep.subr.bf16.mxu1 %v12232_v20  ;;  %v10847_v28 = vpop.f32.mrf.mxu0  ;;  %8236 = vmatmul.mubr.bf16.vlgmr.msra.gmra.mxu0 %v674_v21  ;;  %v12270_v21 = vld [vmem:[%s15636_s1 + $0xbb0] sm:$0xff]  }
 0x143   :  { %11140 = vmatpush3.bf16.msra.mxu0 %v12231_v19  ;;  %8315 = vmatprep.mubr.bf16.mxu0 %v679_v7  ;;  %v12300_v7 = vld [vmem:[%s15636_s1 + $0xc70] sm:$0xff]  }
 0x144   :  { %v10869_v29 = vpop.f32.mrf.mxu1  ;;  %8276 = vmatmul.mubr.bf16.vlgmr.msra.gmra.mxu1 %v676_v23  ;;  %v10848_v32 = vpop.f32.mrf.mxu0  ;;  %11141 = vmatprep.subr.bf16.mxu0 %v12234_v25  ;;  %v12273_v25 = vld [vmem:[%s15636_s1 + $0xbe8] sm:$0xff]  }
 0x145   :  { %11162 = vmatpush3.bf16.msra.mxu1 %v12233_v24  ;;  %v10849_v35 = vadd.f32 %v10848_v32, %v10847_v28  ;;  %8355 = vmatprep.mubr.bf16.mxu1 %v681_v13  ;;  %v12272_v28 = vld [vmem:[%s15636_s1 + $0xb28] sm:$0xff]  }
 0x146   :  { %v10870_v33 = vpop.f32.mrf.mxu1  ;;  %11163 = vmatprep.subr.bf16.mxu1 %v12236_v26  ;;  %v10850_v38 = vpop.f32.mrf.mxu0 }
 0x147   :  { %v10871_v36 = vadd.f32 %v10870_v33, %v10869_v29  ;;  %v7758_v42 = vadd.f32 %v10849_v35, %v13810_v56  ;;  %11142 = vmatpush3.bf16.msra.mxu0 %v12235_v27  ;;  %v12251_v56 = vld [vmem:[%s15636_s1 + $0xa10] sm:$0xff]   ;;  %v12275_v33 = vld [vmem:[%s15636_s1 + $0xb60] sm:$0xff]  }
 0x148   :  { %v10872_v40 = vpop.f32.mrf.mxu1  ;;  %v10851_v44 = vpop.f32.mrf.mxu0  ;;  %11143 = vmatprep.subr.bf16.mxu0 %v12238_v31  ;;  %v12277_v35 = vld [vmem:[%s15636_s1 + $0xbe0] sm:$0xff]  }
 0x149   :  { %11164 = vmatpush3.bf16.msra.mxu1 %v12237_v30  ;;  %v13914_v47 = vadd.f32 %v10871_v36, %v7758_v42  ;;  %v12274_v30 = vld [vmem:[%s15636_s1 + $0xba8] sm:$0xff]   ;;  %v12276_v38 = vld [vmem:[%s15636_s1 + $0xb20] sm:$0xff]   ;;  %v12279_v40 = vld [vmem:[%s15636_s1 + $0xb58] sm:$0xff]  }
 0x14a   :  { %11165 = vmatprep.subr.bf16.mxu1 %v12240_v34  ;;  %v10873_v46 = vpop.f32.mrf.mxu1  ;;  %v12281_v42 = vld [vmem:[%s15636_s1 + $0xbd8] sm:$0xff]  }
 0x14b   :  { %11144 = vmatpush3.bf16.msra.mxu0 %v12239_v37  ;;  %v12282_v44 = vld [vmem:[%s15636_s1 + $0xb98] sm:$0xff]   ;;  %v12285_v46 = vld [vmem:[%s15636_s1 + $0xbd0] sm:$0xff]  }
 0x14c   :  { %11145 = vmatprep.subr.bf16.mxu0 %v12242_v43  ;;  %v12280_v43 = vld [vmem:[%s15636_s1 + $0xb18] sm:$0xff]  }
 0x14d   :  { %11166 = vmatpush3.bf16.msra.mxu1 %v12241_v39  ;;  %v12278_v39 = vld [vmem:[%s15636_s1 + $0xba0] sm:$0xff]  }
 0x14e   :  { %11167 = vmatprep.subr.bf16.mxu1 %v12244_v45  ;;  %v12283_v45 = vld [vmem:[%s15636_s1 + $0xb50] sm:$0xff]  }
 0x14f   :  { %11146 = vmatpush3.bf16.msra.mxu0 %v12243_v48  ;;  %v12286_v48 = vld [vmem:[%s15636_s1 + $0xb90] sm:$0xff]  }
 0x150   :  { %11147 = vmatprep.subr.bf16.mxu0 %v12246_v50  ;;  %v12289_v50 = vld [vmem:[%s15636_s1 + $0xbc8] sm:$0xff]  }
 0x151   :  { %11168 = vmatpush3.bf16.msra.mxu1 %v12245_v49  ;;  %v12287_v49 = vld [vmem:[%s15636_s1 + $0xb48] sm:$0xff]  }
 0x152   :  { %11169 = vmatprep.subr.bf16.mxu1 %v12248_v51  ;;  %v12288_v51 = vld [vmem:[%s15636_s1 + $0xb08] sm:$0xff]  }
 0x153   :  { %11148 = vmatpush3.bf16.msra.mxu0 %v12247_v52  ;;  %v12290_v52 = vld [vmem:[%s15636_s1 + $0xb88] sm:$0xff]  }
 0x154   :  { %11149 = vmatprep.subr.bf16.mxu0 %v12250_v54  ;;  %v12293_v54 = vld [vmem:[%s15636_s1 + $0xbc0] sm:$0xff]  }
 0x155   :  { %11170 = vmatpush3.bf16.msra.mxu1 %v12249_v53  ;;  %v12291_v53 = vld [vmem:[%s15636_s1 + $0xb40] sm:$0xff]  }
 0x156   :  { %11171 = vmatprep.subr.bf16.mxu1 %v12252_v55  ;;  %v39_v55 = vld [vmem:[%s15635_s0 + $0x58] sm:$0xff] }
 0x157   :  { %11150 = vmatpush3.bf16.msra.mxu0 %v12251_v56  ;;  %v276_v56 = vrot.slane %v39_v55, %v12953_v41 }
 0x158   :  { %11151 = vmatprep.subr.bf16.mxu0 %v12254_v58  ;;  %v12292_v58 = vld [vmem:[%s15636_s1 + $0xb00] sm:$0xff]  }
 0x159   :  { %11172 = vmatpush3.bf16.msra.mxu1 %v12253_v57  ;;  %v269_v57 = vcombine.high %v39_v55, %v39_v55  ;;  %v682_v2 = vpack.c.bf16 %v276_v56, %v276_v56 }
 0x15a   :  { %11173 = vmatprep.subr.bf16.mxu1 %v12256_v59  ;;  %v284_v59 = vcombine.high %v276_v56, %v276_v56  ;;  %v12331_v56 = vld [vmem:[%s15636_s1 + $0xdf8] sm:$0xff]  }
 0x15b   :  { %11152 = vmatpush3.bf16.msra.mxu0 %v12255_v60  ;;  %v12294_v60 = vld [vmem:[%s15636_s1 + $0xb80] sm:$0xff]  }
 0x15c   :  { %11153 = vmatprep.subr.bf16.mxu0 %v12258_v62  ;;  %v12295_v62 = vld [vmem:[%s15636_s1 + $0xc78] sm:$0xff]   ;;  %v683_v63 = vpack.c.bf16 %v284_v59, %v284_v59 }
 0x15d   :  { %11174 = vmatpush3.bf16.msra.mxu1 %v12257_v61  ;;  %v283_v61 = vrot.slane %v269_v57, %v12953_v41 }
 0x15e   :  { %11175 = vmatprep.subr.bf16.mxu1 %v12260_v0 }
 0x15f   :  { %11154 = vmatpush3.bf16.msra.mxu0 %v12259_v3  ;;  %v285_v0 = vcombine.high %v283_v61, %v283_v61  ;;  %v12297_v3 = vld [vmem:[%s15636_s1 + $0xc38] sm:$0xff]   ;;  %v684_v5 = vpack.c.bf16 %v283_v61, %v283_v61 }
 0x160   :  { %11183 = vmatprep.subr.bf16.mxu0 %v12262_v8  ;;  %v12302_v8 = vld [vmem:[%s15636_s1 + $0xcf0] sm:$0xff]   ;;  %v12332_v61 = vld [vmem:[%s15636_s1 + $0xdb8] sm:$0xff]  }
 0x161   :  { %11176 = vmatpush3.bf16.msra.mxu1 %v12261_v6  ;;  %v685_v4 = vpack.c.bf16 %v285_v0, %v285_v0  ;;  %v12299_v6 = vld [vmem:[%s15636_s1 + $0xcb8] sm:$0xff]  }
 0x162   :  { %11205 = vmatprep.subr.bf16.mxu1 %v12265_v11  ;;  %v10891_v19 = vpop.f32.mrf.mxu0  ;;  %8316 = vmatmul.mubr.bf16.vlgmr.msra.gmra.mxu0 %v678_v12  ;;  %v12301_v11 = vld [vmem:[%s15636_s1 + $0xc30] sm:$0xff]  }
 0x163   :  { %11184 = vmatpush3.bf16.msra.mxu0 %v12264_v10  ;;  %8395 = vmatprep.mubr.bf16.mxu0 %v683_v63  ;;  %v12303_v12 = vld [vmem:[%s15636_s1 + $0xcb0] sm:$0xff]  }
 0x164   :  { %v10913_v20 = vpop.f32.mrf.mxu1  ;;  %8356 = vmatmul.mubr.bf16.vlgmr.msra.gmra.mxu1 %v680_v14  ;;  %v10892_v23 = vpop.f32.mrf.mxu0  ;;  %11185 = vmatprep.subr.bf16.mxu0 %v12267_v16  ;;  %v12335_v63 = vld [vmem:[%s15636_s1 + $0xdf0] sm:$0xff]  }
 0x165   :  { %11206 = vmatpush3.bf16.msra.mxu1 %v12266_v15  ;;  %v10893_v26 = vadd.f32 %v10892_v23, %v10891_v19  ;;  %8435 = vmatprep.mubr.bf16.mxu1 %v685_v4  ;;  %v12304_v15 = vld [vmem:[%s15636_s1 + $0xc68] sm:$0xff]  }
 0x166   :  { %v10914_v24 = vpop.f32.mrf.mxu1  ;;  %11207 = vmatprep.subr.bf16.mxu1 %v12269_v17  ;;  %v10894_v29 = vpop.f32.mrf.mxu0  ;;  %v12307_v23 = vld [vmem:[%s15636_s1 + $0xca8] sm:$0xff]  }
 0x167   :  { %v10915_v27 = vadd.f32 %v10914_v24, %v10913_v20  ;;  %v7838_v32 = vadd.f32 %v10893_v26, %v13914_v47  ;;  %11186 = vmatpush3.bf16.msra.mxu0 %v12268_v18  ;;  %v12284_v47 = vld [vmem:[%s15636_s1 + $0xb10] sm:$0xff]   ;;  %v12306_v18 = vld [vmem:[%s15636_s1 + $0xce8] sm:$0xff]   ;;  %v12309_v29 = vld [vmem:[%s15636_s1 + $0xc20] sm:$0xff]  }
 0x168   :  { %v10916_v31 = vpop.f32.mrf.mxu1  ;;  %v10895_v34 = vpop.f32.mrf.mxu0  ;;  %11187 = vmatprep.subr.bf16.mxu0 %v12271_v22  ;;  %v12305_v20 = vld [vmem:[%s15636_s1 + $0xc28] sm:$0xff]  }
 0x169   :  { %11208 = vmatpush3.bf16.msra.mxu1 %v12270_v21  ;;  %v14018_v37 = vadd.f32 %v10915_v27, %v7838_v32  ;;  %v12312_v31 = vld [vmem:[%s15636_s1 + $0xc58] sm:$0xff]  }
 0x16a   :  { %11209 = vmatprep.subr.bf16.mxu1 %v12273_v25  ;;  %v10917_v36 = vpop.f32.mrf.mxu1  ;;  %v12308_v25 = vld [vmem:[%s15636_s1 + $0xc60] sm:$0xff]   ;;  %v12314_v32 = vld [vmem:[%s15636_s1 + $0xcd8] sm:$0xff]  }
 0x16b   :  { %11188 = vmatpush3.bf16.msra.mxu0 %v12272_v28  ;;  %v12310_v28 = vld [vmem:[%s15636_s1 + $0xce0] sm:$0xff]   ;;  %v12315_v34 = vld [vmem:[%s15636_s1 + $0xc98] sm:$0xff]   ;;  %v12318_v36 = vld [vmem:[%s15636_s1 + $0xcd0] sm:$0xff]  }
 0x16c   :  { %11189 = vmatprep.subr.bf16.mxu0 %v12275_v33  ;;  %v12313_v33 = vld [vmem:[%s15636_s1 + $0xc18] sm:$0xff]  }
 0x16d   :  { %11210 = vmatpush3.bf16.msra.mxu1 %v12274_v30  ;;  %v12311_v30 = vld [vmem:[%s15636_s1 + $0xca0] sm:$0xff]  }
 0x16e   :  { %11211 = vmatprep.subr.bf16.mxu1 %v12277_v35  ;;  %v12316_v35 = vld [vmem:[%s15636_s1 + $0xc50] sm:$0xff]  }
 0x16f   :  { %11190 = vmatpush3.bf16.msra.mxu0 %v12276_v38  ;;  %v12319_v38 = vld [vmem:[%s15636_s1 + $0xc90] sm:$0xff]  }
 0x170   :  { %11191 = vmatprep.subr.bf16.mxu0 %v12279_v40  ;;  %v12322_v40 = vld [vmem:[%s15636_s1 + $0xcc8] sm:$0xff]  }
 0x171   :  { %11212 = vmatpush3.bf16.msra.mxu1 %v12278_v39  ;;  %v12320_v39 = vld [vmem:[%s15636_s1 + $0xc48] sm:$0xff]  }
 0x172   :  { %11213 = vmatprep.subr.bf16.mxu1 %v12281_v42  ;;  %v12321_v42 = vld [vmem:[%s15636_s1 + $0xc08] sm:$0xff]  }
 0x173   :  { %11192 = vmatpush3.bf16.msra.mxu0 %v12280_v43  ;;  %v12323_v43 = vld [vmem:[%s15636_s1 + $0xc88] sm:$0xff]  }
 0x174   :  { %11193 = vmatprep.subr.bf16.mxu0 %v12283_v45  ;;  %v40_v45 = vld [vmem:[%s15635_s0 + $0x60] sm:$0xff] }
 0x175   :  { %11214 = vmatpush3.bf16.msra.mxu1 %v12282_v44  ;;  %v12324_v44 = vld [vmem:[%s15636_s1 + $0xc40] sm:$0xff]  }
 0x176   :  { %11215 = vmatprep.subr.bf16.mxu1 %v12285_v46  ;;  %v12326_v46 = vld [vmem:[%s15636_s1 + $0xcc0] sm:$0xff]  }
 0x177   :  { %11194 = vmatpush3.bf16.msra.mxu0 %v12284_v47  ;;  %v293_v47 = vrot.slane %v40_v45, %v12953_v41 }
 0x178   :  { %11195 = vmatprep.subr.bf16.mxu0 %v12287_v49  ;;  %v12325_v49 = vld [vmem:[%s15636_s1 + $0xc00] sm:$0xff]  }
 0x179   :  { %11216 = vmatpush3.bf16.msra.mxu1 %v12286_v48  ;;  %v286_v48 = vcombine.high %v40_v45, %v40_v45  ;;  %v686_v57 = vpack.c.bf16 %v293_v47, %v293_v47 }
 0x17a   :  { %11217 = vmatprep.subr.bf16.mxu1 %v12289_v50  ;;  %v301_v50 = vcombine.high %v293_v47, %v293_v47  ;;  %v12364_v47 = vld [vmem:[%s15636_s1 + $0xef8] sm:$0xff]  }
 0x17b   :  { %11196 = vmatpush3.bf16.msra.mxu0 %v12288_v51  ;;  %v12327_v51 = vld [vmem:[%s15636_s1 + $0xc80] sm:$0xff]  }
 0x17c   :  { %11197 = vmatprep.subr.bf16.mxu0 %v12291_v53  ;;  %v12328_v53 = vld [vmem:[%s15636_s1 + $0xd78] sm:$0xff]  }
 0x17d   :  { %11218 = vmatpush3.bf16.msra.mxu1 %v12290_v52  ;;  %v300_v52 = vrot.slane %v286_v48, %v12953_v41 }
 0x17e   :  { %11219 = vmatprep.subr.bf16.mxu1 %v12293_v54  ;;  %v687_v54 = vpack.c.bf16 %v301_v50, %v301_v50 }
 0x17f   :  { %11198 = vmatpush3.bf16.msra.mxu0 %v12292_v58  ;;  %v302_v55 = vcombine.high %v300_v52, %v300_v52  ;;  %v12330_v58 = vld [vmem:[%s15636_s1 + $0xd38] sm:$0xff]  }
 0x180   :  { %11227 = vmatprep.subr.bf16.mxu0 %v12295_v62  ;;  %v12333_v62 = vld [vmem:[%s15636_s1 + $0xd70] sm:$0xff]  }
 0x181   :  { %11220 = vmatpush3.bf16.msra.mxu1 %v12294_v60  ;;  %v689_v59 = vpack.c.bf16 %v302_v55, %v302_v55  ;;  %v688_v60 = vpack.c.bf16 %v300_v52, %v300_v52  ;;  %v12365_v52 = vld [vmem:[%s15636_s1 + $0xeb8] sm:$0xff]  }
 0x182   :  { %11249 = vmatprep.subr.bf16.mxu1 %v12298_v1  ;;  %v10935_v9 = vpop.f32.mrf.mxu0  ;;  %8396 = vmatmul.mubr.bf16.vlgmr.msra.gmra.mxu0 %v682_v2  ;;  %v12334_v2 = vld [vmem:[%s15636_s1 + $0xd30] sm:$0xff]  }
 0x183   :  { %11228 = vmatpush3.bf16.msra.mxu0 %v12297_v3  ;;  %8475 = vmatprep.mubr.bf16.mxu0 %v687_v54  ;;  %v12336_v3 = vld [vmem:[%s15636_s1 + $0xdb0] sm:$0xff]  }
 0x184   :  { %v10957_v10 = vpop.f32.mrf.mxu1  ;;  %8436 = vmatmul.mubr.bf16.vlgmr.msra.gmra.mxu1 %v684_v5  ;;  %v10936_v13 = vpop.f32.mrf.mxu0  ;;  %11229 = vmatprep.subr.bf16.mxu0 %v12300_v7  ;;  %v12368_v54 = vld [vmem:[%s15636_s1 + $0xef0] sm:$0xff]  }
 0x185   :  { %11250 = vmatpush3.bf16.msra.mxu1 %v12299_v6  ;;  %v10937_v16 = vadd.f32 %v10936_v13, %v10935_v9  ;;  %8515 = vmatprep.mubr.bf16.mxu1 %v689_v59  ;;  %v12337_v6 = vld [vmem:[%s15636_s1 + $0xd68] sm:$0xff]  }
 0x186   :  { %v10958_v14 = vpop.f32.mrf.mxu1  ;;  %11251 = vmatprep.subr.bf16.mxu1 %v12302_v8  ;;  %v10938_v19 = vpop.f32.mrf.mxu0  ;;  %v12339_v9 = vld [vmem:[%s15636_s1 + $0xde8] sm:$0xff]  }
 0x187   :  { %v10959_v17 = vadd.f32 %v10958_v14, %v10957_v10  ;;  %v7918_v22 = vadd.f32 %v10937_v16, %v14018_v37  ;;  %11230 = vmatpush3.bf16.msra.mxu0 %v12301_v11  ;;  %v12317_v37 = vld [vmem:[%s15636_s1 + $0xc10] sm:$0xff]   ;;  %v12338_v11 = vld [vmem:[%s15636_s1 + $0xd28] sm:$0xff]   ;;  %v12341_v16 = vld [vmem:[%s15636_s1 + $0xd60] sm:$0xff]  }
 0x188   :  { %v10960_v21 = vpop.f32.mrf.mxu1  ;;  %v10939_v24 = vpop.f32.mrf.mxu0  ;;  %11231 = vmatprep.subr.bf16.mxu0 %v12304_v15  ;;  %v12340_v14 = vld [vmem:[%s15636_s1 + $0xda8] sm:$0xff]   ;;  %v12343_v19 = vld [vmem:[%s15636_s1 + $0xde0] sm:$0xff]  }
 0x189   :  { %11252 = vmatpush3.bf16.msra.mxu1 %v12303_v12  ;;  %v14119_v27 = vadd.f32 %v10959_v17, %v7918_v22  ;;  %v12344_v21 = vld [vmem:[%s15636_s1 + $0xda0] sm:$0xff]   ;;  %v12345_v22 = vld [vmem:[%s15636_s1 + $0xd58] sm:$0xff]  }
 0x18a   :  { %v10961_v26 = vpop.f32.mrf.mxu1  ;;  %11253 = vmatprep.subr.bf16.mxu1 %v12306_v18  ;;  %v12346_v24 = vld [vmem:[%s15636_s1 + $0xd18] sm:$0xff]  }
 0x18b   :  { %11232 = vmatpush3.bf16.msra.mxu0 %v12305_v20  ;;  %v12342_v20 = vld [vmem:[%s15636_s1 + $0xd20] sm:$0xff]   ;;  %v12349_v26 = vld [vmem:[%s15636_s1 + $0xd50] sm:$0xff]  }
 0x18c   :  { %11233 = vmatprep.subr.bf16.mxu0 %v12308_v25  ;;  %v12348_v25 = vld [vmem:[%s15636_s1 + $0xd98] sm:$0xff]  }
 0x18d   :  { %11254 = vmatpush3.bf16.msra.mxu1 %v12307_v23  ;;  %v12347_v23 = vld [vmem:[%s15636_s1 + $0xdd8] sm:$0xff]  }
 0x18e   :  { %11255 = vmatprep.subr.bf16.mxu1 %v12310_v28  ;;  %v12350_v28 = vld [vmem:[%s15636_s1 + $0xd10] sm:$0xff]  }
 0x18f   :  { %11234 = vmatpush3.bf16.msra.mxu0 %v12309_v29  ;;  %v12352_v29 = vld [vmem:[%s15636_s1 + $0xd90] sm:$0xff]  }
 0x190   :  { %11235 = vmatprep.subr.bf16.mxu0 %v12312_v31  ;;  %v12355_v31 = vld [vmem:[%s15636_s1 + $0xdc8] sm:$0xff]  }
 0x191   :  { %11256 = vmatpush3.bf16.msra.mxu1 %v12311_v30  ;;  %v12353_v30 = vld [vmem:[%s15636_s1 + $0xd48] sm:$0xff]  }
 0x192   :  { %11257 = vmatprep.subr.bf16.mxu1 %v12314_v32  ;;  %v12354_v32 = vld [vmem:[%s15636_s1 + $0xd08] sm:$0xff]  }
 0x193   :  { %11236 = vmatpush3.bf16.msra.mxu0 %v12313_v33  ;;  %v12356_v33 = vld [vmem:[%s15636_s1 + $0xd88] sm:$0xff]  }
 0x194   :  { %11237 = vmatprep.subr.bf16.mxu0 %v12316_v35  ;;  %v41_v35 = vld [vmem:[%s15635_s0 + $0x68] sm:$0xff] }
 0x195   :  { %11258 = vmatpush3.bf16.msra.mxu1 %v12315_v34  ;;  %v12357_v34 = vld [vmem:[%s15636_s1 + $0xd40] sm:$0xff]  }
 0x196   :  { %11259 = vmatprep.subr.bf16.mxu1 %v12318_v36  ;;  %v12359_v36 = vld [vmem:[%s15636_s1 + $0xdc0] sm:$0xff]  }
 0x197   :  { %11238 = vmatpush3.bf16.msra.mxu0 %v12317_v37  ;;  %v310_v37 = vrot.slane %v41_v35, %v12953_v41 }
 0x198   :  { %11239 = vmatprep.subr.bf16.mxu0 %v12320_v39  ;;  %v12358_v39 = vld [vmem:[%s15636_s1 + $0xd00] sm:$0xff]  }
 0x199   :  { %11260 = vmatpush3.bf16.msra.mxu1 %v12319_v38  ;;  %v303_v38 = vcombine.high %v41_v35, %v41_v35  ;;  %v690_v48 = vpack.c.bf16 %v310_v37, %v310_v37  ;;  %v12397_v35 = vld [vmem:[%s15636_s1 + $0xff8] sm:$0xff]  }
 0x19a   :  { %11261 = vmatprep.subr.bf16.mxu1 %v12322_v40  ;;  %v318_v40 = vcombine.high %v310_v37, %v310_v37 }
 0x19b   :  { %11240 = vmatpush3.bf16.msra.mxu0 %v12321_v42  ;;  %v12360_v42 = vld [vmem:[%s15636_s1 + $0xd80] sm:$0xff]  }
 0x19c   :  { %11241 = vmatprep.subr.bf16.mxu0 %v12324_v44  ;;  %v12361_v44 = vld [vmem:[%s15636_s1 + $0xe78] sm:$0xff]   ;;  %v691_v45 = vpack.c.bf16 %v318_v40, %v318_v40 }
 0x19d   :  { %11262 = vmatpush3.bf16.msra.mxu1 %v12323_v43  ;;  %v317_v43 = vrot.slane %v303_v38, %v12953_v41 }
 0x19e   :  { %11263 = vmatprep.subr.bf16.mxu1 %v12326_v46 }
 0x19f   :  { %11242 = vmatpush3.bf16.msra.mxu0 %v12325_v49  ;;  %v319_v46 = vcombine.high %v317_v43, %v317_v43  ;;  %v12363_v49 = vld [vmem:[%s15636_s1 + $0xe38] sm:$0xff]  }
 0x1a0   :  { %11271 = vmatprep.subr.bf16.mxu0 %v12328_v53  ;;  %v12366_v53 = vld [vmem:[%s15636_s1 + $0xe70] sm:$0xff]  }
 0x1a1   :  { %11264 = vmatpush3.bf16.msra.mxu1 %v12327_v51  ;;  %v693_v50 = vpack.c.bf16 %v319_v46, %v319_v46  ;;  %v692_v51 = vpack.c.bf16 %v317_v43, %v317_v43 }
 0x1a2   :  { %11293 = vmatprep.subr.bf16.mxu1 %v12331_v56  ;;  %v10979_v0 = vpop.f32.mrf.mxu0  ;;  %8476 = vmatmul.mubr.bf16.vlgmr.msra.gmra.mxu0 %v686_v57  ;;  %v12367_v57 = vld [vmem:[%s15636_s1 + $0xe30] sm:$0xff]  }
 0x1a3   :  { %11272 = vmatpush3.bf16.msra.mxu0 %v12330_v58  ;;  %8555 = vmatprep.mubr.bf16.mxu0 %v691_v45  ;;  %v12369_v58 = vld [vmem:[%s15636_s1 + $0xeb0] sm:$0xff]  }
 0x1a4   :  { %v11001_v1 = vpop.f32.mrf.mxu1  ;;  %8516 = vmatmul.mubr.bf16.vlgmr.msra.gmra.mxu1 %v688_v60  ;;  %v10980_v4 = vpop.f32.mrf.mxu0  ;;  %11273 = vmatprep.subr.bf16.mxu0 %v12333_v62  ;;  %v12401_v45 = vld [vmem:[%s15636_s1 + $0xff0] sm:$0xff]  }
 0x1a5   :  { %11294 = vmatpush3.bf16.msra.mxu1 %v12332_v61  ;;  %v10981_v7 = vadd.f32 %v10980_v4, %v10979_v0  ;;  %8595 = vmatprep.mubr.bf16.mxu1 %v693_v50  ;;  %v12370_v61 = vld [vmem:[%s15636_s1 + $0xe68] sm:$0xff]  }
 0x1a6   :  { %v11002_v5 = vpop.f32.mrf.mxu1  ;;  %11295 = vmatprep.subr.bf16.mxu1 %v12335_v63  ;;  %v10982_v10 = vpop.f32.mrf.mxu0  ;;  %v12372_v0 = vld [vmem:[%s15636_s1 + $0xee8] sm:$0xff]  }
 0x1a7   :  { %v11003_v8 = vadd.f32 %v11002_v5, %v11001_v1  ;;  %v7998_v13 = vadd.f32 %v10981_v7, %v14119_v27  ;;  %11274 = vmatpush3.bf16.msra.mxu0 %v12334_v2  ;;  %v12351_v27 = vld [vmem:[%s15636_s1 + $0xdd0] sm:$0xff]   ;;  %v12371_v2 = vld [vmem:[%s15636_s1 + $0xe28] sm:$0xff]   ;;  %v12374_v7 = vld [vmem:[%s15636_s1 + $0xe60] sm:$0xff]  }
 0x1a8   :  { %v11004_v12 = vpop.f32.mrf.mxu1  ;;  %v10983_v15 = vpop.f32.mrf.mxu0  ;;  %11275 = vmatprep.subr.bf16.mxu0 %v12337_v6  ;;  %v12373_v5 = vld [vmem:[%s15636_s1 + $0xea8] sm:$0xff]   ;;  %v12376_v10 = vld [vmem:[%s15636_s1 + $0xee0] sm:$0xff]  }
 0x1a9   :  { %11296 = vmatpush3.bf16.msra.mxu1 %v12336_v3  ;;  %v14223_v18 = vadd.f32 %v11003_v8, %v7998_v13  ;;  %v12377_v12 = vld [vmem:[%s15636_s1 + $0xea0] sm:$0xff]   ;;  %v12378_v13 = vld [vmem:[%s15636_s1 + $0xe58] sm:$0xff]  }
 0x1aa   :  { %v11005_v17 = vpop.f32.mrf.mxu1  ;;  %11297 = vmatprep.subr.bf16.mxu1 %v12339_v9  ;;  %v12379_v15 = vld [vmem:[%s15636_s1 + $0xe18] sm:$0xff]  }
 0x1ab   :  { %11276 = vmatpush3.bf16.msra.mxu0 %v12338_v11  ;;  %v12375_v11 = vld [vmem:[%s15636_s1 + $0xe20] sm:$0xff]   ;;  %v12382_v17 = vld [vmem:[%s15636_s1 + $0xe50] sm:$0xff]  }
 0x1ac   :  { %11277 = vmatprep.subr.bf16.mxu0 %v12341_v16  ;;  %v12381_v16 = vld [vmem:[%s15636_s1 + $0xe98] sm:$0xff]  }
 0x1ad   :  { %11298 = vmatpush3.bf16.msra.mxu1 %v12340_v14  ;;  %v12380_v14 = vld [vmem:[%s15636_s1 + $0xed8] sm:$0xff]  }
 0x1ae   :  { %11299 = vmatprep.subr.bf16.mxu1 %v12343_v19  ;;  %v12383_v19 = vld [vmem:[%s15636_s1 + $0xe10] sm:$0xff]  }
 0x1af   :  { %11278 = vmatpush3.bf16.msra.mxu0 %v12342_v20  ;;  %v12385_v20 = vld [vmem:[%s15636_s1 + $0xe90] sm:$0xff]  }
 0x1b0   :  { %11279 = vmatprep.subr.bf16.mxu0 %v12345_v22  ;;  %v12387_v22 = vld [vmem:[%s15636_s1 + $0xe08] sm:$0xff]  }
 0x1b1   :  { %11300 = vmatpush3.bf16.msra.mxu1 %v12344_v21  ;;  %v12386_v21 = vld [vmem:[%s15636_s1 + $0xe48] sm:$0xff]  }
 0x1b2   :  { %11301 = vmatprep.subr.bf16.mxu1 %v12347_v23  ;;  %v12388_v23 = vld [vmem:[%s15636_s1 + $0xec8] sm:$0xff]  }
 0x1b3   :  { %11280 = vmatpush3.bf16.msra.mxu0 %v12346_v24  ;;  %v12389_v24 = vld [vmem:[%s15636_s1 + $0xe88] sm:$0xff]  }
 0x1b4   :  { %11281 = vmatprep.subr.bf16.mxu0 %v12349_v26  ;;  %v12392_v26 = vld [vmem:[%s15636_s1 + $0xec0] sm:$0xff]  }
 0x1b5   :  { %11302 = vmatpush3.bf16.msra.mxu1 %v12348_v25  ;;  %v12390_v25 = vld [vmem:[%s15636_s1 + $0xe40] sm:$0xff]  }
 0x1b6   :  { %11303 = vmatprep.subr.bf16.mxu1 %v12351_v27  ;;  %v42_v27 = vld [vmem:[%s15635_s0 + $0x70] sm:$0xff] }
 0x1b7   :  { %11282 = vmatpush3.bf16.msra.mxu0 %v12350_v28  ;;  %v12391_v28 = vld [vmem:[%s15636_s1 + $0xe00] sm:$0xff]  }
 0x1b8   :  { %11283 = vmatprep.subr.bf16.mxu0 %v12353_v30  ;;  %v320_v30 = vcombine.high %v42_v27, %v42_v27 }
 0x1b9   :  { %11304 = vmatpush3.bf16.msra.mxu1 %v12352_v29  ;;  %v327_v29 = vrot.slane %v42_v27, %v12953_v41 }
 0x1ba   :  { %11305 = vmatprep.subr.bf16.mxu1 %v12355_v31  ;;  %v12393_v31 = vld [vmem:[%s15636_s1 + $0xe80] sm:$0xff]  }
 0x1bb   :  { %11284 = vmatpush3.bf16.msra.mxu0 %v12354_v32  ;;  %v335_v32 = vcombine.high %v327_v29, %v327_v29  ;;  %v694_v37 = vpack.c.bf16 %v327_v29, %v327_v29 }
 0x1bc   :  { %11285 = vmatprep.subr.bf16.mxu0 %v12357_v34  ;;  %v334_v34 = vrot.slane %v320_v30, %v12953_v41  ;;  %v12429_v30 = vld [vmem:[%s15636_s1 + $0x1038] sm:$0xff]  }
 0x1bd   :  { %11306 = vmatpush3.bf16.msra.mxu1 %v12356_v33  ;;  %v12394_v33 = vld [vmem:[%s15636_s1 + $0xf78] sm:$0xff]  }
 0x1be   :  { %11307 = vmatprep.subr.bf16.mxu1 %v12359_v36  ;;  %v695_v36 = vpack.c.bf16 %v335_v32, %v335_v32  ;;  %v336_v38 = vcombine.high %v334_v34, %v334_v34  ;;  %v696_v40 = vpack.c.bf16 %v334_v34, %v334_v34  ;;  %v12431_v32 = vld [vmem:[%s15636_s1 + $0x10b8] sm:$0xff]   ;;  %v12432_v34 = vld [vmem:[%s15636_s1 + $0x1070] sm:$0xff]  }
 0x1bf   :  { %11286 = vmatpush3.bf16.msra.mxu0 %v12358_v39  ;;  %v12396_v39 = vld [vmem:[%s15636_s1 + $0xf38] sm:$0xff]  }
 0x1c0   :  { %11315 = vmatprep.subr.bf16.mxu0 %v12361_v44  ;;  %v697_v43 = vpack.c.bf16 %v336_v38, %v336_v38  ;;  %v12399_v44 = vld [vmem:[%s15636_s1 + $0xf70] sm:$0xff]  }
 0x1c1   :  { %11308 = vmatpush3.bf16.msra.mxu1 %v12360_v42  ;;  %v12398_v42 = vld [vmem:[%s15636_s1 + $0xfb8] sm:$0xff]   ;;  %v12433_v38 = vld [vmem:[%s15636_s1 + $0x1030] sm:$0xff]  }
 0x1c2   :  { %11337 = vmatprep.subr.bf16.mxu1 %v12364_v47  ;;  %v11023_v55 = vpop.f32.mrf.mxu0  ;;  %8556 = vmatmul.mubr.bf16.vlgmr.msra.gmra.mxu0 %v690_v48  ;;  %v12400_v48 = vld [vmem:[%s15636_s1 + $0xf30] sm:$0xff]  }
 0x1c3   :  { %11316 = vmatpush3.bf16.msra.mxu0 %v12363_v49  ;;  %8635 = vmatprep.mubr.bf16.mxu0 %v695_v36  ;;  %v12402_v49 = vld [vmem:[%s15636_s1 + $0xfb0] sm:$0xff]  }
 0x1c4   :  { %v11045_v56 = vpop.f32.mrf.mxu1  ;;  %8596 = vmatmul.mubr.bf16.vlgmr.msra.gmra.mxu1 %v692_v51  ;;  %v11024_v59 = vpop.f32.mrf.mxu0  ;;  %11317 = vmatprep.subr.bf16.mxu0 %v12366_v53 }
 0x1c5   :  { %11338 = vmatpush3.bf16.msra.mxu1 %v12365_v52  ;;  %v11025_v62 = vadd.f32 %v11024_v59, %v11023_v55  ;;  %8675 = vmatprep.mubr.bf16.mxu1 %v697_v43  ;;  %v12403_v52 = vld [vmem:[%s15636_s1 + $0xf68] sm:$0xff]  }
 0x1c6   :  { %v11046_v60 = vpop.f32.mrf.mxu1  ;;  %11339 = vmatprep.subr.bf16.mxu1 %v12368_v54  ;;  %v11026_v1 = vpop.f32.mrf.mxu0  ;;  %v12405_v55 = vld [vmem:[%s15636_s1 + $0xfe8] sm:$0xff]  }
 0x1c7   :  { %v11047_v63 = vadd.f32 %v11046_v60, %v11045_v56  ;;  %v8078_v4 = vadd.f32 %v11025_v62, %v14223_v18  ;;  %11318 = vmatpush3.bf16.msra.mxu0 %v12367_v57  ;;  %v12384_v18 = vld [vmem:[%s15636_s1 + $0xed0] sm:$0xff]   ;;  %v12404_v57 = vld [vmem:[%s15636_s1 + $0xf28] sm:$0xff]   ;;  %v12407_v62 = vld [vmem:[%s15636_s1 + $0xf60] sm:$0xff]  }
 0x1c8   :  { %v11048_v3 = vpop.f32.mrf.mxu1  ;;  %v11027_v6 = vpop.f32.mrf.mxu0  ;;  %11319 = vmatprep.subr.bf16.mxu0 %v12370_v61  ;;  %v12406_v60 = vld [vmem:[%s15636_s1 + $0xfa8] sm:$0xff]   ;;  %v12409_v1 = vld [vmem:[%s15636_s1 + $0xfe0] sm:$0xff]  }
 0x1c9   :  { %11340 = vmatpush3.bf16.msra.mxu1 %v12369_v58  ;;  %v14327_v9 = vadd.f32 %v11047_v63, %v8078_v4  ;;  %v12410_v3 = vld [vmem:[%s15636_s1 + $0xfa0] sm:$0xff]   ;;  %v12411_v4 = vld [vmem:[%s15636_s1 + $0xf58] sm:$0xff]   ;;  %v12436_v43 = vld [vmem:[%s15636_s1 + $0x1068] sm:$0xff]  }
 0x1ca   :  { %v11049_v8 = vpop.f32.mrf.mxu1  ;;  %11341 = vmatprep.subr.bf16.mxu1 %v12372_v0  ;;  %v12412_v6 = vld [vmem:[%s15636_s1 + $0xf18] sm:$0xff]  }
 0x1cb   :  { %11320 = vmatpush3.bf16.msra.mxu0 %v12371_v2  ;;  %v12408_v2 = vld [vmem:[%s15636_s1 + $0xf20] sm:$0xff]   ;;  %v12415_v8 = vld [vmem:[%s15636_s1 + $0xf50] sm:$0xff]  }
 0x1cc   :  { %11321 = vmatprep.subr.bf16.mxu0 %v12374_v7  ;;  %v12414_v7 = vld [vmem:[%s15636_s1 + $0xf98] sm:$0xff]  }
 0x1cd   :  { %11342 = vmatpush3.bf16.msra.mxu1 %v12373_v5  ;;  %v12413_v5 = vld [vmem:[%s15636_s1 + $0xfd8] sm:$0xff]  }
 0x1ce   :  { %11343 = vmatprep.subr.bf16.mxu1 %v12376_v10  ;;  %v12416_v10 = vld [vmem:[%s15636_s1 + $0xf10] sm:$0xff]  }
 0x1cf   :  { %11322 = vmatpush3.bf16.msra.mxu0 %v12375_v11  ;;  %v12418_v11 = vld [vmem:[%s15636_s1 + $0xf90] sm:$0xff]  }
 0x1d0   :  { %11323 = vmatprep.subr.bf16.mxu0 %v12378_v13  ;;  %v12421_v13 = vld [vmem:[%s15636_s1 + $0xfc8] sm:$0xff]  }
 0x1d1   :  { %11344 = vmatpush3.bf16.msra.mxu1 %v12377_v12  ;;  %v12419_v12 = vld [vmem:[%s15636_s1 + $0xf48] sm:$0xff]  }
 0x1d2   :  { %11345 = vmatprep.subr.bf16.mxu1 %v12380_v14  ;;  %v12420_v14 = vld [vmem:[%s15636_s1 + $0xf08] sm:$0xff]  }
 0x1d3   :  { %11324 = vmatpush3.bf16.msra.mxu0 %v12379_v15  ;;  %v12422_v15 = vld [vmem:[%s15636_s1 + $0xf88] sm:$0xff]  }
 0x1d4   :  { %11325 = vmatprep.subr.bf16.mxu0 %v12382_v17  ;;  %v12425_v17 = vld [vmem:[%s15636_s1 + $0xfc0] sm:$0xff]  }
 0x1d5   :  { %11346 = vmatpush3.bf16.msra.mxu1 %v12381_v16  ;;  %v12423_v16 = vld [vmem:[%s15636_s1 + $0xf40] sm:$0xff]  }
 0x1d6   :  { %11347 = vmatprep.subr.bf16.mxu1 %v12384_v18  ;;  %v43_v18 = vld [vmem:[%s15635_s0 + $0x78] sm:$0xff] }
 0x1d7   :  { %11326 = vmatpush3.bf16.msra.mxu0 %v12383_v19  ;;  %v12424_v19 = vld [vmem:[%s15636_s1 + $0xf00] sm:$0xff]  }
 0x1d8   :  { %11327 = vmatprep.subr.bf16.mxu0 %v12386_v21  ;;  %v337_v21 = vcombine.high %v43_v18, %v43_v18 }
 0x1d9   :  { %11348 = vmatpush3.bf16.msra.mxu1 %v12385_v20  ;;  %v344_v20 = vrot.slane %v43_v18, %v12953_v41 }
 0x1da   :  { %11349 = vmatprep.subr.bf16.mxu1 %v12388_v23 }
 0x1db   :  { %11328 = vmatpush3.bf16.msra.mxu0 %v12387_v22  ;;  %v12426_v22 = vld [vmem:[%s15636_s1 + $0xf80] sm:$0xff]   ;;  %v352_v23 = vcombine.high %v344_v20, %v344_v20 }
 0x1dc   :  { %11329 = vmatprep.subr.bf16.mxu0 %v12390_v25  ;;  %v351_v25 = vrot.slane %v337_v21, %v12953_v41  ;;  %v12462_v21 = vld [vmem:[%s15636_s1 + $0x1138] sm:$0xff]  }
 0x1dd   :  { %11350 = vmatpush3.bf16.msra.mxu1 %v12389_v24  ;;  %v12427_v24 = vld [vmem:[%s15636_s1 + $0x1078] sm:$0xff]   ;;  %v699_v27 = vpack.c.bf16 %v352_v23, %v352_v23 }
 0x1de   :  { %11351 = vmatprep.subr.bf16.mxu1 %v12392_v26  ;;  %v12430_v26 = vld [vmem:[%s15636_s1 + $0x10f8] sm:$0xff]   ;;  %v353_v29 = vcombine.high %v351_v25, %v351_v25 }
 0x1df   :  { %11330 = vmatpush3.bf16.msra.mxu0 %v12391_v28  ;;  %v698_v28 = vpack.c.bf16 %v344_v20, %v344_v20  ;;  %v12464_v23 = vld [vmem:[%s15636_s1 + $0x11b8] sm:$0xff]  }
 0x1e0   :  { %11359 = vmatprep.subr.bf16.mxu0 %v12394_v33  ;;  %v701_v33 = vpack.c.bf16 %v353_v29, %v353_v29  ;;  %v12466_v29 = vld [vmem:[%s15636_s1 + $0x1130] sm:$0xff]  }
 0x1e1   :  { %11352 = vmatpush3.bf16.msra.mxu1 %v12393_v31  ;;  %v700_v31 = vpack.c.bf16 %v351_v25, %v351_v25  ;;  %v12465_v25 = vld [vmem:[%s15636_s1 + $0x1170] sm:$0xff]  }
 0x1e2   :  { %11381 = vmatprep.subr.bf16.mxu1 %v12397_v35  ;;  %v11067_v46 = vpop.f32.mrf.mxu0  ;;  %8636 = vmatmul.mubr.bf16.vlgmr.msra.gmra.mxu0 %v694_v37  ;;  %v12434_v35 = vld [vmem:[%s15636_s1 + $0x10f0] sm:$0xff]  }
 0x1e3   :  { %11360 = vmatpush3.bf16.msra.mxu0 %v12396_v39  ;;  %8715 = vmatprep.mubr.bf16.mxu0 %v699_v27  ;;  %v12435_v39 = vld [vmem:[%s15636_s1 + $0x10b0] sm:$0xff]  }
 0x1e4   :  { %v11089_v47 = vpop.f32.mrf.mxu1  ;;  %8676 = vmatmul.mubr.bf16.vlgmr.msra.gmra.mxu1 %v696_v40  ;;  %v11068_v50 = vpop.f32.mrf.mxu0  ;;  %11361 = vmatprep.subr.bf16.mxu0 %v12399_v44 }
 0x1e5   :  { %11382 = vmatpush3.bf16.msra.mxu1 %v12398_v42  ;;  %v11069_v53 = vadd.f32 %v11068_v50, %v11067_v46  ;;  %8755 = vmatprep.mubr.bf16.mxu1 %v701_v33  ;;  %v12438_v46 = vld [vmem:[%s15636_s1 + $0x10e8] sm:$0xff]  }
 0x1e6   :  { %v11090_v51 = vpop.f32.mrf.mxu1  ;;  %11383 = vmatprep.subr.bf16.mxu1 %v12401_v45  ;;  %v11070_v56 = vpop.f32.mrf.mxu0  ;;  %v12469_v33 = vld [vmem:[%s15636_s1 + $0x1168] sm:$0xff]  }
 0x1e7   :  { %v11091_v54 = vadd.f32 %v11090_v51, %v11089_v47  ;;  %v8158_v59 = vadd.f32 %v11069_v53, %v14327_v9  ;;  %11362 = vmatpush3.bf16.msra.mxu0 %v12400_v48  ;;  %v12417_v9 = vld [vmem:[%s15636_s1 + $0xfd0] sm:$0xff]   ;;  %v12437_v48 = vld [vmem:[%s15636_s1 + $0x1028] sm:$0xff]   ;;  %v12440_v53 = vld [vmem:[%s15636_s1 + $0x1060] sm:$0xff]  }
 0x1e8   :  { %v11092_v58 = vpop.f32.mrf.mxu1  ;;  %v11071_v61 = vpop.f32.mrf.mxu0  ;;  %11363 = vmatprep.subr.bf16.mxu0 %v12403_v52  ;;  %v12439_v51 = vld [vmem:[%s15636_s1 + $0x10a8] sm:$0xff]   ;;  %v12442_v56 = vld [vmem:[%s15636_s1 + $0x10e0] sm:$0xff]  }
 0x1e9   :  { %11384 = vmatpush3.bf16.msra.mxu1 %v12402_v49  ;;  %v14431_v0 = vadd.f32 %v11091_v54, %v8158_v59  ;;  %v12443_v58 = vld [vmem:[%s15636_s1 + $0x10a0] sm:$0xff]   ;;  %v12444_v59 = vld [vmem:[%s15636_s1 + $0x1058] sm:$0xff]  }
 0x1ea   :  { %v11093_v63 = vpop.f32.mrf.mxu1  ;;  %11385 = vmatprep.subr.bf16.mxu1 %v12405_v55  ;;  %v12445_v61 = vld [vmem:[%s15636_s1 + $0x1018] sm:$0xff]  }
 0x1eb   :  { %11364 = vmatpush3.bf16.msra.mxu0 %v12404_v57  ;;  %v12441_v57 = vld [vmem:[%s15636_s1 + $0x1020] sm:$0xff]   ;;  %v12448_v63 = vld [vmem:[%s15636_s1 + $0x1050] sm:$0xff]  }
 0x1ec   :  { %11365 = vmatprep.subr.bf16.mxu0 %v12407_v62  ;;  %v12447_v62 = vld [vmem:[%s15636_s1 + $0x1098] sm:$0xff]  }
 0x1ed   :  { %11386 = vmatpush3.bf16.msra.mxu1 %v12406_v60  ;;  %v12446_v60 = vld [vmem:[%s15636_s1 + $0x10d8] sm:$0xff]  }
 0x1ee   :  { %11387 = vmatprep.subr.bf16.mxu1 %v12409_v1  ;;  %v12449_v1 = vld [vmem:[%s15636_s1 + $0x1010] sm:$0xff]  }
 0x1ef   :  { %11366 = vmatpush3.bf16.msra.mxu0 %v12408_v2  ;;  %v12451_v2 = vld [vmem:[%s15636_s1 + $0x1090] sm:$0xff]  }
 0x1f0   :  { %11367 = vmatprep.subr.bf16.mxu0 %v12411_v4  ;;  %v12454_v4 = vld [vmem:[%s15636_s1 + $0x10c8] sm:$0xff]  }
 0x1f1   :  { %11388 = vmatpush3.bf16.msra.mxu1 %v12410_v3  ;;  %v12452_v3 = vld [vmem:[%s15636_s1 + $0x1048] sm:$0xff]  }
 0x1f2   :  { %11389 = vmatprep.subr.bf16.mxu1 %v12413_v5  ;;  %v12453_v5 = vld [vmem:[%s15636_s1 + $0x1008] sm:$0xff]  }
 0x1f3   :  { %11368 = vmatpush3.bf16.msra.mxu0 %v12412_v6  ;;  %v12455_v6 = vld [vmem:[%s15636_s1 + $0x1088] sm:$0xff]  }
 0x1f4   :  { %11369 = vmatprep.subr.bf16.mxu0 %v12415_v8  ;;  %v12458_v8 = vld [vmem:[%s15636_s1 + $0x10c0] sm:$0xff]  }
 0x1f5   :  { %11390 = vmatpush3.bf16.msra.mxu1 %v12414_v7  ;;  %v12456_v7 = vld [vmem:[%s15636_s1 + $0x1040] sm:$0xff]  }
 0x1f6   :  { %11391 = vmatprep.subr.bf16.mxu1 %v12417_v9  ;;  %v44_v9 = vld [vmem:[%s15635_s0 + $0x80] sm:$0xff] }
 0x1f7   :  { %11370 = vmatpush3.bf16.msra.mxu0 %v12416_v10  ;;  %v12457_v10 = vld [vmem:[%s15636_s1 + $0x1000] sm:$0xff]  }
 0x1f8   :  { %11371 = vmatprep.subr.bf16.mxu0 %v12419_v12  ;;  %v354_v12 = vcombine.high %v44_v9, %v44_v9 }
 0x1f9   :  { %11392 = vmatpush3.bf16.msra.mxu1 %v12418_v11  ;;  %v361_v11 = vrot.slane %v44_v9, %v12953_v41 }
 0x1fa   :  { %11393 = vmatprep.subr.bf16.mxu1 %v12421_v13  ;;  %v12459_v13 = vld [vmem:[%s15636_s1 + $0x1080] sm:$0xff]  }
 0x1fb   :  { %11372 = vmatpush3.bf16.msra.mxu0 %v12420_v14  ;;  %v369_v14 = vcombine.high %v361_v11, %v361_v11 }
 0x1fc   :  { %11373 = vmatprep.subr.bf16.mxu0 %v12423_v16  ;;  %v368_v16 = vrot.slane %v354_v12, %v12953_v41 }
 0x1fd   :  { %11394 = vmatpush3.bf16.msra.mxu1 %v12422_v15  ;;  %v12460_v15 = vld [vmem:[%s15636_s1 + $0x1178] sm:$0xff]   ;;  %v703_v18 = vpack.c.bf16 %v369_v14, %v369_v14 }
 0x1fe   :  { %11395 = vmatprep.subr.bf16.mxu1 %v12425_v17  ;;  %v12463_v17 = vld [vmem:[%s15636_s1 + $0x11f8] sm:$0xff]   ;;  %v370_v20 = vcombine.high %v368_v16, %v368_v16 }
 0x1ff   :  { %11374 = vmatpush3.bf16.msra.mxu0 %v12424_v19  ;;  %v702_v19 = vpack.c.bf16 %v361_v11, %v361_v11 }
 0x200   :  { %11403 = vmatprep.subr.bf16.mxu0 %v12427_v24  ;;  %v705_v24 = vpack.c.bf16 %v370_v20, %v370_v20 }
 0x201   :  { %11396 = vmatpush3.bf16.msra.mxu1 %v12426_v22  ;;  %v704_v22 = vpack.c.bf16 %v368_v16, %v368_v16 }
 0x202   :  { %11425 = vmatprep.subr.bf16.mxu1 %v12430_v26  ;;  %v11111_v36 = vpop.f32.mrf.mxu0  ;;  %8716 = vmatmul.mubr.bf16.vlgmr.msra.gmra.mxu0 %v698_v28  ;;  %v12467_v26 = vld [vmem:[%s15636_s1 + $0x11f0] sm:$0xff]  }
 0x203   :  { %11404 = vmatpush3.bf16.msra.mxu0 %v12429_v30  ;;  %8795 = vmatprep.mubr.bf16.mxu0 %v703_v18  ;;  %v12468_v30 = vld [vmem:[%s15636_s1 + $0x11b0] sm:$0xff]  }
 0x204   :  { %v11133_v37 = vpop.f32.mrf.mxu1  ;;  %8756 = vmatmul.mubr.bf16.vlgmr.msra.gmra.mxu1 %v700_v31  ;;  %v11112_v40 = vpop.f32.mrf.mxu0  ;;  %11405 = vmatprep.subr.bf16.mxu0 %v12432_v34 }
 0x205   :  { %11426 = vmatpush3.bf16.msra.mxu1 %v12431_v32  ;;  %v11113_v44 = vadd.f32 %v11112_v40, %v11111_v36  ;;  %8835 = vmatprep.mubr.bf16.mxu1 %v705_v24  ;;  %v12471_v36 = vld [vmem:[%s15636_s1 + $0x11e8] sm:$0xff]  }
 0x206   :  { %v11134_v42 = vpop.f32.mrf.mxu1  ;;  %11427 = vmatprep.subr.bf16.mxu1 %v12434_v35  ;;  %v11114_v47 = vpop.f32.mrf.mxu0 }
 0x207   :  { %v11135_v45 = vadd.f32 %v11134_v42, %v11133_v37  ;;  %v8238_v50 = vadd.f32 %v11113_v44, %v14431_v0  ;;  %11406 = vmatpush3.bf16.msra.mxu0 %v12433_v38  ;;  %v12450_v0 = vld [vmem:[%s15636_s1 + $0x10d0] sm:$0xff]   ;;  %v12470_v38 = vld [vmem:[%s15636_s1 + $0x1128] sm:$0xff]   ;;  %v12473_v44 = vld [vmem:[%s15636_s1 + $0x1160] sm:$0xff]  }
 0x208   :  { %v11136_v49 = vpop.f32.mrf.mxu1  ;;  %v11115_v52 = vpop.f32.mrf.mxu0  ;;  %11407 = vmatprep.subr.bf16.mxu0 %v12436_v43  ;;  %v12472_v42 = vld [vmem:[%s15636_s1 + $0x11a8] sm:$0xff]   ;;  %v12475_v47 = vld [vmem:[%s15636_s1 + $0x11e0] sm:$0xff]  }
 0x209   :  { %11428 = vmatpush3.bf16.msra.mxu1 %v12435_v39  ;;  %v14535_v55 = vadd.f32 %v11135_v45, %v8238_v50  ;;  %v12476_v49 = vld [vmem:[%s15636_s1 + $0x11a0] sm:$0xff]   ;;  %v12477_v50 = vld [vmem:[%s15636_s1 + $0x1158] sm:$0xff]  }
 0x20a   :  { %v11137_v54 = vpop.f32.mrf.mxu1  ;;  %11429 = vmatprep.subr.bf16.mxu1 %v12438_v46  ;;  %v12478_v52 = vld [vmem:[%s15636_s1 + $0x1118] sm:$0xff]  }
 0x20b   :  { %11408 = vmatpush3.bf16.msra.mxu0 %v12437_v48  ;;  %v12474_v48 = vld [vmem:[%s15636_s1 + $0x1120] sm:$0xff]   ;;  %v12481_v54 = vld [vmem:[%s15636_s1 + $0x1150] sm:$0xff]  }
 0x20c   :  { %11409 = vmatprep.subr.bf16.mxu0 %v12440_v53  ;;  %v12480_v53 = vld [vmem:[%s15636_s1 + $0x1198] sm:$0xff]  }
 0x20d   :  { %11430 = vmatpush3.bf16.msra.mxu1 %v12439_v51  ;;  %v12479_v51 = vld [vmem:[%s15636_s1 + $0x11d8] sm:$0xff]  }
 0x20e   :  { %11431 = vmatprep.subr.bf16.mxu1 %v12442_v56  ;;  %v12482_v56 = vld [vmem:[%s15636_s1 + $0x1110] sm:$0xff]  }
 0x20f   :  { %11410 = vmatpush3.bf16.msra.mxu0 %v12441_v57  ;;  %v12484_v57 = vld [vmem:[%s15636_s1 + $0x1190] sm:$0xff]  }
 0x210   :  { %11411 = vmatprep.subr.bf16.mxu0 %v12444_v59  ;;  %v12487_v59 = vld [vmem:[%s15636_s1 + $0x11c8] sm:$0xff]  }
 0x211   :  { %11432 = vmatpush3.bf16.msra.mxu1 %v12443_v58  ;;  %v12485_v58 = vld [vmem:[%s15636_s1 + $0x1148] sm:$0xff]  }
 0x212   :  { %11433 = vmatprep.subr.bf16.mxu1 %v12446_v60  ;;  %v12486_v60 = vld [vmem:[%s15636_s1 + $0x1108] sm:$0xff]  }
 0x213   :  { %11412 = vmatpush3.bf16.msra.mxu0 %v12445_v61  ;;  %v12488_v61 = vld [vmem:[%s15636_s1 + $0x1188] sm:$0xff]  }
 0x214   :  { %11413 = vmatprep.subr.bf16.mxu0 %v12448_v63  ;;  %v12490_v63 = vld [vmem:[%s15636_s1 + $0x1100] sm:$0xff]  }
 0x215   :  { %11434 = vmatpush3.bf16.msra.mxu1 %v12447_v62  ;;  %v12489_v62 = vld [vmem:[%s15636_s1 + $0x1140] sm:$0xff]  }
 0x216   :  { %11435 = vmatprep.subr.bf16.mxu1 %v12450_v0  ;;  %v12491_v0 = vld [vmem:[%s15636_s1 + $0x11c0] sm:$0xff]  }
 0x217   :  { %11414 = vmatpush3.bf16.msra.mxu0 %v12449_v1  ;;  %v45_v1 = vld [vmem:[%s15635_s0 + $0x88] sm:$0xff] }
 0x218   :  { %11415 = vmatprep.subr.bf16.mxu0 %v12452_v3  ;;  %v12492_v3 = vld [vmem:[%s15636_s1 + $0x1180] sm:$0xff]  }
 0x219   :  { %11436 = vmatpush3.bf16.msra.mxu1 %v12451_v2  ;;  %v378_v2 = vrot.slane %v45_v1, %v12953_v41 }
 0x21a   :  { %11437 = vmatprep.subr.bf16.mxu1 %v12454_v4  ;;  %v371_v4 = vcombine.high %v45_v1, %v45_v1  ;;  %v12529_v1 = vld [vmem:[%s15636_s1 + $0x13f8] sm:$0xff]  }
 0x21b   :  { %11416 = vmatpush3.bf16.msra.mxu0 %v12453_v5  ;;  %v12493_v5 = vld [vmem:[%s15636_s1 + $0x1278] sm:$0xff]   ;;  %v706_v9 = vpack.c.bf16 %v378_v2, %v378_v2 }
 0x21c   :  { %11417 = vmatprep.subr.bf16.mxu0 %v12456_v7  ;;  %v385_v7 = vrot.slane %v371_v4, %v12953_v41  ;;  %v12530_v4 = vld [vmem:[%s15636_s1 + $0x13b8] sm:$0xff]  }
 0x21d   :  { %11438 = vmatpush3.bf16.msra.mxu1 %v12455_v6  ;;  %v386_v6 = vcombine.high %v378_v2, %v378_v2 }
 0x21e   :  { %11439 = vmatprep.subr.bf16.mxu1 %v12458_v8  ;;  %v12495_v8 = vld [vmem:[%s15636_s1 + $0x1238] sm:$0xff]   ;;  %v387_v12 = vcombine.high %v385_v7, %v385_v7  ;;  %v708_v14 = vpack.c.bf16 %v385_v7, %v385_v7 }
 0x21f   :  { %11418 = vmatpush3.bf16.msra.mxu0 %v12457_v10  ;;  %v12496_v10 = vld [vmem:[%s15636_s1 + $0x12f8] sm:$0xff]   ;;  %v707_v11 = vpack.c.bf16 %v386_v6, %v386_v6  ;;  %v12531_v6 = vld [vmem:[%s15636_s1 + $0x1370] sm:$0xff]  }
 0x220   :  { %11447 = vmatprep.subr.bf16.mxu0 %v12460_v15  ;;  %v12498_v15 = vld [vmem:[%s15636_s1 + $0x1270] sm:$0xff]   ;;  %v709_v16 = vpack.c.bf16 %v387_v12, %v387_v12 }
 0x221   :  { %11440 = vmatpush3.bf16.msra.mxu1 %v12459_v13  ;;  %v12497_v13 = vld [vmem:[%s15636_s1 + $0x12b8] sm:$0xff]   ;;  %v12534_v12 = vld [vmem:[%s15636_s1 + $0x13b0] sm:$0xff]  }
 0x222   :  { %11469 = vmatprep.subr.bf16.mxu1 %v12463_v17  ;;  %v11155_v27 = vpop.f32.mrf.mxu0  ;;  %8796 = vmatmul.mubr.bf16.vlgmr.msra.gmra.mxu0 %v702_v19  ;;  %v12499_v17 = vld [vmem:[%s15636_s1 + $0x1230] sm:$0xff]  }
 0x223   :  { %11448 = vmatpush3.bf16.msra.mxu0 %v12462_v21  ;;  %8875 = vmatprep.mubr.bf16.mxu0 %v707_v11  ;;  %v12500_v19 = vld [vmem:[%s15636_s1 + $0x12f0] sm:$0xff]  }
 0x224   :  { %v11177_v28 = vpop.f32.mrf.mxu1  ;;  %8836 = vmatmul.mubr.bf16.vlgmr.msra.gmra.mxu1 %v704_v22  ;;  %v11156_v31 = vpop.f32.mrf.mxu0  ;;  %11449 = vmatprep.subr.bf16.mxu0 %v12465_v25  ;;  %v12501_v21 = vld [vmem:[%s15636_s1 + $0x12b0] sm:$0xff]  }
 0x225   :  { %11470 = vmatpush3.bf16.msra.mxu1 %v12464_v23  ;;  %v11157_v34 = vadd.f32 %v11156_v31, %v11155_v27  ;;  %8915 = vmatprep.mubr.bf16.mxu1 %v709_v16  ;;  %v12502_v23 = vld [vmem:[%s15636_s1 + $0x1268] sm:$0xff]  }
 0x226   :  { %v11178_v32 = vpop.f32.mrf.mxu1  ;;  %11471 = vmatprep.subr.bf16.mxu1 %v12467_v26  ;;  %v11158_v37 = vpop.f32.mrf.mxu0  ;;  %v12503_v26 = vld [vmem:[%s15636_s1 + $0x1228] sm:$0xff]  }
 0x227   :  { %v11179_v35 = vadd.f32 %v11178_v32, %v11177_v28  ;;  %v8318_v40 = vadd.f32 %v11157_v34, %v14535_v55  ;;  %11450 = vmatpush3.bf16.msra.mxu0 %v12466_v29  ;;  %v12483_v55 = vld [vmem:[%s15636_s1 + $0x11d0] sm:$0xff]   ;;  %v12504_v29 = vld [vmem:[%s15636_s1 + $0x12e8] sm:$0xff]   ;;  %v12506_v34 = vld [vmem:[%s15636_s1 + $0x1260] sm:$0xff]  }
 0x228   :  { %v11180_v39 = vpop.f32.mrf.mxu1  ;;  %v11159_v43 = vpop.f32.mrf.mxu0  ;;  %11451 = vmatprep.subr.bf16.mxu0 %v12469_v33  ;;  %v12505_v31 = vld [vmem:[%s15636_s1 + $0x12a8] sm:$0xff]  }
 0x229   :  { %11472 = vmatpush3.bf16.msra.mxu1 %v12468_v30  ;;  %v14639_v46 = vadd.f32 %v11179_v35, %v8318_v40  ;;  %v12509_v39 = vld [vmem:[%s15636_s1 + $0x12a0] sm:$0xff]   ;;  %v12510_v40 = vld [vmem:[%s15636_s1 + $0x1258] sm:$0xff]  }
 0x22a   :  { %v11181_v45 = vpop.f32.mrf.mxu1  ;;  %11473 = vmatprep.subr.bf16.mxu1 %v12471_v36  ;;  %v12507_v36 = vld [vmem:[%s15636_s1 + $0x1220] sm:$0xff]   ;;  %v12512_v43 = vld [vmem:[%s15636_s1 + $0x12d8] sm:$0xff]  }
 0x22b   :  { %11452 = vmatpush3.bf16.msra.mxu0 %v12470_v38  ;;  %v12508_v38 = vld [vmem:[%s15636_s1 + $0x12e0] sm:$0xff]   ;;  %v12514_v45 = vld [vmem:[%s15636_s1 + $0x1250] sm:$0xff]  }
 0x22c   :  { %11453 = vmatprep.subr.bf16.mxu0 %v12473_v44  ;;  %v12513_v44 = vld [vmem:[%s15636_s1 + $0x1298] sm:$0xff]  }
 0x22d   :  { %11474 = vmatpush3.bf16.msra.mxu1 %v12472_v42  ;;  %v12511_v42 = vld [vmem:[%s15636_s1 + $0x1218] sm:$0xff]  }
 0x22e   :  { %11475 = vmatprep.subr.bf16.mxu1 %v12475_v47  ;;  %v12516_v47 = vld [vmem:[%s15636_s1 + $0x12d0] sm:$0xff]  }
 0x22f   :  { %11454 = vmatpush3.bf16.msra.mxu0 %v12474_v48  ;;  %v12517_v48 = vld [vmem:[%s15636_s1 + $0x1290] sm:$0xff]  }
 0x230   :  { %11455 = vmatprep.subr.bf16.mxu0 %v12477_v50  ;;  %v12519_v50 = vld [vmem:[%s15636_s1 + $0x1208] sm:$0xff]  }
 0x231   :  { %11476 = vmatpush3.bf16.msra.mxu1 %v12476_v49  ;;  %v12518_v49 = vld [vmem:[%s15636_s1 + $0x1248] sm:$0xff]  }
 0x232   :  { %11477 = vmatprep.subr.bf16.mxu1 %v12479_v51  ;;  %v12520_v51 = vld [vmem:[%s15636_s1 + $0x12c8] sm:$0xff]  }
 0x233   :  { %11456 = vmatpush3.bf16.msra.mxu0 %v12478_v52  ;;  %v12521_v52 = vld [vmem:[%s15636_s1 + $0x1288] sm:$0xff]  }
 0x234   :  { %11457 = vmatprep.subr.bf16.mxu0 %v12481_v54  ;;  %v12523_v54 = vld [vmem:[%s15636_s1 + $0x1200] sm:$0xff]  }
 0x235   :  { %11478 = vmatpush3.bf16.msra.mxu1 %v12480_v53  ;;  %v12522_v53 = vld [vmem:[%s15636_s1 + $0x1240] sm:$0xff]  }
 0x236   :  { %11479 = vmatprep.subr.bf16.mxu1 %v12483_v55  ;;  %v12524_v55 = vld [vmem:[%s15636_s1 + $0x12c0] sm:$0xff]  }
 0x237   :  { %11458 = vmatpush3.bf16.msra.mxu0 %v12482_v56  ;;  %v46_v56 = vld [vmem:[%s15635_s0 + $0x90] sm:$0xff] }
 0x238   :  { %11459 = vmatprep.subr.bf16.mxu0 %v12485_v58  ;;  %v12525_v58 = vld [vmem:[%s15636_s1 + $0x1280] sm:$0xff]  }
 0x239   :  { %11480 = vmatpush3.bf16.msra.mxu1 %v12484_v57  ;;  %v395_v57 = vrot.slane %v46_v56, %v12953_v41 }
 0x23a   :  { %11481 = vmatprep.subr.bf16.mxu1 %v12487_v59  ;;  %v388_v59 = vcombine.high %v46_v56, %v46_v56  ;;  %v12562_v56 = vld [vmem:[%s15636_s1 + $0x14f8] sm:$0xff]  }
 0x23b   :  { %11460 = vmatpush3.bf16.msra.mxu0 %v12486_v60  ;;  %v12526_v60 = vld [vmem:[%s15636_s1 + $0x1378] sm:$0xff]  }
 0x23c   :  { %11461 = vmatprep.subr.bf16.mxu0 %v12489_v62  ;;  %v402_v62 = vrot.slane %v388_v59, %v12953_v41  ;;  %v12563_v59 = vld [vmem:[%s15636_s1 + $0x14b8] sm:$0xff]  }
 0x23d   :  { %11482 = vmatpush3.bf16.msra.mxu1 %v12488_v61  ;;  %v403_v61 = vcombine.high %v395_v57, %v395_v57 }
 0x23e   :  { %11483 = vmatprep.subr.bf16.mxu1 %v12491_v0  ;;  %v710_v0 = vpack.c.bf16 %v395_v57, %v395_v57 }
 0x23f   :  { %11462 = vmatpush3.bf16.msra.mxu0 %v12490_v63  ;;  %v12528_v63 = vld [vmem:[%s15636_s1 + $0x1338] sm:$0xff]   ;;  %v711_v2 = vpack.c.bf16 %v403_v61, %v403_v61  ;;  %v12564_v61 = vld [vmem:[%s15636_s1 + $0x1470] sm:$0xff]  }
 0x240   :  { %11491 = vmatprep.subr.bf16.mxu0 %v12493_v5  ;;  %v712_v5 = vpack.c.bf16 %v402_v62, %v402_v62 }
 0x241   :  { %11484 = vmatpush3.bf16.msra.mxu1 %v12492_v3  ;;  %v404_v3 = vcombine.high %v402_v62, %v402_v62 }
 0x242   :  { %11513 = vmatprep.subr.bf16.mxu1 %v12496_v10  ;;  %v11199_v18 = vpop.f32.mrf.mxu0  ;;  %8876 = vmatmul.mubr.bf16.vlgmr.msra.gmra.mxu0 %v706_v9  ;;  %v12533_v10 = vld [vmem:[%s15636_s1 + $0x13f0] sm:$0xff]  }
 0x243   :  { %11492 = vmatpush3.bf16.msra.mxu0 %v12495_v8  ;;  %8955 = vmatprep.mubr.bf16.mxu0 %v711_v2  ;;  %v713_v7 = vpack.c.bf16 %v404_v3, %v404_v3  ;;  %v12532_v8 = vld [vmem:[%s15636_s1 + $0x1330] sm:$0xff]  }
 0x244   :  { %v11221_v20 = vpop.f32.mrf.mxu1  ;;  %v11200_v22 = vpop.f32.mrf.mxu0  ;;  %8916 = vmatmul.mubr.bf16.vlgmr.msra.gmra.mxu1 %v708_v14  ;;  %11493 = vmatprep.subr.bf16.mxu0 %v12498_v15  ;;  %v12535_v14 = vld [vmem:[%s15636_s1 + $0x1368] sm:$0xff]   ;;  %v12567_v3 = vld [vmem:[%s15636_s1 + $0x14b0] sm:$0xff]  }
 0x245   :  { %v11201_v24 = vadd.f32 %v11200_v22, %v11199_v18  ;;  %11514 = vmatpush3.bf16.msra.mxu1 %v12497_v13  ;;  %8995 = vmatprep.mubr.bf16.mxu1 %v713_v7  ;;  %v12538_v22 = vld [vmem:[%s15636_s1 + $0x13a8] sm:$0xff]  }
 0x246   :  { %v11222_v25 = vpop.f32.mrf.mxu1  ;;  %v11202_v27 = vpop.f32.mrf.mxu0  ;;  %11515 = vmatprep.subr.bf16.mxu1 %v12500_v19 }
 0x247   :  { %v11223_v28 = vadd.f32 %v11222_v25, %v11221_v20  ;;  %v8398_v30 = vadd.f32 %v11201_v24, %v14639_v46  ;;  %11494 = vmatpush3.bf16.msra.mxu0 %v12499_v17  ;;  %v12515_v46 = vld [vmem:[%s15636_s1 + $0x1210] sm:$0xff]   ;;  %v12536_v17 = vld [vmem:[%s15636_s1 + $0x1328] sm:$0xff]   ;;  %v12539_v25 = vld [vmem:[%s15636_s1 + $0x1360] sm:$0xff]  }
 0x248   :  { %v11224_v32 = vpop.f32.mrf.mxu1  ;;  %v11203_v33 = vpop.f32.mrf.mxu0  ;;  %11495 = vmatprep.subr.bf16.mxu0 %v12502_v23  ;;  %v12537_v20 = vld [vmem:[%s15636_s1 + $0x13e8] sm:$0xff]   ;;  %v12540_v27 = vld [vmem:[%s15636_s1 + $0x1320] sm:$0xff]  }
 0x249   :  { %v14743_v35 = vadd.f32 %v11223_v28, %v8398_v30  ;;  %11516 = vmatpush3.bf16.msra.mxu1 %v12501_v21  ;;  %v12542_v30 = vld [vmem:[%s15636_s1 + $0x13a0] sm:$0xff]   ;;  %v12544_v32 = vld [vmem:[%s15636_s1 + $0x1318] sm:$0xff]  }
 0x24a   :  { %v11225_v37 = vpop.f32.mrf.mxu1  ;;  %11517 = vmatprep.subr.bf16.mxu1 %v12504_v29  ;;  %v12541_v29 = vld [vmem:[%s15636_s1 + $0x13e0] sm:$0xff]   ;;  %v12545_v33 = vld [vmem:[%s15636_s1 + $0x13d8] sm:$0xff]  }
 0x24b   :  { %11496 = vmatpush3.bf16.msra.mxu0 %v12503_v26  ;;  %v12549_v37 = vld [vmem:[%s15636_s1 + $0x13d0] sm:$0xff]  }
 0x24c   :  { %11497 = vmatprep.subr.bf16.mxu0 %v12506_v34  ;;  %v12546_v34 = vld [vmem:[%s15636_s1 + $0x1398] sm:$0xff]  }
 0x24d   :  { %11518 = vmatpush3.bf16.msra.mxu1 %v12505_v31  ;;  %v12543_v31 = vld [vmem:[%s15636_s1 + $0x1358] sm:$0xff]  }
 0x24e   :  { %11519 = vmatprep.subr.bf16.mxu1 %v12508_v38  ;;  %v12550_v38 = vld [vmem:[%s15636_s1 + $0x1390] sm:$0xff]  }
 0x24f   :  { %11498 = vmatpush3.bf16.msra.mxu0 %v12507_v36  ;;  %v12548_v36 = vld [vmem:[%s15636_s1 + $0x1310] sm:$0xff]  }
 0x250   :  { %11499 = vmatprep.subr.bf16.mxu0 %v12510_v40  ;;  %v12552_v40 = vld [vmem:[%s15636_s1 + $0x1308] sm:$0xff]  }
 0x251   :  { %11520 = vmatpush3.bf16.msra.mxu1 %v12509_v39  ;;  %v12551_v39 = vld [vmem:[%s15636_s1 + $0x1348] sm:$0xff]  }
 0x252   :  { %11521 = vmatprep.subr.bf16.mxu1 %v12512_v43  ;;  %v12554_v43 = vld [vmem:[%s15636_s1 + $0x1388] sm:$0xff]  }
 0x253   :  { %11500 = vmatpush3.bf16.msra.mxu0 %v12511_v42  ;;  %v12553_v42 = vld [vmem:[%s15636_s1 + $0x13c8] sm:$0xff]  }
 0x254   :  { %11501 = vmatprep.subr.bf16.mxu0 %v12514_v45  ;;  %v12556_v45 = vld [vmem:[%s15636_s1 + $0x1300] sm:$0xff]  }
 0x255   :  { %11522 = vmatpush3.bf16.msra.mxu1 %v12513_v44  ;;  %v12555_v44 = vld [vmem:[%s15636_s1 + $0x1340] sm:$0xff]  }
 0x256   :  { %11523 = vmatprep.subr.bf16.mxu1 %v12516_v47  ;;  %v47_v47 = vld [vmem:[%s15635_s0 + $0x98] sm:$0xff] }
 0x257   :  { %11502 = vmatpush3.bf16.msra.mxu0 %v12515_v46  ;;  %v12557_v46 = vld [vmem:[%s15636_s1 + $0x13c0] sm:$0xff]  }
 0x258   :  { %11503 = vmatprep.subr.bf16.mxu0 %v12518_v49  ;;  %v12558_v49 = vld [vmem:[%s15636_s1 + $0x1380] sm:$0xff]  }
 0x259   :  { %11524 = vmatpush3.bf16.msra.mxu1 %v12517_v48  ;;  %v412_v48 = vrot.slane %v47_v47, %v12953_v41 }
 0x25a   :  { %11525 = vmatprep.subr.bf16.mxu1 %v12520_v51  ;;  %v12559_v51 = vld [vmem:[%s15636_s1 + $0x1478] sm:$0xff]  }
 0x25b   :  { %11504 = vmatpush3.bf16.msra.mxu0 %v12519_v50  ;;  %v405_v50 = vcombine.high %v47_v47, %v47_v47  ;;  %v12595_v47 = vld [vmem:[%s15636_s1 + $0x15f8] sm:$0xff]  }
 0x25c   :  { %11505 = vmatprep.subr.bf16.mxu0 %v12522_v53 }
 0x25d   :  { %11526 = vmatpush3.bf16.msra.mxu1 %v12521_v52  ;;  %v420_v52 = vcombine.high %v412_v48, %v412_v48  ;;  %v419_v53 = vrot.slane %v405_v50, %v12953_v41  ;;  %v12596_v50 = vld [vmem:[%s15636_s1 + $0x15b8] sm:$0xff]  }
 0x25e   :  { %11527 = vmatprep.subr.bf16.mxu1 %v12524_v55  ;;  %v714_v55 = vpack.c.bf16 %v412_v48, %v412_v48 }
 0x25f   :  { %11506 = vmatpush3.bf16.msra.mxu0 %v12523_v54  ;;  %v12561_v54 = vld [vmem:[%s15636_s1 + $0x1438] sm:$0xff]   ;;  %v715_v57 = vpack.c.bf16 %v420_v52, %v420_v52  ;;  %v12597_v52 = vld [vmem:[%s15636_s1 + $0x1570] sm:$0xff]  }
 0x260   :  { %11535 = vmatprep.subr.bf16.mxu0 %v12526_v60  ;;  %v716_v60 = vpack.c.bf16 %v419_v53, %v419_v53 }
 0x261   :  { %11528 = vmatpush3.bf16.msra.mxu1 %v12525_v58  ;;  %v421_v58 = vcombine.high %v419_v53, %v419_v53 }
 0x262   :  { %v11243_v9 = vpop.f32.mrf.mxu0  ;;  %8956 = vmatmul.mubr.bf16.vlgmr.msra.gmra.mxu0 %v710_v0  ;;  %11557 = vmatprep.subr.bf16.mxu1 %v12529_v1  ;;  %v12566_v1 = vld [vmem:[%s15636_s1 + $0x14f0] sm:$0xff]  }
 0x263   :  { %11536 = vmatpush3.bf16.msra.mxu0 %v12528_v63  ;;  %9035 = vmatprep.mubr.bf16.mxu0 %v715_v57  ;;  %v717_v62 = vpack.c.bf16 %v421_v58, %v421_v58  ;;  %v12565_v63 = vld [vmem:[%s15636_s1 + $0x1430] sm:$0xff]  }
 0x264   :  { %v11265_v11 = vpop.f32.mrf.mxu1  ;;  %v11244_v13 = vpop.f32.mrf.mxu0  ;;  %8996 = vmatmul.mubr.bf16.vlgmr.msra.gmra.mxu1 %v712_v5  ;;  %11537 = vmatprep.subr.bf16.mxu0 %v12531_v6  ;;  %v12568_v5 = vld [vmem:[%s15636_s1 + $0x1468] sm:$0xff]   ;;  %v12599_v57 = vld [vmem:[%s15636_s1 + $0x15f0] sm:$0xff]  }
 0x265   :  { %v11245_v15 = vadd.f32 %v11244_v13, %v11243_v9  ;;  %11558 = vmatpush3.bf16.msra.mxu1 %v12530_v4  ;;  %9075 = vmatprep.mubr.bf16.mxu1 %v717_v62  ;;  %v12571_v13 = vld [vmem:[%s15636_s1 + $0x14a8] sm:$0xff]  }
 0x266   :  { %v11266_v16 = vpop.f32.mrf.mxu1  ;;  %v11246_v18 = vpop.f32.mrf.mxu0  ;;  %11559 = vmatprep.subr.bf16.mxu1 %v12533_v10  ;;  %v12601_v62 = vld [vmem:[%s15636_s1 + $0x1568] sm:$0xff]  }
 0x267   :  { %v11267_v19 = vadd.f32 %v11266_v16, %v11265_v11  ;;  %v8478_v21 = vadd.f32 %v11245_v15, %v14743_v35  ;;  %11538 = vmatpush3.bf16.msra.mxu0 %v12532_v8  ;;  %v12547_v35 = vld [vmem:[%s15636_s1 + $0x1350] sm:$0xff]   ;;  %v12569_v8 = vld [vmem:[%s15636_s1 + $0x1428] sm:$0xff]   ;;  %v12572_v16 = vld [vmem:[%s15636_s1 + $0x1460] sm:$0xff]  }
 0x268   :  { %v11268_v23 = vpop.f32.mrf.mxu1  ;;  %v11247_v24 = vpop.f32.mrf.mxu0  ;;  %11539 = vmatprep.subr.bf16.mxu0 %v12535_v14  ;;  %v12570_v11 = vld [vmem:[%s15636_s1 + $0x14e8] sm:$0xff]   ;;  %v12573_v18 = vld [vmem:[%s15636_s1 + $0x1420] sm:$0xff]  }
 0x269   :  { %v14847_v26 = vadd.f32 %v11267_v19, %v8478_v21  ;;  %11560 = vmatpush3.bf16.msra.mxu1 %v12534_v12  ;;  %v12575_v21 = vld [vmem:[%s15636_s1 + $0x14a0] sm:$0xff]   ;;  %v12577_v23 = vld [vmem:[%s15636_s1 + $0x1418] sm:$0xff]  }
 0x26a   :  { %v11269_v28 = vpop.f32.mrf.mxu1  ;;  %11561 = vmatprep.subr.bf16.mxu1 %v12537_v20  ;;  %v12574_v20 = vld [vmem:[%s15636_s1 + $0x14e0] sm:$0xff]   ;;  %v12578_v24 = vld [vmem:[%s15636_s1 + $0x14d8] sm:$0xff]  }
 0x26b   :  { %11540 = vmatpush3.bf16.msra.mxu0 %v12536_v17  ;;  %v12582_v28 = vld [vmem:[%s15636_s1 + $0x14d0] sm:$0xff]  }
 0x26c   :  { %11541 = vmatprep.subr.bf16.mxu0 %v12539_v25  ;;  %v12579_v25 = vld [vmem:[%s15636_s1 + $0x1498] sm:$0xff]  }
 0x26d   :  { %11562 = vmatpush3.bf16.msra.mxu1 %v12538_v22  ;;  %v12576_v22 = vld [vmem:[%s15636_s1 + $0x1458] sm:$0xff]  }
 0x26e   :  { %11563 = vmatprep.subr.bf16.mxu1 %v12541_v29  ;;  %v12583_v29 = vld [vmem:[%s15636_s1 + $0x1490] sm:$0xff]  }
 0x26f   :  { %11542 = vmatpush3.bf16.msra.mxu0 %v12540_v27  ;;  %v12581_v27 = vld [vmem:[%s15636_s1 + $0x1410] sm:$0xff]  }
 0x270   :  { %11543 = vmatprep.subr.bf16.mxu0 %v12543_v31  ;;  %v12585_v31 = vld [vmem:[%s15636_s1 + $0x1408] sm:$0xff]  }
 0x271   :  { %11564 = vmatpush3.bf16.msra.mxu1 %v12542_v30  ;;  %v12584_v30 = vld [vmem:[%s15636_s1 + $0x1448] sm:$0xff]  }
 0x272   :  { %11565 = vmatprep.subr.bf16.mxu1 %v12545_v33  ;;  %v12587_v33 = vld [vmem:[%s15636_s1 + $0x1488] sm:$0xff]  }
 0x273   :  { %11544 = vmatpush3.bf16.msra.mxu0 %v12544_v32  ;;  %v12586_v32 = vld [vmem:[%s15636_s1 + $0x14c8] sm:$0xff]  }
 0x274   :  { %11545 = vmatprep.subr.bf16.mxu0 %v12547_v35  ;;  %v12589_v35 = vld [vmem:[%s15636_s1 + $0x1400] sm:$0xff]  }
 0x275   :  { %11566 = vmatpush3.bf16.msra.mxu1 %v12546_v34  ;;  %v12588_v34 = vld [vmem:[%s15636_s1 + $0x1440] sm:$0xff]  }
 0x276   :  { %11567 = vmatprep.subr.bf16.mxu1 %v12549_v37  ;;  %v48_v37 = vld [vmem:[%s15635_s0 + $0xa0] sm:$0xff] }
 0x277   :  { %11546 = vmatpush3.bf16.msra.mxu0 %v12548_v36  ;;  %v12590_v36 = vld [vmem:[%s15636_s1 + $0x14c0] sm:$0xff]  }
 0x278   :  { %11547 = vmatprep.subr.bf16.mxu0 %v12551_v39  ;;  %v12591_v39 = vld [vmem:[%s15636_s1 + $0x1480] sm:$0xff]  }
 0x279   :  { %11568 = vmatpush3.bf16.msra.mxu1 %v12550_v38  ;;  %v429_v38 = vrot.slane %v48_v37, %v12953_v41 }
 0x27a   :  { %11569 = vmatprep.subr.bf16.mxu1 %v12553_v42  ;;  %v12592_v42 = vld [vmem:[%s15636_s1 + $0x1578] sm:$0xff]  }
 0x27b   :  { %11548 = vmatpush3.bf16.msra.mxu0 %v12552_v40  ;;  %v422_v40 = vcombine.high %v48_v37, %v48_v37  ;;  %v12628_v37 = vld [vmem:[%s15636_s1 + $0x16f8] sm:$0xff]  }
 0x27c   :  { %11549 = vmatprep.subr.bf16.mxu0 %v12555_v44 }
 0x27d   :  { %11570 = vmatpush3.bf16.msra.mxu1 %v12554_v43  ;;  %v437_v43 = vcombine.high %v429_v38, %v429_v38  ;;  %v436_v44 = vrot.slane %v422_v40, %v12953_v41  ;;  %v12629_v40 = vld [vmem:[%s15636_s1 + $0x16b8] sm:$0xff]  }
 0x27e   :  { %11571 = vmatprep.subr.bf16.mxu1 %v12557_v46  ;;  %v718_v46 = vpack.c.bf16 %v429_v38, %v429_v38 }
 0x27f   :  { %11550 = vmatpush3.bf16.msra.mxu0 %v12556_v45  ;;  %v12594_v45 = vld [vmem:[%s15636_s1 + $0x1538] sm:$0xff]   ;;  %v719_v48 = vpack.c.bf16 %v437_v43, %v437_v43  ;;  %v12630_v43 = vld [vmem:[%s15636_s1 + $0x1670] sm:$0xff]  }
 0x280   :  { %11579 = vmatprep.subr.bf16.mxu0 %v12559_v51  ;;  %v720_v51 = vpack.c.bf16 %v436_v44, %v436_v44 }
 0x281   :  { %11572 = vmatpush3.bf16.msra.mxu1 %v12558_v49  ;;  %v438_v49 = vcombine.high %v436_v44, %v436_v44 }
 0x282   :  { %v11287_v0 = vpop.f32.mrf.mxu0  ;;  %9036 = vmatmul.mubr.bf16.vlgmr.msra.gmra.mxu0 %v714_v55  ;;  %11601 = vmatprep.subr.bf16.mxu1 %v12562_v56  ;;  %v12598_v55 = vld [vmem:[%s15636_s1 + $0x1530] sm:$0xff]  }
 0x283   :  { %11580 = vmatpush3.bf16.msra.mxu0 %v12561_v54  ;;  %9115 = vmatprep.mubr.bf16.mxu0 %v719_v48  ;;  %v721_v54 = vpack.c.bf16 %v438_v49, %v438_v49  ;;  %v12632_v48 = vld [vmem:[%s15636_s1 + $0x16f0] sm:$0xff]  }
 0x284   :  { %v11309_v2 = vpop.f32.mrf.mxu1  ;;  %v11288_v4 = vpop.f32.mrf.mxu0  ;;  %9076 = vmatmul.mubr.bf16.vlgmr.msra.gmra.mxu1 %v716_v60  ;;  %11581 = vmatprep.subr.bf16.mxu0 %v12564_v61 }
 0x285   :  { %v11289_v6 = vadd.f32 %v11288_v4, %v11287_v0  ;;  %11602 = vmatpush3.bf16.msra.mxu1 %v12563_v59  ;;  %9155 = vmatprep.mubr.bf16.mxu1 %v721_v54  ;;  %v12600_v59 = vld [vmem:[%s15636_s1 + $0x15b0] sm:$0xff]  }
 0x286   :  { %v11310_v7 = vpop.f32.mrf.mxu1  ;;  %v11290_v9 = vpop.f32.mrf.mxu0  ;;  %11603 = vmatprep.subr.bf16.mxu1 %v12566_v1  ;;  %v12602_v1 = vld [vmem:[%s15636_s1 + $0x1528] sm:$0xff]  }
 0x287   :  { %v11311_v10 = vadd.f32 %v11310_v7, %v11309_v2  ;;  %v8558_v12 = vadd.f32 %v11289_v6, %v14847_v26  ;;  %11582 = vmatpush3.bf16.msra.mxu0 %v12565_v63  ;;  %v12580_v26 = vld [vmem:[%s15636_s1 + $0x1450] sm:$0xff]   ;;  %v12604_v6 = vld [vmem:[%s15636_s1 + $0x15a8] sm:$0xff]  }
 0x288   :  { %v11312_v14 = vpop.f32.mrf.mxu1  ;;  %v11291_v15 = vpop.f32.mrf.mxu0  ;;  %11583 = vmatprep.subr.bf16.mxu0 %v12568_v5 }
 0x289   :  { %v14951_v17 = vadd.f32 %v11311_v10, %v8558_v12  ;;  %11604 = vmatpush3.bf16.msra.mxu1 %v12567_v3  ;;  %v12603_v3 = vld [vmem:[%s15636_s1 + $0x15e8] sm:$0xff]   ;;  %v12606_v10 = vld [vmem:[%s15636_s1 + $0x1520] sm:$0xff]   ;;  %v12610_v14 = vld [vmem:[%s15636_s1 + $0x1518] sm:$0xff]  }
 0x28a   :  { %v11313_v19 = vpop.f32.mrf.mxu1  ;;  %11605 = vmatprep.subr.bf16.mxu1 %v12570_v11  ;;  %v12607_v11 = vld [vmem:[%s15636_s1 + $0x15e0] sm:$0xff]   ;;  %v12611_v15 = vld [vmem:[%s15636_s1 + $0x15d8] sm:$0xff]  }
 0x28b   :  { %11584 = vmatpush3.bf16.msra.mxu0 %v12569_v8  ;;  %v12605_v8 = vld [vmem:[%s15636_s1 + $0x1560] sm:$0xff]   ;;  %v12615_v19 = vld [vmem:[%s15636_s1 + $0x15d0] sm:$0xff]  }
 0x28c   :  { %11585 = vmatprep.subr.bf16.mxu0 %v12572_v16  ;;  %v12608_v12 = vld [vmem:[%s15636_s1 + $0x15a0] sm:$0xff]   ;;  %v12612_v16 = vld [vmem:[%s15636_s1 + $0x1598] sm:$0xff]  }
 0x28d   :  { %11606 = vmatpush3.bf16.msra.mxu1 %v12571_v13  ;;  %v12609_v13 = vld [vmem:[%s15636_s1 + $0x1558] sm:$0xff]  }
 0x28e   :  { %11607 = vmatprep.subr.bf16.mxu1 %v12574_v20  ;;  %v12616_v20 = vld [vmem:[%s15636_s1 + $0x1590] sm:$0xff]  }
 0x28f   :  { %11586 = vmatpush3.bf16.msra.mxu0 %v12573_v18  ;;  %v12614_v18 = vld [vmem:[%s15636_s1 + $0x1510] sm:$0xff]  }
 0x290   :  { %11587 = vmatprep.subr.bf16.mxu0 %v12576_v22  ;;  %v12618_v22 = vld [vmem:[%s15636_s1 + $0x1508] sm:$0xff]  }
 0x291   :  { %11608 = vmatpush3.bf16.msra.mxu1 %v12575_v21  ;;  %v12617_v21 = vld [vmem:[%s15636_s1 + $0x1548] sm:$0xff]  }
 0x292   :  { %11609 = vmatprep.subr.bf16.mxu1 %v12578_v24  ;;  %v12620_v24 = vld [vmem:[%s15636_s1 + $0x1588] sm:$0xff]  }
 0x293   :  { %11588 = vmatpush3.bf16.msra.mxu0 %v12577_v23  ;;  %v12619_v23 = vld [vmem:[%s15636_s1 + $0x15c8] sm:$0xff]  }
 0x294   :  { %11589 = vmatprep.subr.bf16.mxu0 %v12580_v26  ;;  %v12622_v26 = vld [vmem:[%s15636_s1 + $0x1500] sm:$0xff]  }
 0x295   :  { %11610 = vmatpush3.bf16.msra.mxu1 %v12579_v25  ;;  %v12621_v25 = vld [vmem:[%s15636_s1 + $0x1540] sm:$0xff]  }
 0x296   :  { %11611 = vmatprep.subr.bf16.mxu1 %v12582_v28  ;;  %v49_v28 = vld [vmem:[%s15635_s0 + $0xa8] sm:$0xff] }
 0x297   :  { %11590 = vmatpush3.bf16.msra.mxu0 %v12581_v27  ;;  %v12623_v27 = vld [vmem:[%s15636_s1 + $0x15c0] sm:$0xff]  }
 0x298   :  { %11591 = vmatprep.subr.bf16.mxu0 %v12584_v30  ;;  %v12624_v30 = vld [vmem:[%s15636_s1 + $0x1580] sm:$0xff]  }
 0x299   :  { %11612 = vmatpush3.bf16.msra.mxu1 %v12583_v29  ;;  %v446_v29 = vrot.slane %v49_v28, %v12953_v41 }
 0x29a   :  { %11613 = vmatprep.subr.bf16.mxu1 %v12586_v32  ;;  %v12625_v32 = vld [vmem:[%s15636_s1 + $0x1678] sm:$0xff]  }
 0x29b   :  { %11592 = vmatpush3.bf16.msra.mxu0 %v12585_v31  ;;  %v439_v31 = vcombine.high %v49_v28, %v49_v28  ;;  %v12661_v28 = vld [vmem:[%s15636_s1 + $0x17f8] sm:$0xff]  }
 0x29c   :  { %11593 = vmatprep.subr.bf16.mxu0 %v12588_v34 }
 0x29d   :  { %11614 = vmatpush3.bf16.msra.mxu1 %v12587_v33  ;;  %v454_v33 = vcombine.high %v446_v29, %v446_v29  ;;  %v453_v34 = vrot.slane %v439_v31, %v12953_v41  ;;  %v12662_v31 = vld [vmem:[%s15636_s1 + $0x17b8] sm:$0xff]  }
 0x29e   :  { %11615 = vmatprep.subr.bf16.mxu1 %v12590_v36  ;;  %v722_v36 = vpack.c.bf16 %v446_v29, %v446_v29 }
 0x29f   :  { %11594 = vmatpush3.bf16.msra.mxu0 %v12589_v35  ;;  %v12627_v35 = vld [vmem:[%s15636_s1 + $0x1638] sm:$0xff]   ;;  %v723_v38 = vpack.c.bf16 %v454_v33, %v454_v33  ;;  %v12663_v33 = vld [vmem:[%s15636_s1 + $0x1770] sm:$0xff]  }
 0x2a0   :  { %11623 = vmatprep.subr.bf16.mxu0 %v12592_v42  ;;  %v724_v42 = vpack.c.bf16 %v453_v34, %v453_v34 }
 0x2a1   :  { %11616 = vmatpush3.bf16.msra.mxu1 %v12591_v39  ;;  %v455_v39 = vcombine.high %v453_v34, %v453_v34 }
 0x2a2   :  { %v11331_v53 = vpop.f32.mrf.mxu0  ;;  %11645 = vmatprep.subr.bf16.mxu1 %v12595_v47  ;;  %9116 = vmatmul.mubr.bf16.vlgmr.msra.gmra.mxu0 %v718_v46  ;;  %v12631_v46 = vld [vmem:[%s15636_s1 + $0x1630] sm:$0xff]  }
 0x2a3   :  { %11624 = vmatpush3.bf16.msra.mxu0 %v12594_v45  ;;  %9195 = vmatprep.mubr.bf16.mxu0 %v723_v38  ;;  %v725_v45 = vpack.c.bf16 %v455_v39, %v455_v39  ;;  %v12665_v38 = vld [vmem:[%s15636_s1 + $0x17f0] sm:$0xff]  }
 0x2a4   :  { %v11353_v56 = vpop.f32.mrf.mxu1  ;;  %v11332_v58 = vpop.f32.mrf.mxu0  ;;  %9156 = vmatmul.mubr.bf16.vlgmr.msra.gmra.mxu1 %v720_v51  ;;  %11625 = vmatprep.subr.bf16.mxu0 %v12597_v52 }
 0x2a5   :  { %v11333_v60 = vadd.f32 %v11332_v58, %v11331_v53  ;;  %11646 = vmatpush3.bf16.msra.mxu1 %v12596_v50  ;;  %9235 = vmatprep.mubr.bf16.mxu1 %v725_v45  ;;  %v12633_v50 = vld [vmem:[%s15636_s1 + $0x16b0] sm:$0xff]   ;;  %v12634_v53 = vld [vmem:[%s15636_s1 + $0x1668] sm:$0xff]  }
 0x2a6   :  { %v11354_v61 = vpop.f32.mrf.mxu1  ;;  %v11334_v63 = vpop.f32.mrf.mxu0  ;;  %11647 = vmatprep.subr.bf16.mxu1 %v12599_v57  ;;  %v12636_v58 = vld [vmem:[%s15636_s1 + $0x16e8] sm:$0xff]  }
 0x2a7   :  { %v11355_v0 = vadd.f32 %v11354_v61, %v11353_v56  ;;  %v8638_v2 = vadd.f32 %v11333_v60, %v14951_v17  ;;  %11626 = vmatpush3.bf16.msra.mxu0 %v12598_v55  ;;  %v12613_v17 = vld [vmem:[%s15636_s1 + $0x1550] sm:$0xff]   ;;  %v12635_v56 = vld [vmem:[%s15636_s1 + $0x1628] sm:$0xff]   ;;  %v12638_v63 = vld [vmem:[%s15636_s1 + $0x1660] sm:$0xff]  }
 0x2a8   :  { %v11356_v4 = vpop.f32.mrf.mxu1  ;;  %v11335_v5 = vpop.f32.mrf.mxu0  ;;  %11627 = vmatprep.subr.bf16.mxu0 %v12601_v62  ;;  %v12637_v61 = vld [vmem:[%s15636_s1 + $0x16a8] sm:$0xff]  }
 0x2a9   :  { %v15052_v7 = vadd.f32 %v11355_v0, %v8638_v2  ;;  %11648 = vmatpush3.bf16.msra.mxu1 %v12600_v59  ;;  %v12640_v2 = vld [vmem:[%s15636_s1 + $0x16e0] sm:$0xff]   ;;  %v12642_v4 = vld [vmem:[%s15636_s1 + $0x1658] sm:$0xff]  }
 0x2aa   :  { %v11357_v9 = vpop.f32.mrf.mxu1  ;;  %11649 = vmatprep.subr.bf16.mxu1 %v12603_v3  ;;  %v12641_v3 = vld [vmem:[%s15636_s1 + $0x16a0] sm:$0xff]   ;;  %v12643_v5 = vld [vmem:[%s15636_s1 + $0x1618] sm:$0xff]  }
 0x2ab   :  { %11628 = vmatpush3.bf16.msra.mxu0 %v12602_v1  ;;  %v12639_v1 = vld [vmem:[%s15636_s1 + $0x1620] sm:$0xff]   ;;  %v12647_v9 = vld [vmem:[%s15636_s1 + $0x1610] sm:$0xff]  }
 0x2ac   :  { %11629 = vmatprep.subr.bf16.mxu0 %v12605_v8  ;;  %v12646_v8 = vld [vmem:[%s15636_s1 + $0x1650] sm:$0xff]  }
 0x2ad   :  { %11650 = vmatpush3.bf16.msra.mxu1 %v12604_v6  ;;  %v12644_v6 = vld [vmem:[%s15636_s1 + $0x16d8] sm:$0xff]  }
 0x2ae   :  { %11651 = vmatprep.subr.bf16.mxu1 %v12607_v11  ;;  %v12649_v11 = vld [vmem:[%s15636_s1 + $0x1690] sm:$0xff]  }
 0x2af   :  { %11630 = vmatpush3.bf16.msra.mxu0 %v12606_v10  ;;  %v12648_v10 = vld [vmem:[%s15636_s1 + $0x16d0] sm:$0xff]  }
 0x2b0   :  { %11631 = vmatprep.subr.bf16.mxu0 %v12609_v13  ;;  %v12651_v13 = vld [vmem:[%s15636_s1 + $0x1608] sm:$0xff]  }
 0x2b1   :  { %11652 = vmatpush3.bf16.msra.mxu1 %v12608_v12  ;;  %v12650_v12 = vld [vmem:[%s15636_s1 + $0x1648] sm:$0xff]  }
 0x2b2   :  { %11653 = vmatprep.subr.bf16.mxu1 %v12611_v15  ;;  %v12653_v15 = vld [vmem:[%s15636_s1 + $0x1688] sm:$0xff]  }
 0x2b3   :  { %11632 = vmatpush3.bf16.msra.mxu0 %v12610_v14  ;;  %v12652_v14 = vld [vmem:[%s15636_s1 + $0x16c8] sm:$0xff]  }
 0x2b4   :  { %11633 = vmatprep.subr.bf16.mxu0 %v12613_v17  ;;  %v12655_v17 = vld [vmem:[%s15636_s1 + $0x1600] sm:$0xff]  }
 0x2b5   :  { %11654 = vmatpush3.bf16.msra.mxu1 %v12612_v16  ;;  %v12654_v16 = vld [vmem:[%s15636_s1 + $0x1640] sm:$0xff]  }
 0x2b6   :  { %11655 = vmatprep.subr.bf16.mxu1 %v12615_v19  ;;  %v50_v19 = vld [vmem:[%s15635_s0 + $0xb0] sm:$0xff] }
 0x2b7   :  { %11634 = vmatpush3.bf16.msra.mxu0 %v12614_v18  ;;  %v12656_v18 = vld [vmem:[%s15636_s1 + $0x16c0] sm:$0xff]  }
 0x2b8   :  { %11635 = vmatprep.subr.bf16.mxu0 %v12617_v21  ;;  %v12657_v21 = vld [vmem:[%s15636_s1 + $0x1680] sm:$0xff]  }
 0x2b9   :  { %11656 = vmatpush3.bf16.msra.mxu1 %v12616_v20  ;;  %v463_v20 = vrot.slane %v50_v19, %v12953_v41 }
 0x2ba   :  { %11657 = vmatprep.subr.bf16.mxu1 %v12619_v23  ;;  %v12658_v23 = vld [vmem:[%s15636_s1 + $0x1778] sm:$0xff]  }
 0x2bb   :  { %11636 = vmatpush3.bf16.msra.mxu0 %v12618_v22  ;;  %v456_v22 = vcombine.high %v50_v19, %v50_v19 }
 0x2bc   :  { %11637 = vmatprep.subr.bf16.mxu0 %v12621_v25 }
 0x2bd   :  { %11658 = vmatpush3.bf16.msra.mxu1 %v12620_v24  ;;  %v471_v24 = vcombine.high %v463_v20, %v463_v20  ;;  %v470_v25 = vrot.slane %v456_v22, %v12953_v41 }
 0x2be   :  { %11659 = vmatprep.subr.bf16.mxu1 %v12623_v27  ;;  %v726_v27 = vpack.c.bf16 %v463_v20, %v463_v20 }
 0x2bf   :  { %11638 = vmatpush3.bf16.msra.mxu0 %v12622_v26  ;;  %v12660_v26 = vld [vmem:[%s15636_s1 + $0x1738] sm:$0xff]   ;;  %v727_v29 = vpack.c.bf16 %v471_v24, %v471_v24  ;;  %v12696_v24 = vld [vmem:[%s15636_s1 + $0x1870] sm:$0xff]  }
 0x2c0   :  { %11667 = vmatprep.subr.bf16.mxu0 %v12625_v32  ;;  %v728_v32 = vpack.c.bf16 %v470_v25, %v470_v25 }
 0x2c1   :  { %11660 = vmatpush3.bf16.msra.mxu1 %v12624_v30  ;;  %v472_v30 = vcombine.high %v470_v25, %v470_v25 }
 0x2c2   :  { %v11375_v44 = vpop.f32.mrf.mxu0  ;;  %9196 = vmatmul.mubr.bf16.vlgmr.msra.gmra.mxu0 %v722_v36  ;;  %11689 = vmatprep.subr.bf16.mxu1 %v12628_v37  ;;  %v12664_v36 = vld [vmem:[%s15636_s1 + $0x1730] sm:$0xff]  }
 0x2c3   :  { %11668 = vmatpush3.bf16.msra.mxu0 %v12627_v35  ;;  %9275 = vmatprep.mubr.bf16.mxu0 %v727_v29  ;;  %v729_v35 = vpack.c.bf16 %v472_v30, %v472_v30  ;;  %v12698_v29 = vld [vmem:[%s15636_s1 + $0x18f0] sm:$0xff]  }
 0x2c4   :  { %v11397_v47 = vpop.f32.mrf.mxu1  ;;  %v11376_v49 = vpop.f32.mrf.mxu0  ;;  %9236 = vmatmul.mubr.bf16.vlgmr.msra.gmra.mxu1 %v724_v42  ;;  %11669 = vmatprep.subr.bf16.mxu0 %v12630_v43 }
 0x2c5   :  { %v11377_v51 = vadd.f32 %v11376_v49, %v11375_v44  ;;  %11690 = vmatpush3.bf16.msra.mxu1 %v12629_v40  ;;  %9315 = vmatprep.mubr.bf16.mxu1 %v729_v35  ;;  %v12666_v40 = vld [vmem:[%s15636_s1 + $0x17b0] sm:$0xff]   ;;  %v12667_v44 = vld [vmem:[%s15636_s1 + $0x1768] sm:$0xff]  }
 0x2c6   :  { %v11398_v52 = vpop.f32.mrf.mxu1  ;;  %v11378_v54 = vpop.f32.mrf.mxu0  ;;  %11691 = vmatprep.subr.bf16.mxu1 %v12632_v48  ;;  %v12669_v49 = vld [vmem:[%s15636_s1 + $0x17e8] sm:$0xff]  }
 0x2c7   :  { %v11399_v55 = vadd.f32 %v11398_v52, %v11397_v47  ;;  %v8718_v57 = vadd.f32 %v11377_v51, %v15052_v7  ;;  %11670 = vmatpush3.bf16.msra.mxu0 %v12631_v46  ;;  %v12645_v7 = vld [vmem:[%s15636_s1 + $0x1698] sm:$0xff]   ;;  %v12668_v47 = vld [vmem:[%s15636_s1 + $0x1728] sm:$0xff]   ;;  %v12671_v54 = vld [vmem:[%s15636_s1 + $0x1760] sm:$0xff]  }
 0x2c8   :  { %v11400_v59 = vpop.f32.mrf.mxu1  ;;  %v11379_v60 = vpop.f32.mrf.mxu0  ;;  %11671 = vmatprep.subr.bf16.mxu0 %v12634_v53  ;;  %v12670_v52 = vld [vmem:[%s15636_s1 + $0x17a8] sm:$0xff]  }
 0x2c9   :  { %v15156_v62 = vadd.f32 %v11399_v55, %v8718_v57  ;;  %11692 = vmatpush3.bf16.msra.mxu1 %v12633_v50  ;;  %v12673_v57 = vld [vmem:[%s15636_s1 + $0x17e0] sm:$0xff]   ;;  %v12675_v59 = vld [vmem:[%s15636_s1 + $0x1758] sm:$0xff]  }
 0x2ca   :  { %v11401_v0 = vpop.f32.mrf.mxu1  ;;  %11693 = vmatprep.subr.bf16.mxu1 %v12636_v58  ;;  %v12674_v58 = vld [vmem:[%s15636_s1 + $0x17a0] sm:$0xff]   ;;  %v12676_v60 = vld [vmem:[%s15636_s1 + $0x1718] sm:$0xff]  }
 0x2cb   :  { %11672 = vmatpush3.bf16.msra.mxu0 %v12635_v56  ;;  %v12672_v56 = vld [vmem:[%s15636_s1 + $0x1720] sm:$0xff]   ;;  %v12680_v0 = vld [vmem:[%s15636_s1 + $0x1710] sm:$0xff]  }
 0x2cc   :  { %11673 = vmatprep.subr.bf16.mxu0 %v12638_v63  ;;  %v12679_v63 = vld [vmem:[%s15636_s1 + $0x1750] sm:$0xff]  }
 0x2cd   :  { %11694 = vmatpush3.bf16.msra.mxu1 %v12637_v61  ;;  %v12677_v61 = vld [vmem:[%s15636_s1 + $0x17d8] sm:$0xff]  }
 0x2ce   :  { %11695 = vmatprep.subr.bf16.mxu1 %v12640_v2  ;;  %v12682_v2 = vld [vmem:[%s15636_s1 + $0x1790] sm:$0xff]  }
 0x2cf   :  { %11674 = vmatpush3.bf16.msra.mxu0 %v12639_v1  ;;  %v12681_v1 = vld [vmem:[%s15636_s1 + $0x17d0] sm:$0xff]  }
 0x2d0   :  { %11675 = vmatprep.subr.bf16.mxu0 %v12642_v4  ;;  %v12684_v4 = vld [vmem:[%s15636_s1 + $0x1708] sm:$0xff]  }
 0x2d1   :  { %11696 = vmatpush3.bf16.msra.mxu1 %v12641_v3  ;;  %v12683_v3 = vld [vmem:[%s15636_s1 + $0x1748] sm:$0xff]  }
 0x2d2   :  { %11697 = vmatprep.subr.bf16.mxu1 %v12644_v6  ;;  %v12686_v6 = vld [vmem:[%s15636_s1 + $0x1788] sm:$0xff]  }
 0x2d3   :  { %11676 = vmatpush3.bf16.msra.mxu0 %v12643_v5  ;;  %v12685_v5 = vld [vmem:[%s15636_s1 + $0x17c8] sm:$0xff]  }
 0x2d4   :  { %11677 = vmatprep.subr.bf16.mxu0 %v12646_v8  ;;  %v12688_v8 = vld [vmem:[%s15636_s1 + $0x1700] sm:$0xff]  }
 0x2d5   :  { %11698 = vmatpush3.bf16.msra.mxu1 %v12645_v7  ;;  %v12687_v7 = vld [vmem:[%s15636_s1 + $0x1740] sm:$0xff]  }
 0x2d6   :  { %11699 = vmatprep.subr.bf16.mxu1 %v12648_v10  ;;  %v51_v10 = vld [vmem:[%s15635_s0 + $0xb8] sm:$0xff] }
 0x2d7   :  { %11678 = vmatpush3.bf16.msra.mxu0 %v12647_v9  ;;  %v12689_v9 = vld [vmem:[%s15636_s1 + $0x17c0] sm:$0xff]  }
 0x2d8   :  { %11679 = vmatprep.subr.bf16.mxu0 %v12650_v12  ;;  %v12690_v12 = vld [vmem:[%s15636_s1 + $0x1780] sm:$0xff]  }
 0x2d9   :  { %11700 = vmatpush3.bf16.msra.mxu1 %v12649_v11  ;;  %v480_v11 = vrot.slane %v51_v10, %v12953_v41 }
 0x2da   :  { %11701 = vmatprep.subr.bf16.mxu1 %v12652_v14  ;;  %v12691_v14 = vld [vmem:[%s15636_s1 + $0x1878] sm:$0xff]  }
 0x2db   :  { %11680 = vmatpush3.bf16.msra.mxu0 %v12651_v13  ;;  %v473_v13 = vcombine.high %v51_v10, %v51_v10 }
 0x2dc   :  { %11681 = vmatprep.subr.bf16.mxu0 %v12654_v16 }
 0x2dd   :  { %11702 = vmatpush3.bf16.msra.mxu1 %v12653_v15  ;;  %v488_v15 = vcombine.high %v480_v11, %v480_v11  ;;  %v487_v16 = vrot.slane %v473_v13, %v12953_v41 }
 0x2de   :  { %11703 = vmatprep.subr.bf16.mxu1 %v12656_v18  ;;  %v12694_v18 = vld [vmem:[%s15636_s1 + $0x18f8] sm:$0xff]  }
 0x2df   :  { %11682 = vmatpush3.bf16.msra.mxu0 %v12655_v17  ;;  %v730_v17 = vpack.c.bf16 %v480_v11, %v480_v11  ;;  %v731_v19 = vpack.c.bf16 %v488_v15, %v488_v15  ;;  %v489_v20 = vcombine.high %v487_v16, %v487_v16  ;;  %v12729_v15 = vld [vmem:[%s15636_s1 + $0x1970] sm:$0xff]  }
 0x2e0   :  { %11711 = vmatprep.subr.bf16.mxu0 %v12658_v23  ;;  %v732_v23 = vpack.c.bf16 %v487_v16, %v487_v16 }
 0x2e1   :  { %11704 = vmatpush3.bf16.msra.mxu1 %v12657_v21  ;;  %v12693_v21 = vld [vmem:[%s15636_s1 + $0x1838] sm:$0xff]   ;;  %v733_v25 = vpack.c.bf16 %v489_v20, %v489_v20  ;;  %v12731_v20 = vld [vmem:[%s15636_s1 + $0x19f0] sm:$0xff]  }
 0x2e2   :  { %v11419_v34 = vpop.f32.mrf.mxu0  ;;  %9276 = vmatmul.mubr.bf16.vlgmr.msra.gmra.mxu0 %v726_v27  ;;  %11733 = vmatprep.subr.bf16.mxu1 %v12661_v28 }
 0x2e3   :  { %11712 = vmatpush3.bf16.msra.mxu0 %v12660_v26  ;;  %9355 = vmatprep.mubr.bf16.mxu0 %v731_v19  ;;  %v12695_v26 = vld [vmem:[%s15636_s1 + $0x18b8] sm:$0xff]  }
 0x2e4   :  { %v11441_v37 = vpop.f32.mrf.mxu1  ;;  %v11420_v39 = vpop.f32.mrf.mxu0  ;;  %9316 = vmatmul.mubr.bf16.vlgmr.msra.gmra.mxu1 %v728_v32  ;;  %11713 = vmatprep.subr.bf16.mxu0 %v12663_v33 }
 0x2e5   :  { %v11421_v42 = vadd.f32 %v11420_v39, %v11419_v34  ;;  %11734 = vmatpush3.bf16.msra.mxu1 %v12662_v31  ;;  %9395 = vmatprep.mubr.bf16.mxu1 %v733_v25  ;;  %v12697_v31 = vld [vmem:[%s15636_s1 + $0x1830] sm:$0xff]   ;;  %v12700_v34 = vld [vmem:[%s15636_s1 + $0x1868] sm:$0xff]  }
 0x2e6   :  { %v11442_v43 = vpop.f32.mrf.mxu1  ;;  %v11422_v45 = vpop.f32.mrf.mxu0  ;;  %11735 = vmatprep.subr.bf16.mxu1 %v12665_v38  ;;  %v12702_v39 = vld [vmem:[%s15636_s1 + $0x18e8] sm:$0xff]  }
 0x2e7   :  { %v11443_v46 = vadd.f32 %v11442_v43, %v11441_v37  ;;  %v8798_v48 = vadd.f32 %v11421_v42, %v15156_v62  ;;  %11714 = vmatpush3.bf16.msra.mxu0 %v12664_v36  ;;  %v12678_v62 = vld [vmem:[%s15636_s1 + $0x1798] sm:$0xff]   ;;  %v12699_v37 = vld [vmem:[%s15636_s1 + $0x18b0] sm:$0xff]   ;;  %v12701_v43 = vld [vmem:[%s15636_s1 + $0x1828] sm:$0xff]  }
 0x2e8   :  { %v11444_v50 = vpop.f32.mrf.mxu1  ;;  %v11423_v51 = vpop.f32.mrf.mxu0  ;;  %11715 = vmatprep.subr.bf16.mxu0 %v12667_v44  ;;  %v12704_v44 = vld [vmem:[%s15636_s1 + $0x1860] sm:$0xff]   ;;  %v12733_v25 = vld [vmem:[%s15636_s1 + $0x1968] sm:$0xff]  }
 0x2e9   :  { %v15260_v53 = vadd.f32 %v11443_v46, %v8798_v48  ;;  %11736 = vmatpush3.bf16.msra.mxu1 %v12666_v40  ;;  %v12703_v46 = vld [vmem:[%s15636_s1 + $0x18a8] sm:$0xff]   ;;  %v12705_v48 = vld [vmem:[%s15636_s1 + $0x1820] sm:$0xff]   ;;  %v12710_v51 = vld [vmem:[%s15636_s1 + $0x18d8] sm:$0xff]  }
 0x2ea   :  { %v11445_v55 = vpop.f32.mrf.mxu1  ;;  %11737 = vmatprep.subr.bf16.mxu1 %v12669_v49  ;;  %v12708_v49 = vld [vmem:[%s15636_s1 + $0x1858] sm:$0xff]   ;;  %v12707_v50 = vld [vmem:[%s15636_s1 + $0x18a0] sm:$0xff]  }
 0x2eb   :  { %11716 = vmatpush3.bf16.msra.mxu0 %v12668_v47  ;;  %v12706_v47 = vld [vmem:[%s15636_s1 + $0x18e0] sm:$0xff]   ;;  %v12714_v55 = vld [vmem:[%s15636_s1 + $0x18d0] sm:$0xff]  }
 0x2ec   :  { %11717 = vmatprep.subr.bf16.mxu0 %v12671_v54  ;;  %v12711_v54 = vld [vmem:[%s15636_s1 + $0x1898] sm:$0xff]  }
 0x2ed   :  { %11738 = vmatpush3.bf16.msra.mxu1 %v12670_v52  ;;  %v12709_v52 = vld [vmem:[%s15636_s1 + $0x1818] sm:$0xff]  }
 0x2ee   :  { %11739 = vmatprep.subr.bf16.mxu1 %v12673_v57  ;;  %v12716_v57 = vld [vmem:[%s15636_s1 + $0x1848] sm:$0xff]  }
 0x2ef   :  { %11718 = vmatpush3.bf16.msra.mxu0 %v12672_v56  ;;  %v12713_v56 = vld [vmem:[%s15636_s1 + $0x1810] sm:$0xff]  }
 0x2f0   :  { %11719 = vmatprep.subr.bf16.mxu0 %v12675_v59  ;;  %v12718_v59 = vld [vmem:[%s15636_s1 + $0x18c8] sm:$0xff]  }
 0x2f1   :  { %11740 = vmatpush3.bf16.msra.mxu1 %v12674_v58  ;;  %v12715_v58 = vld [vmem:[%s15636_s1 + $0x1890] sm:$0xff]  }
 0x2f2   :  { %11741 = vmatprep.subr.bf16.mxu1 %v12677_v61  ;;  %v12720_v61 = vld [vmem:[%s15636_s1 + $0x1840] sm:$0xff]  }
 0x2f3   :  { %11720 = vmatpush3.bf16.msra.mxu0 %v12676_v60  ;;  %v12717_v60 = vld [vmem:[%s15636_s1 + $0x1808] sm:$0xff]  }
 0x2f4   :  { %11721 = vmatprep.subr.bf16.mxu0 %v12679_v63  ;;  %v12722_v63 = vld [vmem:[%s15636_s1 + $0x18c0] sm:$0xff]  }
 0x2f5   :  { %11742 = vmatpush3.bf16.msra.mxu1 %v12678_v62  ;;  %v12719_v62 = vld [vmem:[%s15636_s1 + $0x1888] sm:$0xff]  }
 0x2f6   :  { %11743 = vmatprep.subr.bf16.mxu1 %v12681_v1  ;;  %v12721_v1 = vld [vmem:[%s15636_s1 + $0x1800] sm:$0xff]  }
 0x2f7   :  { %11722 = vmatpush3.bf16.msra.mxu0 %v12680_v0  ;;  %v52_v0 = vld [vmem:[%s15635_s0 + $0xc0] sm:$0xff] }
 0x2f8   :  { %11723 = vmatprep.subr.bf16.mxu0 %v12683_v3  ;;  %v490_v3 = vcombine.high %v52_v0, %v52_v0 }
 0x2f9   :  { %11744 = vmatpush3.bf16.msra.mxu1 %v12682_v2  ;;  %v497_v2 = vrot.slane %v52_v0, %v12953_v41 }
 0x2fa   :  { %11745 = vmatprep.subr.bf16.mxu1 %v12685_v5 }
 0x2fb   :  { %11724 = vmatpush3.bf16.msra.mxu0 %v12684_v4  ;;  %v12724_v4 = vld [vmem:[%s15636_s1 + $0x1978] sm:$0xff]   ;;  %v505_v5 = vcombine.high %v497_v2, %v497_v2 }
 0x2fc   :  { %11725 = vmatprep.subr.bf16.mxu0 %v12687_v7  ;;  %v504_v7 = vrot.slane %v490_v3, %v12953_v41  ;;  %v12804_v3 = vmov 0  }
 0x2fd   :  { %11746 = vmatpush3.bf16.msra.mxu1 %v12686_v6  ;;  %v12723_v6 = vld [vmem:[%s15636_s1 + $0x1880] sm:$0xff]   ;;  %v735_v10 = vpack.c.bf16 %v505_v5, %v505_v5 }
 0x2fe   :  { %11747 = vmatprep.subr.bf16.mxu1 %v12689_v9  ;;  %v12727_v9 = vld [vmem:[%s15636_s1 + $0x19f8] sm:$0xff]   ;;  %v506_v11 = vcombine.high %v504_v7, %v504_v7 }
 0x2ff   :  { %11726 = vmatpush3.bf16.msra.mxu0 %v12688_v8  ;;  %v734_v8 = vpack.c.bf16 %v497_v2, %v497_v2 }
 0x300   :  { %11755 = vmatprep.subr.bf16.mxu0 %v12691_v14  ;;  %v736_v14 = vpack.c.bf16 %v504_v7, %v504_v7  ;;  %v737_v16 = vpack.c.bf16 %v506_v11, %v506_v11 }
 0x301   :  { %11748 = vmatpush3.bf16.msra.mxu1 %v12690_v12  ;;  %v12726_v12 = vld [vmem:[%s15636_s1 + $0x1938] sm:$0xff]  }
 0x302   :  { %v11463_v22 = vpop.f32.mrf.mxu0  ;;  %11777 = vmatprep.subr.bf16.mxu1 %v12694_v18  ;;  %9356 = vmatmul.mubr.bf16.vlgmr.msra.gmra.mxu0 %v730_v17  ;;  %v12728_v17 = vld [vmem:[%s15636_s1 + $0x19b8] sm:$0xff]  }
 0x303   :  { %11756 = vmatpush3.bf16.msra.mxu0 %v12693_v21  ;;  %9435 = vmatprep.mubr.bf16.mxu0 %v735_v10 }
 0x304   :  { %v11464_v27 = vpop.f32.mrf.mxu0  ;;  %v11485_v28 = vpop.f32.mrf.mxu1  ;;  %9396 = vmatmul.mubr.bf16.vlgmr.msra.gmra.mxu1 %v732_v23  ;;  %11757 = vmatprep.subr.bf16.mxu0 %v12696_v24 }
 0x305   :  { %v11465_v30 = vadd.f32 %v11464_v27, %v11463_v22  ;;  %11778 = vmatpush3.bf16.msra.mxu1 %v12695_v26  ;;  %9475 = vmatprep.mubr.bf16.mxu1 %v737_v16  ;;  %v12730_v22 = vld [vmem:[%s15636_s1 + $0x1930] sm:$0xff]  }
 0x306   :  { %v11466_v32 = vpop.f32.mrf.mxu0  ;;  %v11486_v33 = vpop.f32.mrf.mxu1  ;;  %11779 = vmatprep.subr.bf16.mxu1 %v12698_v29 }
 0x307   :  { %v8878_v35 = vadd.f32 %v11465_v30, %v15260_v53  ;;  %v11487_v36 = vadd.f32 %v11486_v33, %v11485_v28  ;;  %11758 = vmatpush3.bf16.msra.mxu0 %v12697_v31  ;;  %v12712_v53 = vld [vmem:[%s15636_s1 + $0x1850] sm:$0xff]   ;;  %v12735_v30 = vld [vmem:[%s15636_s1 + $0x19e8] sm:$0xff]  }
 0x308   :  { %v11467_v38 = vpop.f32.mrf.mxu0  ;;  %v11488_v40 = vpop.f32.mrf.mxu1  ;;  %11759 = vmatprep.subr.bf16.mxu0 %v12700_v34  ;;  %v12732_v28 = vld [vmem:[%s15636_s1 + $0x19b0] sm:$0xff]   ;;  %v12734_v33 = vld [vmem:[%s15636_s1 + $0x1928] sm:$0xff]   ;;  %v12737_v34 = vld [vmem:[%s15636_s1 + $0x1960] sm:$0xff]  }
 0x309   :  { %v15358_v42 = vadd.f32 %v11487_v36, %v8878_v35  ;;  %11780 = vmatpush3.bf16.msra.mxu1 %v12699_v37  ;;  %v12736_v36 = vld [vmem:[%s15636_s1 + $0x19a8] sm:$0xff]   ;;  %v12739_v37 = vld [vmem:[%s15636_s1 + $0x19e0] sm:$0xff]  }
 0x30a   :  { %v11489_v45 = vpop.f32.mrf.mxu1  ;;  %11781 = vmatprep.subr.bf16.mxu1 %v12702_v39  ;;  %v12738_v38 = vld [vmem:[%s15636_s1 + $0x1920] sm:$0xff]   ;;  %v12741_v39 = vld [vmem:[%s15636_s1 + $0x1958] sm:$0xff]  }
 0x30b   :  { %11760 = vmatpush3.bf16.msra.mxu0 %v12701_v43  ;;  %v12740_v40 = vld [vmem:[%s15636_s1 + $0x19a0] sm:$0xff]   ;;  %v12742_v43 = vld [vmem:[%s15636_s1 + $0x1918] sm:$0xff]  }
 0x30c   :  { %11761 = vmatprep.subr.bf16.mxu0 %v12704_v44  ;;  %v12745_v44 = vld [vmem:[%s15636_s1 + $0x1950] sm:$0xff]   ;;  %v12744_v45 = vld [vmem:[%s15636_s1 + $0x1998] sm:$0xff]  }
 0x30d   :  { %11782 = vmatpush3.bf16.msra.mxu1 %v12703_v46  ;;  %v12747_v46 = vld [vmem:[%s15636_s1 + $0x19d0] sm:$0xff]  }
 0x30e   :  { %11783 = vmatprep.subr.bf16.mxu1 %v12706_v47  ;;  %v12746_v47 = vld [vmem:[%s15636_s1 + $0x1910] sm:$0xff]  }
 0x30f   :  { %11762 = vmatpush3.bf16.msra.mxu0 %v12705_v48  ;;  %v12749_v48 = vld [vmem:[%s15636_s1 + $0x1948] sm:$0xff]  }
 0x310   :  { %11763 = vmatprep.subr.bf16.mxu0 %v12708_v49  ;;  %v12748_v49 = vld [vmem:[%s15636_s1 + $0x1990] sm:$0xff]  }
 0x311   :  { %11784 = vmatpush3.bf16.msra.mxu1 %v12707_v50  ;;  %v12751_v50 = vld [vmem:[%s15636_s1 + $0x19c8] sm:$0xff]  }
 0x312   :  { %11785 = vmatprep.subr.bf16.mxu1 %v12710_v51  ;;  %v12750_v51 = vld [vmem:[%s15636_s1 + $0x1908] sm:$0xff]  }
 0x313   :  { %11764 = vmatpush3.bf16.msra.mxu0 %v12709_v52  ;;  %v12753_v52 = vld [vmem:[%s15636_s1 + $0x1940] sm:$0xff]  }
 0x314   :  { %11765 = vmatprep.subr.bf16.mxu0 %v12712_v53  ;;  %v12752_v53 = vld [vmem:[%s15636_s1 + $0x1988] sm:$0xff]  }
 0x315   :  { %11786 = vmatpush3.bf16.msra.mxu1 %v12711_v54  ;;  %v12755_v54 = vld [vmem:[%s15636_s1 + $0x19c0] sm:$0xff]  }
 0x316   :  { %11787 = vmatprep.subr.bf16.mxu1 %v12714_v55  ;;  %v53_v55 = vld [vmem:[%s15635_s0 + $0xc8] sm:$0xff] }
 0x317   :  { %11766 = vmatpush3.bf16.msra.mxu0 %v12713_v56  ;;  %v12754_v56 = vld [vmem:[%s15636_s1 + $0x1900] sm:$0xff]  }
 0x318   :  { %11767 = vmatprep.subr.bf16.mxu0 %v12716_v57  ;;  %v514_v57 = vrot.slane %v53_v55, %v12953_v41 }
 0x319   :  { %11788 = vmatpush3.bf16.msra.mxu1 %v12715_v58  ;;  %v507_v58 = vcombine.high %v53_v55, %v53_v55 }
 0x31a   :  { %11789 = vmatprep.subr.bf16.mxu1 %v12718_v59  ;;  %v522_v59 = vcombine.high %v514_v57, %v514_v57 }
 0x31b   :  { %11768 = vmatpush3.bf16.msra.mxu0 %v12717_v60  ;;  %v12756_v60 = vld [vmem:[%s15636_s1 + $0x1980] sm:$0xff]  }
 0x31c   :  { %11769 = vmatprep.subr.bf16.mxu0 %v12720_v61  ;;  %v521_v61 = vrot.slane %v507_v58, %v12953_v41 }
 0x31d   :  { %11790 = vmatpush3.bf16.msra.mxu1 %v12719_v62  ;;  %v738_v62 = vpack.c.bf16 %v514_v57, %v514_v57 }
 0x31e   :  { %11791 = vmatprep.subr.bf16.mxu1 %v12722_v63  ;;  %v739_v63 = vpack.c.bf16 %v522_v59, %v522_v59  ;;  %v523_v0 = vcombine.high %v521_v61, %v521_v61 }
 0x31f   :  { %11770 = vmatpush3.bf16.msra.mxu0 %v12721_v1  ;;  %v12758_v1 = vld [vmem:[%s15636_s1 + $0x1a38] sm:$0xff]  }
 0x320   :  { %11799 = vmatprep.subr.bf16.mxu0 %v12724_v4  ;;  %v740_v4 = vpack.c.bf16 %v521_v61, %v521_v61  ;;  %v741_v5 = vpack.c.bf16 %v523_v0, %v523_v0 }
 0x321   :  { %11792 = vmatpush3.bf16.msra.mxu1 %v12723_v6 }
 0x322   :  { %v11507_v13 = vpop.f32.mrf.mxu0  ;;  %9436 = vmatmul.mubr.bf16.vlgmr.msra.gmra.mxu0 %v734_v8  ;;  %11821 = vmatprep.subr.bf16.mxu1 %v12727_v9  ;;  %v12759_v8 = vld [vmem:[%s15636_s1 + $0x1a30] sm:$0xff]  }
 0x323   :  { %11800 = vmatpush3.bf16.msra.mxu0 %v12726_v12  ;;  %9515 = vmatprep.mubr.bf16.mxu0 %v739_v63 }
 0x324   :  { %v11508_v18 = vpop.f32.mrf.mxu0  ;;  %v11529_v19 = vpop.f32.mrf.mxu1  ;;  %9476 = vmatmul.mubr.bf16.vlgmr.msra.gmra.mxu1 %v736_v14  ;;  %11801 = vmatprep.subr.bf16.mxu0 %v12729_v15  ;;  %v9837_v14 = vld.sshfl [vmem:[%s15635_s0 + $0xd0] sm:$0x33 pattern:$0x76325410] }
 0x325   :  { %v11509_v21 = vadd.f32 %v11508_v18, %v11507_v13  ;;  %11822 = vmatpush3.bf16.msra.mxu1 %v12728_v17  ;;  %9555 = vmatprep.mubr.bf16.mxu1 %v741_v5  ;;  %v12760_v13 = vld [vmem:[%s15636_s1 + $0x1a28] sm:$0xff]   ;;  %v531_v17 = vcombine.high %v9837_v14, %v9837_v14 }
 0x326   :  { %v11510_v23 = vpop.f32.mrf.mxu0  ;;  %v11530_v24 = vpop.f32.mrf.mxu1  ;;  %11823 = vmatprep.subr.bf16.mxu1 %v12731_v20 }
 0x327   :  { %v8958_v26 = vadd.f32 %v11509_v21, %v15358_v42  ;;  %v11531_v27 = vadd.f32 %v11530_v24, %v11529_v19  ;;  %11802 = vmatpush3.bf16.msra.mxu0 %v12730_v22  ;;  %v12743_v42 = vld [vmem:[%s15636_s1 + $0x19d8] sm:$0xff]   ;;  %v743_v20 = vpack.c.bf16 %v531_v17, %v531_v17  ;;  %v12761_v21 = vld [vmem:[%s15636_s1 + $0x1a20] sm:$0xff]  }
 0x328   :  { %v11511_v29 = vpop.f32.mrf.mxu0  ;;  %v11532_v31 = vpop.f32.mrf.mxu1  ;;  %11803 = vmatprep.subr.bf16.mxu0 %v12733_v25 }
 0x329   :  { %v15462_v32 = vadd.f32 %v11531_v27, %v8958_v26  ;;  %11824 = vmatpush3.bf16.msra.mxu1 %v12732_v28 }
 0x32a   :  { %v11533_v35 = vpop.f32.mrf.mxu1  ;;  %11825 = vmatprep.subr.bf16.mxu1 %v12735_v30 }
 0x32b   :  { %11804 = vmatpush3.bf16.msra.mxu0 %v12734_v33 }
 0x32c   :  { %11805 = vmatprep.subr.bf16.mxu0 %v12737_v34 }
 0x32d   :  { %11826 = vmatpush3.bf16.msra.mxu1 %v12736_v36 }
 0x32e   :  { %11827 = vmatprep.subr.bf16.mxu1 %v12739_v37 }
 0x32f   :  { %11806 = vmatpush3.bf16.msra.mxu0 %v12738_v38 }
 0x330   :  { %11807 = vmatprep.subr.bf16.mxu0 %v12741_v39 }
 0x331   :  { %11828 = vmatpush3.bf16.msra.mxu1 %v12740_v40 }
 0x332   :  { %11829 = vmatprep.subr.bf16.mxu1 %v12743_v42 }
 0x333   :  { %11808 = vmatpush3.bf16.msra.mxu0 %v12742_v43 }
 0x334   :  { %11809 = vmatprep.subr.bf16.mxu0 %v12745_v44 }
 0x335   :  { %11830 = vmatpush3.bf16.msra.mxu1 %v12744_v45 }
 0x336   :  { %11831 = vmatprep.subr.bf16.mxu1 %v12747_v46 }
 0x337   :  { %11810 = vmatpush3.bf16.msra.mxu0 %v12746_v47 }
 0x338   :  { %11811 = vmatprep.subr.bf16.mxu0 %v12749_v48 }
 0x339   :  { %11832 = vmatpush3.bf16.msra.mxu1 %v12748_v49 }
 0x33a   :  { %11833 = vmatprep.subr.bf16.mxu1 %v12751_v50 }
 0x33b   :  { %11812 = vmatpush3.bf16.msra.mxu0 %v12750_v51 }
 0x33c   :  { %11813 = vmatprep.subr.bf16.mxu0 %v12753_v52 }
 0x33d   :  { %11834 = vmatpush3.bf16.msra.mxu1 %v12752_v53 }
 0x33e   :  { %11835 = vmatprep.subr.bf16.mxu1 %v12755_v54 }
 0x33f   :  { %11814 = vmatpush3.bf16.msra.mxu0 %v12754_v56 }
 0x340   :  { %9563 = vmatprep.subr.bf16.mxu0 %v12804_v3 }
 0x341   :  { %11836 = vmatpush3.bf16.msra.mxu1 %v12756_v60 }
 0x342   :  { %v11551_v2 = vpop.f32.mrf.mxu0  ;;  %9516 = vmatmul.mubr.bf16.vlgmr.msra.gmra.mxu0 %v738_v62 }
 0x343   :  { %9564 = vmatpush1.bf16.msra.mxu0 %v12758_v1  ;;  %10680 = vmatprep.mubr.msk.bf16.mxu0 %vm7479_vm0, %v743_v20 }
 0x344   :  { %v11552_v6 = vpop.f32.mrf.mxu0  ;;  %v11573_v7 = vpop.f32.mrf.mxu1  ;;  %9556 = vmatmul.mubr.bf16.vlgmr.msra.gmra.mxu1 %v740_v4  ;;  %9565 = vmatprep.subr.bf16.mxu0 %v12804_v3 }
 0x345   :  { %v11553_v41 = vadd.f32 %v11552_v6, %v11551_v2 }
 0x346   :  { %v11554_v9 = vpop.f32.mrf.mxu0  ;;  %v11574_v10 = vpop.f32.mrf.mxu1 }
 0x347   :  { %v9038_v11 = vadd.f32 %v11553_v41, %v15462_v32  ;;  %v11575_v12 = vadd.f32 %v11574_v10, %v11573_v7  ;;  %9566 = vmatpush1.bf16.msra.mxu0 %v12759_v8 }
 0x348   :  { %v11555_v15 = vpop.f32.mrf.mxu0  ;;  %v11576_v16 = vpop.f32.mrf.mxu1  ;;  %9567 = vmatprep.subr.bf16.mxu0 %v12804_v3 }
 0x349   :  { %v9078_v18 = vadd.f32 %v11575_v12, %v9038_v11 }
 0x34a   :  { %v11577_v19 = vpop.f32.mrf.mxu1 }
 0x34b   :  { %9568 = vmatpush1.bf16.msra.mxu0 %v12760_v13 }
 0x34c   :  { %9569 = vmatprep.subr.bf16.mxu0 %v12804_v3 }
 0x34d   :  { %12 = vsyncpa [#allocation3], 0  ;;  %v12762_v22 = vld [vmem:[%s15636_s1 + $0x1a18] sm:$0xff]   ;;  %v12763_v23 = vld [vmem:[%s15636_s1 + $0x1a10] sm:$0xff]   ;;  %v742_v28 = vpack.c.bf16 %v9837_v14, %v9837_v14  ;;  %vm9676_vm1 = vcmask 1043456   ;;  %v12805_v54 = vmov 0.0  }
 0x34e   :  { %v12764_v24 = vld [vmem:[%s15636_s1 + $0x1a08] sm:$0xff]   ;;  %v12765_v25 = vld [vmem:[%s15636_s1 + $0x1a00] sm:$0xff]   ;;  %v12767_v52 = vld [vmem:[%s15638_s3 + $0x38] ss:$0 sps:$4 sm:$0xff]   ;;  %11859 = vmatprep.subr.bf16.mxu1 %v12805_v54  ;;  %vm12806_vm2 = vmmov 0   ;;  %vm9777_vm3 = vcmask 1041408  }
 0x34f   :  { %9570 = vmatpush1.bf16.msra.mxu0 %v12761_v21  ;;  %v12766_v26 = vld [vmem:[%s15636_s1 + $0x1a40] sm:$0xff]   ;;  %v9678_v55 = vsel %vm9676_vm1, %v12767_v52, 0  ;;  %v12768_v56 = vld [vmem:[%s15638_s3 + $0x30] sm:$0xff]   ;;  %v12769_v57 = vld [vmem:[%s15638_s3 + $0x28] sm:$0xff]   ;;  %11875 = vmatprep.mubr.msk.bf16.mxu1 %vm12806_vm2, %v12805_v54  ;;  %vm9672_vm4 = vcmask 982016   ;;  %vm9773_vm5 = vcmask 687104  }
 0x350   :  { %9571 = vmatprep.subr.bf16.mxu0 %v12804_v3  ;;  %11860 = vmatpush3.bf16.msra.mxu1 %v9678_v55  ;;  %v12770_v58 = vld [vmem:[%s15638_s3 + $0x20] sm:$0xff]   ;;  %v12771_v59 = vld [vmem:[%s15638_s3 + $0x18] sm:$0xff]   ;;  %v12772_v60 = vld [vmem:[%s15638_s3 + $0x10] sm:$0xff]   ;;  %s12807_s10 = smov [#allocation2]   ;;  %vm9821_vm6 = vcmask 74752  }
 0x351   :  { %11861 = vmatprep.subr.bf16.mxu1 %v12805_v54  ;;  %v12773_v1 = vld [vmem:[%s15638_s3 + $0x8] sm:$0xff]   ;;  %v12774_v8 = vld [vmem:[%s15638_s3] sm:$0xff]  }
 0x353   :  { %9572 = vmatpush1.bf16.msra.mxu0 %v12762_v22 }
 0x354   :  { %9573 = vmatprep.subr.bf16.mxu0 %v12804_v3  ;;  %11862 = vmatpush3.bf16.msra.mxu1 %v12768_v56 }
 0x355   :  { %11863 = vmatprep.subr.bf16.mxu1 %v12805_v54 }
 0x357   :  { %9574 = vmatpush1.bf16.msra.mxu0 %v12763_v23 }
 0x358   :  { %9575 = vmatprep.subr.bf16.mxu0 %v12804_v3  ;;  %11864 = vmatpush3.bf16.msra.mxu1 %v12769_v57  ;;  %v12776_v57 = vld [vmem:[%s15640_s5 + $0x20] sm:$0xff]  }
 0x359   :  { %11865 = vmatprep.subr.bf16.mxu1 %v12805_v54 }
 0x35b   :  { %9576 = vmatpush1.bf16.msra.mxu0 %v12764_v24 }
 0x35c   :  { %9577 = vmatprep.subr.bf16.mxu0 %v12804_v3  ;;  %11866 = vmatpush3.bf16.msra.mxu1 %v12770_v58  ;;  %v12777_v58 = vld [vmem:[%s15640_s5 + $0x18] sm:$0xff]  }
 0x35d   :  { %11867 = vmatprep.subr.bf16.mxu1 %v12805_v54 }
 0x35f   :  { %9578 = vmatpush1.bf16.msra.mxu0 %v12765_v25 }
 0x360   :  { %9593 = vmatprep.subr.bf16.mxu0 %v12804_v3  ;;  %11868 = vmatpush3.bf16.msra.mxu1 %v12771_v59  ;;  %v12778_v59 = vld [vmem:[%s15640_s5 + $0x10] sm:$0xff]  }
 0x361   :  { %11869 = vmatprep.subr.bf16.mxu1 %v12805_v54 }
 0x362   :  { %v11595_v27 = vpop.f32.mrf.mxu0 }
 0x363   :  { %9594 = vmatpush2.bf16.msra.mxu0 %v12766_v26 }
 0x364   :  { %v11596_v29 = vpop.f32.mrf.mxu0  ;;  %v11617_v30 = vpop.f32.mrf.mxu1  ;;  %11870 = vmatpush3.bf16.msra.mxu1 %v12772_v60  ;;  %v12779_v60 = vld [vmem:[%s15640_s5 + $0x8] sm:$0xff]  }
 0x365   :  { %v11597_v31 = vadd.f32 %v11596_v29, %v11595_v27  ;;  %11871 = vmatprep.subr.bf16.mxu1 %v12805_v54 }
 0x366   :  { %v11598_v32 = vpop.f32.mrf.mxu0  ;;  %v11618_v33 = vpop.f32.mrf.mxu1  ;;  %9596 = vmatmul.mubr.bf16.vlgmr.msra.gmra.mxu0 %v742_v28 }
 0x367   :  { %v9118_v34 = vadd.f32 %v11597_v31, %v9078_v18  ;;  %v11619_v35 = vadd.f32 %v11618_v33, %v11617_v30 }
 0x368   :  { %v11599_v36 = vpop.f32.mrf.mxu0  ;;  %v11620_v37 = vpop.f32.mrf.mxu1  ;;  %11872 = vmatpush3.bf16.msra.mxu1 %v12773_v1 }
 0x369   :  { %v9158_v38 = vadd.f32 %v11619_v35, %v9118_v34  ;;  %11873 = vmatprep.subr.bf16.mxu1 %v12805_v54 }
 0x36a   :  { %v11621_v39 = vpop.f32.mrf.mxu1 }
 0x36c   :  { %11874 = vmatpush3.bf16.msra.mxu1 %v12774_v8 }
 0x36d   :  { %11879 = vmatprep.subr.bf16.mxu1 %v12805_v54 }
 0x382   :  { %v11639_v40 = vpop.f32.mrf.mxu0 }
 0x384   :  { %v11640_v42 = vpop.f32.mrf.mxu0  ;;  %v11661_v43 = vpop.f32.mrf.mxu1 }
 0x385   :  { %v11641_v44 = vadd.f32 %v11640_v42, %v11639_v40 }
 0x386   :  { %v11642_v45 = vpop.f32.mrf.mxu0  ;;  %v11662_v46 = vpop.f32.mrf.mxu1 }
 0x387   :  { %v9198_v47 = vadd.f32 %v11641_v44, %v9158_v38  ;;  %v11663_v48 = vadd.f32 %v11662_v46, %v11661_v43 }
 0x388   :  { %v11643_v49 = vpop.f32.mrf.mxu0  ;;  %v11664_v50 = vpop.f32.mrf.mxu1 }
 0x389   :  { %v9238_v51 = vadd.f32 %v11663_v48, %v9198_v47  ;;  %v12775_v49 = vld [vmem:[%s15640_s5 + $0x28] ss:$0 sps:$4 sm:$0x33]  }
 0x38a   :  { %v11665_v53 = vpop.f32.mrf.mxu1  ;;  %v9779_v55 = vsel %vm9777_vm3, %v12775_v49, 0 }
 0x3a2   :  { %v11683_v61 = vpop.f32.mrf.mxu0 }
 0x3a4   :  { %v11684_v62 = vpop.f32.mrf.mxu0  ;;  %v11705_v63 = vpop.f32.mrf.mxu1 }
 0x3a5   :  { %v11685_v0 = vadd.f32 %v11684_v62, %v11683_v61  ;;  %v12780_v61 = vld [vmem:[%s15640_s5] sm:$0xff]   ;;  %s9829_s5 = sshll.u32 %s12807_s10, 4  ;;  %s9830_s5 = int_to_ptr.vmem [resolvable:$true] %s9829_s5 }
 0x3a6   :  { %v11686_v2 = vpop.f32.mrf.mxu0  ;;  %v11706_v3 = vpop.f32.mrf.mxu1  ;;  %v10681_v62 = vld [vmem:[%s15639_s4] ss:$0 sm:$0xff]  ;;  %s12781_s4 = scalar_lea.vmem %s9830_s5, 32  ;;  %p12786_p1 = scmp.lt.s32.totalorder %s9830_s5, %s9830_s5 }
 0x3a7   :  { %v9278_v4 = vadd.f32 %v11685_v0, %v9238_v51  ;;  %v11707_v5 = vadd.f32 %v11706_v3, %v11705_v63  ;;  %p12782_p0 = scmp.ne.s32.totalorder %s9830_s5, %s12781_s4  ;;  %p12787_p2 = scmp.lt.s32.totalorder %s12781_s4, %s12781_s4 }
 0x3a8   :  { %v11687_v6 = vpop.f32.mrf.mxu0  ;;  %v11708_v7 = vpop.f32.mrf.mxu1 }
 0x3a9   :  { %v9318_v41 = vadd.f32 %v11707_v5, %v9278_v4  ;;  %p12788_p3 = por %p12787_p2, %p12786_p1 }
 0x3aa   :  { %v11709_v9 = vpop.f32.mrf.mxu1 }
 0x3ab   :  { %p12789_p4 = pnand %p12788_p3, %p12782_p0 }
 0x3c2   :  { %v11727_v10 = vpop.f32.mrf.mxu0 }
 0x3c4   :  { %v11728_v11 = vpop.f32.mrf.mxu0  ;;  %v11749_v12 = vpop.f32.mrf.mxu1 }
 0x3c5   :  { %v11729_v13 = vadd.f32 %v11728_v11, %v11727_v10 }
 0x3c6   :  { %v11730_v14 = vpop.f32.mrf.mxu0  ;;  %v11750_v15 = vpop.f32.mrf.mxu1 }
 0x3c7   :  { %v9358_v16 = vadd.f32 %v11729_v13, %v9318_v41  ;;  %v11751_v17 = vadd.f32 %v11750_v15, %v11749_v12 }
 0x3c8   :  { %v11731_v18 = vpop.f32.mrf.mxu0  ;;  %v11752_v19 = vpop.f32.mrf.mxu1 }
 0x3c9   :  { %v9398_v20 = vadd.f32 %v11751_v17, %v9358_v16 }
 0x3ca   :  { %v11753_v21 = vpop.f32.mrf.mxu1 }
 0x3e2   :  { %v11771_v22 = vpop.f32.mrf.mxu0 }
 0x3e4   :  { %v11772_v23 = vpop.f32.mrf.mxu0  ;;  %v11793_v24 = vpop.f32.mrf.mxu1 }
 0x3e5   :  { %v11773_v38 = vadd.f32 %v11772_v23, %v11771_v22 }
 0x3e6   :  { %v11774_v25 = vpop.f32.mrf.mxu0  ;;  %v11794_v26 = vpop.f32.mrf.mxu1 }
 0x3e7   :  { %v9438_v39 = vadd.f32 %v11773_v38, %v9398_v20  ;;  %v11795_v40 = vadd.f32 %v11794_v26, %v11793_v24 }
 0x3e8   :  { %v11775_v27 = vpop.f32.mrf.mxu0  ;;  %v11796_v28 = vpop.f32.mrf.mxu1 }
 0x3e9   :  { %v9478_v43 = vadd.f32 %v11795_v40, %v9438_v39 }
 0x3ea   :  { %v11797_v29 = vpop.f32.mrf.mxu1 }
 0x402   :  { %v11815_v30 = vpop.f32.mrf.mxu0 }
 0x404   :  { %v11816_v31 = vpop.f32.mrf.mxu0  ;;  %v11837_v32 = vpop.f32.mrf.mxu1 }
 0x405   :  { %v11817_v42 = vadd.f32 %v11816_v31, %v11815_v30 }
 0x406   :  { %v11818_v33 = vpop.f32.mrf.mxu0  ;;  %v11838_v34 = vpop.f32.mrf.mxu1 }
 0x407   :  { %v9518_v44 = vadd.f32 %v11817_v42, %v9478_v43  ;;  %v11839_v45 = vadd.f32 %v11838_v34, %v11837_v32 }
 0x408   :  { %v11819_v35 = vpop.f32.mrf.mxu0  ;;  %v11840_v36 = vpop.f32.mrf.mxu1 }
 0x409   :  { %v9558_v46 = vadd.f32 %v11839_v45, %v9518_v44 }
 0x40a   :  { %v11841_v37 = vpop.f32.mrf.mxu1 }
 0x426   :  { %v9597_v47 = vpop.f32.mrf.mxu0 }
 0x427   :  { %v9598_v48 = vadd.f32 %v9597_v47, %v9558_v46 }
 0x428   :  { %v9599_v50 = vpop.f32.mrf.mxu0 }
 0x429   :  { %v9603_v51 = vmax.f32 %v9598_v48, 0.0 }
 0x42a   :  { %v9600_v52 = vpop.f32.mrf.mxu0 }
 0x42b   :  { %v9604_v53 = vpack.c.bf16 %v9603_v51, %v9603_v51 }
 0x42c   :  { %v9601_v56 = vpop.f32.mrf.mxu0 }
 0x42d   :  { %11876 = vmatmul.mubr.msk.bf16.vlgmr.msra.gmra.mxu1 %vm9672_vm4, %v9604_v53 }
 0x42e   :  { %11880 = vmatpush3.bf16.msra.mxu1 %v9779_v55  ;;  %11891 = vmatprep.mubr.msk.bf16.mxu1 %vm12806_vm2, %v12805_v54 }
 0x42f   :  { %11881 = vmatprep.subr.bf16.mxu1 %v12805_v54 }
 0x432   :  { %11882 = vmatpush3.bf16.msra.mxu1 %v12776_v57 }
 0x433   :  { %11883 = vmatprep.subr.bf16.mxu1 %v12805_v54 }
 0x436   :  { %11884 = vmatpush3.bf16.msra.mxu1 %v12777_v58 }
 0x437   :  { %11885 = vmatprep.subr.bf16.mxu1 %v12805_v54 }
 0x43a   :  { %11886 = vmatpush3.bf16.msra.mxu1 %v12778_v59 }
 0x43b   :  { %11887 = vmatprep.subr.bf16.mxu1 %v12805_v54 }
 0x43e   :  { %11888 = vmatpush3.bf16.msra.mxu1 %v12779_v60 }
 0x43f   :  { %11889 = vmatprep.subr.bf16.mxu1 %v12805_v54  ;;  %v10691_v54 = vld [vmem:[%s15641_s6] ss:$0 sm:$0xff] }
 0x442   :  { %11890 = vmatpush3.bf16.msra.mxu1 %v12780_v61 }
 0x4ed   :  { %v9714_v63 = vpop.f32.mrf.mxu1 }
 0x4ee   :  { %v9715_v0 = vadd.f32 %v10681_v62, %v9714_v63 }
 0x4ef   :  { %v11877_v1 = vpop.f32.mrf.mxu1 }
 0x4f0   :  { %v9720_v2 = vmax.f32 %v9715_v0, 0.0 }
 0x4f1   :  { %v9717_v3 = vpop.f32.mrf.mxu1 }
 0x4f2   :  { %v9721_v4 = vpack.c.bf16 %v9720_v2, %v9720_v2 }
 0x4f3   :  { %v11878_v5 = vpop.f32.mrf.mxu1 }
 0x4f4   :  { %11892 = vmatmul.mubr.msk.bf16.vlgmr.msra.gmra.mxu1 %vm9773_vm5, %v9721_v4 }
 0x5b4   :  { %v9815_v6 = vpop.f32.mrf.mxu1 }
 0x5b5   :  { %v9816_v7 = vadd.f32 %v10691_v54, %v9815_v6 }
 0x5b6   :  { %v11893_v41 = vpop.f32.mrf.mxu1 }
 0x5b7   :  { %9822 = vst.msk [vmem:[#allocation2] sm:$0x3] %vm9821_vm6, %v9816_v7 }
 0x5b8   :  { %v9818_v8 = vpop.f32.mrf.mxu1 }
 0x5b9   :  { %12792 = shalt.err (!%p12789_p4)
}
 0x5ba   :  { %9832 = dma.vmem_to_hbm [thread:$0]  %s9830_s5, 32, %s15642_s7, [#allocation3]   ;;  %v11894_v9 = vpop.f32.mrf.mxu1 }
 0x5bb   :  { %12801 = dma.done.wait [#allocation3], 32  }
 0x5bc   :  { %12802 = vsyncadd [#allocation3], 4294967264 }
 0x5bd   :  { %9836 = vsyncpa [#allocation3], 1 }

</bundles_post_ra>
